<compile_context>
chip_gen: v6e
topology: v6e:2x2x1
jax: 0.10.0
libtpu: 0.0.40
codegen_flags: <defaults>
</compile_context>

<pallas_src>
import math
from dataclasses import dataclass
from functools import partial

import numpy as np
import jax
import jax.numpy as jnp
from jax import lax
from jax.experimental import pallas as pl
from jax.experimental.pallas import tpu as pltpu


@dataclass(frozen=True)
class DamoConfig:
    d_model: int = 32
    d_hidden: int = 32
    n_layers: int = 2
    n_heads: int = 4
    n_max_markers: int = 16
    n_joints: int = 4
    seq_len: int = 3


# ---------------------------------------------------------------------------
# The single fused kernel: one batch element per grid step.
# ---------------------------------------------------------------------------
def _damo_kernel(S, M, H, J, x_ref, mcol_ref, mrow_ref, *rest):
    (ew1_r, eb1_r, ew2_r, eb2_r, ews_r, ebs_r,
     wq_r, bq_r, wk_r, bk_r, wv_r, bv_r, wm_r, bm_r,
     wp1a_r, wp1b_r, bp1_r, wp2_r, bp2_r,
     wseq_r, bseq_r,
     wa_r, ba_r, wb_r, bb_r, wj_r, bj_r,
     wc_r, bc_r, wd_r, bd_r, wcs_r, bcs_r,
     wea_r, web_r, be_r, wf_r, bf_r, wesa_r, wesb_r, bes_r,
     wga_r, wgb_r, bg_r, wh_r, bh_r, wgsa_r, wgsb_r, bgs_r,
     o_ref) = rest

    L = wq_r.shape[0]
    D = wq_r.shape[-1]
    dk = D // H
    center = S // 2
    f32 = jnp.float32
    bf16 = jnp.bfloat16

    # single-pass bf16 MXU matmuls, f32 accumulation
    def dot(a, b):                                   # a @ b
        return lax.dot_general(a.astype(bf16), b.astype(bf16),
                               (((1,), (0,)), ((), ())),
                               preferred_element_type=f32)

    def dot_nt(a, b):                                # a @ b.T
        return lax.dot_general(a.astype(bf16), b.astype(bf16),
                               (((1,), (1,)), ((), ())),
                               preferred_element_type=f32)

    # ---- embedding: ResConv2DBlock(3 -> D) + ReLU on all S*M rows at once ----
    xf = x_ref[0]                                                   # (S*M, 3)
    h = jnp.maximum(dot(xf, ew1_r[...]) + eb1_r[...], 0.0)          # (S*M, dh)
    y = dot(h, ew2_r[...]) + eb2_r[...]
    y = y + dot(xf, ews_r[...]) + ebs_r[...]                        # conv shortcut
    feats_all = jnp.maximum(y, 0.0)                                 # (S*M, D)
    feats = [feats_all[s * M:(s + 1) * M, :] for s in range(S)]

    pmcol = mcol_ref[0]                                             # (S*M, 1)
    qmask = [pmcol[s * M:(s + 1) * M, :] != 0.0 for s in range(S)]  # (M,1) each
    krow = mrow_ref[0][center:center + 1, :] != 0.0                 # (1, M)

    inv_scale = 1.0 / math.sqrt(dk)

    # ---- LayeredMixedAttention: L layers x S MultiHeadAttention blocks ------
    # NOTE: fully-masked query rows get uniform attention over -1e9 scores
    # (garbage that is only zeroed by the center-frame mask at the head) --
    # this matches the reference; do not reorder the masking.
    for l in range(L):
        kv = feats[center]
        new_feats = []
        for s in range(S):
            xq = feats[s]
            mask2d = jnp.logical_and(qmask[s], krow)                # (M, M)
            q = dot(xq, wq_r[l, s]) + bq_r[l, s]                    # head-blocked cols
            k = dot(kv, wk_r[l, s]) + bk_r[l, s]
            v = dot(kv, wv_r[l, s]) + bv_r[l, s]
            merged = None
            for hd in range(H):
                lo = hd * dk
                qh = q[:, lo:lo + dk]
                kh = k[:, lo:lo + dk]
                vh = v[:, lo:lo + dk]
                sco = dot_nt(qh, kh) * inv_scale                    # (M, M)
                sco = jnp.where(mask2d, sco, -1e9)
                sco = sco - jnp.max(sco, axis=-1, keepdims=True)
                p = jnp.exp(sco)
                p = p * pl.reciprocal(jnp.sum(p, axis=-1, keepdims=True),
                                      approx=True)
                ah = dot(p, vh)                                     # (M, dk)
                contrib = dot(ah, wm_r[l, s, hd])                   # merge folded/head
                merged = contrib if merged is None else merged + contrib
            merged = merged + bm_r[l, s]
            # post_merge with input-channel-split weights (no lane concat)
            h1 = jnp.maximum(dot(merged, wp1a_r[l, s]) + dot(xq, wp1b_r[l, s])
                             + bp1_r[l, s], 0.0)
            new_feats.append(dot(h1, wp2_r[l, s]) + bp2_r[l, s])
        feats = new_feats

    # ---- post_attention_layer: 1x1 conv over the seq axis + ReLU ------------
    wseq = wseq_r[...]                                              # (S, 1, 1)
    acc = feats[0] * wseq[0]
    for s in range(1, S):
        acc = acc + feats[s] * wseq[s]
    cen = jnp.maximum(acc + bseq_r[...], 0.0)                       # (M, D)

    # ---- joint_feats_layer (leading ReLU is a no-op: cen >= 0 already) ------
    hj = jnp.maximum(dot(cen, wa_r[...]) + ba_r[...], 0.0)
    z = jnp.maximum(dot(hj, wb_r[...]) + bb_r[...] + cen, 0.0)      # identity shortcut
    mcf = dot(z, wj_r[...]) + bj_r[...]                             # (M, 4J)

    # ---- joint_indices_predictor --------------------------------------------
    m0 = jnp.maximum(mcf, 0.0)
    hji = jnp.maximum(dot(m0, wc_r[...]) + bc_r[...], 0.0)
    ji = (dot(hji, wd_r[...]) + bd_r[...]
          + dot(m0, wcs_r[...]) + bcs_r[...])                       # (M, J+1)

    # ---- weight_predictor (split inputs; softmax over the 3 channels) -------
    a0 = jnp.maximum(mcf[:, :J], 0.0)
    b0 = jnp.maximum(ji, 0.0)
    hw = jnp.maximum(dot(a0, wea_r[...]) + dot(b0, web_r[...]) + be_r[...], 0.0)
    wlog = (dot(hw, wf_r[...]) + bf_r[...]
            + dot(a0, wesa_r[...]) + dot(b0, wesb_r[...]) + bes_r[...])  # (M, 3)
    wlog = wlog - jnp.max(wlog, axis=1, keepdims=True)
    wexp = jnp.exp(wlog)
    weight = wexp * pl.reciprocal(jnp.sum(wexp, axis=1, keepdims=True),
                                  approx=True)

    # ---- offset_predictor (split inputs) ------------------------------------
    c0 = jnp.maximum(mcf[:, J:], 0.0)
    ho = jnp.maximum(dot(c0, wga_r[...]) + dot(b0, wgb_r[...]) + bg_r[...], 0.0)
    off = (dot(ho, wh_r[...]) + bh_r[...]
           + dot(c0, wgsa_r[...]) + dot(b0, wgsb_r[...]) + bgs_r[...])   # (M, 9)

    # ---- center-frame mask + one lane-dense padded output slab --------------
    cm = pmcol[center * M:(center + 1) * M, :]                      # (M, 1)
    pad_w = o_ref.shape[-1] - (J + 1 + 3 + 9)
    o_ref[0] = jnp.concatenate(
        [ji * cm, weight * cm, off * cm,
         jnp.zeros((M, pad_w), f32)], axis=1)


# ---------------------------------------------------------------------------
# compute_offsets: masked per-frame median of the non-zero markers.
# TODO(synk): data-dependent sort/selection has no clean Mosaic lowering; kept in XLA.
# ---------------------------------------------------------------------------
def compute_offsets(points_seq):
    B, S, M, _ = points_seq.shape
    nonzero = jnp.sum(points_seq == 0.0, axis=-1) != 3              # (B, S, M)
    cnt = jnp.sum(nonzero, axis=-1)                                 # (B, S)
    vals = jnp.where(nonzero[..., None], points_seq, jnp.inf)
    svals = jnp.sort(vals, axis=2)
    k = jnp.clip((cnt - 1) // 2, 0, M - 1).astype(jnp.int32)        # torch lower median
    idx = jnp.broadcast_to(k[:, :, None, None], (B, S, 1, 3))
    med = jnp.take_along_axis(svals, idx, axis=2)                   # (B, S, 1, 3)
    return jnp.where((cnt > 0)[:, :, None, None], med, 0.0)


# ---------------------------------------------------------------------------
# Parameters (eval-mode BatchNorm, folded into the 1x1 convs for the kernel).
# ---------------------------------------------------------------------------
def init_params(key, cfg):
    D, dh, H, L, S, J = (cfg.d_model, cfg.d_hidden, cfg.n_heads,
                         cfg.n_layers, cfg.seq_len, cfg.n_joints)
    keys = iter(jax.random.split(key, 1024))

    def dense(cout, cin):
        w = jax.random.normal(next(keys), (cout, cin), jnp.float32) / math.sqrt(cin)
        b = 0.1 * jax.random.normal(next(keys), (cout,), jnp.float32)
        return w, b

    def bn(c):
        return dict(
            gamma=1.0 + 0.1 * jax.random.normal(next(keys), (c,), jnp.float32),
            beta=0.1 * jax.random.normal(next(keys), (c,), jnp.float32),
            mean=0.1 * jax.random.normal(next(keys), (c,), jnp.float32),
            var=jax.random.uniform(next(keys), (c,), jnp.float32,
                                   minval=0.5, maxval=1.5))

    p = {}
    w1, b1 = dense(dh, 3); w2, b2 = dense(D, dh); ws, bs = dense(D, 3)
    p['embed'] = dict(w1=w1, b1=b1, bn1=bn(dh), w2=w2, b2=b2, bn2=bn(D),
                      ws=ws, bs=bs, bns=bn(D))

    layers = []
    for _ in range(L):
        per_seq = []
        for _ in range(S):
            wq, bq = dense(D, D); wk, bk = dense(D, D); wv, bv = dense(D, D)
            wm, bm = dense(D, D)
            wp1, bp1 = dense(2 * D, 2 * D)
            wp2, bp2 = dense(D, 2 * D)
            per_seq.append(dict(wq=wq, bq=bq, wk=wk, bk=bk, wv=wv, bv=bv,
                                wm=wm, bm=bm, wp1=wp1, bp1=bp1, bn_p1=bn(2 * D),
                                wp2=wp2, bp2=jnp.zeros_like(bp2)))  # torch zero-inits it
        layers.append(per_seq)
    p['layers'] = layers

    wpa, bpa = dense(1, S)
    p['post_att'] = dict(w=wpa, b=bpa)

    w1, b1 = dense(dh, D); w2, b2 = dense(D, dh); wj, bj = dense(4 * J, D)
    p['joint_feats'] = dict(w1=w1, b1=b1, bn1=bn(dh), w2=w2, b2=b2, bn2=bn(D),
                            wj=wj, bj=bj)
    w1, b1 = dense(2 * dh, 4 * J); w2, b2 = dense(J + 1, 2 * dh); ws, bs = dense(J + 1, 4 * J)
    p['joint_idx'] = dict(w1=w1, b1=b1, bn1=bn(2 * dh), w2=w2, b2=b2, bn2=bn(J + 1),
                          ws=ws, bs=bs, bns=bn(J + 1))
    w1, b1 = dense(dh, 2 * J + 1); w2, b2 = dense(3, dh); ws, bs = dense(3, 2 * J + 1)
    p['weight_pred'] = dict(w1=w1, b1=b1, bn1=bn(dh), w2=w2, b2=b2, bn2=bn(3),
                            ws=ws, bs=bs, bns=bn(3))
    w1, b1 = dense(2 * dh, 4 * J + 1); w2, b2 = dense(9, 2 * dh); ws, bs = dense(9, 4 * J + 1)
    p['offset_pred'] = dict(w1=w1, b1=b1, bn1=bn(2 * dh), w2=w2, b2=b2, bn2=bn(9),
                            ws=ws, bs=bs, bns=bn(9))
    return p


def _fold(w, b, bn, eps=1e-5):
    s = bn['gamma'] / jnp.sqrt(bn['var'] + eps)
    return w * s[:, None], s * b + bn['beta'] - bn['mean'] * s


def build_pallas_params(raw, cfg):
    """Fold BN, transpose to (in, out), head-block q/k/v, split concat inputs,
    stack per-(layer, seq) weights, cast matmul operands to bf16."""
    D, dh, H = cfg.d_model, cfg.d_hidden, cfg.n_heads
    S, J, L = cfg.seq_len, cfg.n_joints, cfg.n_layers
    dk = D // H
    # head-blocked channel permutation: new channel h*dk + d  <-  old channel d*H + h
    perm = np.arange(D).reshape(dk, H).T.reshape(-1)
    cast = lambda a: a.astype(jnp.bfloat16)

    e = raw['embed']
    ew1, eb1 = _fold(e['w1'], e['b1'], e['bn1'])
    ew2, eb2 = _fold(e['w2'], e['b2'], e['bn2'])
    ews, ebs = _fold(e['ws'], e['bs'], e['bns'])
    embed_w = (cast(ew1.T), eb1[None, :], cast(ew2.T), eb2[None, :],
               cast(ews.T), ebs[None, :])

    def per_ls(getter):
        return jnp.stack([jnp.stack([getter(raw['layers'][l][s]) for s in range(S)])
                          for l in range(L)])

    def fold_p1(p):
        w, b = _fold(p['wp1'], p['bp1'], p['bn_p1'])
        return w.T, b                                  # (2D_in, 2D_out), (2D_out,)

    wq = per_ls(lambda p: cast(p['wq'][perm].T))
    bq = per_ls(lambda p: p['bq'][perm][None, :])
    wk = per_ls(lambda p: cast(p['wk'][perm].T))
    bk = per_ls(lambda p: p['bk'][perm][None, :])
    wv = per_ls(lambda p: cast(p['wv'][perm].T))
    bv = per_ls(lambda p: p['bv'][perm][None, :])
    wm = per_ls(lambda p: cast(p['wm'][:, perm].T.reshape(H, dk, D)))
    bm = per_ls(lambda p: p['bm'][None, :])
    wp1a = per_ls(lambda p: cast(fold_p1(p)[0][:D]))   # multiplies merged
    wp1b = per_ls(lambda p: cast(fold_p1(p)[0][D:]))   # multiplies init_query
    bp1 = per_ls(lambda p: fold_p1(p)[1][None, :])
    wp2 = per_ls(lambda p: cast(p['wp2'].T))
    bp2 = per_ls(lambda p: p['bp2'][None, :])
    layer_w = (wq, bq, wk, bk, wv, bv, wm, bm, wp1a, wp1b, bp1, wp2, bp2)

    jf, jp = raw['joint_feats'], raw['joint_idx']
    wpd, opd = raw['weight_pred'], raw['offset_pred']
    wa, ba = _fold(jf['w1'], jf['b1'], jf['bn1'])
    wb, bb = _fold(jf['w2'], jf['b2'], jf['bn2'])
    wc, bc = _fold(jp['w1'], jp['b1'], jp['bn1'])
    wd, bd = _fold(jp['w2'], jp['b2'], jp['bn2'])
    wcs, bcs = _fold(jp['ws'], jp['bs'], jp['bns'])
    we, be = _fold(wpd['w1'], wpd['b1'], wpd['bn1'])
    wf, bfb = _fold(wpd['w2'], wpd['b2'], wpd['bn2'])
    wes, bes = _fold(wpd['ws'], wpd['bs'], wpd['bns'])
    wg, bg = _fold(opd['w1'], opd['b1'], opd['bn1'])
    wh, bh = _fold(opd['w2'], opd['b2'], opd['bn2'])
    wgs, bgs = _fold(opd['ws'], opd['bs'], opd['bns'])

    weT, wesT = we.T, wes.T                            # (2J+1, dh), (2J+1, 3)
    wgT, wgsT = wg.T, wgs.T                            # (4J+1, 2dh), (4J+1, 9)

    head_w = (
        raw['post_att']['w'][0].reshape(S, 1, 1),
        raw['post_att']['b'].reshape(1, 1),
        cast(wa.T), ba[None, :], cast(wb.T), bb[None, :],
        cast(jf['wj'].T), jf['bj'][None, :],
        cast(wc.T), bc[None, :], cast(wd.T), bd[None, :],
        cast(wcs.T), bcs[None, :],
        cast(weT[:J]), cast(weT[J:]), be[None, :],
        cast(wf.T), bfb[None, :],
        cast(wesT[:J]), cast(wesT[J:]), bes[None, :],
        cast(wgT[:3 * J]), cast(wgT[3 * J:]), bg[None, :],
        cast(wh.T), bh[None, :],
        cast(wgsT[:3 * J]), cast(wgsT[3 * J:]), bgs[None, :],
    )
    return embed_w + layer_w + head_w


# ---------------------------------------------------------------------------
# Full Damo.forward (single fused pallas_call).
# ---------------------------------------------------------------------------
def damo_forward_pallas(weights, points_seq, points_mask, cfg):
    B, S, M, _ = points_seq.shape
    H, J = cfg.n_heads, cfg.n_joints
    PAD_W = 128                                        # lane-dense output slab

    pm = points_mask.astype(jnp.float32)
    pts = points_seq * pm[..., None]
    offs = compute_offsets(pts)                        # (B, S, 1, 3) -- plain XLA
    x = (pts - offs).astype(jnp.float32).reshape(B, S * M, 3)
    mcol = pm.reshape(B, S * M, 1)
    mrow = pm                                          # (B, S, M)

    data_specs = [
        pl.BlockSpec((1, S * M, 3), lambda b: (b, 0, 0)),
        pl.BlockSpec((1, S * M, 1), lambda b: (b, 0, 0)),
        pl.BlockSpec((1, S, M), lambda b: (b, 0, 0)),
    ]
    w_specs = [pl.BlockSpec(a.shape, lambda b, _nd=a.ndim: (0,) * _nd)
               for a in weights]

    out = pl.pallas_call(
        partial(_damo_kernel, S, M, H, J),
        out_shape=jax.ShapeDtypeStruct((B, M, PAD_W), jnp.float32),
        grid_spec=pltpu.PrefetchScalarGridSpec(
            num_scalar_prefetch=0,
            grid=(B,),
            in_specs=data_specs + w_specs,
            out_specs=pl.BlockSpec((1, M, PAD_W), lambda b: (b, 0, 0)),
        ),
        compiler_params=pltpu.CompilerParams(
            dimension_semantics=("parallel",)),
    )(x, mcol, mrow, *weights)

    joint_indices = out[:, :, :J + 1]
    weight = out[:, :, J + 1:J + 4]
    offset = out[:, :, J + 4:J + 13].reshape(B, cfg.n_max_markers, 3, 3)
    return joint_indices, weight, offset


# ---------------------------------------------------------------------------
# Pure-JAX reference (mirrors the PyTorch code, unfolded BN in eval mode)
# ---------------------------------------------------------------------------
def _conv1d(x, w, b):                                  # x: (B, C_in, N)
    return jnp.einsum('oc,bcn->bon', w, x) + b[None, :, None]


def _bn(x, p, eps=1e-5):
    return ((x - p['mean'][None, :, None]) / jnp.sqrt(p['var'][None, :, None] + eps)
            * p['gamma'][None, :, None] + p['beta'][None, :, None])


def _res_conv1d(x, p, identity_short):
    h = jax.nn.relu(_bn(_conv1d(x, p['w1'], p['b1']), p['bn1']))
    y = _bn(_conv1d(h, p['w2'], p['b2']), p['bn2'])
    sc = x if identity_short else _bn(_conv1d(x, p['ws'], p['bs']), p['bns'])
    return y + sc


def _mha_ref(p, init_query, kv, mask2d, n_heads):
    B, D, M = init_query.shape
    d_k = D // n_heads
    q = _conv1d(init_query, p['wq'], p['bq']).reshape(B, d_k, n_heads, M)
    k = _conv1d(kv, p['wk'], p['bk']).reshape(B, d_k, n_heads, M)
    v = _conv1d(kv, p['wv'], p['bv']).reshape(B, d_k, n_heads, M)
    scores = jnp.einsum('bdhn,bdhm->bhnm', q, k) / math.sqrt(d_k)
    scores = jnp.where(mask2d, scores, -1e9)
    attn = jax.nn.softmax(scores, axis=-1)
    x = jnp.einsum('bhnm,bdhm->bdhn', attn, v).reshape(B, D, M)
    x = _conv1d(x, p['wm'], p['bm'])
    xcat = jnp.concatenate([x, init_query], axis=1)
    h = jax.nn.relu(_bn(_conv1d(xcat, p['wp1'], p['bp1']), p['bn_p1']))
    return _conv1d(h, p['wp2'], p['bp2'])


def damo_forward_ref(raw, points_seq, points_mask, cfg):
    B, S, M, _ = points_seq.shape
    D, J = cfg.d_model, cfg.n_joints
    center = S // 2

    pm = points_mask.astype(jnp.float32)
    pts = points_seq * pm[..., None]
    centered = pts - compute_offsets(pts)

    x = jnp.transpose(centered, (0, 3, 2, 1)).reshape(B, 3, M * S)
    feats = jax.nn.relu(_res_conv1d(x, raw['embed'], identity_short=False))
    feats = feats.reshape(B, D, M, S)

    for layer in raw['layers']:
        outs = []
        for idx in range(S):
            qmask = pm[:, idx, :] != 0
            kmask = pm[:, center, :] != 0
            mask2d = qmask[:, None, :, None] & kmask[:, None, None, :]
            att = _mha_ref(layer[idx], feats[:, :, :, idx], feats[:, :, :, center],
                           mask2d, cfg.n_heads)
            outs.append(att[..., None])
        feats = jnp.concatenate(outs, axis=3)

    pa_in = jnp.transpose(feats, (0, 3, 2, 1))                      # (B, S, M, D)
    pa = jnp.einsum('os,bsmd->bomd', raw['post_att']['w'], pa_in)
    pa = jax.nn.relu(pa + raw['post_att']['b'][None, :, None, None])
    center_feats = jnp.transpose(pa, (0, 1, 3, 2))[:, 0]            # (B, D, M)

    jf = raw['joint_feats']
    x0 = jax.nn.relu(center_feats)
    z = jax.nn.relu(_res_conv1d(x0, jf, identity_short=True))
    mcf = _conv1d(z, jf['wj'], jf['bj'])                            # (B, 4J, M)

    ji = _res_conv1d(jax.nn.relu(mcf), raw['joint_idx'], identity_short=False)

    w_in = jnp.concatenate([mcf[:, :J, :], ji], axis=1)
    wlog = _res_conv1d(jax.nn.relu(w_in), raw['weight_pred'], identity_short=False)
    weight = jnp.transpose(jax.nn.softmax(wlog, axis=1), (0, 2, 1))

    o_in = jnp.concatenate([mcf[:, J:, :], ji], axis=1)
    off = _res_conv1d(jax.nn.relu(o_in), raw['offset_pred'], identity_short=False)
    off = jnp.transpose(off, (0, 2, 1))

    cm = pm[:, center, :, None]
    ji_out = jnp.transpose(ji, (0, 2, 1)) * cm
    weight = weight * cm
    off = off * cm
    return ji_out, weight, off.reshape(B, cfg.n_max_markers, 3, 3)


if __name__ == "__main__":
    cfg = DamoConfig(d_model=32, d_hidden=32, n_layers=2, n_heads=4,
                     n_max_markers=16, n_joints=4, seq_len=3)
    B = 2
    key = jax.random.PRNGKey(0)
    k_pts, k_mask, k_par = jax.random.split(key, 3)
    points_seq = jax.random.normal(
        k_pts, (B, cfg.seq_len, cfg.n_max_markers, 3), dtype=jnp.float32)
    points_mask = (jax.random.uniform(k_mask, (B, cfg.seq_len, cfg.n_max_markers))
                   > 0.2).astype(jnp.float32)
    raw = init_params(k_par, cfg)

    # Build the fused-kernel weight pack once (outside the jitted forward).
    weights = build_pallas_params(raw, cfg)

    fwd = jax.jit(partial(damo_forward_pallas, cfg=cfg))
    joint_indices, weight, offset = fwd(weights, points_seq, points_mask)
    jax.block_until_ready((joint_indices, weight, offset))

    # Accurate f32 reference (the kernel runs single-pass bf16 on the MXU per
    # the perf review, hence the 3e-2 tolerance below).
    with jax.default_matmul_precision("highest"):
        ji_r, w_r, off_r = damo_forward_ref(raw, points_seq, points_mask, cfg)
        jax.block_until_ready((ji_r, w_r, off_r))

    assert joint_indices.shape == (B, cfg.n_max_markers, cfg.n_joints + 1)
    assert weight.shape == (B, cfg.n_max_markers, 3)
    assert offset.shape == (B, cfg.n_max_markers, 3, 3)
    assert jnp.allclose(joint_indices, ji_r, atol=3e-2, rtol=3e-2), "joint_indices mismatch"
    assert jnp.allclose(weight, w_r, atol=3e-2, rtol=3e-2), "weight mismatch"
    assert jnp.allclose(offset, off_r, atol=3e-2, rtol=3e-2), "offset mismatch"
    print("KERNEL_OK")
</pallas_src>

<mosaic_0001>
module attributes {stable_mosaic.version = 11 : i64} {
  func.func @_damo_kernel(%arg0: i32, %arg1: memref<1x48x3xf32, #tpu.memory_space<vmem>>, %arg2: memref<1x48x1xf32, #tpu.memory_space<vmem>>, %arg3: memref<1x3x16xf32, #tpu.memory_space<vmem>>, %arg4: memref<3x32xbf16, #tpu.memory_space<vmem>>, %arg5: memref<1x32xf32, #tpu.memory_space<vmem>>, %arg6: memref<32x32xbf16, #tpu.memory_space<vmem>>, %arg7: memref<1x32xf32, #tpu.memory_space<vmem>>, %arg8: memref<3x32xbf16, #tpu.memory_space<vmem>>, %arg9: memref<1x32xf32, #tpu.memory_space<vmem>>, %arg10: memref<2x3x32x32xbf16, #tpu.memory_space<vmem>>, %arg11: memref<2x3x1x32xf32, #tpu.memory_space<vmem>>, %arg12: memref<2x3x32x32xbf16, #tpu.memory_space<vmem>>, %arg13: memref<2x3x1x32xf32, #tpu.memory_space<vmem>>, %arg14: memref<2x3x32x32xbf16, #tpu.memory_space<vmem>>, %arg15: memref<2x3x1x32xf32, #tpu.memory_space<vmem>>, %arg16: memref<2x3x4x8x32xbf16, #tpu.memory_space<vmem>>, %arg17: memref<2x3x1x32xf32, #tpu.memory_space<vmem>>, %arg18: memref<2x3x32x64xbf16, #tpu.memory_space<vmem>>, %arg19: memref<2x3x32x64xbf16, #tpu.memory_space<vmem>>, %arg20: memref<2x3x1x64xf32, #tpu.memory_space<vmem>>, %arg21: memref<2x3x64x32xbf16, #tpu.memory_space<vmem>>, %arg22: memref<2x3x1x32xf32, #tpu.memory_space<vmem>>, %arg23: memref<3x1x1xf32, #tpu.memory_space<vmem>>, %arg24: memref<1x1xf32, #tpu.memory_space<vmem>>, %arg25: memref<32x32xbf16, #tpu.memory_space<vmem>>, %arg26: memref<1x32xf32, #tpu.memory_space<vmem>>, %arg27: memref<32x32xbf16, #tpu.memory_space<vmem>>, %arg28: memref<1x32xf32, #tpu.memory_space<vmem>>, %arg29: memref<32x16xbf16, #tpu.memory_space<vmem>>, %arg30: memref<1x16xf32, #tpu.memory_space<vmem>>, %arg31: memref<16x64xbf16, #tpu.memory_space<vmem>>, %arg32: memref<1x64xf32, #tpu.memory_space<vmem>>, %arg33: memref<64x5xbf16, #tpu.memory_space<vmem>>, %arg34: memref<1x5xf32, #tpu.memory_space<vmem>>, %arg35: memref<16x5xbf16, #tpu.memory_space<vmem>>, %arg36: memref<1x5xf32, #tpu.memory_space<vmem>>, %arg37: memref<4x32xbf16, #tpu.memory_space<vmem>>, %arg38: memref<5x32xbf16, #tpu.memory_space<vmem>>, %arg39: memref<1x32xf32, #tpu.memory_space<vmem>>, %arg40: memref<32x3xbf16, #tpu.memory_space<vmem>>, %arg41: memref<1x3xf32, #tpu.memory_space<vmem>>, %arg42: memref<4x3xbf16, #tpu.memory_space<vmem>>, %arg43: memref<5x3xbf16, #tpu.memory_space<vmem>>, %arg44: memref<1x3xf32, #tpu.memory_space<vmem>>, %arg45: memref<12x64xbf16, #tpu.memory_space<vmem>>, %arg46: memref<5x64xbf16, #tpu.memory_space<vmem>>, %arg47: memref<1x64xf32, #tpu.memory_space<vmem>>, %arg48: memref<64x9xbf16, #tpu.memory_space<vmem>>, %arg49: memref<1x9xf32, #tpu.memory_space<vmem>>, %arg50: memref<12x9xbf16, #tpu.memory_space<vmem>>, %arg51: memref<5x9xbf16, #tpu.memory_space<vmem>>, %arg52: memref<1x9xf32, #tpu.memory_space<vmem>>, %arg53: memref<1x16x128xf32, #tpu.memory_space<vmem>>) attributes {dimension_semantics = [#tpu.dimension_semantics<parallel>], iteration_bounds = array<i64: 2>, scalar_prefetch = 0 : i64, scratch_operands = 0 : i64, tpu.core_type = #tpu.core_type<tc>, window_params = [{transform_indices = @transform_0, window_bounds = array<i64: 1, 48, 3>}, {transform_indices = @transform_1, window_bounds = array<i64: 1, 48, 1>}, {transform_indices = @transform_2, window_bounds = array<i64: 1, 3, 16>}, {pipeline_mode = #tpu.pipeline_mode<synchronous>, transform_indices = @transform_3, window_bounds = array<i64: 3, 32>}, {pipeline_mode = #tpu.pipeline_mode<synchronous>, transform_indices = @transform_4, window_bounds = array<i64: 1, 32>}, {pipeline_mode = #tpu.pipeline_mode<synchronous>, transform_indices = @transform_5, window_bounds = array<i64: 32, 32>}, {pipeline_mode = #tpu.pipeline_mode<synchronous>, transform_indices = @transform_6, window_bounds = array<i64: 1, 32>}, {pipeline_mode = #tpu.pipeline_mode<synchronous>, transform_indices = @transform_7, window_bounds = array<i64: 3, 32>}, {pipeline_mode = #tpu.pipeline_mode<synchronous>, transform_indices = @transform_8, window_bounds = array<i64: 1, 32>}, {pipeline_mode = #tpu.pipeline_mode<synchronous>, transform_indices = @transform_9, window_bounds = array<i64: 2, 3, 32, 32>}, {pipeline_mode = #tpu.pipeline_mode<synchronous>, transform_indices = @transform_10, window_bounds = array<i64: 2, 3, 1, 32>}, {pipeline_mode = #tpu.pipeline_mode<synchronous>, transform_indices = @transform_11, window_bounds = array<i64: 2, 3, 32, 32>}, {pipeline_mode = #tpu.pipeline_mode<synchronous>, transform_indices = @transform_12, window_bounds = array<i64: 2, 3, 1, 32>}, {pipeline_mode = #tpu.pipeline_mode<synchronous>, transform_indices = @transform_13, window_bounds = array<i64: 2, 3, 32, 32>}, {pipeline_mode = #tpu.pipeline_mode<synchronous>, transform_indices = @transform_14, window_bounds = array<i64: 2, 3, 1, 32>}, {pipeline_mode = #tpu.pipeline_mode<synchronous>, transform_indices = @transform_15, window_bounds = array<i64: 2, 3, 4, 8, 32>}, {pipeline_mode = #tpu.pipeline_mode<synchronous>, transform_indices = @transform_16, window_bounds = array<i64: 2, 3, 1, 32>}, {pipeline_mode = #tpu.pipeline_mode<synchronous>, transform_indices = @transform_17, window_bounds = array<i64: 2, 3, 32, 64>}, {pipeline_mode = #tpu.pipeline_mode<synchronous>, transform_indices = @transform_18, window_bounds = array<i64: 2, 3, 32, 64>}, {pipeline_mode = #tpu.pipeline_mode<synchronous>, transform_indices = @transform_19, window_bounds = array<i64: 2, 3, 1, 64>}, {pipeline_mode = #tpu.pipeline_mode<synchronous>, transform_indices = @transform_20, window_bounds = array<i64: 2, 3, 64, 32>}, {pipeline_mode = #tpu.pipeline_mode<synchronous>, transform_indices = @transform_21, window_bounds = array<i64: 2, 3, 1, 32>}, {pipeline_mode = #tpu.pipeline_mode<synchronous>, transform_indices = @transform_22, window_bounds = array<i64: 3, 1, 1>}, {pipeline_mode = #tpu.pipeline_mode<synchronous>, transform_indices = @transform_23, window_bounds = array<i64: 1, 1>}, {pipeline_mode = #tpu.pipeline_mode<synchronous>, transform_indices = @transform_24, window_bounds = array<i64: 32, 32>}, {pipeline_mode = #tpu.pipeline_mode<synchronous>, transform_indices = @transform_25, window_bounds = array<i64: 1, 32>}, {pipeline_mode = #tpu.pipeline_mode<synchronous>, transform_indices = @transform_26, window_bounds = array<i64: 32, 32>}, {pipeline_mode = #tpu.pipeline_mode<synchronous>, transform_indices = @transform_27, window_bounds = array<i64: 1, 32>}, {pipeline_mode = #tpu.pipeline_mode<synchronous>, transform_indices = @transform_28, window_bounds = array<i64: 32, 16>}, {pipeline_mode = #tpu.pipeline_mode<synchronous>, transform_indices = @transform_29, window_bounds = array<i64: 1, 16>}, {pipeline_mode = #tpu.pipeline_mode<synchronous>, transform_indices = @transform_30, window_bounds = array<i64: 16, 64>}, {pipeline_mode = #tpu.pipeline_mode<synchronous>, transform_indices = @transform_31, window_bounds = array<i64: 1, 64>}, {pipeline_mode = #tpu.pipeline_mode<synchronous>, transform_indices = @transform_32, window_bounds = array<i64: 64, 5>}, {pipeline_mode = #tpu.pipeline_mode<synchronous>, transform_indices = @transform_33, window_bounds = array<i64: 1, 5>}, {pipeline_mode = #tpu.pipeline_mode<synchronous>, transform_indices = @transform_34, window_bounds = array<i64: 16, 5>}, {pipeline_mode = #tpu.pipeline_mode<synchronous>, transform_indices = @transform_35, window_bounds = array<i64: 1, 5>}, {pipeline_mode = #tpu.pipeline_mode<synchronous>, transform_indices = @transform_36, window_bounds = array<i64: 4, 32>}, {pipeline_mode = #tpu.pipeline_mode<synchronous>, transform_indices = @transform_37, window_bounds = array<i64: 5, 32>}, {pipeline_mode = #tpu.pipeline_mode<synchronous>, transform_indices = @transform_38, window_bounds = array<i64: 1, 32>}, {pipeline_mode = #tpu.pipeline_mode<synchronous>, transform_indices = @transform_39, window_bounds = array<i64: 32, 3>}, {pipeline_mode = #tpu.pipeline_mode<synchronous>, transform_indices = @transform_40, window_bounds = array<i64: 1, 3>}, {pipeline_mode = #tpu.pipeline_mode<synchronous>, transform_indices = @transform_41, window_bounds = array<i64: 4, 3>}, {pipeline_mode = #tpu.pipeline_mode<synchronous>, transform_indices = @transform_42, window_bounds = array<i64: 5, 3>}, {pipeline_mode = #tpu.pipeline_mode<synchronous>, transform_indices = @transform_43, window_bounds = array<i64: 1, 3>}, {pipeline_mode = #tpu.pipeline_mode<synchronous>, transform_indices = @transform_44, window_bounds = array<i64: 12, 64>}, {pipeline_mode = #tpu.pipeline_mode<synchronous>, transform_indices = @transform_45, window_bounds = array<i64: 5, 64>}, {pipeline_mode = #tpu.pipeline_mode<synchronous>, transform_indices = @transform_46, window_bounds = array<i64: 1, 64>}, {pipeline_mode = #tpu.pipeline_mode<synchronous>, transform_indices = @transform_47, window_bounds = array<i64: 64, 9>}, {pipeline_mode = #tpu.pipeline_mode<synchronous>, transform_indices = @transform_48, window_bounds = array<i64: 1, 9>}, {pipeline_mode = #tpu.pipeline_mode<synchronous>, transform_indices = @transform_49, window_bounds = array<i64: 12, 9>}, {pipeline_mode = #tpu.pipeline_mode<synchronous>, transform_indices = @transform_50, window_bounds = array<i64: 5, 9>}, {pipeline_mode = #tpu.pipeline_mode<synchronous>, transform_indices = @transform_51, window_bounds = array<i64: 1, 9>}, {transform_indices = @transform_52, window_bounds = array<i64: 1, 16, 128>}]} {
    %c0 = arith.constant 0 : index
    %c0_0 = arith.constant 0 : index
    %c0_1 = arith.constant 0 : index
    %0 = vector.load %arg1[%c0, %c0_0, %c0_1] : memref<1x48x3xf32, #tpu.memory_space<vmem>>, vector<1x48x3xf32>
    %1 = vector.shape_cast %0 : vector<1x48x3xf32> to vector<48x3xf32>
    %c0_2 = arith.constant 0 : index
    %c0_3 = arith.constant 0 : index
    %2 = vector.load %arg4[%c0_2, %c0_3] : memref<3x32xbf16, #tpu.memory_space<vmem>>, vector<3x32xbf16>
    %3 = arith.truncf %1 : vector<48x3xf32> to vector<48x3xbf16>
    %cst = arith.constant dense<0.000000e+00> : vector<48x32xf32>
    %4 = tpu.matmul %3, %2, %cst {dimension_numbers = #tpu.dot_dimension_numbers<[1], [0], [0], [1], [0, 0, 1, 1], [], []>} : vector<48x3xbf16>, vector<3x32xbf16>, vector<48x32xf32> -> vector<48x32xf32>
    %c0_4 = arith.constant 0 : index
    %c0_5 = arith.constant 0 : index
    %5 = vector.load %arg5[%c0_4, %c0_5] : memref<1x32xf32, #tpu.memory_space<vmem>>, vector<1x32xf32>
    %6 = vector.broadcast %5 : vector<1x32xf32> to vector<48x32xf32>
    %7 = arith.addf %4, %6 : vector<48x32xf32>
    %cst_6 = arith.constant 0.000000e+00 : f32
    %8 = vector.broadcast %cst_6 : f32 to vector<48x32xf32>
    %9 = arith.maximumf %7, %8 : vector<48x32xf32>
    %c0_7 = arith.constant 0 : index
    %c0_8 = arith.constant 0 : index
    %10 = vector.load %arg6[%c0_7, %c0_8] : memref<32x32xbf16, #tpu.memory_space<vmem>>, vector<32x32xbf16>
    %11 = arith.truncf %9 : vector<48x32xf32> to vector<48x32xbf16>
    %cst_9 = arith.constant dense<0.000000e+00> : vector<48x32xf32>
    %12 = tpu.matmul %11, %10, %cst_9 {dimension_numbers = #tpu.dot_dimension_numbers<[1], [0], [0], [1], [0, 0, 1, 1], [], []>} : vector<48x32xbf16>, vector<32x32xbf16>, vector<48x32xf32> -> vector<48x32xf32>
    %c0_10 = arith.constant 0 : index
    %c0_11 = arith.constant 0 : index
    %13 = vector.load %arg7[%c0_10, %c0_11] : memref<1x32xf32, #tpu.memory_space<vmem>>, vector<1x32xf32>
    %14 = vector.broadcast %13 : vector<1x32xf32> to vector<48x32xf32>
    %15 = arith.addf %12, %14 : vector<48x32xf32>
    %c0_12 = arith.constant 0 : index
    %c0_13 = arith.constant 0 : index
    %16 = vector.load %arg8[%c0_12, %c0_13] : memref<3x32xbf16, #tpu.memory_space<vmem>>, vector<3x32xbf16>
    %17 = arith.truncf %1 : vector<48x3xf32> to vector<48x3xbf16>
    %cst_14 = arith.constant dense<0.000000e+00> : vector<48x32xf32>
    %18 = tpu.matmul %17, %16, %cst_14 {dimension_numbers = #tpu.dot_dimension_numbers<[1], [0], [0], [1], [0, 0, 1, 1], [], []>} : vector<48x3xbf16>, vector<3x32xbf16>, vector<48x32xf32> -> vector<48x32xf32>
    %19 = arith.addf %15, %18 : vector<48x32xf32>
    %c0_15 = arith.constant 0 : index
    %c0_16 = arith.constant 0 : index
    %20 = vector.load %arg9[%c0_15, %c0_16] : memref<1x32xf32, #tpu.memory_space<vmem>>, vector<1x32xf32>
    %21 = vector.broadcast %20 : vector<1x32xf32> to vector<48x32xf32>
    %22 = arith.addf %19, %21 : vector<48x32xf32>
    %cst_17 = arith.constant 0.000000e+00 : f32
    %23 = vector.broadcast %cst_17 : f32 to vector<48x32xf32>
    %24 = arith.maximumf %22, %23 : vector<48x32xf32>
    %25 = vector.extract_strided_slice %24 {offsets = [0, 0], sizes = [16, 32], strides = [1, 1]} : vector<48x32xf32> to vector<16x32xf32>
    %26 = vector.extract_strided_slice %24 {offsets = [16, 0], sizes = [16, 32], strides = [1, 1]} : vector<48x32xf32> to vector<16x32xf32>
    %27 = vector.extract_strided_slice %24 {offsets = [32, 0], sizes = [16, 32], strides = [1, 1]} : vector<48x32xf32> to vector<16x32xf32>
    %c0_18 = arith.constant 0 : index
    %c0_19 = arith.constant 0 : index
    %c0_20 = arith.constant 0 : index
    %28 = vector.load %arg2[%c0_18, %c0_19, %c0_20] : memref<1x48x1xf32, #tpu.memory_space<vmem>>, vector<1x48x1xf32>
    %29 = vector.shape_cast %28 : vector<1x48x1xf32> to vector<48x1xf32>
    %30 = vector.extract_strided_slice %29 {offsets = [0, 0], sizes = [16, 1], strides = [1, 1]} : vector<48x1xf32> to vector<16x1xf32>
    %cst_21 = arith.constant 0.000000e+00 : f32
    %31 = vector.broadcast %cst_21 : f32 to vector<16x1xf32>
    %32 = arith.cmpf one, %30, %31 : vector<16x1xf32>
    %33 = vector.extract_strided_slice %29 {offsets = [16, 0], sizes = [16, 1], strides = [1, 1]} : vector<48x1xf32> to vector<16x1xf32>
    %cst_22 = arith.constant 0.000000e+00 : f32
    %34 = vector.broadcast %cst_22 : f32 to vector<16x1xf32>
    %35 = arith.cmpf one, %33, %34 : vector<16x1xf32>
    %36 = vector.extract_strided_slice %29 {offsets = [32, 0], sizes = [16, 1], strides = [1, 1]} : vector<48x1xf32> to vector<16x1xf32>
    %cst_23 = arith.constant 0.000000e+00 : f32
    %37 = vector.broadcast %cst_23 : f32 to vector<16x1xf32>
    %38 = arith.cmpf one, %36, %37 : vector<16x1xf32>
    %c0_24 = arith.constant 0 : index
    %c0_25 = arith.constant 0 : index
    %c0_26 = arith.constant 0 : index
    %39 = vector.load %arg3[%c0_24, %c0_25, %c0_26] : memref<1x3x16xf32, #tpu.memory_space<vmem>>, vector<1x3x16xf32>
    %40 = vector.shape_cast %39 : vector<1x3x16xf32> to vector<3x16xf32>
    %41 = vector.extract_strided_slice %40 {offsets = [1, 0], sizes = [1, 16], strides = [1, 1]} : vector<3x16xf32> to vector<1x16xf32>
    %cst_27 = arith.constant 0.000000e+00 : f32
    %42 = vector.broadcast %cst_27 : f32 to vector<1x16xf32>
    %43 = arith.cmpf one, %41, %42 : vector<1x16xf32>
    %44 = vector.broadcast %32 : vector<16x1xi1> to vector<16x16xi1>
    %45 = vector.broadcast %43 : vector<1x16xi1> to vector<16x16xi1>
    %46 = arith.andi %44, %45 : vector<16x16xi1>
    %c0_28 = arith.constant 0 : index
    %c0_29 = arith.constant 0 : index
    %c0_30 = arith.constant 0 : index
    %c0_31 = arith.constant 0 : index
    %47 = vector.load %arg10[%c0_28, %c0_29, %c0_30, %c0_31] : memref<2x3x32x32xbf16, #tpu.memory_space<vmem>>, vector<1x1x32x32xbf16>
    %48 = vector.shape_cast %47 : vector<1x1x32x32xbf16> to vector<32x32xbf16>
    %49 = arith.truncf %25 : vector<16x32xf32> to vector<16x32xbf16>
    %cst_32 = arith.constant dense<0.000000e+00> : vector<16x32xf32>
    %50 = tpu.matmul %49, %48, %cst_32 {dimension_numbers = #tpu.dot_dimension_numbers<[1], [0], [0], [1], [0, 0, 1, 1], [], []>} : vector<16x32xbf16>, vector<32x32xbf16>, vector<16x32xf32> -> vector<16x32xf32>
    %c0_33 = arith.constant 0 : index
    %c0_34 = arith.constant 0 : index
    %c0_35 = arith.constant 0 : index
    %c0_36 = arith.constant 0 : index
    %51 = vector.load %arg11[%c0_33, %c0_34, %c0_35, %c0_36] : memref<2x3x1x32xf32, #tpu.memory_space<vmem>>, vector<1x1x1x32xf32>
    %52 = vector.shape_cast %51 : vector<1x1x1x32xf32> to vector<1x32xf32>
    %53 = vector.broadcast %52 : vector<1x32xf32> to vector<16x32xf32>
    %54 = arith.addf %50, %53 : vector<16x32xf32>
    %c0_37 = arith.constant 0 : index
    %c0_38 = arith.constant 0 : index
    %c0_39 = arith.constant 0 : index
    %c0_40 = arith.constant 0 : index
    %55 = vector.load %arg12[%c0_37, %c0_38, %c0_39, %c0_40] : memref<2x3x32x32xbf16, #tpu.memory_space<vmem>>, vector<1x1x32x32xbf16>
    %56 = vector.shape_cast %55 : vector<1x1x32x32xbf16> to vector<32x32xbf16>
    %57 = arith.truncf %26 : vector<16x32xf32> to vector<16x32xbf16>
    %cst_41 = arith.constant dense<0.000000e+00> : vector<16x32xf32>
    %58 = tpu.matmul %57, %56, %cst_41 {dimension_numbers = #tpu.dot_dimension_numbers<[1], [0], [0], [1], [0, 0, 1, 1], [], []>} : vector<16x32xbf16>, vector<32x32xbf16>, vector<16x32xf32> -> vector<16x32xf32>
    %c0_42 = arith.constant 0 : index
    %c0_43 = arith.constant 0 : index
    %c0_44 = arith.constant 0 : index
    %c0_45 = arith.constant 0 : index
    %59 = vector.load %arg13[%c0_42, %c0_43, %c0_44, %c0_45] : memref<2x3x1x32xf32, #tpu.memory_space<vmem>>, vector<1x1x1x32xf32>
    %60 = vector.shape_cast %59 : vector<1x1x1x32xf32> to vector<1x32xf32>
    %61 = vector.broadcast %60 : vector<1x32xf32> to vector<16x32xf32>
    %62 = arith.addf %58, %61 : vector<16x32xf32>
    %c0_46 = arith.constant 0 : index
    %c0_47 = arith.constant 0 : index
    %c0_48 = arith.constant 0 : index
    %c0_49 = arith.constant 0 : index
    %63 = vector.load %arg14[%c0_46, %c0_47, %c0_48, %c0_49] : memref<2x3x32x32xbf16, #tpu.memory_space<vmem>>, vector<1x1x32x32xbf16>
    %64 = vector.shape_cast %63 : vector<1x1x32x32xbf16> to vector<32x32xbf16>
    %65 = arith.truncf %26 : vector<16x32xf32> to vector<16x32xbf16>
    %cst_50 = arith.constant dense<0.000000e+00> : vector<16x32xf32>
    %66 = tpu.matmul %65, %64, %cst_50 {dimension_numbers = #tpu.dot_dimension_numbers<[1], [0], [0], [1], [0, 0, 1, 1], [], []>} : vector<16x32xbf16>, vector<32x32xbf16>, vector<16x32xf32> -> vector<16x32xf32>
    %c0_51 = arith.constant 0 : index
    %c0_52 = arith.constant 0 : index
    %c0_53 = arith.constant 0 : index
    %c0_54 = arith.constant 0 : index
    %67 = vector.load %arg15[%c0_51, %c0_52, %c0_53, %c0_54] : memref<2x3x1x32xf32, #tpu.memory_space<vmem>>, vector<1x1x1x32xf32>
    %68 = vector.shape_cast %67 : vector<1x1x1x32xf32> to vector<1x32xf32>
    %69 = vector.broadcast %68 : vector<1x32xf32> to vector<16x32xf32>
    %70 = arith.addf %66, %69 : vector<16x32xf32>
    %71 = vector.extract_strided_slice %54 {offsets = [0, 0], sizes = [16, 8], strides = [1, 1]} : vector<16x32xf32> to vector<16x8xf32>
    %72 = vector.extract_strided_slice %62 {offsets = [0, 0], sizes = [16, 8], strides = [1, 1]} : vector<16x32xf32> to vector<16x8xf32>
    %73 = vector.extract_strided_slice %70 {offsets = [0, 0], sizes = [16, 8], strides = [1, 1]} : vector<16x32xf32> to vector<16x8xf32>
    %74 = arith.truncf %71 : vector<16x8xf32> to vector<16x8xbf16>
    %75 = arith.truncf %72 : vector<16x8xf32> to vector<16x8xbf16>
    %cst_55 = arith.constant dense<0.000000e+00> : vector<16x16xf32>
    %76 = tpu.matmul %74, %75, %cst_55 {dimension_numbers = #tpu.dot_dimension_numbers<[1], [1], [0], [0], [0, 0, 1, 0], [], []>} : vector<16x8xbf16>, vector<16x8xbf16>, vector<16x16xf32> -> vector<16x16xf32>
    %cst_56 = arith.constant 0.353553385 : f32
    %77 = vector.broadcast %cst_56 : f32 to vector<16x16xf32>
    %78 = arith.mulf %76, %77 : vector<16x16xf32>
    %cst_57 = arith.constant -1.000000e+09 : f32
    %79 = vector.broadcast %cst_57 : f32 to vector<16x16xf32>
    %80 = arith.select %46, %78, %79 : vector<16x16xi1>, vector<16x16xf32>
    %cst_58 = arith.constant dense<0xFF800000> : vector<16xf32>
    %81 = vector.multi_reduction <maximumf>, %80, %cst_58 [1] : vector<16x16xf32> to vector<16xf32>
    %82 = vector.shape_cast %81 : vector<16xf32> to vector<16x1xf32>
    %83 = vector.broadcast %82 : vector<16x1xf32> to vector<16x16xf32>
    %84 = arith.subf %80, %83 : vector<16x16xf32>
    %85 = math.exp %84 : vector<16x16xf32>
    %cst_59 = arith.constant dense<0.000000e+00> : vector<16xf32>
    %86 = vector.multi_reduction <add>, %85, %cst_59 [1] : vector<16x16xf32> to vector<16xf32>
    %87 = vector.shape_cast %86 : vector<16xf32> to vector<16x1xf32>
    %88 = tpu.reciprocal %87 {approx = true} : vector<16x1xf32> -> vector<16x1xf32>
    %89 = vector.broadcast %88 : vector<16x1xf32> to vector<16x16xf32>
    %90 = arith.mulf %85, %89 : vector<16x16xf32>
    %91 = arith.truncf %90 : vector<16x16xf32> to vector<16x16xbf16>
    %92 = arith.truncf %73 : vector<16x8xf32> to vector<16x8xbf16>
    %cst_60 = arith.constant dense<0.000000e+00> : vector<16x8xf32>
    %93 = tpu.matmul %91, %92, %cst_60 {dimension_numbers = #tpu.dot_dimension_numbers<[1], [0], [0], [1], [0, 0, 1, 1], [], []>} : vector<16x16xbf16>, vector<16x8xbf16>, vector<16x8xf32> -> vector<16x8xf32>
    %c0_61 = arith.constant 0 : index
    %c0_62 = arith.constant 0 : index
    %c0_63 = arith.constant 0 : index
    %c0_64 = arith.constant 0 : index
    %c0_65 = arith.constant 0 : index
    %94 = vector.load %arg16[%c0_61, %c0_62, %c0_63, %c0_64, %c0_65] : memref<2x3x4x8x32xbf16, #tpu.memory_space<vmem>>, vector<1x1x1x8x32xbf16>
    %95 = vector.shape_cast %94 : vector<1x1x1x8x32xbf16> to vector<8x32xbf16>
    %96 = arith.truncf %93 : vector<16x8xf32> to vector<16x8xbf16>
    %cst_66 = arith.constant dense<0.000000e+00> : vector<16x32xf32>
    %97 = tpu.matmul %96, %95, %cst_66 {dimension_numbers = #tpu.dot_dimension_numbers<[1], [0], [0], [1], [0, 0, 1, 1], [], []>} : vector<16x8xbf16>, vector<8x32xbf16>, vector<16x32xf32> -> vector<16x32xf32>
    %98 = vector.extract_strided_slice %54 {offsets = [0, 8], sizes = [16, 8], strides = [1, 1]} : vector<16x32xf32> to vector<16x8xf32>
    %99 = vector.extract_strided_slice %62 {offsets = [0, 8], sizes = [16, 8], strides = [1, 1]} : vector<16x32xf32> to vector<16x8xf32>
    %100 = vector.extract_strided_slice %70 {offsets = [0, 8], sizes = [16, 8], strides = [1, 1]} : vector<16x32xf32> to vector<16x8xf32>
    %101 = arith.truncf %98 : vector<16x8xf32> to vector<16x8xbf16>
    %102 = arith.truncf %99 : vector<16x8xf32> to vector<16x8xbf16>
    %cst_67 = arith.constant dense<0.000000e+00> : vector<16x16xf32>
    %103 = tpu.matmul %101, %102, %cst_67 {dimension_numbers = #tpu.dot_dimension_numbers<[1], [1], [0], [0], [0, 0, 1, 0], [], []>} : vector<16x8xbf16>, vector<16x8xbf16>, vector<16x16xf32> -> vector<16x16xf32>
    %cst_68 = arith.constant 0.353553385 : f32
    %104 = vector.broadcast %cst_68 : f32 to vector<16x16xf32>
    %105 = arith.mulf %103, %104 : vector<16x16xf32>
    %cst_69 = arith.constant -1.000000e+09 : f32
    %106 = vector.broadcast %cst_69 : f32 to vector<16x16xf32>
    %107 = arith.select %46, %105, %106 : vector<16x16xi1>, vector<16x16xf32>
    %cst_70 = arith.constant dense<0xFF800000> : vector<16xf32>
    %108 = vector.multi_reduction <maximumf>, %107, %cst_70 [1] : vector<16x16xf32> to vector<16xf32>
    %109 = vector.shape_cast %108 : vector<16xf32> to vector<16x1xf32>
    %110 = vector.broadcast %109 : vector<16x1xf32> to vector<16x16xf32>
    %111 = arith.subf %107, %110 : vector<16x16xf32>
    %112 = math.exp %111 : vector<16x16xf32>
    %cst_71 = arith.constant dense<0.000000e+00> : vector<16xf32>
    %113 = vector.multi_reduction <add>, %112, %cst_71 [1] : vector<16x16xf32> to vector<16xf32>
    %114 = vector.shape_cast %113 : vector<16xf32> to vector<16x1xf32>
    %115 = tpu.reciprocal %114 {approx = true} : vector<16x1xf32> -> vector<16x1xf32>
    %116 = vector.broadcast %115 : vector<16x1xf32> to vector<16x16xf32>
    %117 = arith.mulf %112, %116 : vector<16x16xf32>
    %118 = arith.truncf %117 : vector<16x16xf32> to vector<16x16xbf16>
    %119 = arith.truncf %100 : vector<16x8xf32> to vector<16x8xbf16>
    %cst_72 = arith.constant dense<0.000000e+00> : vector<16x8xf32>
    %120 = tpu.matmul %118, %119, %cst_72 {dimension_numbers = #tpu.dot_dimension_numbers<[1], [0], [0], [1], [0, 0, 1, 1], [], []>} : vector<16x16xbf16>, vector<16x8xbf16>, vector<16x8xf32> -> vector<16x8xf32>
    %c0_73 = arith.constant 0 : index
    %c0_74 = arith.constant 0 : index
    %c1 = arith.constant 1 : index
    %c0_75 = arith.constant 0 : index
    %c0_76 = arith.constant 0 : index
    %121 = vector.load %arg16[%c0_73, %c0_74, %c1, %c0_75, %c0_76] : memref<2x3x4x8x32xbf16, #tpu.memory_space<vmem>>, vector<1x1x1x8x32xbf16>
    %122 = vector.shape_cast %121 : vector<1x1x1x8x32xbf16> to vector<8x32xbf16>
    %123 = arith.truncf %120 : vector<16x8xf32> to vector<16x8xbf16>
    %cst_77 = arith.constant dense<0.000000e+00> : vector<16x32xf32>
    %124 = tpu.matmul %123, %122, %cst_77 {dimension_numbers = #tpu.dot_dimension_numbers<[1], [0], [0], [1], [0, 0, 1, 1], [], []>} : vector<16x8xbf16>, vector<8x32xbf16>, vector<16x32xf32> -> vector<16x32xf32>
    %125 = arith.addf %97, %124 : vector<16x32xf32>
    %126 = vector.extract_strided_slice %54 {offsets = [0, 16], sizes = [16, 8], strides = [1, 1]} : vector<16x32xf32> to vector<16x8xf32>
    %127 = vector.extract_strided_slice %62 {offsets = [0, 16], sizes = [16, 8], strides = [1, 1]} : vector<16x32xf32> to vector<16x8xf32>
    %128 = vector.extract_strided_slice %70 {offsets = [0, 16], sizes = [16, 8], strides = [1, 1]} : vector<16x32xf32> to vector<16x8xf32>
    %129 = arith.truncf %126 : vector<16x8xf32> to vector<16x8xbf16>
    %130 = arith.truncf %127 : vector<16x8xf32> to vector<16x8xbf16>
    %cst_78 = arith.constant dense<0.000000e+00> : vector<16x16xf32>
    %131 = tpu.matmul %129, %130, %cst_78 {dimension_numbers = #tpu.dot_dimension_numbers<[1], [1], [0], [0], [0, 0, 1, 0], [], []>} : vector<16x8xbf16>, vector<16x8xbf16>, vector<16x16xf32> -> vector<16x16xf32>
    %cst_79 = arith.constant 0.353553385 : f32
    %132 = vector.broadcast %cst_79 : f32 to vector<16x16xf32>
    %133 = arith.mulf %131, %132 : vector<16x16xf32>
    %cst_80 = arith.constant -1.000000e+09 : f32
    %134 = vector.broadcast %cst_80 : f32 to vector<16x16xf32>
    %135 = arith.select %46, %133, %134 : vector<16x16xi1>, vector<16x16xf32>
    %cst_81 = arith.constant dense<0xFF800000> : vector<16xf32>
    %136 = vector.multi_reduction <maximumf>, %135, %cst_81 [1] : vector<16x16xf32> to vector<16xf32>
    %137 = vector.shape_cast %136 : vector<16xf32> to vector<16x1xf32>
    %138 = vector.broadcast %137 : vector<16x1xf32> to vector<16x16xf32>
    %139 = arith.subf %135, %138 : vector<16x16xf32>
    %140 = math.exp %139 : vector<16x16xf32>
    %cst_82 = arith.constant dense<0.000000e+00> : vector<16xf32>
    %141 = vector.multi_reduction <add>, %140, %cst_82 [1] : vector<16x16xf32> to vector<16xf32>
    %142 = vector.shape_cast %141 : vector<16xf32> to vector<16x1xf32>
    %143 = tpu.reciprocal %142 {approx = true} : vector<16x1xf32> -> vector<16x1xf32>
    %144 = vector.broadcast %143 : vector<16x1xf32> to vector<16x16xf32>
    %145 = arith.mulf %140, %144 : vector<16x16xf32>
    %146 = arith.truncf %145 : vector<16x16xf32> to vector<16x16xbf16>
    %147 = arith.truncf %128 : vector<16x8xf32> to vector<16x8xbf16>
    %cst_83 = arith.constant dense<0.000000e+00> : vector<16x8xf32>
    %148 = tpu.matmul %146, %147, %cst_83 {dimension_numbers = #tpu.dot_dimension_numbers<[1], [0], [0], [1], [0, 0, 1, 1], [], []>} : vector<16x16xbf16>, vector<16x8xbf16>, vector<16x8xf32> -> vector<16x8xf32>
    %c0_84 = arith.constant 0 : index
    %c0_85 = arith.constant 0 : index
    %c2 = arith.constant 2 : index
    %c0_86 = arith.constant 0 : index
    %c0_87 = arith.constant 0 : index
    %149 = vector.load %arg16[%c0_84, %c0_85, %c2, %c0_86, %c0_87] : memref<2x3x4x8x32xbf16, #tpu.memory_space<vmem>>, vector<1x1x1x8x32xbf16>
    %150 = vector.shape_cast %149 : vector<1x1x1x8x32xbf16> to vector<8x32xbf16>
    %151 = arith.truncf %148 : vector<16x8xf32> to vector<16x8xbf16>
    %cst_88 = arith.constant dense<0.000000e+00> : vector<16x32xf32>
    %152 = tpu.matmul %151, %150, %cst_88 {dimension_numbers = #tpu.dot_dimension_numbers<[1], [0], [0], [1], [0, 0, 1, 1], [], []>} : vector<16x8xbf16>, vector<8x32xbf16>, vector<16x32xf32> -> vector<16x32xf32>
    %153 = arith.addf %125, %152 : vector<16x32xf32>
    %154 = vector.extract_strided_slice %54 {offsets = [0, 24], sizes = [16, 8], strides = [1, 1]} : vector<16x32xf32> to vector<16x8xf32>
    %155 = vector.extract_strided_slice %62 {offsets = [0, 24], sizes = [16, 8], strides = [1, 1]} : vector<16x32xf32> to vector<16x8xf32>
    %156 = vector.extract_strided_slice %70 {offsets = [0, 24], sizes = [16, 8], strides = [1, 1]} : vector<16x32xf32> to vector<16x8xf32>
    %157 = arith.truncf %154 : vector<16x8xf32> to vector<16x8xbf16>
    %158 = arith.truncf %155 : vector<16x8xf32> to vector<16x8xbf16>
    %cst_89 = arith.constant dense<0.000000e+00> : vector<16x16xf32>
    %159 = tpu.matmul %157, %158, %cst_89 {dimension_numbers = #tpu.dot_dimension_numbers<[1], [1], [0], [0], [0, 0, 1, 0], [], []>} : vector<16x8xbf16>, vector<16x8xbf16>, vector<16x16xf32> -> vector<16x16xf32>
    %cst_90 = arith.constant 0.353553385 : f32
    %160 = vector.broadcast %cst_90 : f32 to vector<16x16xf32>
    %161 = arith.mulf %159, %160 : vector<16x16xf32>
    %cst_91 = arith.constant -1.000000e+09 : f32
    %162 = vector.broadcast %cst_91 : f32 to vector<16x16xf32>
    %163 = arith.select %46, %161, %162 : vector<16x16xi1>, vector<16x16xf32>
    %cst_92 = arith.constant dense<0xFF800000> : vector<16xf32>
    %164 = vector.multi_reduction <maximumf>, %163, %cst_92 [1] : vector<16x16xf32> to vector<16xf32>
    %165 = vector.shape_cast %164 : vector<16xf32> to vector<16x1xf32>
    %166 = vector.broadcast %165 : vector<16x1xf32> to vector<16x16xf32>
    %167 = arith.subf %163, %166 : vector<16x16xf32>
    %168 = math.exp %167 : vector<16x16xf32>
    %cst_93 = arith.constant dense<0.000000e+00> : vector<16xf32>
    %169 = vector.multi_reduction <add>, %168, %cst_93 [1] : vector<16x16xf32> to vector<16xf32>
    %170 = vector.shape_cast %169 : vector<16xf32> to vector<16x1xf32>
    %171 = tpu.reciprocal %170 {approx = true} : vector<16x1xf32> -> vector<16x1xf32>
    %172 = vector.broadcast %171 : vector<16x1xf32> to vector<16x16xf32>
    %173 = arith.mulf %168, %172 : vector<16x16xf32>
    %174 = arith.truncf %173 : vector<16x16xf32> to vector<16x16xbf16>
    %175 = arith.truncf %156 : vector<16x8xf32> to vector<16x8xbf16>
    %cst_94 = arith.constant dense<0.000000e+00> : vector<16x8xf32>
    %176 = tpu.matmul %174, %175, %cst_94 {dimension_numbers = #tpu.dot_dimension_numbers<[1], [0], [0], [1], [0, 0, 1, 1], [], []>} : vector<16x16xbf16>, vector<16x8xbf16>, vector<16x8xf32> -> vector<16x8xf32>
    %c0_95 = arith.constant 0 : index
    %c0_96 = arith.constant 0 : index
    %c3 = arith.constant 3 : index
    %c0_97 = arith.constant 0 : index
    %c0_98 = arith.constant 0 : index
    %177 = vector.load %arg16[%c0_95, %c0_96, %c3, %c0_97, %c0_98] : memref<2x3x4x8x32xbf16, #tpu.memory_space<vmem>>, vector<1x1x1x8x32xbf16>
    %178 = vector.shape_cast %177 : vector<1x1x1x8x32xbf16> to vector<8x32xbf16>
    %179 = arith.truncf %176 : vector<16x8xf32> to vector<16x8xbf16>
    %cst_99 = arith.constant dense<0.000000e+00> : vector<16x32xf32>
    %180 = tpu.matmul %179, %178, %cst_99 {dimension_numbers = #tpu.dot_dimension_numbers<[1], [0], [0], [1], [0, 0, 1, 1], [], []>} : vector<16x8xbf16>, vector<8x32xbf16>, vector<16x32xf32> -> vector<16x32xf32>
    %181 = arith.addf %153, %180 : vector<16x32xf32>
    %c0_100 = arith.constant 0 : index
    %c0_101 = arith.constant 0 : index
    %c0_102 = arith.constant 0 : index
    %c0_103 = arith.constant 0 : index
    %182 = vector.load %arg17[%c0_100, %c0_101, %c0_102, %c0_103] : memref<2x3x1x32xf32, #tpu.memory_space<vmem>>, vector<1x1x1x32xf32>
    %183 = vector.shape_cast %182 : vector<1x1x1x32xf32> to vector<1x32xf32>
    %184 = vector.broadcast %183 : vector<1x32xf32> to vector<16x32xf32>
    %185 = arith.addf %181, %184 : vector<16x32xf32>
    %c0_104 = arith.constant 0 : index
    %c0_105 = arith.constant 0 : index
    %c0_106 = arith.constant 0 : index
    %c0_107 = arith.constant 0 : index
    %186 = vector.load %arg18[%c0_104, %c0_105, %c0_106, %c0_107] : memref<2x3x32x64xbf16, #tpu.memory_space<vmem>>, vector<1x1x32x64xbf16>
    %187 = vector.shape_cast %186 : vector<1x1x32x64xbf16> to vector<32x64xbf16>
    %188 = arith.truncf %185 : vector<16x32xf32> to vector<16x32xbf16>
    %cst_108 = arith.constant dense<0.000000e+00> : vector<16x64xf32>
    %189 = tpu.matmul %188, %187, %cst_108 {dimension_numbers = #tpu.dot_dimension_numbers<[1], [0], [0], [1], [0, 0, 1, 1], [], []>} : vector<16x32xbf16>, vector<32x64xbf16>, vector<16x64xf32> -> vector<16x64xf32>
    %c0_109 = arith.constant 0 : index
    %c0_110 = arith.constant 0 : index
    %c0_111 = arith.constant 0 : index
    %c0_112 = arith.constant 0 : index
    %190 = vector.load %arg19[%c0_109, %c0_110, %c0_111, %c0_112] : memref<2x3x32x64xbf16, #tpu.memory_space<vmem>>, vector<1x1x32x64xbf16>
    %191 = vector.shape_cast %190 : vector<1x1x32x64xbf16> to vector<32x64xbf16>
    %192 = arith.truncf %25 : vector<16x32xf32> to vector<16x32xbf16>
    %cst_113 = arith.constant dense<0.000000e+00> : vector<16x64xf32>
    %193 = tpu.matmul %192, %191, %cst_113 {dimension_numbers = #tpu.dot_dimension_numbers<[1], [0], [0], [1], [0, 0, 1, 1], [], []>} : vector<16x32xbf16>, vector<32x64xbf16>, vector<16x64xf32> -> vector<16x64xf32>
    %194 = arith.addf %189, %193 : vector<16x64xf32>
    %c0_114 = arith.constant 0 : index
    %c0_115 = arith.constant 0 : index
    %c0_116 = arith.constant 0 : index
    %c0_117 = arith.constant 0 : index
    %195 = vector.load %arg20[%c0_114, %c0_115, %c0_116, %c0_117] : memref<2x3x1x64xf32, #tpu.memory_space<vmem>>, vector<1x1x1x64xf32>
    %196 = vector.shape_cast %195 : vector<1x1x1x64xf32> to vector<1x64xf32>
    %197 = vector.broadcast %196 : vector<1x64xf32> to vector<16x64xf32>
    %198 = arith.addf %194, %197 : vector<16x64xf32>
    %cst_118 = arith.constant 0.000000e+00 : f32
    %199 = vector.broadcast %cst_118 : f32 to vector<16x64xf32>
    %200 = arith.maximumf %198, %199 : vector<16x64xf32>
    %c0_119 = arith.constant 0 : index
    %c0_120 = arith.constant 0 : index
    %c0_121 = arith.constant 0 : index
    %c0_122 = arith.constant 0 : index
    %201 = vector.load %arg21[%c0_119, %c0_120, %c0_121, %c0_122] : memref<2x3x64x32xbf16, #tpu.memory_space<vmem>>, vector<1x1x64x32xbf16>
    %202 = vector.shape_cast %201 : vector<1x1x64x32xbf16> to vector<64x32xbf16>
    %203 = arith.truncf %200 : vector<16x64xf32> to vector<16x64xbf16>
    %cst_123 = arith.constant dense<0.000000e+00> : vector<16x32xf32>
    %204 = tpu.matmul %203, %202, %cst_123 {dimension_numbers = #tpu.dot_dimension_numbers<[1], [0], [0], [1], [0, 0, 1, 1], [], []>} : vector<16x64xbf16>, vector<64x32xbf16>, vector<16x32xf32> -> vector<16x32xf32>
    %c0_124 = arith.constant 0 : index
    %c0_125 = arith.constant 0 : index
    %c0_126 = arith.constant 0 : index
    %c0_127 = arith.constant 0 : index
    %205 = vector.load %arg22[%c0_124, %c0_125, %c0_126, %c0_127] : memref<2x3x1x32xf32, #tpu.memory_space<vmem>>, vector<1x1x1x32xf32>
    %206 = vector.shape_cast %205 : vector<1x1x1x32xf32> to vector<1x32xf32>
    %207 = vector.broadcast %206 : vector<1x32xf32> to vector<16x32xf32>
    %208 = arith.addf %204, %207 : vector<16x32xf32>
    %209 = vector.broadcast %35 : vector<16x1xi1> to vector<16x16xi1>
    %210 = vector.broadcast %43 : vector<1x16xi1> to vector<16x16xi1>
    %211 = arith.andi %209, %210 : vector<16x16xi1>
    %c0_128 = arith.constant 0 : index
    %c1_129 = arith.constant 1 : index
    %c0_130 = arith.constant 0 : index
    %c0_131 = arith.constant 0 : index
    %212 = vector.load %arg10[%c0_128, %c1_129, %c0_130, %c0_131] : memref<2x3x32x32xbf16, #tpu.memory_space<vmem>>, vector<1x1x32x32xbf16>
    %213 = vector.shape_cast %212 : vector<1x1x32x32xbf16> to vector<32x32xbf16>
    %214 = arith.truncf %26 : vector<16x32xf32> to vector<16x32xbf16>
    %cst_132 = arith.constant dense<0.000000e+00> : vector<16x32xf32>
    %215 = tpu.matmul %214, %213, %cst_132 {dimension_numbers = #tpu.dot_dimension_numbers<[1], [0], [0], [1], [0, 0, 1, 1], [], []>} : vector<16x32xbf16>, vector<32x32xbf16>, vector<16x32xf32> -> vector<16x32xf32>
    %c0_133 = arith.constant 0 : index
    %c1_134 = arith.constant 1 : index
    %c0_135 = arith.constant 0 : index
    %c0_136 = arith.constant 0 : index
    %216 = vector.load %arg11[%c0_133, %c1_134, %c0_135, %c0_136] : memref<2x3x1x32xf32, #tpu.memory_space<vmem>>, vector<1x1x1x32xf32>
    %217 = vector.shape_cast %216 : vector<1x1x1x32xf32> to vector<1x32xf32>
    %218 = vector.broadcast %217 : vector<1x32xf32> to vector<16x32xf32>
    %219 = arith.addf %215, %218 : vector<16x32xf32>
    %c0_137 = arith.constant 0 : index
    %c1_138 = arith.constant 1 : index
    %c0_139 = arith.constant 0 : index
    %c0_140 = arith.constant 0 : index
    %220 = vector.load %arg12[%c0_137, %c1_138, %c0_139, %c0_140] : memref<2x3x32x32xbf16, #tpu.memory_space<vmem>>, vector<1x1x32x32xbf16>
    %221 = vector.shape_cast %220 : vector<1x1x32x32xbf16> to vector<32x32xbf16>
    %222 = arith.truncf %26 : vector<16x32xf32> to vector<16x32xbf16>
    %cst_141 = arith.constant dense<0.000000e+00> : vector<16x32xf32>
    %223 = tpu.matmul %222, %221, %cst_141 {dimension_numbers = #tpu.dot_dimension_numbers<[1], [0], [0], [1], [0, 0, 1, 1], [], []>} : vector<16x32xbf16>, vector<32x32xbf16>, vector<16x32xf32> -> vector<16x32xf32>
    %c0_142 = arith.constant 0 : index
    %c1_143 = arith.constant 1 : index
    %c0_144 = arith.constant 0 : index
    %c0_145 = arith.constant 0 : index
    %224 = vector.load %arg13[%c0_142, %c1_143, %c0_144, %c0_145] : memref<2x3x1x32xf32, #tpu.memory_space<vmem>>, vector<1x1x1x32xf32>
    %225 = vector.shape_cast %224 : vector<1x1x1x32xf32> to vector<1x32xf32>
    %226 = vector.broadcast %225 : vector<1x32xf32> to vector<16x32xf32>
    %227 = arith.addf %223, %226 : vector<16x32xf32>
    %c0_146 = arith.constant 0 : index
    %c1_147 = arith.constant 1 : index
    %c0_148 = arith.constant 0 : index
    %c0_149 = arith.constant 0 : index
    %228 = vector.load %arg14[%c0_146, %c1_147, %c0_148, %c0_149] : memref<2x3x32x32xbf16, #tpu.memory_space<vmem>>, vector<1x1x32x32xbf16>
    %229 = vector.shape_cast %228 : vector<1x1x32x32xbf16> to vector<32x32xbf16>
    %230 = arith.truncf %26 : vector<16x32xf32> to vector<16x32xbf16>
    %cst_150 = arith.constant dense<0.000000e+00> : vector<16x32xf32>
    %231 = tpu.matmul %230, %229, %cst_150 {dimension_numbers = #tpu.dot_dimension_numbers<[1], [0], [0], [1], [0, 0, 1, 1], [], []>} : vector<16x32xbf16>, vector<32x32xbf16>, vector<16x32xf32> -> vector<16x32xf32>
    %c0_151 = arith.constant 0 : index
    %c1_152 = arith.constant 1 : index
    %c0_153 = arith.constant 0 : index
    %c0_154 = arith.constant 0 : index
    %232 = vector.load %arg15[%c0_151, %c1_152, %c0_153, %c0_154] : memref<2x3x1x32xf32, #tpu.memory_space<vmem>>, vector<1x1x1x32xf32>
    %233 = vector.shape_cast %232 : vector<1x1x1x32xf32> to vector<1x32xf32>
    %234 = vector.broadcast %233 : vector<1x32xf32> to vector<16x32xf32>
    %235 = arith.addf %231, %234 : vector<16x32xf32>
    %236 = vector.extract_strided_slice %219 {offsets = [0, 0], sizes = [16, 8], strides = [1, 1]} : vector<16x32xf32> to vector<16x8xf32>
    %237 = vector.extract_strided_slice %227 {offsets = [0, 0], sizes = [16, 8], strides = [1, 1]} : vector<16x32xf32> to vector<16x8xf32>
    %238 = vector.extract_strided_slice %235 {offsets = [0, 0], sizes = [16, 8], strides = [1, 1]} : vector<16x32xf32> to vector<16x8xf32>
    %239 = arith.truncf %236 : vector<16x8xf32> to vector<16x8xbf16>
    %240 = arith.truncf %237 : vector<16x8xf32> to vector<16x8xbf16>
    %cst_155 = arith.constant dense<0.000000e+00> : vector<16x16xf32>
    %241 = tpu.matmul %239, %240, %cst_155 {dimension_numbers = #tpu.dot_dimension_numbers<[1], [1], [0], [0], [0, 0, 1, 0], [], []>} : vector<16x8xbf16>, vector<16x8xbf16>, vector<16x16xf32> -> vector<16x16xf32>
    %cst_156 = arith.constant 0.353553385 : f32
    %242 = vector.broadcast %cst_156 : f32 to vector<16x16xf32>
    %243 = arith.mulf %241, %242 : vector<16x16xf32>
    %cst_157 = arith.constant -1.000000e+09 : f32
    %244 = vector.broadcast %cst_157 : f32 to vector<16x16xf32>
    %245 = arith.select %211, %243, %244 : vector<16x16xi1>, vector<16x16xf32>
    %cst_158 = arith.constant dense<0xFF800000> : vector<16xf32>
    %246 = vector.multi_reduction <maximumf>, %245, %cst_158 [1] : vector<16x16xf32> to vector<16xf32>
    %247 = vector.shape_cast %246 : vector<16xf32> to vector<16x1xf32>
    %248 = vector.broadcast %247 : vector<16x1xf32> to vector<16x16xf32>
    %249 = arith.subf %245, %248 : vector<16x16xf32>
    %250 = math.exp %249 : vector<16x16xf32>
    %cst_159 = arith.constant dense<0.000000e+00> : vector<16xf32>
    %251 = vector.multi_reduction <add>, %250, %cst_159 [1] : vector<16x16xf32> to vector<16xf32>
    %252 = vector.shape_cast %251 : vector<16xf32> to vector<16x1xf32>
    %253 = tpu.reciprocal %252 {approx = true} : vector<16x1xf32> -> vector<16x1xf32>
    %254 = vector.broadcast %253 : vector<16x1xf32> to vector<16x16xf32>
    %255 = arith.mulf %250, %254 : vector<16x16xf32>
    %256 = arith.truncf %255 : vector<16x16xf32> to vector<16x16xbf16>
    %257 = arith.truncf %238 : vector<16x8xf32> to vector<16x8xbf16>
    %cst_160 = arith.constant dense<0.000000e+00> : vector<16x8xf32>
    %258 = tpu.matmul %256, %257, %cst_160 {dimension_numbers = #tpu.dot_dimension_numbers<[1], [0], [0], [1], [0, 0, 1, 1], [], []>} : vector<16x16xbf16>, vector<16x8xbf16>, vector<16x8xf32> -> vector<16x8xf32>
    %c0_161 = arith.constant 0 : index
    %c1_162 = arith.constant 1 : index
    %c0_163 = arith.constant 0 : index
    %c0_164 = arith.constant 0 : index
    %c0_165 = arith.constant 0 : index
    %259 = vector.load %arg16[%c0_161, %c1_162, %c0_163, %c0_164, %c0_165] : memref<2x3x4x8x32xbf16, #tpu.memory_space<vmem>>, vector<1x1x1x8x32xbf16>
    %260 = vector.shape_cast %259 : vector<1x1x1x8x32xbf16> to vector<8x32xbf16>
    %261 = arith.truncf %258 : vector<16x8xf32> to vector<16x8xbf16>
    %cst_166 = arith.constant dense<0.000000e+00> : vector<16x32xf32>
    %262 = tpu.matmul %261, %260, %cst_166 {dimension_numbers = #tpu.dot_dimension_numbers<[1], [0], [0], [1], [0, 0, 1, 1], [], []>} : vector<16x8xbf16>, vector<8x32xbf16>, vector<16x32xf32> -> vector<16x32xf32>
    %263 = vector.extract_strided_slice %219 {offsets = [0, 8], sizes = [16, 8], strides = [1, 1]} : vector<16x32xf32> to vector<16x8xf32>
    %264 = vector.extract_strided_slice %227 {offsets = [0, 8], sizes = [16, 8], strides = [1, 1]} : vector<16x32xf32> to vector<16x8xf32>
    %265 = vector.extract_strided_slice %235 {offsets = [0, 8], sizes = [16, 8], strides = [1, 1]} : vector<16x32xf32> to vector<16x8xf32>
    %266 = arith.truncf %263 : vector<16x8xf32> to vector<16x8xbf16>
    %267 = arith.truncf %264 : vector<16x8xf32> to vector<16x8xbf16>
    %cst_167 = arith.constant dense<0.000000e+00> : vector<16x16xf32>
    %268 = tpu.matmul %266, %267, %cst_167 {dimension_numbers = #tpu.dot_dimension_numbers<[1], [1], [0], [0], [0, 0, 1, 0], [], []>} : vector<16x8xbf16>, vector<16x8xbf16>, vector<16x16xf32> -> vector<16x16xf32>
    %cst_168 = arith.constant 0.353553385 : f32
    %269 = vector.broadcast %cst_168 : f32 to vector<16x16xf32>
    %270 = arith.mulf %268, %269 : vector<16x16xf32>
    %cst_169 = arith.constant -1.000000e+09 : f32
    %271 = vector.broadcast %cst_169 : f32 to vector<16x16xf32>
    %272 = arith.select %211, %270, %271 : vector<16x16xi1>, vector<16x16xf32>
    %cst_170 = arith.constant dense<0xFF800000> : vector<16xf32>
    %273 = vector.multi_reduction <maximumf>, %272, %cst_170 [1] : vector<16x16xf32> to vector<16xf32>
    %274 = vector.shape_cast %273 : vector<16xf32> to vector<16x1xf32>
    %275 = vector.broadcast %274 : vector<16x1xf32> to vector<16x16xf32>
    %276 = arith.subf %272, %275 : vector<16x16xf32>
    %277 = math.exp %276 : vector<16x16xf32>
    %cst_171 = arith.constant dense<0.000000e+00> : vector<16xf32>
    %278 = vector.multi_reduction <add>, %277, %cst_171 [1] : vector<16x16xf32> to vector<16xf32>
    %279 = vector.shape_cast %278 : vector<16xf32> to vector<16x1xf32>
    %280 = tpu.reciprocal %279 {approx = true} : vector<16x1xf32> -> vector<16x1xf32>
    %281 = vector.broadcast %280 : vector<16x1xf32> to vector<16x16xf32>
    %282 = arith.mulf %277, %281 : vector<16x16xf32>
    %283 = arith.truncf %282 : vector<16x16xf32> to vector<16x16xbf16>
    %284 = arith.truncf %265 : vector<16x8xf32> to vector<16x8xbf16>
    %cst_172 = arith.constant dense<0.000000e+00> : vector<16x8xf32>
    %285 = tpu.matmul %283, %284, %cst_172 {dimension_numbers = #tpu.dot_dimension_numbers<[1], [0], [0], [1], [0, 0, 1, 1], [], []>} : vector<16x16xbf16>, vector<16x8xbf16>, vector<16x8xf32> -> vector<16x8xf32>
    %c0_173 = arith.constant 0 : index
    %c1_174 = arith.constant 1 : index
    %c1_175 = arith.constant 1 : index
    %c0_176 = arith.constant 0 : index
    %c0_177 = arith.constant 0 : index
    %286 = vector.load %arg16[%c0_173, %c1_174, %c1_175, %c0_176, %c0_177] : memref<2x3x4x8x32xbf16, #tpu.memory_space<vmem>>, vector<1x1x1x8x32xbf16>
    %287 = vector.shape_cast %286 : vector<1x1x1x8x32xbf16> to vector<8x32xbf16>
    %288 = arith.truncf %285 : vector<16x8xf32> to vector<16x8xbf16>
    %cst_178 = arith.constant dense<0.000000e+00> : vector<16x32xf32>
    %289 = tpu.matmul %288, %287, %cst_178 {dimension_numbers = #tpu.dot_dimension_numbers<[1], [0], [0], [1], [0, 0, 1, 1], [], []>} : vector<16x8xbf16>, vector<8x32xbf16>, vector<16x32xf32> -> vector<16x32xf32>
    %290 = arith.addf %262, %289 : vector<16x32xf32>
    %291 = vector.extract_strided_slice %219 {offsets = [0, 16], sizes = [16, 8], strides = [1, 1]} : vector<16x32xf32> to vector<16x8xf32>
    %292 = vector.extract_strided_slice %227 {offsets = [0, 16], sizes = [16, 8], strides = [1, 1]} : vector<16x32xf32> to vector<16x8xf32>
    %293 = vector.extract_strided_slice %235 {offsets = [0, 16], sizes = [16, 8], strides = [1, 1]} : vector<16x32xf32> to vector<16x8xf32>
    %294 = arith.truncf %291 : vector<16x8xf32> to vector<16x8xbf16>
    %295 = arith.truncf %292 : vector<16x8xf32> to vector<16x8xbf16>
    %cst_179 = arith.constant dense<0.000000e+00> : vector<16x16xf32>
    %296 = tpu.matmul %294, %295, %cst_179 {dimension_numbers = #tpu.dot_dimension_numbers<[1], [1], [0], [0], [0, 0, 1, 0], [], []>} : vector<16x8xbf16>, vector<16x8xbf16>, vector<16x16xf32> -> vector<16x16xf32>
    %cst_180 = arith.constant 0.353553385 : f32
    %297 = vector.broadcast %cst_180 : f32 to vector<16x16xf32>
    %298 = arith.mulf %296, %297 : vector<16x16xf32>
    %cst_181 = arith.constant -1.000000e+09 : f32
    %299 = vector.broadcast %cst_181 : f32 to vector<16x16xf32>
    %300 = arith.select %211, %298, %299 : vector<16x16xi1>, vector<16x16xf32>
    %cst_182 = arith.constant dense<0xFF800000> : vector<16xf32>
    %301 = vector.multi_reduction <maximumf>, %300, %cst_182 [1] : vector<16x16xf32> to vector<16xf32>
    %302 = vector.shape_cast %301 : vector<16xf32> to vector<16x1xf32>
    %303 = vector.broadcast %302 : vector<16x1xf32> to vector<16x16xf32>
    %304 = arith.subf %300, %303 : vector<16x16xf32>
    %305 = math.exp %304 : vector<16x16xf32>
    %cst_183 = arith.constant dense<0.000000e+00> : vector<16xf32>
    %306 = vector.multi_reduction <add>, %305, %cst_183 [1] : vector<16x16xf32> to vector<16xf32>
    %307 = vector.shape_cast %306 : vector<16xf32> to vector<16x1xf32>
    %308 = tpu.reciprocal %307 {approx = true} : vector<16x1xf32> -> vector<16x1xf32>
    %309 = vector.broadcast %308 : vector<16x1xf32> to vector<16x16xf32>
    %310 = arith.mulf %305, %309 : vector<16x16xf32>
    %311 = arith.truncf %310 : vector<16x16xf32> to vector<16x16xbf16>
    %312 = arith.truncf %293 : vector<16x8xf32> to vector<16x8xbf16>
    %cst_184 = arith.constant dense<0.000000e+00> : vector<16x8xf32>
    %313 = tpu.matmul %311, %312, %cst_184 {dimension_numbers = #tpu.dot_dimension_numbers<[1], [0], [0], [1], [0, 0, 1, 1], [], []>} : vector<16x16xbf16>, vector<16x8xbf16>, vector<16x8xf32> -> vector<16x8xf32>
    %c0_185 = arith.constant 0 : index
    %c1_186 = arith.constant 1 : index
    %c2_187 = arith.constant 2 : index
    %c0_188 = arith.constant 0 : index
    %c0_189 = arith.constant 0 : index
    %314 = vector.load %arg16[%c0_185, %c1_186, %c2_187, %c0_188, %c0_189] : memref<2x3x4x8x32xbf16, #tpu.memory_space<vmem>>, vector<1x1x1x8x32xbf16>
    %315 = vector.shape_cast %314 : vector<1x1x1x8x32xbf16> to vector<8x32xbf16>
    %316 = arith.truncf %313 : vector<16x8xf32> to vector<16x8xbf16>
    %cst_190 = arith.constant dense<0.000000e+00> : vector<16x32xf32>
    %317 = tpu.matmul %316, %315, %cst_190 {dimension_numbers = #tpu.dot_dimension_numbers<[1], [0], [0], [1], [0, 0, 1, 1], [], []>} : vector<16x8xbf16>, vector<8x32xbf16>, vector<16x32xf32> -> vector<16x32xf32>
    %318 = arith.addf %290, %317 : vector<16x32xf32>
    %319 = vector.extract_strided_slice %219 {offsets = [0, 24], sizes = [16, 8], strides = [1, 1]} : vector<16x32xf32> to vector<16x8xf32>
    %320 = vector.extract_strided_slice %227 {offsets = [0, 24], sizes = [16, 8], strides = [1, 1]} : vector<16x32xf32> to vector<16x8xf32>
    %321 = vector.extract_strided_slice %235 {offsets = [0, 24], sizes = [16, 8], strides = [1, 1]} : vector<16x32xf32> to vector<16x8xf32>
    %322 = arith.truncf %319 : vector<16x8xf32> to vector<16x8xbf16>
    %323 = arith.truncf %320 : vector<16x8xf32> to vector<16x8xbf16>
    %cst_191 = arith.constant dense<0.000000e+00> : vector<16x16xf32>
    %324 = tpu.matmul %322, %323, %cst_191 {dimension_numbers = #tpu.dot_dimension_numbers<[1], [1], [0], [0], [0, 0, 1, 0], [], []>} : vector<16x8xbf16>, vector<16x8xbf16>, vector<16x16xf32> -> vector<16x16xf32>
    %cst_192 = arith.constant 0.353553385 : f32
    %325 = vector.broadcast %cst_192 : f32 to vector<16x16xf32>
    %326 = arith.mulf %324, %325 : vector<16x16xf32>
    %cst_193 = arith.constant -1.000000e+09 : f32
    %327 = vector.broadcast %cst_193 : f32 to vector<16x16xf32>
    %328 = arith.select %211, %326, %327 : vector<16x16xi1>, vector<16x16xf32>
    %cst_194 = arith.constant dense<0xFF800000> : vector<16xf32>
    %329 = vector.multi_reduction <maximumf>, %328, %cst_194 [1] : vector<16x16xf32> to vector<16xf32>
    %330 = vector.shape_cast %329 : vector<16xf32> to vector<16x1xf32>
    %331 = vector.broadcast %330 : vector<16x1xf32> to vector<16x16xf32>
    %332 = arith.subf %328, %331 : vector<16x16xf32>
    %333 = math.exp %332 : vector<16x16xf32>
    %cst_195 = arith.constant dense<0.000000e+00> : vector<16xf32>
    %334 = vector.multi_reduction <add>, %333, %cst_195 [1] : vector<16x16xf32> to vector<16xf32>
    %335 = vector.shape_cast %334 : vector<16xf32> to vector<16x1xf32>
    %336 = tpu.reciprocal %335 {approx = true} : vector<16x1xf32> -> vector<16x1xf32>
    %337 = vector.broadcast %336 : vector<16x1xf32> to vector<16x16xf32>
    %338 = arith.mulf %333, %337 : vector<16x16xf32>
    %339 = arith.truncf %338 : vector<16x16xf32> to vector<16x16xbf16>
    %340 = arith.truncf %321 : vector<16x8xf32> to vector<16x8xbf16>
    %cst_196 = arith.constant dense<0.000000e+00> : vector<16x8xf32>
    %341 = tpu.matmul %339, %340, %cst_196 {dimension_numbers = #tpu.dot_dimension_numbers<[1], [0], [0], [1], [0, 0, 1, 1], [], []>} : vector<16x16xbf16>, vector<16x8xbf16>, vector<16x8xf32> -> vector<16x8xf32>
    %c0_197 = arith.constant 0 : index
    %c1_198 = arith.constant 1 : index
    %c3_199 = arith.constant 3 : index
    %c0_200 = arith.constant 0 : index
    %c0_201 = arith.constant 0 : index
    %342 = vector.load %arg16[%c0_197, %c1_198, %c3_199, %c0_200, %c0_201] : memref<2x3x4x8x32xbf16, #tpu.memory_space<vmem>>, vector<1x1x1x8x32xbf16>
    %343 = vector.shape_cast %342 : vector<1x1x1x8x32xbf16> to vector<8x32xbf16>
    %344 = arith.truncf %341 : vector<16x8xf32> to vector<16x8xbf16>
    %cst_202 = arith.constant dense<0.000000e+00> : vector<16x32xf32>
    %345 = tpu.matmul %344, %343, %cst_202 {dimension_numbers = #tpu.dot_dimension_numbers<[1], [0], [0], [1], [0, 0, 1, 1], [], []>} : vector<16x8xbf16>, vector<8x32xbf16>, vector<16x32xf32> -> vector<16x32xf32>
    %346 = arith.addf %318, %345 : vector<16x32xf32>
    %c0_203 = arith.constant 0 : index
    %c1_204 = arith.constant 1 : index
    %c0_205 = arith.constant 0 : index
    %c0_206 = arith.constant 0 : index
    %347 = vector.load %arg17[%c0_203, %c1_204, %c0_205, %c0_206] : memref<2x3x1x32xf32, #tpu.memory_space<vmem>>, vector<1x1x1x32xf32>
    %348 = vector.shape_cast %347 : vector<1x1x1x32xf32> to vector<1x32xf32>
    %349 = vector.broadcast %348 : vector<1x32xf32> to vector<16x32xf32>
    %350 = arith.addf %346, %349 : vector<16x32xf32>
    %c0_207 = arith.constant 0 : index
    %c1_208 = arith.constant 1 : index
    %c0_209 = arith.constant 0 : index
    %c0_210 = arith.constant 0 : index
    %351 = vector.load %arg18[%c0_207, %c1_208, %c0_209, %c0_210] : memref<2x3x32x64xbf16, #tpu.memory_space<vmem>>, vector<1x1x32x64xbf16>
    %352 = vector.shape_cast %351 : vector<1x1x32x64xbf16> to vector<32x64xbf16>
    %353 = arith.truncf %350 : vector<16x32xf32> to vector<16x32xbf16>
    %cst_211 = arith.constant dense<0.000000e+00> : vector<16x64xf32>
    %354 = tpu.matmul %353, %352, %cst_211 {dimension_numbers = #tpu.dot_dimension_numbers<[1], [0], [0], [1], [0, 0, 1, 1], [], []>} : vector<16x32xbf16>, vector<32x64xbf16>, vector<16x64xf32> -> vector<16x64xf32>
    %c0_212 = arith.constant 0 : index
    %c1_213 = arith.constant 1 : index
    %c0_214 = arith.constant 0 : index
    %c0_215 = arith.constant 0 : index
    %355 = vector.load %arg19[%c0_212, %c1_213, %c0_214, %c0_215] : memref<2x3x32x64xbf16, #tpu.memory_space<vmem>>, vector<1x1x32x64xbf16>
    %356 = vector.shape_cast %355 : vector<1x1x32x64xbf16> to vector<32x64xbf16>
    %357 = arith.truncf %26 : vector<16x32xf32> to vector<16x32xbf16>
    %cst_216 = arith.constant dense<0.000000e+00> : vector<16x64xf32>
    %358 = tpu.matmul %357, %356, %cst_216 {dimension_numbers = #tpu.dot_dimension_numbers<[1], [0], [0], [1], [0, 0, 1, 1], [], []>} : vector<16x32xbf16>, vector<32x64xbf16>, vector<16x64xf32> -> vector<16x64xf32>
    %359 = arith.addf %354, %358 : vector<16x64xf32>
    %c0_217 = arith.constant 0 : index
    %c1_218 = arith.constant 1 : index
    %c0_219 = arith.constant 0 : index
    %c0_220 = arith.constant 0 : index
    %360 = vector.load %arg20[%c0_217, %c1_218, %c0_219, %c0_220] : memref<2x3x1x64xf32, #tpu.memory_space<vmem>>, vector<1x1x1x64xf32>
    %361 = vector.shape_cast %360 : vector<1x1x1x64xf32> to vector<1x64xf32>
    %362 = vector.broadcast %361 : vector<1x64xf32> to vector<16x64xf32>
    %363 = arith.addf %359, %362 : vector<16x64xf32>
    %cst_221 = arith.constant 0.000000e+00 : f32
    %364 = vector.broadcast %cst_221 : f32 to vector<16x64xf32>
    %365 = arith.maximumf %363, %364 : vector<16x64xf32>
    %c0_222 = arith.constant 0 : index
    %c1_223 = arith.constant 1 : index
    %c0_224 = arith.constant 0 : index
    %c0_225 = arith.constant 0 : index
    %366 = vector.load %arg21[%c0_222, %c1_223, %c0_224, %c0_225] : memref<2x3x64x32xbf16, #tpu.memory_space<vmem>>, vector<1x1x64x32xbf16>
    %367 = vector.shape_cast %366 : vector<1x1x64x32xbf16> to vector<64x32xbf16>
    %368 = arith.truncf %365 : vector<16x64xf32> to vector<16x64xbf16>
    %cst_226 = arith.constant dense<0.000000e+00> : vector<16x32xf32>
    %369 = tpu.matmul %368, %367, %cst_226 {dimension_numbers = #tpu.dot_dimension_numbers<[1], [0], [0], [1], [0, 0, 1, 1], [], []>} : vector<16x64xbf16>, vector<64x32xbf16>, vector<16x32xf32> -> vector<16x32xf32>
    %c0_227 = arith.constant 0 : index
    %c1_228 = arith.constant 1 : index
    %c0_229 = arith.constant 0 : index
    %c0_230 = arith.constant 0 : index
    %370 = vector.load %arg22[%c0_227, %c1_228, %c0_229, %c0_230] : memref<2x3x1x32xf32, #tpu.memory_space<vmem>>, vector<1x1x1x32xf32>
    %371 = vector.shape_cast %370 : vector<1x1x1x32xf32> to vector<1x32xf32>
    %372 = vector.broadcast %371 : vector<1x32xf32> to vector<16x32xf32>
    %373 = arith.addf %369, %372 : vector<16x32xf32>
    %374 = vector.broadcast %38 : vector<16x1xi1> to vector<16x16xi1>
    %375 = vector.broadcast %43 : vector<1x16xi1> to vector<16x16xi1>
    %376 = arith.andi %374, %375 : vector<16x16xi1>
    %c0_231 = arith.constant 0 : index
    %c2_232 = arith.constant 2 : index
    %c0_233 = arith.constant 0 : index
    %c0_234 = arith.constant 0 : index
    %377 = vector.load %arg10[%c0_231, %c2_232, %c0_233, %c0_234] : memref<2x3x32x32xbf16, #tpu.memory_space<vmem>>, vector<1x1x32x32xbf16>
    %378 = vector.shape_cast %377 : vector<1x1x32x32xbf16> to vector<32x32xbf16>
    %379 = arith.truncf %27 : vector<16x32xf32> to vector<16x32xbf16>
    %cst_235 = arith.constant dense<0.000000e+00> : vector<16x32xf32>
    %380 = tpu.matmul %379, %378, %cst_235 {dimension_numbers = #tpu.dot_dimension_numbers<[1], [0], [0], [1], [0, 0, 1, 1], [], []>} : vector<16x32xbf16>, vector<32x32xbf16>, vector<16x32xf32> -> vector<16x32xf32>
    %c0_236 = arith.constant 0 : index
    %c2_237 = arith.constant 2 : index
    %c0_238 = arith.constant 0 : index
    %c0_239 = arith.constant 0 : index
    %381 = vector.load %arg11[%c0_236, %c2_237, %c0_238, %c0_239] : memref<2x3x1x32xf32, #tpu.memory_space<vmem>>, vector<1x1x1x32xf32>
    %382 = vector.shape_cast %381 : vector<1x1x1x32xf32> to vector<1x32xf32>
    %383 = vector.broadcast %382 : vector<1x32xf32> to vector<16x32xf32>
    %384 = arith.addf %380, %383 : vector<16x32xf32>
    %c0_240 = arith.constant 0 : index
    %c2_241 = arith.constant 2 : index
    %c0_242 = arith.constant 0 : index
    %c0_243 = arith.constant 0 : index
    %385 = vector.load %arg12[%c0_240, %c2_241, %c0_242, %c0_243] : memref<2x3x32x32xbf16, #tpu.memory_space<vmem>>, vector<1x1x32x32xbf16>
    %386 = vector.shape_cast %385 : vector<1x1x32x32xbf16> to vector<32x32xbf16>
    %387 = arith.truncf %26 : vector<16x32xf32> to vector<16x32xbf16>
    %cst_244 = arith.constant dense<0.000000e+00> : vector<16x32xf32>
    %388 = tpu.matmul %387, %386, %cst_244 {dimension_numbers = #tpu.dot_dimension_numbers<[1], [0], [0], [1], [0, 0, 1, 1], [], []>} : vector<16x32xbf16>, vector<32x32xbf16>, vector<16x32xf32> -> vector<16x32xf32>
    %c0_245 = arith.constant 0 : index
    %c2_246 = arith.constant 2 : index
    %c0_247 = arith.constant 0 : index
    %c0_248 = arith.constant 0 : index
    %389 = vector.load %arg13[%c0_245, %c2_246, %c0_247, %c0_248] : memref<2x3x1x32xf32, #tpu.memory_space<vmem>>, vector<1x1x1x32xf32>
    %390 = vector.shape_cast %389 : vector<1x1x1x32xf32> to vector<1x32xf32>
    %391 = vector.broadcast %390 : vector<1x32xf32> to vector<16x32xf32>
    %392 = arith.addf %388, %391 : vector<16x32xf32>
    %c0_249 = arith.constant 0 : index
    %c2_250 = arith.constant 2 : index
    %c0_251 = arith.constant 0 : index
    %c0_252 = arith.constant 0 : index
    %393 = vector.load %arg14[%c0_249, %c2_250, %c0_251, %c0_252] : memref<2x3x32x32xbf16, #tpu.memory_space<vmem>>, vector<1x1x32x32xbf16>
    %394 = vector.shape_cast %393 : vector<1x1x32x32xbf16> to vector<32x32xbf16>
    %395 = arith.truncf %26 : vector<16x32xf32> to vector<16x32xbf16>
    %cst_253 = arith.constant dense<0.000000e+00> : vector<16x32xf32>
    %396 = tpu.matmul %395, %394, %cst_253 {dimension_numbers = #tpu.dot_dimension_numbers<[1], [0], [0], [1], [0, 0, 1, 1], [], []>} : vector<16x32xbf16>, vector<32x32xbf16>, vector<16x32xf32> -> vector<16x32xf32>
    %c0_254 = arith.constant 0 : index
    %c2_255 = arith.constant 2 : index
    %c0_256 = arith.constant 0 : index
    %c0_257 = arith.constant 0 : index
    %397 = vector.load %arg15[%c0_254, %c2_255, %c0_256, %c0_257] : memref<2x3x1x32xf32, #tpu.memory_space<vmem>>, vector<1x1x1x32xf32>
    %398 = vector.shape_cast %397 : vector<1x1x1x32xf32> to vector<1x32xf32>
    %399 = vector.broadcast %398 : vector<1x32xf32> to vector<16x32xf32>
    %400 = arith.addf %396, %399 : vector<16x32xf32>
    %401 = vector.extract_strided_slice %384 {offsets = [0, 0], sizes = [16, 8], strides = [1, 1]} : vector<16x32xf32> to vector<16x8xf32>
    %402 = vector.extract_strided_slice %392 {offsets = [0, 0], sizes = [16, 8], strides = [1, 1]} : vector<16x32xf32> to vector<16x8xf32>
    %403 = vector.extract_strided_slice %400 {offsets = [0, 0], sizes = [16, 8], strides = [1, 1]} : vector<16x32xf32> to vector<16x8xf32>
    %404 = arith.truncf %401 : vector<16x8xf32> to vector<16x8xbf16>
    %405 = arith.truncf %402 : vector<16x8xf32> to vector<16x8xbf16>
    %cst_258 = arith.constant dense<0.000000e+00> : vector<16x16xf32>
    %406 = tpu.matmul %404, %405, %cst_258 {dimension_numbers = #tpu.dot_dimension_numbers<[1], [1], [0], [0], [0, 0, 1, 0], [], []>} : vector<16x8xbf16>, vector<16x8xbf16>, vector<16x16xf32> -> vector<16x16xf32>
    %cst_259 = arith.constant 0.353553385 : f32
    %407 = vector.broadcast %cst_259 : f32 to vector<16x16xf32>
    %408 = arith.mulf %406, %407 : vector<16x16xf32>
    %cst_260 = arith.constant -1.000000e+09 : f32
    %409 = vector.broadcast %cst_260 : f32 to vector<16x16xf32>
    %410 = arith.select %376, %408, %409 : vector<16x16xi1>, vector<16x16xf32>
    %cst_261 = arith.constant dense<0xFF800000> : vector<16xf32>
    %411 = vector.multi_reduction <maximumf>, %410, %cst_261 [1] : vector<16x16xf32> to vector<16xf32>
    %412 = vector.shape_cast %411 : vector<16xf32> to vector<16x1xf32>
    %413 = vector.broadcast %412 : vector<16x1xf32> to vector<16x16xf32>
    %414 = arith.subf %410, %413 : vector<16x16xf32>
    %415 = math.exp %414 : vector<16x16xf32>
    %cst_262 = arith.constant dense<0.000000e+00> : vector<16xf32>
    %416 = vector.multi_reduction <add>, %415, %cst_262 [1] : vector<16x16xf32> to vector<16xf32>
    %417 = vector.shape_cast %416 : vector<16xf32> to vector<16x1xf32>
    %418 = tpu.reciprocal %417 {approx = true} : vector<16x1xf32> -> vector<16x1xf32>
    %419 = vector.broadcast %418 : vector<16x1xf32> to vector<16x16xf32>
    %420 = arith.mulf %415, %419 : vector<16x16xf32>
    %421 = arith.truncf %420 : vector<16x16xf32> to vector<16x16xbf16>
    %422 = arith.truncf %403 : vector<16x8xf32> to vector<16x8xbf16>
    %cst_263 = arith.constant dense<0.000000e+00> : vector<16x8xf32>
    %423 = tpu.matmul %421, %422, %cst_263 {dimension_numbers = #tpu.dot_dimension_numbers<[1], [0], [0], [1], [0, 0, 1, 1], [], []>} : vector<16x16xbf16>, vector<16x8xbf16>, vector<16x8xf32> -> vector<16x8xf32>
    %c0_264 = arith.constant 0 : index
    %c2_265 = arith.constant 2 : index
    %c0_266 = arith.constant 0 : index
    %c0_267 = arith.constant 0 : index
    %c0_268 = arith.constant 0 : index
    %424 = vector.load %arg16[%c0_264, %c2_265, %c0_266, %c0_267, %c0_268] : memref<2x3x4x8x32xbf16, #tpu.memory_space<vmem>>, vector<1x1x1x8x32xbf16>
    %425 = vector.shape_cast %424 : vector<1x1x1x8x32xbf16> to vector<8x32xbf16>
    %426 = arith.truncf %423 : vector<16x8xf32> to vector<16x8xbf16>
    %cst_269 = arith.constant dense<0.000000e+00> : vector<16x32xf32>
    %427 = tpu.matmul %426, %425, %cst_269 {dimension_numbers = #tpu.dot_dimension_numbers<[1], [0], [0], [1], [0, 0, 1, 1], [], []>} : vector<16x8xbf16>, vector<8x32xbf16>, vector<16x32xf32> -> vector<16x32xf32>
    %428 = vector.extract_strided_slice %384 {offsets = [0, 8], sizes = [16, 8], strides = [1, 1]} : vector<16x32xf32> to vector<16x8xf32>
    %429 = vector.extract_strided_slice %392 {offsets = [0, 8], sizes = [16, 8], strides = [1, 1]} : vector<16x32xf32> to vector<16x8xf32>
    %430 = vector.extract_strided_slice %400 {offsets = [0, 8], sizes = [16, 8], strides = [1, 1]} : vector<16x32xf32> to vector<16x8xf32>
    %431 = arith.truncf %428 : vector<16x8xf32> to vector<16x8xbf16>
    %432 = arith.truncf %429 : vector<16x8xf32> to vector<16x8xbf16>
    %cst_270 = arith.constant dense<0.000000e+00> : vector<16x16xf32>
    %433 = tpu.matmul %431, %432, %cst_270 {dimension_numbers = #tpu.dot_dimension_numbers<[1], [1], [0], [0], [0, 0, 1, 0], [], []>} : vector<16x8xbf16>, vector<16x8xbf16>, vector<16x16xf32> -> vector<16x16xf32>
    %cst_271 = arith.constant 0.353553385 : f32
    %434 = vector.broadcast %cst_271 : f32 to vector<16x16xf32>
    %435 = arith.mulf %433, %434 : vector<16x16xf32>
    %cst_272 = arith.constant -1.000000e+09 : f32
    %436 = vector.broadcast %cst_272 : f32 to vector<16x16xf32>
    %437 = arith.select %376, %435, %436 : vector<16x16xi1>, vector<16x16xf32>
    %cst_273 = arith.constant dense<0xFF800000> : vector<16xf32>
    %438 = vector.multi_reduction <maximumf>, %437, %cst_273 [1] : vector<16x16xf32> to vector<16xf32>
    %439 = vector.shape_cast %438 : vector<16xf32> to vector<16x1xf32>
    %440 = vector.broadcast %439 : vector<16x1xf32> to vector<16x16xf32>
    %441 = arith.subf %437, %440 : vector<16x16xf32>
    %442 = math.exp %441 : vector<16x16xf32>
    %cst_274 = arith.constant dense<0.000000e+00> : vector<16xf32>
    %443 = vector.multi_reduction <add>, %442, %cst_274 [1] : vector<16x16xf32> to vector<16xf32>
    %444 = vector.shape_cast %443 : vector<16xf32> to vector<16x1xf32>
    %445 = tpu.reciprocal %444 {approx = true} : vector<16x1xf32> -> vector<16x1xf32>
    %446 = vector.broadcast %445 : vector<16x1xf32> to vector<16x16xf32>
    %447 = arith.mulf %442, %446 : vector<16x16xf32>
    %448 = arith.truncf %447 : vector<16x16xf32> to vector<16x16xbf16>
    %449 = arith.truncf %430 : vector<16x8xf32> to vector<16x8xbf16>
    %cst_275 = arith.constant dense<0.000000e+00> : vector<16x8xf32>
    %450 = tpu.matmul %448, %449, %cst_275 {dimension_numbers = #tpu.dot_dimension_numbers<[1], [0], [0], [1], [0, 0, 1, 1], [], []>} : vector<16x16xbf16>, vector<16x8xbf16>, vector<16x8xf32> -> vector<16x8xf32>
    %c0_276 = arith.constant 0 : index
    %c2_277 = arith.constant 2 : index
    %c1_278 = arith.constant 1 : index
    %c0_279 = arith.constant 0 : index
    %c0_280 = arith.constant 0 : index
    %451 = vector.load %arg16[%c0_276, %c2_277, %c1_278, %c0_279, %c0_280] : memref<2x3x4x8x32xbf16, #tpu.memory_space<vmem>>, vector<1x1x1x8x32xbf16>
    %452 = vector.shape_cast %451 : vector<1x1x1x8x32xbf16> to vector<8x32xbf16>
    %453 = arith.truncf %450 : vector<16x8xf32> to vector<16x8xbf16>
    %cst_281 = arith.constant dense<0.000000e+00> : vector<16x32xf32>
    %454 = tpu.matmul %453, %452, %cst_281 {dimension_numbers = #tpu.dot_dimension_numbers<[1], [0], [0], [1], [0, 0, 1, 1], [], []>} : vector<16x8xbf16>, vector<8x32xbf16>, vector<16x32xf32> -> vector<16x32xf32>
    %455 = arith.addf %427, %454 : vector<16x32xf32>
    %456 = vector.extract_strided_slice %384 {offsets = [0, 16], sizes = [16, 8], strides = [1, 1]} : vector<16x32xf32> to vector<16x8xf32>
    %457 = vector.extract_strided_slice %392 {offsets = [0, 16], sizes = [16, 8], strides = [1, 1]} : vector<16x32xf32> to vector<16x8xf32>
    %458 = vector.extract_strided_slice %400 {offsets = [0, 16], sizes = [16, 8], strides = [1, 1]} : vector<16x32xf32> to vector<16x8xf32>
    %459 = arith.truncf %456 : vector<16x8xf32> to vector<16x8xbf16>
    %460 = arith.truncf %457 : vector<16x8xf32> to vector<16x8xbf16>
    %cst_282 = arith.constant dense<0.000000e+00> : vector<16x16xf32>
    %461 = tpu.matmul %459, %460, %cst_282 {dimension_numbers = #tpu.dot_dimension_numbers<[1], [1], [0], [0], [0, 0, 1, 0], [], []>} : vector<16x8xbf16>, vector<16x8xbf16>, vector<16x16xf32> -> vector<16x16xf32>
    %cst_283 = arith.constant 0.353553385 : f32
    %462 = vector.broadcast %cst_283 : f32 to vector<16x16xf32>
    %463 = arith.mulf %461, %462 : vector<16x16xf32>
    %cst_284 = arith.constant -1.000000e+09 : f32
    %464 = vector.broadcast %cst_284 : f32 to vector<16x16xf32>
    %465 = arith.select %376, %463, %464 : vector<16x16xi1>, vector<16x16xf32>
    %cst_285 = arith.constant dense<0xFF800000> : vector<16xf32>
    %466 = vector.multi_reduction <maximumf>, %465, %cst_285 [1] : vector<16x16xf32> to vector<16xf32>
    %467 = vector.shape_cast %466 : vector<16xf32> to vector<16x1xf32>
    %468 = vector.broadcast %467 : vector<16x1xf32> to vector<16x16xf32>
    %469 = arith.subf %465, %468 : vector<16x16xf32>
    %470 = math.exp %469 : vector<16x16xf32>
    %cst_286 = arith.constant dense<0.000000e+00> : vector<16xf32>
    %471 = vector.multi_reduction <add>, %470, %cst_286 [1] : vector<16x16xf32> to vector<16xf32>
    %472 = vector.shape_cast %471 : vector<16xf32> to vector<16x1xf32>
    %473 = tpu.reciprocal %472 {approx = true} : vector<16x1xf32> -> vector<16x1xf32>
    %474 = vector.broadcast %473 : vector<16x1xf32> to vector<16x16xf32>
    %475 = arith.mulf %470, %474 : vector<16x16xf32>
    %476 = arith.truncf %475 : vector<16x16xf32> to vector<16x16xbf16>
    %477 = arith.truncf %458 : vector<16x8xf32> to vector<16x8xbf16>
    %cst_287 = arith.constant dense<0.000000e+00> : vector<16x8xf32>
    %478 = tpu.matmul %476, %477, %cst_287 {dimension_numbers = #tpu.dot_dimension_numbers<[1], [0], [0], [1], [0, 0, 1, 1], [], []>} : vector<16x16xbf16>, vector<16x8xbf16>, vector<16x8xf32> -> vector<16x8xf32>
    %c0_288 = arith.constant 0 : index
    %c2_289 = arith.constant 2 : index
    %c2_290 = arith.constant 2 : index
    %c0_291 = arith.constant 0 : index
    %c0_292 = arith.constant 0 : index
    %479 = vector.load %arg16[%c0_288, %c2_289, %c2_290, %c0_291, %c0_292] : memref<2x3x4x8x32xbf16, #tpu.memory_space<vmem>>, vector<1x1x1x8x32xbf16>
    %480 = vector.shape_cast %479 : vector<1x1x1x8x32xbf16> to vector<8x32xbf16>
    %481 = arith.truncf %478 : vector<16x8xf32> to vector<16x8xbf16>
    %cst_293 = arith.constant dense<0.000000e+00> : vector<16x32xf32>
    %482 = tpu.matmul %481, %480, %cst_293 {dimension_numbers = #tpu.dot_dimension_numbers<[1], [0], [0], [1], [0, 0, 1, 1], [], []>} : vector<16x8xbf16>, vector<8x32xbf16>, vector<16x32xf32> -> vector<16x32xf32>
    %483 = arith.addf %455, %482 : vector<16x32xf32>
    %484 = vector.extract_strided_slice %384 {offsets = [0, 24], sizes = [16, 8], strides = [1, 1]} : vector<16x32xf32> to vector<16x8xf32>
    %485 = vector.extract_strided_slice %392 {offsets = [0, 24], sizes = [16, 8], strides = [1, 1]} : vector<16x32xf32> to vector<16x8xf32>
    %486 = vector.extract_strided_slice %400 {offsets = [0, 24], sizes = [16, 8], strides = [1, 1]} : vector<16x32xf32> to vector<16x8xf32>
    %487 = arith.truncf %484 : vector<16x8xf32> to vector<16x8xbf16>
    %488 = arith.truncf %485 : vector<16x8xf32> to vector<16x8xbf16>
    %cst_294 = arith.constant dense<0.000000e+00> : vector<16x16xf32>
    %489 = tpu.matmul %487, %488, %cst_294 {dimension_numbers = #tpu.dot_dimension_numbers<[1], [1], [0], [0], [0, 0, 1, 0], [], []>} : vector<16x8xbf16>, vector<16x8xbf16>, vector<16x16xf32> -> vector<16x16xf32>
    %cst_295 = arith.constant 0.353553385 : f32
    %490 = vector.broadcast %cst_295 : f32 to vector<16x16xf32>
    %491 = arith.mulf %489, %490 : vector<16x16xf32>
    %cst_296 = arith.constant -1.000000e+09 : f32
    %492 = vector.broadcast %cst_296 : f32 to vector<16x16xf32>
    %493 = arith.select %376, %491, %492 : vector<16x16xi1>, vector<16x16xf32>
    %cst_297 = arith.constant dense<0xFF800000> : vector<16xf32>
    %494 = vector.multi_reduction <maximumf>, %493, %cst_297 [1] : vector<16x16xf32> to vector<16xf32>
    %495 = vector.shape_cast %494 : vector<16xf32> to vector<16x1xf32>
    %496 = vector.broadcast %495 : vector<16x1xf32> to vector<16x16xf32>
    %497 = arith.subf %493, %496 : vector<16x16xf32>
    %498 = math.exp %497 : vector<16x16xf32>
    %cst_298 = arith.constant dense<0.000000e+00> : vector<16xf32>
    %499 = vector.multi_reduction <add>, %498, %cst_298 [1] : vector<16x16xf32> to vector<16xf32>
    %500 = vector.shape_cast %499 : vector<16xf32> to vector<16x1xf32>
    %501 = tpu.reciprocal %500 {approx = true} : vector<16x1xf32> -> vector<16x1xf32>
    %502 = vector.broadcast %501 : vector<16x1xf32> to vector<16x16xf32>
    %503 = arith.mulf %498, %502 : vector<16x16xf32>
    %504 = arith.truncf %503 : vector<16x16xf32> to vector<16x16xbf16>
    %505 = arith.truncf %486 : vector<16x8xf32> to vector<16x8xbf16>
    %cst_299 = arith.constant dense<0.000000e+00> : vector<16x8xf32>
    %506 = tpu.matmul %504, %505, %cst_299 {dimension_numbers = #tpu.dot_dimension_numbers<[1], [0], [0], [1], [0, 0, 1, 1], [], []>} : vector<16x16xbf16>, vector<16x8xbf16>, vector<16x8xf32> -> vector<16x8xf32>
    %c0_300 = arith.constant 0 : index
    %c2_301 = arith.constant 2 : index
    %c3_302 = arith.constant 3 : index
    %c0_303 = arith.constant 0 : index
    %c0_304 = arith.constant 0 : index
    %507 = vector.load %arg16[%c0_300, %c2_301, %c3_302, %c0_303, %c0_304] : memref<2x3x4x8x32xbf16, #tpu.memory_space<vmem>>, vector<1x1x1x8x32xbf16>
    %508 = vector.shape_cast %507 : vector<1x1x1x8x32xbf16> to vector<8x32xbf16>
    %509 = arith.truncf %506 : vector<16x8xf32> to vector<16x8xbf16>
    %cst_305 = arith.constant dense<0.000000e+00> : vector<16x32xf32>
    %510 = tpu.matmul %509, %508, %cst_305 {dimension_numbers = #tpu.dot_dimension_numbers<[1], [0], [0], [1], [0, 0, 1, 1], [], []>} : vector<16x8xbf16>, vector<8x32xbf16>, vector<16x32xf32> -> vector<16x32xf32>
    %511 = arith.addf %483, %510 : vector<16x32xf32>
    %c0_306 = arith.constant 0 : index
    %c2_307 = arith.constant 2 : index
    %c0_308 = arith.constant 0 : index
    %c0_309 = arith.constant 0 : index
    %512 = vector.load %arg17[%c0_306, %c2_307, %c0_308, %c0_309] : memref<2x3x1x32xf32, #tpu.memory_space<vmem>>, vector<1x1x1x32xf32>
    %513 = vector.shape_cast %512 : vector<1x1x1x32xf32> to vector<1x32xf32>
    %514 = vector.broadcast %513 : vector<1x32xf32> to vector<16x32xf32>
    %515 = arith.addf %511, %514 : vector<16x32xf32>
    %c0_310 = arith.constant 0 : index
    %c2_311 = arith.constant 2 : index
    %c0_312 = arith.constant 0 : index
    %c0_313 = arith.constant 0 : index
    %516 = vector.load %arg18[%c0_310, %c2_311, %c0_312, %c0_313] : memref<2x3x32x64xbf16, #tpu.memory_space<vmem>>, vector<1x1x32x64xbf16>
    %517 = vector.shape_cast %516 : vector<1x1x32x64xbf16> to vector<32x64xbf16>
    %518 = arith.truncf %515 : vector<16x32xf32> to vector<16x32xbf16>
    %cst_314 = arith.constant dense<0.000000e+00> : vector<16x64xf32>
    %519 = tpu.matmul %518, %517, %cst_314 {dimension_numbers = #tpu.dot_dimension_numbers<[1], [0], [0], [1], [0, 0, 1, 1], [], []>} : vector<16x32xbf16>, vector<32x64xbf16>, vector<16x64xf32> -> vector<16x64xf32>
    %c0_315 = arith.constant 0 : index
    %c2_316 = arith.constant 2 : index
    %c0_317 = arith.constant 0 : index
    %c0_318 = arith.constant 0 : index
    %520 = vector.load %arg19[%c0_315, %c2_316, %c0_317, %c0_318] : memref<2x3x32x64xbf16, #tpu.memory_space<vmem>>, vector<1x1x32x64xbf16>
    %521 = vector.shape_cast %520 : vector<1x1x32x64xbf16> to vector<32x64xbf16>
    %522 = arith.truncf %27 : vector<16x32xf32> to vector<16x32xbf16>
    %cst_319 = arith.constant dense<0.000000e+00> : vector<16x64xf32>
    %523 = tpu.matmul %522, %521, %cst_319 {dimension_numbers = #tpu.dot_dimension_numbers<[1], [0], [0], [1], [0, 0, 1, 1], [], []>} : vector<16x32xbf16>, vector<32x64xbf16>, vector<16x64xf32> -> vector<16x64xf32>
    %524 = arith.addf %519, %523 : vector<16x64xf32>
    %c0_320 = arith.constant 0 : index
    %c2_321 = arith.constant 2 : index
    %c0_322 = arith.constant 0 : index
    %c0_323 = arith.constant 0 : index
    %525 = vector.load %arg20[%c0_320, %c2_321, %c0_322, %c0_323] : memref<2x3x1x64xf32, #tpu.memory_space<vmem>>, vector<1x1x1x64xf32>
    %526 = vector.shape_cast %525 : vector<1x1x1x64xf32> to vector<1x64xf32>
    %527 = vector.broadcast %526 : vector<1x64xf32> to vector<16x64xf32>
    %528 = arith.addf %524, %527 : vector<16x64xf32>
    %cst_324 = arith.constant 0.000000e+00 : f32
    %529 = vector.broadcast %cst_324 : f32 to vector<16x64xf32>
    %530 = arith.maximumf %528, %529 : vector<16x64xf32>
    %c0_325 = arith.constant 0 : index
    %c2_326 = arith.constant 2 : index
    %c0_327 = arith.constant 0 : index
    %c0_328 = arith.constant 0 : index
    %531 = vector.load %arg21[%c0_325, %c2_326, %c0_327, %c0_328] : memref<2x3x64x32xbf16, #tpu.memory_space<vmem>>, vector<1x1x64x32xbf16>
    %532 = vector.shape_cast %531 : vector<1x1x64x32xbf16> to vector<64x32xbf16>
    %533 = arith.truncf %530 : vector<16x64xf32> to vector<16x64xbf16>
    %cst_329 = arith.constant dense<0.000000e+00> : vector<16x32xf32>
    %534 = tpu.matmul %533, %532, %cst_329 {dimension_numbers = #tpu.dot_dimension_numbers<[1], [0], [0], [1], [0, 0, 1, 1], [], []>} : vector<16x64xbf16>, vector<64x32xbf16>, vector<16x32xf32> -> vector<16x32xf32>
    %c0_330 = arith.constant 0 : index
    %c2_331 = arith.constant 2 : index
    %c0_332 = arith.constant 0 : index
    %c0_333 = arith.constant 0 : index
    %535 = vector.load %arg22[%c0_330, %c2_331, %c0_332, %c0_333] : memref<2x3x1x32xf32, #tpu.memory_space<vmem>>, vector<1x1x1x32xf32>
    %536 = vector.shape_cast %535 : vector<1x1x1x32xf32> to vector<1x32xf32>
    %537 = vector.broadcast %536 : vector<1x32xf32> to vector<16x32xf32>
    %538 = arith.addf %534, %537 : vector<16x32xf32>
    %539 = vector.broadcast %32 : vector<16x1xi1> to vector<16x16xi1>
    %540 = vector.broadcast %43 : vector<1x16xi1> to vector<16x16xi1>
    %541 = arith.andi %539, %540 : vector<16x16xi1>
    %c1_334 = arith.constant 1 : index
    %c0_335 = arith.constant 0 : index
    %c0_336 = arith.constant 0 : index
    %c0_337 = arith.constant 0 : index
    %542 = vector.load %arg10[%c1_334, %c0_335, %c0_336, %c0_337] : memref<2x3x32x32xbf16, #tpu.memory_space<vmem>>, vector<1x1x32x32xbf16>
    %543 = vector.shape_cast %542 : vector<1x1x32x32xbf16> to vector<32x32xbf16>
    %544 = arith.truncf %208 : vector<16x32xf32> to vector<16x32xbf16>
    %cst_338 = arith.constant dense<0.000000e+00> : vector<16x32xf32>
    %545 = tpu.matmul %544, %543, %cst_338 {dimension_numbers = #tpu.dot_dimension_numbers<[1], [0], [0], [1], [0, 0, 1, 1], [], []>} : vector<16x32xbf16>, vector<32x32xbf16>, vector<16x32xf32> -> vector<16x32xf32>
    %c1_339 = arith.constant 1 : index
    %c0_340 = arith.constant 0 : index
    %c0_341 = arith.constant 0 : index
    %c0_342 = arith.constant 0 : index
    %546 = vector.load %arg11[%c1_339, %c0_340, %c0_341, %c0_342] : memref<2x3x1x32xf32, #tpu.memory_space<vmem>>, vector<1x1x1x32xf32>
    %547 = vector.shape_cast %546 : vector<1x1x1x32xf32> to vector<1x32xf32>
    %548 = vector.broadcast %547 : vector<1x32xf32> to vector<16x32xf32>
    %549 = arith.addf %545, %548 : vector<16x32xf32>
    %c1_343 = arith.constant 1 : index
    %c0_344 = arith.constant 0 : index
    %c0_345 = arith.constant 0 : index
    %c0_346 = arith.constant 0 : index
    %550 = vector.load %arg12[%c1_343, %c0_344, %c0_345, %c0_346] : memref<2x3x32x32xbf16, #tpu.memory_space<vmem>>, vector<1x1x32x32xbf16>
    %551 = vector.shape_cast %550 : vector<1x1x32x32xbf16> to vector<32x32xbf16>
    %552 = arith.truncf %373 : vector<16x32xf32> to vector<16x32xbf16>
    %cst_347 = arith.constant dense<0.000000e+00> : vector<16x32xf32>
    %553 = tpu.matmul %552, %551, %cst_347 {dimension_numbers = #tpu.dot_dimension_numbers<[1], [0], [0], [1], [0, 0, 1, 1], [], []>} : vector<16x32xbf16>, vector<32x32xbf16>, vector<16x32xf32> -> vector<16x32xf32>
    %c1_348 = arith.constant 1 : index
    %c0_349 = arith.constant 0 : index
    %c0_350 = arith.constant 0 : index
    %c0_351 = arith.constant 0 : index
    %554 = vector.load %arg13[%c1_348, %c0_349, %c0_350, %c0_351] : memref<2x3x1x32xf32, #tpu.memory_space<vmem>>, vector<1x1x1x32xf32>
    %555 = vector.shape_cast %554 : vector<1x1x1x32xf32> to vector<1x32xf32>
    %556 = vector.broadcast %555 : vector<1x32xf32> to vector<16x32xf32>
    %557 = arith.addf %553, %556 : vector<16x32xf32>
    %c1_352 = arith.constant 1 : index
    %c0_353 = arith.constant 0 : index
    %c0_354 = arith.constant 0 : index
    %c0_355 = arith.constant 0 : index
    %558 = vector.load %arg14[%c1_352, %c0_353, %c0_354, %c0_355] : memref<2x3x32x32xbf16, #tpu.memory_space<vmem>>, vector<1x1x32x32xbf16>
    %559 = vector.shape_cast %558 : vector<1x1x32x32xbf16> to vector<32x32xbf16>
    %560 = arith.truncf %373 : vector<16x32xf32> to vector<16x32xbf16>
    %cst_356 = arith.constant dense<0.000000e+00> : vector<16x32xf32>
    %561 = tpu.matmul %560, %559, %cst_356 {dimension_numbers = #tpu.dot_dimension_numbers<[1], [0], [0], [1], [0, 0, 1, 1], [], []>} : vector<16x32xbf16>, vector<32x32xbf16>, vector<16x32xf32> -> vector<16x32xf32>
    %c1_357 = arith.constant 1 : index
    %c0_358 = arith.constant 0 : index
    %c0_359 = arith.constant 0 : index
    %c0_360 = arith.constant 0 : index
    %562 = vector.load %arg15[%c1_357, %c0_358, %c0_359, %c0_360] : memref<2x3x1x32xf32, #tpu.memory_space<vmem>>, vector<1x1x1x32xf32>
    %563 = vector.shape_cast %562 : vector<1x1x1x32xf32> to vector<1x32xf32>
    %564 = vector.broadcast %563 : vector<1x32xf32> to vector<16x32xf32>
    %565 = arith.addf %561, %564 : vector<16x32xf32>
    %566 = vector.extract_strided_slice %549 {offsets = [0, 0], sizes = [16, 8], strides = [1, 1]} : vector<16x32xf32> to vector<16x8xf32>
    %567 = vector.extract_strided_slice %557 {offsets = [0, 0], sizes = [16, 8], strides = [1, 1]} : vector<16x32xf32> to vector<16x8xf32>
    %568 = vector.extract_strided_slice %565 {offsets = [0, 0], sizes = [16, 8], strides = [1, 1]} : vector<16x32xf32> to vector<16x8xf32>
    %569 = arith.truncf %566 : vector<16x8xf32> to vector<16x8xbf16>
    %570 = arith.truncf %567 : vector<16x8xf32> to vector<16x8xbf16>
    %cst_361 = arith.constant dense<0.000000e+00> : vector<16x16xf32>
    %571 = tpu.matmul %569, %570, %cst_361 {dimension_numbers = #tpu.dot_dimension_numbers<[1], [1], [0], [0], [0, 0, 1, 0], [], []>} : vector<16x8xbf16>, vector<16x8xbf16>, vector<16x16xf32> -> vector<16x16xf32>
    %cst_362 = arith.constant 0.353553385 : f32
    %572 = vector.broadcast %cst_362 : f32 to vector<16x16xf32>
    %573 = arith.mulf %571, %572 : vector<16x16xf32>
    %cst_363 = arith.constant -1.000000e+09 : f32
    %574 = vector.broadcast %cst_363 : f32 to vector<16x16xf32>
    %575 = arith.select %541, %573, %574 : vector<16x16xi1>, vector<16x16xf32>
    %cst_364 = arith.constant dense<0xFF800000> : vector<16xf32>
    %576 = vector.multi_reduction <maximumf>, %575, %cst_364 [1] : vector<16x16xf32> to vector<16xf32>
    %577 = vector.shape_cast %576 : vector<16xf32> to vector<16x1xf32>
    %578 = vector.broadcast %577 : vector<16x1xf32> to vector<16x16xf32>
    %579 = arith.subf %575, %578 : vector<16x16xf32>
    %580 = math.exp %579 : vector<16x16xf32>
    %cst_365 = arith.constant dense<0.000000e+00> : vector<16xf32>
    %581 = vector.multi_reduction <add>, %580, %cst_365 [1] : vector<16x16xf32> to vector<16xf32>
    %582 = vector.shape_cast %581 : vector<16xf32> to vector<16x1xf32>
    %583 = tpu.reciprocal %582 {approx = true} : vector<16x1xf32> -> vector<16x1xf32>
    %584 = vector.broadcast %583 : vector<16x1xf32> to vector<16x16xf32>
    %585 = arith.mulf %580, %584 : vector<16x16xf32>
    %586 = arith.truncf %585 : vector<16x16xf32> to vector<16x16xbf16>
    %587 = arith.truncf %568 : vector<16x8xf32> to vector<16x8xbf16>
    %cst_366 = arith.constant dense<0.000000e+00> : vector<16x8xf32>
    %588 = tpu.matmul %586, %587, %cst_366 {dimension_numbers = #tpu.dot_dimension_numbers<[1], [0], [0], [1], [0, 0, 1, 1], [], []>} : vector<16x16xbf16>, vector<16x8xbf16>, vector<16x8xf32> -> vector<16x8xf32>
    %c1_367 = arith.constant 1 : index
    %c0_368 = arith.constant 0 : index
    %c0_369 = arith.constant 0 : index
    %c0_370 = arith.constant 0 : index
    %c0_371 = arith.constant 0 : index
    %589 = vector.load %arg16[%c1_367, %c0_368, %c0_369, %c0_370, %c0_371] : memref<2x3x4x8x32xbf16, #tpu.memory_space<vmem>>, vector<1x1x1x8x32xbf16>
    %590 = vector.shape_cast %589 : vector<1x1x1x8x32xbf16> to vector<8x32xbf16>
    %591 = arith.truncf %588 : vector<16x8xf32> to vector<16x8xbf16>
    %cst_372 = arith.constant dense<0.000000e+00> : vector<16x32xf32>
    %592 = tpu.matmul %591, %590, %cst_372 {dimension_numbers = #tpu.dot_dimension_numbers<[1], [0], [0], [1], [0, 0, 1, 1], [], []>} : vector<16x8xbf16>, vector<8x32xbf16>, vector<16x32xf32> -> vector<16x32xf32>
    %593 = vector.extract_strided_slice %549 {offsets = [0, 8], sizes = [16, 8], strides = [1, 1]} : vector<16x32xf32> to vector<16x8xf32>
    %594 = vector.extract_strided_slice %557 {offsets = [0, 8], sizes = [16, 8], strides = [1, 1]} : vector<16x32xf32> to vector<16x8xf32>
    %595 = vector.extract_strided_slice %565 {offsets = [0, 8], sizes = [16, 8], strides = [1, 1]} : vector<16x32xf32> to vector<16x8xf32>
    %596 = arith.truncf %593 : vector<16x8xf32> to vector<16x8xbf16>
    %597 = arith.truncf %594 : vector<16x8xf32> to vector<16x8xbf16>
    %cst_373 = arith.constant dense<0.000000e+00> : vector<16x16xf32>
    %598 = tpu.matmul %596, %597, %cst_373 {dimension_numbers = #tpu.dot_dimension_numbers<[1], [1], [0], [0], [0, 0, 1, 0], [], []>} : vector<16x8xbf16>, vector<16x8xbf16>, vector<16x16xf32> -> vector<16x16xf32>
    %cst_374 = arith.constant 0.353553385 : f32
    %599 = vector.broadcast %cst_374 : f32 to vector<16x16xf32>
    %600 = arith.mulf %598, %599 : vector<16x16xf32>
    %cst_375 = arith.constant -1.000000e+09 : f32
    %601 = vector.broadcast %cst_375 : f32 to vector<16x16xf32>
    %602 = arith.select %541, %600, %601 : vector<16x16xi1>, vector<16x16xf32>
    %cst_376 = arith.constant dense<0xFF800000> : vector<16xf32>
    %603 = vector.multi_reduction <maximumf>, %602, %cst_376 [1] : vector<16x16xf32> to vector<16xf32>
    %604 = vector.shape_cast %603 : vector<16xf32> to vector<16x1xf32>
    %605 = vector.broadcast %604 : vector<16x1xf32> to vector<16x16xf32>
    %606 = arith.subf %602, %605 : vector<16x16xf32>
    %607 = math.exp %606 : vector<16x16xf32>
    %cst_377 = arith.constant dense<0.000000e+00> : vector<16xf32>
    %608 = vector.multi_reduction <add>, %607, %cst_377 [1] : vector<16x16xf32> to vector<16xf32>
    %609 = vector.shape_cast %608 : vector<16xf32> to vector<16x1xf32>
    %610 = tpu.reciprocal %609 {approx = true} : vector<16x1xf32> -> vector<16x1xf32>
    %611 = vector.broadcast %610 : vector<16x1xf32> to vector<16x16xf32>
    %612 = arith.mulf %607, %611 : vector<16x16xf32>
    %613 = arith.truncf %612 : vector<16x16xf32> to vector<16x16xbf16>
    %614 = arith.truncf %595 : vector<16x8xf32> to vector<16x8xbf16>
    %cst_378 = arith.constant dense<0.000000e+00> : vector<16x8xf32>
    %615 = tpu.matmul %613, %614, %cst_378 {dimension_numbers = #tpu.dot_dimension_numbers<[1], [0], [0], [1], [0, 0, 1, 1], [], []>} : vector<16x16xbf16>, vector<16x8xbf16>, vector<16x8xf32> -> vector<16x8xf32>
    %c1_379 = arith.constant 1 : index
    %c0_380 = arith.constant 0 : index
    %c1_381 = arith.constant 1 : index
    %c0_382 = arith.constant 0 : index
    %c0_383 = arith.constant 0 : index
    %616 = vector.load %arg16[%c1_379, %c0_380, %c1_381, %c0_382, %c0_383] : memref<2x3x4x8x32xbf16, #tpu.memory_space<vmem>>, vector<1x1x1x8x32xbf16>
    %617 = vector.shape_cast %616 : vector<1x1x1x8x32xbf16> to vector<8x32xbf16>
    %618 = arith.truncf %615 : vector<16x8xf32> to vector<16x8xbf16>
    %cst_384 = arith.constant dense<0.000000e+00> : vector<16x32xf32>
    %619 = tpu.matmul %618, %617, %cst_384 {dimension_numbers = #tpu.dot_dimension_numbers<[1], [0], [0], [1], [0, 0, 1, 1], [], []>} : vector<16x8xbf16>, vector<8x32xbf16>, vector<16x32xf32> -> vector<16x32xf32>
    %620 = arith.addf %592, %619 : vector<16x32xf32>
    %621 = vector.extract_strided_slice %549 {offsets = [0, 16], sizes = [16, 8], strides = [1, 1]} : vector<16x32xf32> to vector<16x8xf32>
    %622 = vector.extract_strided_slice %557 {offsets = [0, 16], sizes = [16, 8], strides = [1, 1]} : vector<16x32xf32> to vector<16x8xf32>
    %623 = vector.extract_strided_slice %565 {offsets = [0, 16], sizes = [16, 8], strides = [1, 1]} : vector<16x32xf32> to vector<16x8xf32>
    %624 = arith.truncf %621 : vector<16x8xf32> to vector<16x8xbf16>
    %625 = arith.truncf %622 : vector<16x8xf32> to vector<16x8xbf16>
    %cst_385 = arith.constant dense<0.000000e+00> : vector<16x16xf32>
    %626 = tpu.matmul %624, %625, %cst_385 {dimension_numbers = #tpu.dot_dimension_numbers<[1], [1], [0], [0], [0, 0, 1, 0], [], []>} : vector<16x8xbf16>, vector<16x8xbf16>, vector<16x16xf32> -> vector<16x16xf32>
    %cst_386 = arith.constant 0.353553385 : f32
    %627 = vector.broadcast %cst_386 : f32 to vector<16x16xf32>
    %628 = arith.mulf %626, %627 : vector<16x16xf32>
    %cst_387 = arith.constant -1.000000e+09 : f32
    %629 = vector.broadcast %cst_387 : f32 to vector<16x16xf32>
    %630 = arith.select %541, %628, %629 : vector<16x16xi1>, vector<16x16xf32>
    %cst_388 = arith.constant dense<0xFF800000> : vector<16xf32>
    %631 = vector.multi_reduction <maximumf>, %630, %cst_388 [1] : vector<16x16xf32> to vector<16xf32>
    %632 = vector.shape_cast %631 : vector<16xf32> to vector<16x1xf32>
    %633 = vector.broadcast %632 : vector<16x1xf32> to vector<16x16xf32>
    %634 = arith.subf %630, %633 : vector<16x16xf32>
    %635 = math.exp %634 : vector<16x16xf32>
    %cst_389 = arith.constant dense<0.000000e+00> : vector<16xf32>
    %636 = vector.multi_reduction <add>, %635, %cst_389 [1] : vector<16x16xf32> to vector<16xf32>
    %637 = vector.shape_cast %636 : vector<16xf32> to vector<16x1xf32>
    %638 = tpu.reciprocal %637 {approx = true} : vector<16x1xf32> -> vector<16x1xf32>
    %639 = vector.broadcast %638 : vector<16x1xf32> to vector<16x16xf32>
    %640 = arith.mulf %635, %639 : vector<16x16xf32>
    %641 = arith.truncf %640 : vector<16x16xf32> to vector<16x16xbf16>
    %642 = arith.truncf %623 : vector<16x8xf32> to vector<16x8xbf16>
    %cst_390 = arith.constant dense<0.000000e+00> : vector<16x8xf32>
    %643 = tpu.matmul %641, %642, %cst_390 {dimension_numbers = #tpu.dot_dimension_numbers<[1], [0], [0], [1], [0, 0, 1, 1], [], []>} : vector<16x16xbf16>, vector<16x8xbf16>, vector<16x8xf32> -> vector<16x8xf32>
    %c1_391 = arith.constant 1 : index
    %c0_392 = arith.constant 0 : index
    %c2_393 = arith.constant 2 : index
    %c0_394 = arith.constant 0 : index
    %c0_395 = arith.constant 0 : index
    %644 = vector.load %arg16[%c1_391, %c0_392, %c2_393, %c0_394, %c0_395] : memref<2x3x4x8x32xbf16, #tpu.memory_space<vmem>>, vector<1x1x1x8x32xbf16>
    %645 = vector.shape_cast %644 : vector<1x1x1x8x32xbf16> to vector<8x32xbf16>
    %646 = arith.truncf %643 : vector<16x8xf32> to vector<16x8xbf16>
    %cst_396 = arith.constant dense<0.000000e+00> : vector<16x32xf32>
    %647 = tpu.matmul %646, %645, %cst_396 {dimension_numbers = #tpu.dot_dimension_numbers<[1], [0], [0], [1], [0, 0, 1, 1], [], []>} : vector<16x8xbf16>, vector<8x32xbf16>, vector<16x32xf32> -> vector<16x32xf32>
    %648 = arith.addf %620, %647 : vector<16x32xf32>
    %649 = vector.extract_strided_slice %549 {offsets = [0, 24], sizes = [16, 8], strides = [1, 1]} : vector<16x32xf32> to vector<16x8xf32>
    %650 = vector.extract_strided_slice %557 {offsets = [0, 24], sizes = [16, 8], strides = [1, 1]} : vector<16x32xf32> to vector<16x8xf32>
    %651 = vector.extract_strided_slice %565 {offsets = [0, 24], sizes = [16, 8], strides = [1, 1]} : vector<16x32xf32> to vector<16x8xf32>
    %652 = arith.truncf %649 : vector<16x8xf32> to vector<16x8xbf16>
    %653 = arith.truncf %650 : vector<16x8xf32> to vector<16x8xbf16>
    %cst_397 = arith.constant dense<0.000000e+00> : vector<16x16xf32>
    %654 = tpu.matmul %652, %653, %cst_397 {dimension_numbers = #tpu.dot_dimension_numbers<[1], [1], [0], [0], [0, 0, 1, 0], [], []>} : vector<16x8xbf16>, vector<16x8xbf16>, vector<16x16xf32> -> vector<16x16xf32>
    %cst_398 = arith.constant 0.353553385 : f32
    %655 = vector.broadcast %cst_398 : f32 to vector<16x16xf32>
    %656 = arith.mulf %654, %655 : vector<16x16xf32>
    %cst_399 = arith.constant -1.000000e+09 : f32
    %657 = vector.broadcast %cst_399 : f32 to vector<16x16xf32>
    %658 = arith.select %541, %656, %657 : vector<16x16xi1>, vector<16x16xf32>
    %cst_400 = arith.constant dense<0xFF800000> : vector<16xf32>
    %659 = vector.multi_reduction <maximumf>, %658, %cst_400 [1] : vector<16x16xf32> to vector<16xf32>
    %660 = vector.shape_cast %659 : vector<16xf32> to vector<16x1xf32>
    %661 = vector.broadcast %660 : vector<16x1xf32> to vector<16x16xf32>
    %662 = arith.subf %658, %661 : vector<16x16xf32>
    %663 = math.exp %662 : vector<16x16xf32>
    %cst_401 = arith.constant dense<0.000000e+00> : vector<16xf32>
    %664 = vector.multi_reduction <add>, %663, %cst_401 [1] : vector<16x16xf32> to vector<16xf32>
    %665 = vector.shape_cast %664 : vector<16xf32> to vector<16x1xf32>
    %666 = tpu.reciprocal %665 {approx = true} : vector<16x1xf32> -> vector<16x1xf32>
    %667 = vector.broadcast %666 : vector<16x1xf32> to vector<16x16xf32>
    %668 = arith.mulf %663, %667 : vector<16x16xf32>
    %669 = arith.truncf %668 : vector<16x16xf32> to vector<16x16xbf16>
    %670 = arith.truncf %651 : vector<16x8xf32> to vector<16x8xbf16>
    %cst_402 = arith.constant dense<0.000000e+00> : vector<16x8xf32>
    %671 = tpu.matmul %669, %670, %cst_402 {dimension_numbers = #tpu.dot_dimension_numbers<[1], [0], [0], [1], [0, 0, 1, 1], [], []>} : vector<16x16xbf16>, vector<16x8xbf16>, vector<16x8xf32> -> vector<16x8xf32>
    %c1_403 = arith.constant 1 : index
    %c0_404 = arith.constant 0 : index
    %c3_405 = arith.constant 3 : index
    %c0_406 = arith.constant 0 : index
    %c0_407 = arith.constant 0 : index
    %672 = vector.load %arg16[%c1_403, %c0_404, %c3_405, %c0_406, %c0_407] : memref<2x3x4x8x32xbf16, #tpu.memory_space<vmem>>, vector<1x1x1x8x32xbf16>
    %673 = vector.shape_cast %672 : vector<1x1x1x8x32xbf16> to vector<8x32xbf16>
    %674 = arith.truncf %671 : vector<16x8xf32> to vector<16x8xbf16>
    %cst_408 = arith.constant dense<0.000000e+00> : vector<16x32xf32>
    %675 = tpu.matmul %674, %673, %cst_408 {dimension_numbers = #tpu.dot_dimension_numbers<[1], [0], [0], [1], [0, 0, 1, 1], [], []>} : vector<16x8xbf16>, vector<8x32xbf16>, vector<16x32xf32> -> vector<16x32xf32>
    %676 = arith.addf %648, %675 : vector<16x32xf32>
    %c1_409 = arith.constant 1 : index
    %c0_410 = arith.constant 0 : index
    %c0_411 = arith.constant 0 : index
    %c0_412 = arith.constant 0 : index
    %677 = vector.load %arg17[%c1_409, %c0_410, %c0_411, %c0_412] : memref<2x3x1x32xf32, #tpu.memory_space<vmem>>, vector<1x1x1x32xf32>
    %678 = vector.shape_cast %677 : vector<1x1x1x32xf32> to vector<1x32xf32>
    %679 = vector.broadcast %678 : vector<1x32xf32> to vector<16x32xf32>
    %680 = arith.addf %676, %679 : vector<16x32xf32>
    %c1_413 = arith.constant 1 : index
    %c0_414 = arith.constant 0 : index
    %c0_415 = arith.constant 0 : index
    %c0_416 = arith.constant 0 : index
    %681 = vector.load %arg18[%c1_413, %c0_414, %c0_415, %c0_416] : memref<2x3x32x64xbf16, #tpu.memory_space<vmem>>, vector<1x1x32x64xbf16>
    %682 = vector.shape_cast %681 : vector<1x1x32x64xbf16> to vector<32x64xbf16>
    %683 = arith.truncf %680 : vector<16x32xf32> to vector<16x32xbf16>
    %cst_417 = arith.constant dense<0.000000e+00> : vector<16x64xf32>
    %684 = tpu.matmul %683, %682, %cst_417 {dimension_numbers = #tpu.dot_dimension_numbers<[1], [0], [0], [1], [0, 0, 1, 1], [], []>} : vector<16x32xbf16>, vector<32x64xbf16>, vector<16x64xf32> -> vector<16x64xf32>
    %c1_418 = arith.constant 1 : index
    %c0_419 = arith.constant 0 : index
    %c0_420 = arith.constant 0 : index
    %c0_421 = arith.constant 0 : index
    %685 = vector.load %arg19[%c1_418, %c0_419, %c0_420, %c0_421] : memref<2x3x32x64xbf16, #tpu.memory_space<vmem>>, vector<1x1x32x64xbf16>
    %686 = vector.shape_cast %685 : vector<1x1x32x64xbf16> to vector<32x64xbf16>
    %687 = arith.truncf %208 : vector<16x32xf32> to vector<16x32xbf16>
    %cst_422 = arith.constant dense<0.000000e+00> : vector<16x64xf32>
    %688 = tpu.matmul %687, %686, %cst_422 {dimension_numbers = #tpu.dot_dimension_numbers<[1], [0], [0], [1], [0, 0, 1, 1], [], []>} : vector<16x32xbf16>, vector<32x64xbf16>, vector<16x64xf32> -> vector<16x64xf32>
    %689 = arith.addf %684, %688 : vector<16x64xf32>
    %c1_423 = arith.constant 1 : index
    %c0_424 = arith.constant 0 : index
    %c0_425 = arith.constant 0 : index
    %c0_426 = arith.constant 0 : index
    %690 = vector.load %arg20[%c1_423, %c0_424, %c0_425, %c0_426] : memref<2x3x1x64xf32, #tpu.memory_space<vmem>>, vector<1x1x1x64xf32>
    %691 = vector.shape_cast %690 : vector<1x1x1x64xf32> to vector<1x64xf32>
    %692 = vector.broadcast %691 : vector<1x64xf32> to vector<16x64xf32>
    %693 = arith.addf %689, %692 : vector<16x64xf32>
    %cst_427 = arith.constant 0.000000e+00 : f32
    %694 = vector.broadcast %cst_427 : f32 to vector<16x64xf32>
    %695 = arith.maximumf %693, %694 : vector<16x64xf32>
    %c1_428 = arith.constant 1 : index
    %c0_429 = arith.constant 0 : index
    %c0_430 = arith.constant 0 : index
    %c0_431 = arith.constant 0 : index
    %696 = vector.load %arg21[%c1_428, %c0_429, %c0_430, %c0_431] : memref<2x3x64x32xbf16, #tpu.memory_space<vmem>>, vector<1x1x64x32xbf16>
    %697 = vector.shape_cast %696 : vector<1x1x64x32xbf16> to vector<64x32xbf16>
    %698 = arith.truncf %695 : vector<16x64xf32> to vector<16x64xbf16>
    %cst_432 = arith.constant dense<0.000000e+00> : vector<16x32xf32>
    %699 = tpu.matmul %698, %697, %cst_432 {dimension_numbers = #tpu.dot_dimension_numbers<[1], [0], [0], [1], [0, 0, 1, 1], [], []>} : vector<16x64xbf16>, vector<64x32xbf16>, vector<16x32xf32> -> vector<16x32xf32>
    %c1_433 = arith.constant 1 : index
    %c0_434 = arith.constant 0 : index
    %c0_435 = arith.constant 0 : index
    %c0_436 = arith.constant 0 : index
    %700 = vector.load %arg22[%c1_433, %c0_434, %c0_435, %c0_436] : memref<2x3x1x32xf32, #tpu.memory_space<vmem>>, vector<1x1x1x32xf32>
    %701 = vector.shape_cast %700 : vector<1x1x1x32xf32> to vector<1x32xf32>
    %702 = vector.broadcast %701 : vector<1x32xf32> to vector<16x32xf32>
    %703 = arith.addf %699, %702 : vector<16x32xf32>
    %704 = vector.broadcast %35 : vector<16x1xi1> to vector<16x16xi1>
    %705 = vector.broadcast %43 : vector<1x16xi1> to vector<16x16xi1>
    %706 = arith.andi %704, %705 : vector<16x16xi1>
    %c1_437 = arith.constant 1 : index
    %c1_438 = arith.constant 1 : index
    %c0_439 = arith.constant 0 : index
    %c0_440 = arith.constant 0 : index
    %707 = vector.load %arg10[%c1_437, %c1_438, %c0_439, %c0_440] : memref<2x3x32x32xbf16, #tpu.memory_space<vmem>>, vector<1x1x32x32xbf16>
    %708 = vector.shape_cast %707 : vector<1x1x32x32xbf16> to vector<32x32xbf16>
    %709 = arith.truncf %373 : vector<16x32xf32> to vector<16x32xbf16>
    %cst_441 = arith.constant dense<0.000000e+00> : vector<16x32xf32>
    %710 = tpu.matmul %709, %708, %cst_441 {dimension_numbers = #tpu.dot_dimension_numbers<[1], [0], [0], [1], [0, 0, 1, 1], [], []>} : vector<16x32xbf16>, vector<32x32xbf16>, vector<16x32xf32> -> vector<16x32xf32>
    %c1_442 = arith.constant 1 : index
    %c1_443 = arith.constant 1 : index
    %c0_444 = arith.constant 0 : index
    %c0_445 = arith.constant 0 : index
    %711 = vector.load %arg11[%c1_442, %c1_443, %c0_444, %c0_445] : memref<2x3x1x32xf32, #tpu.memory_space<vmem>>, vector<1x1x1x32xf32>
    %712 = vector.shape_cast %711 : vector<1x1x1x32xf32> to vector<1x32xf32>
    %713 = vector.broadcast %712 : vector<1x32xf32> to vector<16x32xf32>
    %714 = arith.addf %710, %713 : vector<16x32xf32>
    %c1_446 = arith.constant 1 : index
    %c1_447 = arith.constant 1 : index
    %c0_448 = arith.constant 0 : index
    %c0_449 = arith.constant 0 : index
    %715 = vector.load %arg12[%c1_446, %c1_447, %c0_448, %c0_449] : memref<2x3x32x32xbf16, #tpu.memory_space<vmem>>, vector<1x1x32x32xbf16>
    %716 = vector.shape_cast %715 : vector<1x1x32x32xbf16> to vector<32x32xbf16>
    %717 = arith.truncf %373 : vector<16x32xf32> to vector<16x32xbf16>
    %cst_450 = arith.constant dense<0.000000e+00> : vector<16x32xf32>
    %718 = tpu.matmul %717, %716, %cst_450 {dimension_numbers = #tpu.dot_dimension_numbers<[1], [0], [0], [1], [0, 0, 1, 1], [], []>} : vector<16x32xbf16>, vector<32x32xbf16>, vector<16x32xf32> -> vector<16x32xf32>
    %c1_451 = arith.constant 1 : index
    %c1_452 = arith.constant 1 : index
    %c0_453 = arith.constant 0 : index
    %c0_454 = arith.constant 0 : index
    %719 = vector.load %arg13[%c1_451, %c1_452, %c0_453, %c0_454] : memref<2x3x1x32xf32, #tpu.memory_space<vmem>>, vector<1x1x1x32xf32>
    %720 = vector.shape_cast %719 : vector<1x1x1x32xf32> to vector<1x32xf32>
    %721 = vector.broadcast %720 : vector<1x32xf32> to vector<16x32xf32>
    %722 = arith.addf %718, %721 : vector<16x32xf32>
    %c1_455 = arith.constant 1 : index
    %c1_456 = arith.constant 1 : index
    %c0_457 = arith.constant 0 : index
    %c0_458 = arith.constant 0 : index
    %723 = vector.load %arg14[%c1_455, %c1_456, %c0_457, %c0_458] : memref<2x3x32x32xbf16, #tpu.memory_space<vmem>>, vector<1x1x32x32xbf16>
    %724 = vector.shape_cast %723 : vector<1x1x32x32xbf16> to vector<32x32xbf16>
    %725 = arith.truncf %373 : vector<16x32xf32> to vector<16x32xbf16>
    %cst_459 = arith.constant dense<0.000000e+00> : vector<16x32xf32>
    %726 = tpu.matmul %725, %724, %cst_459 {dimension_numbers = #tpu.dot_dimension_numbers<[1], [0], [0], [1], [0, 0, 1, 1], [], []>} : vector<16x32xbf16>, vector<32x32xbf16>, vector<16x32xf32> -> vector<16x32xf32>
    %c1_460 = arith.constant 1 : index
    %c1_461 = arith.constant 1 : index
    %c0_462 = arith.constant 0 : index
    %c0_463 = arith.constant 0 : index
    %727 = vector.load %arg15[%c1_460, %c1_461, %c0_462, %c0_463] : memref<2x3x1x32xf32, #tpu.memory_space<vmem>>, vector<1x1x1x32xf32>
    %728 = vector.shape_cast %727 : vector<1x1x1x32xf32> to vector<1x32xf32>
    %729 = vector.broadcast %728 : vector<1x32xf32> to vector<16x32xf32>
    %730 = arith.addf %726, %729 : vector<16x32xf32>
    %731 = vector.extract_strided_slice %714 {offsets = [0, 0], sizes = [16, 8], strides = [1, 1]} : vector<16x32xf32> to vector<16x8xf32>
    %732 = vector.extract_strided_slice %722 {offsets = [0, 0], sizes = [16, 8], strides = [1, 1]} : vector<16x32xf32> to vector<16x8xf32>
    %733 = vector.extract_strided_slice %730 {offsets = [0, 0], sizes = [16, 8], strides = [1, 1]} : vector<16x32xf32> to vector<16x8xf32>
    %734 = arith.truncf %731 : vector<16x8xf32> to vector<16x8xbf16>
    %735 = arith.truncf %732 : vector<16x8xf32> to vector<16x8xbf16>
    %cst_464 = arith.constant dense<0.000000e+00> : vector<16x16xf32>
    %736 = tpu.matmul %734, %735, %cst_464 {dimension_numbers = #tpu.dot_dimension_numbers<[1], [1], [0], [0], [0, 0, 1, 0], [], []>} : vector<16x8xbf16>, vector<16x8xbf16>, vector<16x16xf32> -> vector<16x16xf32>
    %cst_465 = arith.constant 0.353553385 : f32
    %737 = vector.broadcast %cst_465 : f32 to vector<16x16xf32>
    %738 = arith.mulf %736, %737 : vector<16x16xf32>
    %cst_466 = arith.constant -1.000000e+09 : f32
    %739 = vector.broadcast %cst_466 : f32 to vector<16x16xf32>
    %740 = arith.select %706, %738, %739 : vector<16x16xi1>, vector<16x16xf32>
    %cst_467 = arith.constant dense<0xFF800000> : vector<16xf32>
    %741 = vector.multi_reduction <maximumf>, %740, %cst_467 [1] : vector<16x16xf32> to vector<16xf32>
    %742 = vector.shape_cast %741 : vector<16xf32> to vector<16x1xf32>
    %743 = vector.broadcast %742 : vector<16x1xf32> to vector<16x16xf32>
    %744 = arith.subf %740, %743 : vector<16x16xf32>
    %745 = math.exp %744 : vector<16x16xf32>
    %cst_468 = arith.constant dense<0.000000e+00> : vector<16xf32>
    %746 = vector.multi_reduction <add>, %745, %cst_468 [1] : vector<16x16xf32> to vector<16xf32>
    %747 = vector.shape_cast %746 : vector<16xf32> to vector<16x1xf32>
    %748 = tpu.reciprocal %747 {approx = true} : vector<16x1xf32> -> vector<16x1xf32>
    %749 = vector.broadcast %748 : vector<16x1xf32> to vector<16x16xf32>
    %750 = arith.mulf %745, %749 : vector<16x16xf32>
    %751 = arith.truncf %750 : vector<16x16xf32> to vector<16x16xbf16>
    %752 = arith.truncf %733 : vector<16x8xf32> to vector<16x8xbf16>
    %cst_469 = arith.constant dense<0.000000e+00> : vector<16x8xf32>
    %753 = tpu.matmul %751, %752, %cst_469 {dimension_numbers = #tpu.dot_dimension_numbers<[1], [0], [0], [1], [0, 0, 1, 1], [], []>} : vector<16x16xbf16>, vector<16x8xbf16>, vector<16x8xf32> -> vector<16x8xf32>
    %c1_470 = arith.constant 1 : index
    %c1_471 = arith.constant 1 : index
    %c0_472 = arith.constant 0 : index
    %c0_473 = arith.constant 0 : index
    %c0_474 = arith.constant 0 : index
    %754 = vector.load %arg16[%c1_470, %c1_471, %c0_472, %c0_473, %c0_474] : memref<2x3x4x8x32xbf16, #tpu.memory_space<vmem>>, vector<1x1x1x8x32xbf16>
    %755 = vector.shape_cast %754 : vector<1x1x1x8x32xbf16> to vector<8x32xbf16>
    %756 = arith.truncf %753 : vector<16x8xf32> to vector<16x8xbf16>
    %cst_475 = arith.constant dense<0.000000e+00> : vector<16x32xf32>
    %757 = tpu.matmul %756, %755, %cst_475 {dimension_numbers = #tpu.dot_dimension_numbers<[1], [0], [0], [1], [0, 0, 1, 1], [], []>} : vector<16x8xbf16>, vector<8x32xbf16>, vector<16x32xf32> -> vector<16x32xf32>
    %758 = vector.extract_strided_slice %714 {offsets = [0, 8], sizes = [16, 8], strides = [1, 1]} : vector<16x32xf32> to vector<16x8xf32>
    %759 = vector.extract_strided_slice %722 {offsets = [0, 8], sizes = [16, 8], strides = [1, 1]} : vector<16x32xf32> to vector<16x8xf32>
    %760 = vector.extract_strided_slice %730 {offsets = [0, 8], sizes = [16, 8], strides = [1, 1]} : vector<16x32xf32> to vector<16x8xf32>
    %761 = arith.truncf %758 : vector<16x8xf32> to vector<16x8xbf16>
    %762 = arith.truncf %759 : vector<16x8xf32> to vector<16x8xbf16>
    %cst_476 = arith.constant dense<0.000000e+00> : vector<16x16xf32>
    %763 = tpu.matmul %761, %762, %cst_476 {dimension_numbers = #tpu.dot_dimension_numbers<[1], [1], [0], [0], [0, 0, 1, 0], [], []>} : vector<16x8xbf16>, vector<16x8xbf16>, vector<16x16xf32> -> vector<16x16xf32>
    %cst_477 = arith.constant 0.353553385 : f32
    %764 = vector.broadcast %cst_477 : f32 to vector<16x16xf32>
    %765 = arith.mulf %763, %764 : vector<16x16xf32>
    %cst_478 = arith.constant -1.000000e+09 : f32
    %766 = vector.broadcast %cst_478 : f32 to vector<16x16xf32>
    %767 = arith.select %706, %765, %766 : vector<16x16xi1>, vector<16x16xf32>
    %cst_479 = arith.constant dense<0xFF800000> : vector<16xf32>
    %768 = vector.multi_reduction <maximumf>, %767, %cst_479 [1] : vector<16x16xf32> to vector<16xf32>
    %769 = vector.shape_cast %768 : vector<16xf32> to vector<16x1xf32>
    %770 = vector.broadcast %769 : vector<16x1xf32> to vector<16x16xf32>
    %771 = arith.subf %767, %770 : vector<16x16xf32>
    %772 = math.exp %771 : vector<16x16xf32>
    %cst_480 = arith.constant dense<0.000000e+00> : vector<16xf32>
    %773 = vector.multi_reduction <add>, %772, %cst_480 [1] : vector<16x16xf32> to vector<16xf32>
    %774 = vector.shape_cast %773 : vector<16xf32> to vector<16x1xf32>
    %775 = tpu.reciprocal %774 {approx = true} : vector<16x1xf32> -> vector<16x1xf32>
    %776 = vector.broadcast %775 : vector<16x1xf32> to vector<16x16xf32>
    %777 = arith.mulf %772, %776 : vector<16x16xf32>
    %778 = arith.truncf %777 : vector<16x16xf32> to vector<16x16xbf16>
    %779 = arith.truncf %760 : vector<16x8xf32> to vector<16x8xbf16>
    %cst_481 = arith.constant dense<0.000000e+00> : vector<16x8xf32>
    %780 = tpu.matmul %778, %779, %cst_481 {dimension_numbers = #tpu.dot_dimension_numbers<[1], [0], [0], [1], [0, 0, 1, 1], [], []>} : vector<16x16xbf16>, vector<16x8xbf16>, vector<16x8xf32> -> vector<16x8xf32>
    %c1_482 = arith.constant 1 : index
    %c1_483 = arith.constant 1 : index
    %c1_484 = arith.constant 1 : index
    %c0_485 = arith.constant 0 : index
    %c0_486 = arith.constant 0 : index
    %781 = vector.load %arg16[%c1_482, %c1_483, %c1_484, %c0_485, %c0_486] : memref<2x3x4x8x32xbf16, #tpu.memory_space<vmem>>, vector<1x1x1x8x32xbf16>
    %782 = vector.shape_cast %781 : vector<1x1x1x8x32xbf16> to vector<8x32xbf16>
    %783 = arith.truncf %780 : vector<16x8xf32> to vector<16x8xbf16>
    %cst_487 = arith.constant dense<0.000000e+00> : vector<16x32xf32>
    %784 = tpu.matmul %783, %782, %cst_487 {dimension_numbers = #tpu.dot_dimension_numbers<[1], [0], [0], [1], [0, 0, 1, 1], [], []>} : vector<16x8xbf16>, vector<8x32xbf16>, vector<16x32xf32> -> vector<16x32xf32>
    %785 = arith.addf %757, %784 : vector<16x32xf32>
    %786 = vector.extract_strided_slice %714 {offsets = [0, 16], sizes = [16, 8], strides = [1, 1]} : vector<16x32xf32> to vector<16x8xf32>
    %787 = vector.extract_strided_slice %722 {offsets = [0, 16], sizes = [16, 8], strides = [1, 1]} : vector<16x32xf32> to vector<16x8xf32>
    %788 = vector.extract_strided_slice %730 {offsets = [0, 16], sizes = [16, 8], strides = [1, 1]} : vector<16x32xf32> to vector<16x8xf32>
    %789 = arith.truncf %786 : vector<16x8xf32> to vector<16x8xbf16>
    %790 = arith.truncf %787 : vector<16x8xf32> to vector<16x8xbf16>
    %cst_488 = arith.constant dense<0.000000e+00> : vector<16x16xf32>
    %791 = tpu.matmul %789, %790, %cst_488 {dimension_numbers = #tpu.dot_dimension_numbers<[1], [1], [0], [0], [0, 0, 1, 0], [], []>} : vector<16x8xbf16>, vector<16x8xbf16>, vector<16x16xf32> -> vector<16x16xf32>
    %cst_489 = arith.constant 0.353553385 : f32
    %792 = vector.broadcast %cst_489 : f32 to vector<16x16xf32>
    %793 = arith.mulf %791, %792 : vector<16x16xf32>
    %cst_490 = arith.constant -1.000000e+09 : f32
    %794 = vector.broadcast %cst_490 : f32 to vector<16x16xf32>
    %795 = arith.select %706, %793, %794 : vector<16x16xi1>, vector<16x16xf32>
    %cst_491 = arith.constant dense<0xFF800000> : vector<16xf32>
    %796 = vector.multi_reduction <maximumf>, %795, %cst_491 [1] : vector<16x16xf32> to vector<16xf32>
    %797 = vector.shape_cast %796 : vector<16xf32> to vector<16x1xf32>
    %798 = vector.broadcast %797 : vector<16x1xf32> to vector<16x16xf32>
    %799 = arith.subf %795, %798 : vector<16x16xf32>
    %800 = math.exp %799 : vector<16x16xf32>
    %cst_492 = arith.constant dense<0.000000e+00> : vector<16xf32>
    %801 = vector.multi_reduction <add>, %800, %cst_492 [1] : vector<16x16xf32> to vector<16xf32>
    %802 = vector.shape_cast %801 : vector<16xf32> to vector<16x1xf32>
    %803 = tpu.reciprocal %802 {approx = true} : vector<16x1xf32> -> vector<16x1xf32>
    %804 = vector.broadcast %803 : vector<16x1xf32> to vector<16x16xf32>
    %805 = arith.mulf %800, %804 : vector<16x16xf32>
    %806 = arith.truncf %805 : vector<16x16xf32> to vector<16x16xbf16>
    %807 = arith.truncf %788 : vector<16x8xf32> to vector<16x8xbf16>
    %cst_493 = arith.constant dense<0.000000e+00> : vector<16x8xf32>
    %808 = tpu.matmul %806, %807, %cst_493 {dimension_numbers = #tpu.dot_dimension_numbers<[1], [0], [0], [1], [0, 0, 1, 1], [], []>} : vector<16x16xbf16>, vector<16x8xbf16>, vector<16x8xf32> -> vector<16x8xf32>
    %c1_494 = arith.constant 1 : index
    %c1_495 = arith.constant 1 : index
    %c2_496 = arith.constant 2 : index
    %c0_497 = arith.constant 0 : index
    %c0_498 = arith.constant 0 : index
    %809 = vector.load %arg16[%c1_494, %c1_495, %c2_496, %c0_497, %c0_498] : memref<2x3x4x8x32xbf16, #tpu.memory_space<vmem>>, vector<1x1x1x8x32xbf16>
    %810 = vector.shape_cast %809 : vector<1x1x1x8x32xbf16> to vector<8x32xbf16>
    %811 = arith.truncf %808 : vector<16x8xf32> to vector<16x8xbf16>
    %cst_499 = arith.constant dense<0.000000e+00> : vector<16x32xf32>
    %812 = tpu.matmul %811, %810, %cst_499 {dimension_numbers = #tpu.dot_dimension_numbers<[1], [0], [0], [1], [0, 0, 1, 1], [], []>} : vector<16x8xbf16>, vector<8x32xbf16>, vector<16x32xf32> -> vector<16x32xf32>
    %813 = arith.addf %785, %812 : vector<16x32xf32>
    %814 = vector.extract_strided_slice %714 {offsets = [0, 24], sizes = [16, 8], strides = [1, 1]} : vector<16x32xf32> to vector<16x8xf32>
    %815 = vector.extract_strided_slice %722 {offsets = [0, 24], sizes = [16, 8], strides = [1, 1]} : vector<16x32xf32> to vector<16x8xf32>
    %816 = vector.extract_strided_slice %730 {offsets = [0, 24], sizes = [16, 8], strides = [1, 1]} : vector<16x32xf32> to vector<16x8xf32>
    %817 = arith.truncf %814 : vector<16x8xf32> to vector<16x8xbf16>
    %818 = arith.truncf %815 : vector<16x8xf32> to vector<16x8xbf16>
    %cst_500 = arith.constant dense<0.000000e+00> : vector<16x16xf32>
    %819 = tpu.matmul %817, %818, %cst_500 {dimension_numbers = #tpu.dot_dimension_numbers<[1], [1], [0], [0], [0, 0, 1, 0], [], []>} : vector<16x8xbf16>, vector<16x8xbf16>, vector<16x16xf32> -> vector<16x16xf32>
    %cst_501 = arith.constant 0.353553385 : f32
    %820 = vector.broadcast %cst_501 : f32 to vector<16x16xf32>
    %821 = arith.mulf %819, %820 : vector<16x16xf32>
    %cst_502 = arith.constant -1.000000e+09 : f32
    %822 = vector.broadcast %cst_502 : f32 to vector<16x16xf32>
    %823 = arith.select %706, %821, %822 : vector<16x16xi1>, vector<16x16xf32>
    %cst_503 = arith.constant dense<0xFF800000> : vector<16xf32>
    %824 = vector.multi_reduction <maximumf>, %823, %cst_503 [1] : vector<16x16xf32> to vector<16xf32>
    %825 = vector.shape_cast %824 : vector<16xf32> to vector<16x1xf32>
    %826 = vector.broadcast %825 : vector<16x1xf32> to vector<16x16xf32>
    %827 = arith.subf %823, %826 : vector<16x16xf32>
    %828 = math.exp %827 : vector<16x16xf32>
    %cst_504 = arith.constant dense<0.000000e+00> : vector<16xf32>
    %829 = vector.multi_reduction <add>, %828, %cst_504 [1] : vector<16x16xf32> to vector<16xf32>
    %830 = vector.shape_cast %829 : vector<16xf32> to vector<16x1xf32>
    %831 = tpu.reciprocal %830 {approx = true} : vector<16x1xf32> -> vector<16x1xf32>
    %832 = vector.broadcast %831 : vector<16x1xf32> to vector<16x16xf32>
    %833 = arith.mulf %828, %832 : vector<16x16xf32>
    %834 = arith.truncf %833 : vector<16x16xf32> to vector<16x16xbf16>
    %835 = arith.truncf %816 : vector<16x8xf32> to vector<16x8xbf16>
    %cst_505 = arith.constant dense<0.000000e+00> : vector<16x8xf32>
    %836 = tpu.matmul %834, %835, %cst_505 {dimension_numbers = #tpu.dot_dimension_numbers<[1], [0], [0], [1], [0, 0, 1, 1], [], []>} : vector<16x16xbf16>, vector<16x8xbf16>, vector<16x8xf32> -> vector<16x8xf32>
    %c1_506 = arith.constant 1 : index
    %c1_507 = arith.constant 1 : index
    %c3_508 = arith.constant 3 : index
    %c0_509 = arith.constant 0 : index
    %c0_510 = arith.constant 0 : index
    %837 = vector.load %arg16[%c1_506, %c1_507, %c3_508, %c0_509, %c0_510] : memref<2x3x4x8x32xbf16, #tpu.memory_space<vmem>>, vector<1x1x1x8x32xbf16>
    %838 = vector.shape_cast %837 : vector<1x1x1x8x32xbf16> to vector<8x32xbf16>
    %839 = arith.truncf %836 : vector<16x8xf32> to vector<16x8xbf16>
    %cst_511 = arith.constant dense<0.000000e+00> : vector<16x32xf32>
    %840 = tpu.matmul %839, %838, %cst_511 {dimension_numbers = #tpu.dot_dimension_numbers<[1], [0], [0], [1], [0, 0, 1, 1], [], []>} : vector<16x8xbf16>, vector<8x32xbf16>, vector<16x32xf32> -> vector<16x32xf32>
    %841 = arith.addf %813, %840 : vector<16x32xf32>
    %c1_512 = arith.constant 1 : index
    %c1_513 = arith.constant 1 : index
    %c0_514 = arith.constant 0 : index
    %c0_515 = arith.constant 0 : index
    %842 = vector.load %arg17[%c1_512, %c1_513, %c0_514, %c0_515] : memref<2x3x1x32xf32, #tpu.memory_space<vmem>>, vector<1x1x1x32xf32>
    %843 = vector.shape_cast %842 : vector<1x1x1x32xf32> to vector<1x32xf32>
    %844 = vector.broadcast %843 : vector<1x32xf32> to vector<16x32xf32>
    %845 = arith.addf %841, %844 : vector<16x32xf32>
    %c1_516 = arith.constant 1 : index
    %c1_517 = arith.constant 1 : index
    %c0_518 = arith.constant 0 : index
    %c0_519 = arith.constant 0 : index
    %846 = vector.load %arg18[%c1_516, %c1_517, %c0_518, %c0_519] : memref<2x3x32x64xbf16, #tpu.memory_space<vmem>>, vector<1x1x32x64xbf16>
    %847 = vector.shape_cast %846 : vector<1x1x32x64xbf16> to vector<32x64xbf16>
    %848 = arith.truncf %845 : vector<16x32xf32> to vector<16x32xbf16>
    %cst_520 = arith.constant dense<0.000000e+00> : vector<16x64xf32>
    %849 = tpu.matmul %848, %847, %cst_520 {dimension_numbers = #tpu.dot_dimension_numbers<[1], [0], [0], [1], [0, 0, 1, 1], [], []>} : vector<16x32xbf16>, vector<32x64xbf16>, vector<16x64xf32> -> vector<16x64xf32>
    %c1_521 = arith.constant 1 : index
    %c1_522 = arith.constant 1 : index
    %c0_523 = arith.constant 0 : index
    %c0_524 = arith.constant 0 : index
    %850 = vector.load %arg19[%c1_521, %c1_522, %c0_523, %c0_524] : memref<2x3x32x64xbf16, #tpu.memory_space<vmem>>, vector<1x1x32x64xbf16>
    %851 = vector.shape_cast %850 : vector<1x1x32x64xbf16> to vector<32x64xbf16>
    %852 = arith.truncf %373 : vector<16x32xf32> to vector<16x32xbf16>
    %cst_525 = arith.constant dense<0.000000e+00> : vector<16x64xf32>
    %853 = tpu.matmul %852, %851, %cst_525 {dimension_numbers = #tpu.dot_dimension_numbers<[1], [0], [0], [1], [0, 0, 1, 1], [], []>} : vector<16x32xbf16>, vector<32x64xbf16>, vector<16x64xf32> -> vector<16x64xf32>
    %854 = arith.addf %849, %853 : vector<16x64xf32>
    %c1_526 = arith.constant 1 : index
    %c1_527 = arith.constant 1 : index
    %c0_528 = arith.constant 0 : index
    %c0_529 = arith.constant 0 : index
    %855 = vector.load %arg20[%c1_526, %c1_527, %c0_528, %c0_529] : memref<2x3x1x64xf32, #tpu.memory_space<vmem>>, vector<1x1x1x64xf32>
    %856 = vector.shape_cast %855 : vector<1x1x1x64xf32> to vector<1x64xf32>
    %857 = vector.broadcast %856 : vector<1x64xf32> to vector<16x64xf32>
    %858 = arith.addf %854, %857 : vector<16x64xf32>
    %cst_530 = arith.constant 0.000000e+00 : f32
    %859 = vector.broadcast %cst_530 : f32 to vector<16x64xf32>
    %860 = arith.maximumf %858, %859 : vector<16x64xf32>
    %c1_531 = arith.constant 1 : index
    %c1_532 = arith.constant 1 : index
    %c0_533 = arith.constant 0 : index
    %c0_534 = arith.constant 0 : index
    %861 = vector.load %arg21[%c1_531, %c1_532, %c0_533, %c0_534] : memref<2x3x64x32xbf16, #tpu.memory_space<vmem>>, vector<1x1x64x32xbf16>
    %862 = vector.shape_cast %861 : vector<1x1x64x32xbf16> to vector<64x32xbf16>
    %863 = arith.truncf %860 : vector<16x64xf32> to vector<16x64xbf16>
    %cst_535 = arith.constant dense<0.000000e+00> : vector<16x32xf32>
    %864 = tpu.matmul %863, %862, %cst_535 {dimension_numbers = #tpu.dot_dimension_numbers<[1], [0], [0], [1], [0, 0, 1, 1], [], []>} : vector<16x64xbf16>, vector<64x32xbf16>, vector<16x32xf32> -> vector<16x32xf32>
    %c1_536 = arith.constant 1 : index
    %c1_537 = arith.constant 1 : index
    %c0_538 = arith.constant 0 : index
    %c0_539 = arith.constant 0 : index
    %865 = vector.load %arg22[%c1_536, %c1_537, %c0_538, %c0_539] : memref<2x3x1x32xf32, #tpu.memory_space<vmem>>, vector<1x1x1x32xf32>
    %866 = vector.shape_cast %865 : vector<1x1x1x32xf32> to vector<1x32xf32>
    %867 = vector.broadcast %866 : vector<1x32xf32> to vector<16x32xf32>
    %868 = arith.addf %864, %867 : vector<16x32xf32>
    %869 = vector.broadcast %38 : vector<16x1xi1> to vector<16x16xi1>
    %870 = vector.broadcast %43 : vector<1x16xi1> to vector<16x16xi1>
    %871 = arith.andi %869, %870 : vector<16x16xi1>
    %c1_540 = arith.constant 1 : index
    %c2_541 = arith.constant 2 : index
    %c0_542 = arith.constant 0 : index
    %c0_543 = arith.constant 0 : index
    %872 = vector.load %arg10[%c1_540, %c2_541, %c0_542, %c0_543] : memref<2x3x32x32xbf16, #tpu.memory_space<vmem>>, vector<1x1x32x32xbf16>
    %873 = vector.shape_cast %872 : vector<1x1x32x32xbf16> to vector<32x32xbf16>
    %874 = arith.truncf %538 : vector<16x32xf32> to vector<16x32xbf16>
    %cst_544 = arith.constant dense<0.000000e+00> : vector<16x32xf32>
    %875 = tpu.matmul %874, %873, %cst_544 {dimension_numbers = #tpu.dot_dimension_numbers<[1], [0], [0], [1], [0, 0, 1, 1], [], []>} : vector<16x32xbf16>, vector<32x32xbf16>, vector<16x32xf32> -> vector<16x32xf32>
    %c1_545 = arith.constant 1 : index
    %c2_546 = arith.constant 2 : index
    %c0_547 = arith.constant 0 : index
    %c0_548 = arith.constant 0 : index
    %876 = vector.load %arg11[%c1_545, %c2_546, %c0_547, %c0_548] : memref<2x3x1x32xf32, #tpu.memory_space<vmem>>, vector<1x1x1x32xf32>
    %877 = vector.shape_cast %876 : vector<1x1x1x32xf32> to vector<1x32xf32>
    %878 = vector.broadcast %877 : vector<1x32xf32> to vector<16x32xf32>
    %879 = arith.addf %875, %878 : vector<16x32xf32>
    %c1_549 = arith.constant 1 : index
    %c2_550 = arith.constant 2 : index
    %c0_551 = arith.constant 0 : index
    %c0_552 = arith.constant 0 : index
    %880 = vector.load %arg12[%c1_549, %c2_550, %c0_551, %c0_552] : memref<2x3x32x32xbf16, #tpu.memory_space<vmem>>, vector<1x1x32x32xbf16>
    %881 = vector.shape_cast %880 : vector<1x1x32x32xbf16> to vector<32x32xbf16>
    %882 = arith.truncf %373 : vector<16x32xf32> to vector<16x32xbf16>
    %cst_553 = arith.constant dense<0.000000e+00> : vector<16x32xf32>
    %883 = tpu.matmul %882, %881, %cst_553 {dimension_numbers = #tpu.dot_dimension_numbers<[1], [0], [0], [1], [0, 0, 1, 1], [], []>} : vector<16x32xbf16>, vector<32x32xbf16>, vector<16x32xf32> -> vector<16x32xf32>
    %c1_554 = arith.constant 1 : index
    %c2_555 = arith.constant 2 : index
    %c0_556 = arith.constant 0 : index
    %c0_557 = arith.constant 0 : index
    %884 = vector.load %arg13[%c1_554, %c2_555, %c0_556, %c0_557] : memref<2x3x1x32xf32, #tpu.memory_space<vmem>>, vector<1x1x1x32xf32>
    %885 = vector.shape_cast %884 : vector<1x1x1x32xf32> to vector<1x32xf32>
    %886 = vector.broadcast %885 : vector<1x32xf32> to vector<16x32xf32>
    %887 = arith.addf %883, %886 : vector<16x32xf32>
    %c1_558 = arith.constant 1 : index
    %c2_559 = arith.constant 2 : index
    %c0_560 = arith.constant 0 : index
    %c0_561 = arith.constant 0 : index
    %888 = vector.load %arg14[%c1_558, %c2_559, %c0_560, %c0_561] : memref<2x3x32x32xbf16, #tpu.memory_space<vmem>>, vector<1x1x32x32xbf16>
    %889 = vector.shape_cast %888 : vector<1x1x32x32xbf16> to vector<32x32xbf16>
    %890 = arith.truncf %373 : vector<16x32xf32> to vector<16x32xbf16>
    %cst_562 = arith.constant dense<0.000000e+00> : vector<16x32xf32>
    %891 = tpu.matmul %890, %889, %cst_562 {dimension_numbers = #tpu.dot_dimension_numbers<[1], [0], [0], [1], [0, 0, 1, 1], [], []>} : vector<16x32xbf16>, vector<32x32xbf16>, vector<16x32xf32> -> vector<16x32xf32>
    %c1_563 = arith.constant 1 : index
    %c2_564 = arith.constant 2 : index
    %c0_565 = arith.constant 0 : index
    %c0_566 = arith.constant 0 : index
    %892 = vector.load %arg15[%c1_563, %c2_564, %c0_565, %c0_566] : memref<2x3x1x32xf32, #tpu.memory_space<vmem>>, vector<1x1x1x32xf32>
    %893 = vector.shape_cast %892 : vector<1x1x1x32xf32> to vector<1x32xf32>
    %894 = vector.broadcast %893 : vector<1x32xf32> to vector<16x32xf32>
    %895 = arith.addf %891, %894 : vector<16x32xf32>
    %896 = vector.extract_strided_slice %879 {offsets = [0, 0], sizes = [16, 8], strides = [1, 1]} : vector<16x32xf32> to vector<16x8xf32>
    %897 = vector.extract_strided_slice %887 {offsets = [0, 0], sizes = [16, 8], strides = [1, 1]} : vector<16x32xf32> to vector<16x8xf32>
    %898 = vector.extract_strided_slice %895 {offsets = [0, 0], sizes = [16, 8], strides = [1, 1]} : vector<16x32xf32> to vector<16x8xf32>
    %899 = arith.truncf %896 : vector<16x8xf32> to vector<16x8xbf16>
    %900 = arith.truncf %897 : vector<16x8xf32> to vector<16x8xbf16>
    %cst_567 = arith.constant dense<0.000000e+00> : vector<16x16xf32>
    %901 = tpu.matmul %899, %900, %cst_567 {dimension_numbers = #tpu.dot_dimension_numbers<[1], [1], [0], [0], [0, 0, 1, 0], [], []>} : vector<16x8xbf16>, vector<16x8xbf16>, vector<16x16xf32> -> vector<16x16xf32>
    %cst_568 = arith.constant 0.353553385 : f32
    %902 = vector.broadcast %cst_568 : f32 to vector<16x16xf32>
    %903 = arith.mulf %901, %902 : vector<16x16xf32>
    %cst_569 = arith.constant -1.000000e+09 : f32
    %904 = vector.broadcast %cst_569 : f32 to vector<16x16xf32>
    %905 = arith.select %871, %903, %904 : vector<16x16xi1>, vector<16x16xf32>
    %cst_570 = arith.constant dense<0xFF800000> : vector<16xf32>
    %906 = vector.multi_reduction <maximumf>, %905, %cst_570 [1] : vector<16x16xf32> to vector<16xf32>
    %907 = vector.shape_cast %906 : vector<16xf32> to vector<16x1xf32>
    %908 = vector.broadcast %907 : vector<16x1xf32> to vector<16x16xf32>
    %909 = arith.subf %905, %908 : vector<16x16xf32>
    %910 = math.exp %909 : vector<16x16xf32>
    %cst_571 = arith.constant dense<0.000000e+00> : vector<16xf32>
    %911 = vector.multi_reduction <add>, %910, %cst_571 [1] : vector<16x16xf32> to vector<16xf32>
    %912 = vector.shape_cast %911 : vector<16xf32> to vector<16x1xf32>
    %913 = tpu.reciprocal %912 {approx = true} : vector<16x1xf32> -> vector<16x1xf32>
    %914 = vector.broadcast %913 : vector<16x1xf32> to vector<16x16xf32>
    %915 = arith.mulf %910, %914 : vector<16x16xf32>
    %916 = arith.truncf %915 : vector<16x16xf32> to vector<16x16xbf16>
    %917 = arith.truncf %898 : vector<16x8xf32> to vector<16x8xbf16>
    %cst_572 = arith.constant dense<0.000000e+00> : vector<16x8xf32>
    %918 = tpu.matmul %916, %917, %cst_572 {dimension_numbers = #tpu.dot_dimension_numbers<[1], [0], [0], [1], [0, 0, 1, 1], [], []>} : vector<16x16xbf16>, vector<16x8xbf16>, vector<16x8xf32> -> vector<16x8xf32>
    %c1_573 = arith.constant 1 : index
    %c2_574 = arith.constant 2 : index
    %c0_575 = arith.constant 0 : index
    %c0_576 = arith.constant 0 : index
    %c0_577 = arith.constant 0 : index
    %919 = vector.load %arg16[%c1_573, %c2_574, %c0_575, %c0_576, %c0_577] : memref<2x3x4x8x32xbf16, #tpu.memory_space<vmem>>, vector<1x1x1x8x32xbf16>
    %920 = vector.shape_cast %919 : vector<1x1x1x8x32xbf16> to vector<8x32xbf16>
    %921 = arith.truncf %918 : vector<16x8xf32> to vector<16x8xbf16>
    %cst_578 = arith.constant dense<0.000000e+00> : vector<16x32xf32>
    %922 = tpu.matmul %921, %920, %cst_578 {dimension_numbers = #tpu.dot_dimension_numbers<[1], [0], [0], [1], [0, 0, 1, 1], [], []>} : vector<16x8xbf16>, vector<8x32xbf16>, vector<16x32xf32> -> vector<16x32xf32>
    %923 = vector.extract_strided_slice %879 {offsets = [0, 8], sizes = [16, 8], strides = [1, 1]} : vector<16x32xf32> to vector<16x8xf32>
    %924 = vector.extract_strided_slice %887 {offsets = [0, 8], sizes = [16, 8], strides = [1, 1]} : vector<16x32xf32> to vector<16x8xf32>
    %925 = vector.extract_strided_slice %895 {offsets = [0, 8], sizes = [16, 8], strides = [1, 1]} : vector<16x32xf32> to vector<16x8xf32>
    %926 = arith.truncf %923 : vector<16x8xf32> to vector<16x8xbf16>
    %927 = arith.truncf %924 : vector<16x8xf32> to vector<16x8xbf16>
    %cst_579 = arith.constant dense<0.000000e+00> : vector<16x16xf32>
    %928 = tpu.matmul %926, %927, %cst_579 {dimension_numbers = #tpu.dot_dimension_numbers<[1], [1], [0], [0], [0, 0, 1, 0], [], []>} : vector<16x8xbf16>, vector<16x8xbf16>, vector<16x16xf32> -> vector<16x16xf32>
    %cst_580 = arith.constant 0.353553385 : f32
    %929 = vector.broadcast %cst_580 : f32 to vector<16x16xf32>
    %930 = arith.mulf %928, %929 : vector<16x16xf32>
    %cst_581 = arith.constant -1.000000e+09 : f32
    %931 = vector.broadcast %cst_581 : f32 to vector<16x16xf32>
    %932 = arith.select %871, %930, %931 : vector<16x16xi1>, vector<16x16xf32>
    %cst_582 = arith.constant dense<0xFF800000> : vector<16xf32>
    %933 = vector.multi_reduction <maximumf>, %932, %cst_582 [1] : vector<16x16xf32> to vector<16xf32>
    %934 = vector.shape_cast %933 : vector<16xf32> to vector<16x1xf32>
    %935 = vector.broadcast %934 : vector<16x1xf32> to vector<16x16xf32>
    %936 = arith.subf %932, %935 : vector<16x16xf32>
    %937 = math.exp %936 : vector<16x16xf32>
    %cst_583 = arith.constant dense<0.000000e+00> : vector<16xf32>
    %938 = vector.multi_reduction <add>, %937, %cst_583 [1] : vector<16x16xf32> to vector<16xf32>
    %939 = vector.shape_cast %938 : vector<16xf32> to vector<16x1xf32>
    %940 = tpu.reciprocal %939 {approx = true} : vector<16x1xf32> -> vector<16x1xf32>
    %941 = vector.broadcast %940 : vector<16x1xf32> to vector<16x16xf32>
    %942 = arith.mulf %937, %941 : vector<16x16xf32>
    %943 = arith.truncf %942 : vector<16x16xf32> to vector<16x16xbf16>
    %944 = arith.truncf %925 : vector<16x8xf32> to vector<16x8xbf16>
    %cst_584 = arith.constant dense<0.000000e+00> : vector<16x8xf32>
    %945 = tpu.matmul %943, %944, %cst_584 {dimension_numbers = #tpu.dot_dimension_numbers<[1], [0], [0], [1], [0, 0, 1, 1], [], []>} : vector<16x16xbf16>, vector<16x8xbf16>, vector<16x8xf32> -> vector<16x8xf32>
    %c1_585 = arith.constant 1 : index
    %c2_586 = arith.constant 2 : index
    %c1_587 = arith.constant 1 : index
    %c0_588 = arith.constant 0 : index
    %c0_589 = arith.constant 0 : index
    %946 = vector.load %arg16[%c1_585, %c2_586, %c1_587, %c0_588, %c0_589] : memref<2x3x4x8x32xbf16, #tpu.memory_space<vmem>>, vector<1x1x1x8x32xbf16>
    %947 = vector.shape_cast %946 : vector<1x1x1x8x32xbf16> to vector<8x32xbf16>
    %948 = arith.truncf %945 : vector<16x8xf32> to vector<16x8xbf16>
    %cst_590 = arith.constant dense<0.000000e+00> : vector<16x32xf32>
    %949 = tpu.matmul %948, %947, %cst_590 {dimension_numbers = #tpu.dot_dimension_numbers<[1], [0], [0], [1], [0, 0, 1, 1], [], []>} : vector<16x8xbf16>, vector<8x32xbf16>, vector<16x32xf32> -> vector<16x32xf32>
    %950 = arith.addf %922, %949 : vector<16x32xf32>
    %951 = vector.extract_strided_slice %879 {offsets = [0, 16], sizes = [16, 8], strides = [1, 1]} : vector<16x32xf32> to vector<16x8xf32>
    %952 = vector.extract_strided_slice %887 {offsets = [0, 16], sizes = [16, 8], strides = [1, 1]} : vector<16x32xf32> to vector<16x8xf32>
    %953 = vector.extract_strided_slice %895 {offsets = [0, 16], sizes = [16, 8], strides = [1, 1]} : vector<16x32xf32> to vector<16x8xf32>
    %954 = arith.truncf %951 : vector<16x8xf32> to vector<16x8xbf16>
    %955 = arith.truncf %952 : vector<16x8xf32> to vector<16x8xbf16>
    %cst_591 = arith.constant dense<0.000000e+00> : vector<16x16xf32>
    %956 = tpu.matmul %954, %955, %cst_591 {dimension_numbers = #tpu.dot_dimension_numbers<[1], [1], [0], [0], [0, 0, 1, 0], [], []>} : vector<16x8xbf16>, vector<16x8xbf16>, vector<16x16xf32> -> vector<16x16xf32>
    %cst_592 = arith.constant 0.353553385 : f32
    %957 = vector.broadcast %cst_592 : f32 to vector<16x16xf32>
    %958 = arith.mulf %956, %957 : vector<16x16xf32>
    %cst_593 = arith.constant -1.000000e+09 : f32
    %959 = vector.broadcast %cst_593 : f32 to vector<16x16xf32>
    %960 = arith.select %871, %958, %959 : vector<16x16xi1>, vector<16x16xf32>
    %cst_594 = arith.constant dense<0xFF800000> : vector<16xf32>
    %961 = vector.multi_reduction <maximumf>, %960, %cst_594 [1] : vector<16x16xf32> to vector<16xf32>
    %962 = vector.shape_cast %961 : vector<16xf32> to vector<16x1xf32>
    %963 = vector.broadcast %962 : vector<16x1xf32> to vector<16x16xf32>
    %964 = arith.subf %960, %963 : vector<16x16xf32>
    %965 = math.exp %964 : vector<16x16xf32>
    %cst_595 = arith.constant dense<0.000000e+00> : vector<16xf32>
    %966 = vector.multi_reduction <add>, %965, %cst_595 [1] : vector<16x16xf32> to vector<16xf32>
    %967 = vector.shape_cast %966 : vector<16xf32> to vector<16x1xf32>
    %968 = tpu.reciprocal %967 {approx = true} : vector<16x1xf32> -> vector<16x1xf32>
    %969 = vector.broadcast %968 : vector<16x1xf32> to vector<16x16xf32>
    %970 = arith.mulf %965, %969 : vector<16x16xf32>
    %971 = arith.truncf %970 : vector<16x16xf32> to vector<16x16xbf16>
    %972 = arith.truncf %953 : vector<16x8xf32> to vector<16x8xbf16>
    %cst_596 = arith.constant dense<0.000000e+00> : vector<16x8xf32>
    %973 = tpu.matmul %971, %972, %cst_596 {dimension_numbers = #tpu.dot_dimension_numbers<[1], [0], [0], [1], [0, 0, 1, 1], [], []>} : vector<16x16xbf16>, vector<16x8xbf16>, vector<16x8xf32> -> vector<16x8xf32>
    %c1_597 = arith.constant 1 : index
    %c2_598 = arith.constant 2 : index
    %c2_599 = arith.constant 2 : index
    %c0_600 = arith.constant 0 : index
    %c0_601 = arith.constant 0 : index
    %974 = vector.load %arg16[%c1_597, %c2_598, %c2_599, %c0_600, %c0_601] : memref<2x3x4x8x32xbf16, #tpu.memory_space<vmem>>, vector<1x1x1x8x32xbf16>
    %975 = vector.shape_cast %974 : vector<1x1x1x8x32xbf16> to vector<8x32xbf16>
    %976 = arith.truncf %973 : vector<16x8xf32> to vector<16x8xbf16>
    %cst_602 = arith.constant dense<0.000000e+00> : vector<16x32xf32>
    %977 = tpu.matmul %976, %975, %cst_602 {dimension_numbers = #tpu.dot_dimension_numbers<[1], [0], [0], [1], [0, 0, 1, 1], [], []>} : vector<16x8xbf16>, vector<8x32xbf16>, vector<16x32xf32> -> vector<16x32xf32>
    %978 = arith.addf %950, %977 : vector<16x32xf32>
    %979 = vector.extract_strided_slice %879 {offsets = [0, 24], sizes = [16, 8], strides = [1, 1]} : vector<16x32xf32> to vector<16x8xf32>
    %980 = vector.extract_strided_slice %887 {offsets = [0, 24], sizes = [16, 8], strides = [1, 1]} : vector<16x32xf32> to vector<16x8xf32>
    %981 = vector.extract_strided_slice %895 {offsets = [0, 24], sizes = [16, 8], strides = [1, 1]} : vector<16x32xf32> to vector<16x8xf32>
    %982 = arith.truncf %979 : vector<16x8xf32> to vector<16x8xbf16>
    %983 = arith.truncf %980 : vector<16x8xf32> to vector<16x8xbf16>
    %cst_603 = arith.constant dense<0.000000e+00> : vector<16x16xf32>
    %984 = tpu.matmul %982, %983, %cst_603 {dimension_numbers = #tpu.dot_dimension_numbers<[1], [1], [0], [0], [0, 0, 1, 0], [], []>} : vector<16x8xbf16>, vector<16x8xbf16>, vector<16x16xf32> -> vector<16x16xf32>
    %cst_604 = arith.constant 0.353553385 : f32
    %985 = vector.broadcast %cst_604 : f32 to vector<16x16xf32>
    %986 = arith.mulf %984, %985 : vector<16x16xf32>
    %cst_605 = arith.constant -1.000000e+09 : f32
    %987 = vector.broadcast %cst_605 : f32 to vector<16x16xf32>
    %988 = arith.select %871, %986, %987 : vector<16x16xi1>, vector<16x16xf32>
    %cst_606 = arith.constant dense<0xFF800000> : vector<16xf32>
    %989 = vector.multi_reduction <maximumf>, %988, %cst_606 [1] : vector<16x16xf32> to vector<16xf32>
    %990 = vector.shape_cast %989 : vector<16xf32> to vector<16x1xf32>
    %991 = vector.broadcast %990 : vector<16x1xf32> to vector<16x16xf32>
    %992 = arith.subf %988, %991 : vector<16x16xf32>
    %993 = math.exp %992 : vector<16x16xf32>
    %cst_607 = arith.constant dense<0.000000e+00> : vector<16xf32>
    %994 = vector.multi_reduction <add>, %993, %cst_607 [1] : vector<16x16xf32> to vector<16xf32>
    %995 = vector.shape_cast %994 : vector<16xf32> to vector<16x1xf32>
    %996 = tpu.reciprocal %995 {approx = true} : vector<16x1xf32> -> vector<16x1xf32>
    %997 = vector.broadcast %996 : vector<16x1xf32> to vector<16x16xf32>
    %998 = arith.mulf %993, %997 : vector<16x16xf32>
    %999 = arith.truncf %998 : vector<16x16xf32> to vector<16x16xbf16>
    %1000 = arith.truncf %981 : vector<16x8xf32> to vector<16x8xbf16>
    %cst_608 = arith.constant dense<0.000000e+00> : vector<16x8xf32>
    %1001 = tpu.matmul %999, %1000, %cst_608 {dimension_numbers = #tpu.dot_dimension_numbers<[1], [0], [0], [1], [0, 0, 1, 1], [], []>} : vector<16x16xbf16>, vector<16x8xbf16>, vector<16x8xf32> -> vector<16x8xf32>
    %c1_609 = arith.constant 1 : index
    %c2_610 = arith.constant 2 : index
    %c3_611 = arith.constant 3 : index
    %c0_612 = arith.constant 0 : index
    %c0_613 = arith.constant 0 : index
    %1002 = vector.load %arg16[%c1_609, %c2_610, %c3_611, %c0_612, %c0_613] : memref<2x3x4x8x32xbf16, #tpu.memory_space<vmem>>, vector<1x1x1x8x32xbf16>
    %1003 = vector.shape_cast %1002 : vector<1x1x1x8x32xbf16> to vector<8x32xbf16>
    %1004 = arith.truncf %1001 : vector<16x8xf32> to vector<16x8xbf16>
    %cst_614 = arith.constant dense<0.000000e+00> : vector<16x32xf32>
    %1005 = tpu.matmul %1004, %1003, %cst_614 {dimension_numbers = #tpu.dot_dimension_numbers<[1], [0], [0], [1], [0, 0, 1, 1], [], []>} : vector<16x8xbf16>, vector<8x32xbf16>, vector<16x32xf32> -> vector<16x32xf32>
    %1006 = arith.addf %978, %1005 : vector<16x32xf32>
    %c1_615 = arith.constant 1 : index
    %c2_616 = arith.constant 2 : index
    %c0_617 = arith.constant 0 : index
    %c0_618 = arith.constant 0 : index
    %1007 = vector.load %arg17[%c1_615, %c2_616, %c0_617, %c0_618] : memref<2x3x1x32xf32, #tpu.memory_space<vmem>>, vector<1x1x1x32xf32>
    %1008 = vector.shape_cast %1007 : vector<1x1x1x32xf32> to vector<1x32xf32>
    %1009 = vector.broadcast %1008 : vector<1x32xf32> to vector<16x32xf32>
    %1010 = arith.addf %1006, %1009 : vector<16x32xf32>
    %c1_619 = arith.constant 1 : index
    %c2_620 = arith.constant 2 : index
    %c0_621 = arith.constant 0 : index
    %c0_622 = arith.constant 0 : index
    %1011 = vector.load %arg18[%c1_619, %c2_620, %c0_621, %c0_622] : memref<2x3x32x64xbf16, #tpu.memory_space<vmem>>, vector<1x1x32x64xbf16>
    %1012 = vector.shape_cast %1011 : vector<1x1x32x64xbf16> to vector<32x64xbf16>
    %1013 = arith.truncf %1010 : vector<16x32xf32> to vector<16x32xbf16>
    %cst_623 = arith.constant dense<0.000000e+00> : vector<16x64xf32>
    %1014 = tpu.matmul %1013, %1012, %cst_623 {dimension_numbers = #tpu.dot_dimension_numbers<[1], [0], [0], [1], [0, 0, 1, 1], [], []>} : vector<16x32xbf16>, vector<32x64xbf16>, vector<16x64xf32> -> vector<16x64xf32>
    %c1_624 = arith.constant 1 : index
    %c2_625 = arith.constant 2 : index
    %c0_626 = arith.constant 0 : index
    %c0_627 = arith.constant 0 : index
    %1015 = vector.load %arg19[%c1_624, %c2_625, %c0_626, %c0_627] : memref<2x3x32x64xbf16, #tpu.memory_space<vmem>>, vector<1x1x32x64xbf16>
    %1016 = vector.shape_cast %1015 : vector<1x1x32x64xbf16> to vector<32x64xbf16>
    %1017 = arith.truncf %538 : vector<16x32xf32> to vector<16x32xbf16>
    %cst_628 = arith.constant dense<0.000000e+00> : vector<16x64xf32>
    %1018 = tpu.matmul %1017, %1016, %cst_628 {dimension_numbers = #tpu.dot_dimension_numbers<[1], [0], [0], [1], [0, 0, 1, 1], [], []>} : vector<16x32xbf16>, vector<32x64xbf16>, vector<16x64xf32> -> vector<16x64xf32>
    %1019 = arith.addf %1014, %1018 : vector<16x64xf32>
    %c1_629 = arith.constant 1 : index
    %c2_630 = arith.constant 2 : index
    %c0_631 = arith.constant 0 : index
    %c0_632 = arith.constant 0 : index
    %1020 = vector.load %arg20[%c1_629, %c2_630, %c0_631, %c0_632] : memref<2x3x1x64xf32, #tpu.memory_space<vmem>>, vector<1x1x1x64xf32>
    %1021 = vector.shape_cast %1020 : vector<1x1x1x64xf32> to vector<1x64xf32>
    %1022 = vector.broadcast %1021 : vector<1x64xf32> to vector<16x64xf32>
    %1023 = arith.addf %1019, %1022 : vector<16x64xf32>
    %cst_633 = arith.constant 0.000000e+00 : f32
    %1024 = vector.broadcast %cst_633 : f32 to vector<16x64xf32>
    %1025 = arith.maximumf %1023, %1024 : vector<16x64xf32>
    %c1_634 = arith.constant 1 : index
    %c2_635 = arith.constant 2 : index
    %c0_636 = arith.constant 0 : index
    %c0_637 = arith.constant 0 : index
    %1026 = vector.load %arg21[%c1_634, %c2_635, %c0_636, %c0_637] : memref<2x3x64x32xbf16, #tpu.memory_space<vmem>>, vector<1x1x64x32xbf16>
    %1027 = vector.shape_cast %1026 : vector<1x1x64x32xbf16> to vector<64x32xbf16>
    %1028 = arith.truncf %1025 : vector<16x64xf32> to vector<16x64xbf16>
    %cst_638 = arith.constant dense<0.000000e+00> : vector<16x32xf32>
    %1029 = tpu.matmul %1028, %1027, %cst_638 {dimension_numbers = #tpu.dot_dimension_numbers<[1], [0], [0], [1], [0, 0, 1, 1], [], []>} : vector<16x64xbf16>, vector<64x32xbf16>, vector<16x32xf32> -> vector<16x32xf32>
    %c1_639 = arith.constant 1 : index
    %c2_640 = arith.constant 2 : index
    %c0_641 = arith.constant 0 : index
    %c0_642 = arith.constant 0 : index
    %1030 = vector.load %arg22[%c1_639, %c2_640, %c0_641, %c0_642] : memref<2x3x1x32xf32, #tpu.memory_space<vmem>>, vector<1x1x1x32xf32>
    %1031 = vector.shape_cast %1030 : vector<1x1x1x32xf32> to vector<1x32xf32>
    %1032 = vector.broadcast %1031 : vector<1x32xf32> to vector<16x32xf32>
    %1033 = arith.addf %1029, %1032 : vector<16x32xf32>
    %c0_643 = arith.constant 0 : index
    %c0_644 = arith.constant 0 : index
    %c0_645 = arith.constant 0 : index
    %1034 = vector.load %arg23[%c0_643, %c0_644, %c0_645] : memref<3x1x1xf32, #tpu.memory_space<vmem>>, vector<3x1x1xf32>
    %1035 = vector.extract_strided_slice %1034 {offsets = [0, 0, 0], sizes = [1, 1, 1], strides = [1, 1, 1]} : vector<3x1x1xf32> to vector<1x1x1xf32>
    %1036 = vector.shape_cast %1035 : vector<1x1x1xf32> to vector<1x1xf32>
    %1037 = vector.broadcast %1036 : vector<1x1xf32> to vector<16x32xf32>
    %1038 = arith.mulf %703, %1037 : vector<16x32xf32>
    %1039 = vector.extract_strided_slice %1034 {offsets = [1, 0, 0], sizes = [1, 1, 1], strides = [1, 1, 1]} : vector<3x1x1xf32> to vector<1x1x1xf32>
    %1040 = vector.shape_cast %1039 : vector<1x1x1xf32> to vector<1x1xf32>
    %1041 = vector.broadcast %1040 : vector<1x1xf32> to vector<16x32xf32>
    %1042 = arith.mulf %868, %1041 : vector<16x32xf32>
    %1043 = arith.addf %1038, %1042 : vector<16x32xf32>
    %1044 = vector.extract_strided_slice %1034 {offsets = [2, 0, 0], sizes = [1, 1, 1], strides = [1, 1, 1]} : vector<3x1x1xf32> to vector<1x1x1xf32>
    %1045 = vector.shape_cast %1044 : vector<1x1x1xf32> to vector<1x1xf32>
    %1046 = vector.broadcast %1045 : vector<1x1xf32> to vector<16x32xf32>
    %1047 = arith.mulf %1033, %1046 : vector<16x32xf32>
    %1048 = arith.addf %1043, %1047 : vector<16x32xf32>
    %c0_646 = arith.constant 0 : index
    %c0_647 = arith.constant 0 : index
    %1049 = vector.load %arg24[%c0_646, %c0_647] : memref<1x1xf32, #tpu.memory_space<vmem>>, vector<1x1xf32>
    %1050 = vector.broadcast %1049 : vector<1x1xf32> to vector<16x32xf32>
    %1051 = arith.addf %1048, %1050 : vector<16x32xf32>
    %cst_648 = arith.constant 0.000000e+00 : f32
    %1052 = vector.broadcast %cst_648 : f32 to vector<16x32xf32>
    %1053 = arith.maximumf %1051, %1052 : vector<16x32xf32>
    %c0_649 = arith.constant 0 : index
    %c0_650 = arith.constant 0 : index
    %1054 = vector.load %arg25[%c0_649, %c0_650] : memref<32x32xbf16, #tpu.memory_space<vmem>>, vector<32x32xbf16>
    %1055 = arith.truncf %1053 : vector<16x32xf32> to vector<16x32xbf16>
    %cst_651 = arith.constant dense<0.000000e+00> : vector<16x32xf32>
    %1056 = tpu.matmul %1055, %1054, %cst_651 {dimension_numbers = #tpu.dot_dimension_numbers<[1], [0], [0], [1], [0, 0, 1, 1], [], []>} : vector<16x32xbf16>, vector<32x32xbf16>, vector<16x32xf32> -> vector<16x32xf32>
    %c0_652 = arith.constant 0 : index
    %c0_653 = arith.constant 0 : index
    %1057 = vector.load %arg26[%c0_652, %c0_653] : memref<1x32xf32, #tpu.memory_space<vmem>>, vector<1x32xf32>
    %1058 = vector.broadcast %1057 : vector<1x32xf32> to vector<16x32xf32>
    %1059 = arith.addf %1056, %1058 : vector<16x32xf32>
    %cst_654 = arith.constant 0.000000e+00 : f32
    %1060 = vector.broadcast %cst_654 : f32 to vector<16x32xf32>
    %1061 = arith.maximumf %1059, %1060 : vector<16x32xf32>
    %c0_655 = arith.constant 0 : index
    %c0_656 = arith.constant 0 : index
    %1062 = vector.load %arg27[%c0_655, %c0_656] : memref<32x32xbf16, #tpu.memory_space<vmem>>, vector<32x32xbf16>
    %1063 = arith.truncf %1061 : vector<16x32xf32> to vector<16x32xbf16>
    %cst_657 = arith.constant dense<0.000000e+00> : vector<16x32xf32>
    %1064 = tpu.matmul %1063, %1062, %cst_657 {dimension_numbers = #tpu.dot_dimension_numbers<[1], [0], [0], [1], [0, 0, 1, 1], [], []>} : vector<16x32xbf16>, vector<32x32xbf16>, vector<16x32xf32> -> vector<16x32xf32>
    %c0_658 = arith.constant 0 : index
    %c0_659 = arith.constant 0 : index
    %1065 = vector.load %arg28[%c0_658, %c0_659] : memref<1x32xf32, #tpu.memory_space<vmem>>, vector<1x32xf32>
    %1066 = vector.broadcast %1065 : vector<1x32xf32> to vector<16x32xf32>
    %1067 = arith.addf %1064, %1066 : vector<16x32xf32>
    %1068 = arith.addf %1067, %1053 : vector<16x32xf32>
    %cst_660 = arith.constant 0.000000e+00 : f32
    %1069 = vector.broadcast %cst_660 : f32 to vector<16x32xf32>
    %1070 = arith.maximumf %1068, %1069 : vector<16x32xf32>
    %c0_661 = arith.constant 0 : index
    %c0_662 = arith.constant 0 : index
    %1071 = vector.load %arg29[%c0_661, %c0_662] : memref<32x16xbf16, #tpu.memory_space<vmem>>, vector<32x16xbf16>
    %1072 = arith.truncf %1070 : vector<16x32xf32> to vector<16x32xbf16>
    %cst_663 = arith.constant dense<0.000000e+00> : vector<16x16xf32>
    %1073 = tpu.matmul %1072, %1071, %cst_663 {dimension_numbers = #tpu.dot_dimension_numbers<[1], [0], [0], [1], [0, 0, 1, 1], [], []>} : vector<16x32xbf16>, vector<32x16xbf16>, vector<16x16xf32> -> vector<16x16xf32>
    %c0_664 = arith.constant 0 : index
    %c0_665 = arith.constant 0 : index
    %1074 = vector.load %arg30[%c0_664, %c0_665] : memref<1x16xf32, #tpu.memory_space<vmem>>, vector<1x16xf32>
    %1075 = vector.broadcast %1074 : vector<1x16xf32> to vector<16x16xf32>
    %1076 = arith.addf %1073, %1075 : vector<16x16xf32>
    %cst_666 = arith.constant 0.000000e+00 : f32
    %1077 = vector.broadcast %cst_666 : f32 to vector<16x16xf32>
    %1078 = arith.maximumf %1076, %1077 : vector<16x16xf32>
    %c0_667 = arith.constant 0 : index
    %c0_668 = arith.constant 0 : index
    %1079 = vector.load %arg31[%c0_667, %c0_668] : memref<16x64xbf16, #tpu.memory_space<vmem>>, vector<16x64xbf16>
    %1080 = arith.truncf %1078 : vector<16x16xf32> to vector<16x16xbf16>
    %cst_669 = arith.constant dense<0.000000e+00> : vector<16x64xf32>
    %1081 = tpu.matmul %1080, %1079, %cst_669 {dimension_numbers = #tpu.dot_dimension_numbers<[1], [0], [0], [1], [0, 0, 1, 1], [], []>} : vector<16x16xbf16>, vector<16x64xbf16>, vector<16x64xf32> -> vector<16x64xf32>
    %c0_670 = arith.constant 0 : index
    %c0_671 = arith.constant 0 : index
    %1082 = vector.load %arg32[%c0_670, %c0_671] : memref<1x64xf32, #tpu.memory_space<vmem>>, vector<1x64xf32>
    %1083 = vector.broadcast %1082 : vector<1x64xf32> to vector<16x64xf32>
    %1084 = arith.addf %1081, %1083 : vector<16x64xf32>
    %cst_672 = arith.constant 0.000000e+00 : f32
    %1085 = vector.broadcast %cst_672 : f32 to vector<16x64xf32>
    %1086 = arith.maximumf %1084, %1085 : vector<16x64xf32>
    %c0_673 = arith.constant 0 : index
    %c0_674 = arith.constant 0 : index
    %1087 = vector.load %arg33[%c0_673, %c0_674] : memref<64x5xbf16, #tpu.memory_space<vmem>>, vector<64x5xbf16>
    %1088 = arith.truncf %1086 : vector<16x64xf32> to vector<16x64xbf16>
    %cst_675 = arith.constant dense<0.000000e+00> : vector<16x5xf32>
    %1089 = tpu.matmul %1088, %1087, %cst_675 {dimension_numbers = #tpu.dot_dimension_numbers<[1], [0], [0], [1], [0, 0, 1, 1], [], []>} : vector<16x64xbf16>, vector<64x5xbf16>, vector<16x5xf32> -> vector<16x5xf32>
    %c0_676 = arith.constant 0 : index
    %c0_677 = arith.constant 0 : index
    %1090 = vector.load %arg34[%c0_676, %c0_677] : memref<1x5xf32, #tpu.memory_space<vmem>>, vector<1x5xf32>
    %1091 = vector.broadcast %1090 : vector<1x5xf32> to vector<16x5xf32>
    %1092 = arith.addf %1089, %1091 : vector<16x5xf32>
    %c0_678 = arith.constant 0 : index
    %c0_679 = arith.constant 0 : index
    %1093 = vector.load %arg35[%c0_678, %c0_679] : memref<16x5xbf16, #tpu.memory_space<vmem>>, vector<16x5xbf16>
    %1094 = arith.truncf %1078 : vector<16x16xf32> to vector<16x16xbf16>
    %cst_680 = arith.constant dense<0.000000e+00> : vector<16x5xf32>
    %1095 = tpu.matmul %1094, %1093, %cst_680 {dimension_numbers = #tpu.dot_dimension_numbers<[1], [0], [0], [1], [0, 0, 1, 1], [], []>} : vector<16x16xbf16>, vector<16x5xbf16>, vector<16x5xf32> -> vector<16x5xf32>
    %1096 = arith.addf %1092, %1095 : vector<16x5xf32>
    %c0_681 = arith.constant 0 : index
    %c0_682 = arith.constant 0 : index
    %1097 = vector.load %arg36[%c0_681, %c0_682] : memref<1x5xf32, #tpu.memory_space<vmem>>, vector<1x5xf32>
    %1098 = vector.broadcast %1097 : vector<1x5xf32> to vector<16x5xf32>
    %1099 = arith.addf %1096, %1098 : vector<16x5xf32>
    %1100 = vector.extract_strided_slice %1076 {offsets = [0, 0], sizes = [16, 4], strides = [1, 1]} : vector<16x16xf32> to vector<16x4xf32>
    %cst_683 = arith.constant 0.000000e+00 : f32
    %1101 = vector.broadcast %cst_683 : f32 to vector<16x4xf32>
    %1102 = arith.maximumf %1100, %1101 : vector<16x4xf32>
    %cst_684 = arith.constant 0.000000e+00 : f32
    %1103 = vector.broadcast %cst_684 : f32 to vector<16x5xf32>
    %1104 = arith.maximumf %1099, %1103 : vector<16x5xf32>
    %c0_685 = arith.constant 0 : index
    %c0_686 = arith.constant 0 : index
    %1105 = vector.load %arg37[%c0_685, %c0_686] : memref<4x32xbf16, #tpu.memory_space<vmem>>, vector<4x32xbf16>
    %1106 = arith.truncf %1102 : vector<16x4xf32> to vector<16x4xbf16>
    %cst_687 = arith.constant dense<0.000000e+00> : vector<16x32xf32>
    %1107 = tpu.matmul %1106, %1105, %cst_687 {dimension_numbers = #tpu.dot_dimension_numbers<[1], [0], [0], [1], [0, 0, 1, 1], [], []>} : vector<16x4xbf16>, vector<4x32xbf16>, vector<16x32xf32> -> vector<16x32xf32>
    %c0_688 = arith.constant 0 : index
    %c0_689 = arith.constant 0 : index
    %1108 = vector.load %arg38[%c0_688, %c0_689] : memref<5x32xbf16, #tpu.memory_space<vmem>>, vector<5x32xbf16>
    %1109 = arith.truncf %1104 : vector<16x5xf32> to vector<16x5xbf16>
    %cst_690 = arith.constant dense<0.000000e+00> : vector<16x32xf32>
    %1110 = tpu.matmul %1109, %1108, %cst_690 {dimension_numbers = #tpu.dot_dimension_numbers<[1], [0], [0], [1], [0, 0, 1, 1], [], []>} : vector<16x5xbf16>, vector<5x32xbf16>, vector<16x32xf32> -> vector<16x32xf32>
    %1111 = arith.addf %1107, %1110 : vector<16x32xf32>
    %c0_691 = arith.constant 0 : index
    %c0_692 = arith.constant 0 : index
    %1112 = vector.load %arg39[%c0_691, %c0_692] : memref<1x32xf32, #tpu.memory_space<vmem>>, vector<1x32xf32>
    %1113 = vector.broadcast %1112 : vector<1x32xf32> to vector<16x32xf32>
    %1114 = arith.addf %1111, %1113 : vector<16x32xf32>
    %cst_693 = arith.constant 0.000000e+00 : f32
    %1115 = vector.broadcast %cst_693 : f32 to vector<16x32xf32>
    %1116 = arith.maximumf %1114, %1115 : vector<16x32xf32>
    %c0_694 = arith.constant 0 : index
    %c0_695 = arith.constant 0 : index
    %1117 = vector.load %arg40[%c0_694, %c0_695] : memref<32x3xbf16, #tpu.memory_space<vmem>>, vector<32x3xbf16>
    %1118 = arith.truncf %1116 : vector<16x32xf32> to vector<16x32xbf16>
    %cst_696 = arith.constant dense<0.000000e+00> : vector<16x3xf32>
    %1119 = tpu.matmul %1118, %1117, %cst_696 {dimension_numbers = #tpu.dot_dimension_numbers<[1], [0], [0], [1], [0, 0, 1, 1], [], []>} : vector<16x32xbf16>, vector<32x3xbf16>, vector<16x3xf32> -> vector<16x3xf32>
    %c0_697 = arith.constant 0 : index
    %c0_698 = arith.constant 0 : index
    %1120 = vector.load %arg41[%c0_697, %c0_698] : memref<1x3xf32, #tpu.memory_space<vmem>>, vector<1x3xf32>
    %1121 = vector.broadcast %1120 : vector<1x3xf32> to vector<16x3xf32>
    %1122 = arith.addf %1119, %1121 : vector<16x3xf32>
    %c0_699 = arith.constant 0 : index
    %c0_700 = arith.constant 0 : index
    %1123 = vector.load %arg42[%c0_699, %c0_700] : memref<4x3xbf16, #tpu.memory_space<vmem>>, vector<4x3xbf16>
    %1124 = arith.truncf %1102 : vector<16x4xf32> to vector<16x4xbf16>
    %cst_701 = arith.constant dense<0.000000e+00> : vector<16x3xf32>
    %1125 = tpu.matmul %1124, %1123, %cst_701 {dimension_numbers = #tpu.dot_dimension_numbers<[1], [0], [0], [1], [0, 0, 1, 1], [], []>} : vector<16x4xbf16>, vector<4x3xbf16>, vector<16x3xf32> -> vector<16x3xf32>
    %1126 = arith.addf %1122, %1125 : vector<16x3xf32>
    %c0_702 = arith.constant 0 : index
    %c0_703 = arith.constant 0 : index
    %1127 = vector.load %arg43[%c0_702, %c0_703] : memref<5x3xbf16, #tpu.memory_space<vmem>>, vector<5x3xbf16>
    %1128 = arith.truncf %1104 : vector<16x5xf32> to vector<16x5xbf16>
    %cst_704 = arith.constant dense<0.000000e+00> : vector<16x3xf32>
    %1129 = tpu.matmul %1128, %1127, %cst_704 {dimension_numbers = #tpu.dot_dimension_numbers<[1], [0], [0], [1], [0, 0, 1, 1], [], []>} : vector<16x5xbf16>, vector<5x3xbf16>, vector<16x3xf32> -> vector<16x3xf32>
    %1130 = arith.addf %1126, %1129 : vector<16x3xf32>
    %c0_705 = arith.constant 0 : index
    %c0_706 = arith.constant 0 : index
    %1131 = vector.load %arg44[%c0_705, %c0_706] : memref<1x3xf32, #tpu.memory_space<vmem>>, vector<1x3xf32>
    %1132 = vector.broadcast %1131 : vector<1x3xf32> to vector<16x3xf32>
    %1133 = arith.addf %1130, %1132 : vector<16x3xf32>
    %cst_707 = arith.constant dense<0xFF800000> : vector<16xf32>
    %1134 = vector.multi_reduction <maximumf>, %1133, %cst_707 [1] : vector<16x3xf32> to vector<16xf32>
    %1135 = vector.shape_cast %1134 : vector<16xf32> to vector<16x1xf32>
    %1136 = vector.broadcast %1135 : vector<16x1xf32> to vector<16x3xf32>
    %1137 = arith.subf %1133, %1136 : vector<16x3xf32>
    %1138 = math.exp %1137 : vector<16x3xf32>
    %cst_708 = arith.constant dense<0.000000e+00> : vector<16xf32>
    %1139 = vector.multi_reduction <add>, %1138, %cst_708 [1] : vector<16x3xf32> to vector<16xf32>
    %1140 = vector.shape_cast %1139 : vector<16xf32> to vector<16x1xf32>
    %1141 = tpu.reciprocal %1140 {approx = true} : vector<16x1xf32> -> vector<16x1xf32>
    %1142 = vector.broadcast %1141 : vector<16x1xf32> to vector<16x3xf32>
    %1143 = arith.mulf %1138, %1142 : vector<16x3xf32>
    %1144 = vector.extract_strided_slice %1076 {offsets = [0, 4], sizes = [16, 12], strides = [1, 1]} : vector<16x16xf32> to vector<16x12xf32>
    %cst_709 = arith.constant 0.000000e+00 : f32
    %1145 = vector.broadcast %cst_709 : f32 to vector<16x12xf32>
    %1146 = arith.maximumf %1144, %1145 : vector<16x12xf32>
    %c0_710 = arith.constant 0 : index
    %c0_711 = arith.constant 0 : index
    %1147 = vector.load %arg45[%c0_710, %c0_711] : memref<12x64xbf16, #tpu.memory_space<vmem>>, vector<12x64xbf16>
    %1148 = arith.truncf %1146 : vector<16x12xf32> to vector<16x12xbf16>
    %cst_712 = arith.constant dense<0.000000e+00> : vector<16x64xf32>
    %1149 = tpu.matmul %1148, %1147, %cst_712 {dimension_numbers = #tpu.dot_dimension_numbers<[1], [0], [0], [1], [0, 0, 1, 1], [], []>} : vector<16x12xbf16>, vector<12x64xbf16>, vector<16x64xf32> -> vector<16x64xf32>
    %c0_713 = arith.constant 0 : index
    %c0_714 = arith.constant 0 : index
    %1150 = vector.load %arg46[%c0_713, %c0_714] : memref<5x64xbf16, #tpu.memory_space<vmem>>, vector<5x64xbf16>
    %1151 = arith.truncf %1104 : vector<16x5xf32> to vector<16x5xbf16>
    %cst_715 = arith.constant dense<0.000000e+00> : vector<16x64xf32>
    %1152 = tpu.matmul %1151, %1150, %cst_715 {dimension_numbers = #tpu.dot_dimension_numbers<[1], [0], [0], [1], [0, 0, 1, 1], [], []>} : vector<16x5xbf16>, vector<5x64xbf16>, vector<16x64xf32> -> vector<16x64xf32>
    %1153 = arith.addf %1149, %1152 : vector<16x64xf32>
    %c0_716 = arith.constant 0 : index
    %c0_717 = arith.constant 0 : index
    %1154 = vector.load %arg47[%c0_716, %c0_717] : memref<1x64xf32, #tpu.memory_space<vmem>>, vector<1x64xf32>
    %1155 = vector.broadcast %1154 : vector<1x64xf32> to vector<16x64xf32>
    %1156 = arith.addf %1153, %1155 : vector<16x64xf32>
    %cst_718 = arith.constant 0.000000e+00 : f32
    %1157 = vector.broadcast %cst_718 : f32 to vector<16x64xf32>
    %1158 = arith.maximumf %1156, %1157 : vector<16x64xf32>
    %c0_719 = arith.constant 0 : index
    %c0_720 = arith.constant 0 : index
    %1159 = vector.load %arg48[%c0_719, %c0_720] : memref<64x9xbf16, #tpu.memory_space<vmem>>, vector<64x9xbf16>
    %1160 = arith.truncf %1158 : vector<16x64xf32> to vector<16x64xbf16>
    %cst_721 = arith.constant dense<0.000000e+00> : vector<16x9xf32>
    %1161 = tpu.matmul %1160, %1159, %cst_721 {dimension_numbers = #tpu.dot_dimension_numbers<[1], [0], [0], [1], [0, 0, 1, 1], [], []>} : vector<16x64xbf16>, vector<64x9xbf16>, vector<16x9xf32> -> vector<16x9xf32>
    %c0_722 = arith.constant 0 : index
    %c0_723 = arith.constant 0 : index
    %1162 = vector.load %arg49[%c0_722, %c0_723] : memref<1x9xf32, #tpu.memory_space<vmem>>, vector<1x9xf32>
    %1163 = vector.broadcast %1162 : vector<1x9xf32> to vector<16x9xf32>
    %1164 = arith.addf %1161, %1163 : vector<16x9xf32>
    %c0_724 = arith.constant 0 : index
    %c0_725 = arith.constant 0 : index
    %1165 = vector.load %arg50[%c0_724, %c0_725] : memref<12x9xbf16, #tpu.memory_space<vmem>>, vector<12x9xbf16>
    %1166 = arith.truncf %1146 : vector<16x12xf32> to vector<16x12xbf16>
    %cst_726 = arith.constant dense<0.000000e+00> : vector<16x9xf32>
    %1167 = tpu.matmul %1166, %1165, %cst_726 {dimension_numbers = #tpu.dot_dimension_numbers<[1], [0], [0], [1], [0, 0, 1, 1], [], []>} : vector<16x12xbf16>, vector<12x9xbf16>, vector<16x9xf32> -> vector<16x9xf32>
    %1168 = arith.addf %1164, %1167 : vector<16x9xf32>
    %c0_727 = arith.constant 0 : index
    %c0_728 = arith.constant 0 : index
    %1169 = vector.load %arg51[%c0_727, %c0_728] : memref<5x9xbf16, #tpu.memory_space<vmem>>, vector<5x9xbf16>
    %1170 = arith.truncf %1104 : vector<16x5xf32> to vector<16x5xbf16>
    %cst_729 = arith.constant dense<0.000000e+00> : vector<16x9xf32>
    %1171 = tpu.matmul %1170, %1169, %cst_729 {dimension_numbers = #tpu.dot_dimension_numbers<[1], [0], [0], [1], [0, 0, 1, 1], [], []>} : vector<16x5xbf16>, vector<5x9xbf16>, vector<16x9xf32> -> vector<16x9xf32>
    %1172 = arith.addf %1168, %1171 : vector<16x9xf32>
    %c0_730 = arith.constant 0 : index
    %c0_731 = arith.constant 0 : index
    %1173 = vector.load %arg52[%c0_730, %c0_731] : memref<1x9xf32, #tpu.memory_space<vmem>>, vector<1x9xf32>
    %1174 = vector.broadcast %1173 : vector<1x9xf32> to vector<16x9xf32>
    %1175 = arith.addf %1172, %1174 : vector<16x9xf32>
    %1176 = vector.extract_strided_slice %29 {offsets = [16, 0], sizes = [16, 1], strides = [1, 1]} : vector<48x1xf32> to vector<16x1xf32>
    %1177 = vector.broadcast %1176 : vector<16x1xf32> to vector<16x5xf32>
    %1178 = arith.mulf %1099, %1177 : vector<16x5xf32>
    %1179 = vector.broadcast %1176 : vector<16x1xf32> to vector<16x3xf32>
    %1180 = arith.mulf %1143, %1179 : vector<16x3xf32>
    %1181 = vector.broadcast %1176 : vector<16x1xf32> to vector<16x9xf32>
    %1182 = arith.mulf %1175, %1181 : vector<16x9xf32>
    %cst_732 = arith.constant 0.000000e+00 : f32
    %1183 = vector.broadcast %cst_732 : f32 to vector<16x111xf32>
    %1184 = tpu.concatenate %1178, %1180, %1182, %1183 in 1 : vector<16x5xf32>, vector<16x3xf32>, vector<16x9xf32>, vector<16x111xf32> -> vector<16x128xf32>
    %c0_733 = arith.constant 0 : index
    %c0_734 = arith.constant 0 : index
    %c0_735 = arith.constant 0 : index
    %1185 = vector.load %arg53[%c0_733, %c0_734, %c0_735] : memref<1x16x128xf32, #tpu.memory_space<vmem>>, vector<1x16x128xf32>
    %1186 = vector.shape_cast %1185 : vector<1x16x128xf32> to vector<16x128xf32>
    %1187 = vector.shape_cast %1184 : vector<16x128xf32> to vector<1x16x128xf32>
    tpu.vector_store %arg53[%c0_733, %c0_734, %c0_735], %1187 {strides = array<i32>} : memref<1x16x128xf32, #tpu.memory_space<vmem>>, vector<1x16x128xf32>,
    return
  }
  func.func @transform_0(%arg0: i32) -> (i32, i32, i32) {
    %c0_i32 = arith.constant 0 : i32
    %c0_i32_0 = arith.constant 0 : i32
    %c0_i32_1 = arith.constant 0 : i32
    return %arg0, %c0_i32, %c0_i32_0 : i32, i32, i32
  }
  func.func @transform_1(%arg0: i32) -> (i32, i32, i32) {
    %c0_i32 = arith.constant 0 : i32
    %c0_i32_0 = arith.constant 0 : i32
    %c0_i32_1 = arith.constant 0 : i32
    return %arg0, %c0_i32, %c0_i32_0 : i32, i32, i32
  }
  func.func @transform_2(%arg0: i32) -> (i32, i32, i32) {
    %c0_i32 = arith.constant 0 : i32
    %c0_i32_0 = arith.constant 0 : i32
    %c0_i32_1 = arith.constant 0 : i32
    return %arg0, %c0_i32, %c0_i32_0 : i32, i32, i32
  }
  func.func @transform_3(%arg0: i32) -> (i32, i32) {
    %c0_i32 = arith.constant 0 : i32
    %c0_i32_0 = arith.constant 0 : i32
    %c0_i32_1 = arith.constant 0 : i32
    return %c0_i32, %c0_i32_0 : i32, i32
  }
  func.func @transform_4(%arg0: i32) -> (i32, i32) {
    %c0_i32 = arith.constant 0 : i32
    %c0_i32_0 = arith.constant 0 : i32
    %c0_i32_1 = arith.constant 0 : i32
    return %c0_i32, %c0_i32_0 : i32, i32
  }
  func.func @transform_5(%arg0: i32) -> (i32, i32) {
    %c0_i32 = arith.constant 0 : i32
    %c0_i32_0 = arith.constant 0 : i32
    %c0_i32_1 = arith.constant 0 : i32
    return %c0_i32, %c0_i32_0 : i32, i32
  }
  func.func @transform_6(%arg0: i32) -> (i32, i32) {
    %c0_i32 = arith.constant 0 : i32
    %c0_i32_0 = arith.constant 0 : i32
    %c0_i32_1 = arith.constant 0 : i32
    return %c0_i32, %c0_i32_0 : i32, i32
  }
  func.func @transform_7(%arg0: i32) -> (i32, i32) {
    %c0_i32 = arith.constant 0 : i32
    %c0_i32_0 = arith.constant 0 : i32
    %c0_i32_1 = arith.constant 0 : i32
    return %c0_i32, %c0_i32_0 : i32, i32
  }
  func.func @transform_8(%arg0: i32) -> (i32, i32) {
    %c0_i32 = arith.constant 0 : i32
    %c0_i32_0 = arith.constant 0 : i32
    %c0_i32_1 = arith.constant 0 : i32
    return %c0_i32, %c0_i32_0 : i32, i32
  }
  func.func @transform_9(%arg0: i32) -> (i32, i32, i32, i32) {
    %c0_i32 = arith.constant 0 : i32
    %c0_i32_0 = arith.constant 0 : i32
    %c0_i32_1 = arith.constant 0 : i32
    %c0_i32_2 = arith.constant 0 : i32
    %c0_i32_3 = arith.constant 0 : i32
    return %c0_i32, %c0_i32_0, %c0_i32_1, %c0_i32_2 : i32, i32, i32, i32
  }
  func.func @transform_10(%arg0: i32) -> (i32, i32, i32, i32) {
    %c0_i32 = arith.constant 0 : i32
    %c0_i32_0 = arith.constant 0 : i32
    %c0_i32_1 = arith.constant 0 : i32
    %c0_i32_2 = arith.constant 0 : i32
    %c0_i32_3 = arith.constant 0 : i32
    return %c0_i32, %c0_i32_0, %c0_i32_1, %c0_i32_2 : i32, i32, i32, i32
  }
  func.func @transform_11(%arg0: i32) -> (i32, i32, i32, i32) {
    %c0_i32 = arith.constant 0 : i32
    %c0_i32_0 = arith.constant 0 : i32
    %c0_i32_1 = arith.constant 0 : i32
    %c0_i32_2 = arith.constant 0 : i32
    %c0_i32_3 = arith.constant 0 : i32
    return %c0_i32, %c0_i32_0, %c0_i32_1, %c0_i32_2 : i32, i32, i32, i32
  }
  func.func @transform_12(%arg0: i32) -> (i32, i32, i32, i32) {
    %c0_i32 = arith.constant 0 : i32
    %c0_i32_0 = arith.constant 0 : i32
    %c0_i32_1 = arith.constant 0 : i32
    %c0_i32_2 = arith.constant 0 : i32
    %c0_i32_3 = arith.constant 0 : i32
    return %c0_i32, %c0_i32_0, %c0_i32_1, %c0_i32_2 : i32, i32, i32, i32
  }
  func.func @transform_13(%arg0: i32) -> (i32, i32, i32, i32) {
    %c0_i32 = arith.constant 0 : i32
    %c0_i32_0 = arith.constant 0 : i32
    %c0_i32_1 = arith.constant 0 : i32
    %c0_i32_2 = arith.constant 0 : i32
    %c0_i32_3 = arith.constant 0 : i32
    return %c0_i32, %c0_i32_0, %c0_i32_1, %c0_i32_2 : i32, i32, i32, i32
  }
  func.func @transform_14(%arg0: i32) -> (i32, i32, i32, i32) {
    %c0_i32 = arith.constant 0 : i32
    %c0_i32_0 = arith.constant 0 : i32
    %c0_i32_1 = arith.constant 0 : i32
    %c0_i32_2 = arith.constant 0 : i32
    %c0_i32_3 = arith.constant 0 : i32
    return %c0_i32, %c0_i32_0, %c0_i32_1, %c0_i32_2 : i32, i32, i32, i32
  }
  func.func @transform_15(%arg0: i32) -> (i32, i32, i32, i32, i32) {
    %c0_i32 = arith.constant 0 : i32
    %c0_i32_0 = arith.constant 0 : i32
    %c0_i32_1 = arith.constant 0 : i32
    %c0_i32_2 = arith.constant 0 : i32
    %c0_i32_3 = arith.constant 0 : i32
    %c0_i32_4 = arith.constant 0 : i32
    return %c0_i32, %c0_i32_0, %c0_i32_1, %c0_i32_2, %c0_i32_3 : i32, i32, i32, i32, i32
  }
  func.func @transform_16(%arg0: i32) -> (i32, i32, i32, i32) {
    %c0_i32 = arith.constant 0 : i32
    %c0_i32_0 = arith.constant 0 : i32
    %c0_i32_1 = arith.constant 0 : i32
    %c0_i32_2 = arith.constant 0 : i32
    %c0_i32_3 = arith.constant 0 : i32
    return %c0_i32, %c0_i32_0, %c0_i32_1, %c0_i32_2 : i32, i32, i32, i32
  }
  func.func @transform_17(%arg0: i32) -> (i32, i32, i32, i32) {
    %c0_i32 = arith.constant 0 : i32
    %c0_i32_0 = arith.constant 0 : i32
    %c0_i32_1 = arith.constant 0 : i32
    %c0_i32_2 = arith.constant 0 : i32
    %c0_i32_3 = arith.constant 0 : i32
    return %c0_i32, %c0_i32_0, %c0_i32_1, %c0_i32_2 : i32, i32, i32, i32
  }
  func.func @transform_18(%arg0: i32) -> (i32, i32, i32, i32) {
    %c0_i32 = arith.constant 0 : i32
    %c0_i32_0 = arith.constant 0 : i32
    %c0_i32_1 = arith.constant 0 : i32
    %c0_i32_2 = arith.constant 0 : i32
    %c0_i32_3 = arith.constant 0 : i32
    return %c0_i32, %c0_i32_0, %c0_i32_1, %c0_i32_2 : i32, i32, i32, i32
  }
  func.func @transform_19(%arg0: i32) -> (i32, i32, i32, i32) {
    %c0_i32 = arith.constant 0 : i32
    %c0_i32_0 = arith.constant 0 : i32
    %c0_i32_1 = arith.constant 0 : i32
    %c0_i32_2 = arith.constant 0 : i32
    %c0_i32_3 = arith.constant 0 : i32
    return %c0_i32, %c0_i32_0, %c0_i32_1, %c0_i32_2 : i32, i32, i32, i32
  }
  func.func @transform_20(%arg0: i32) -> (i32, i32, i32, i32) {
    %c0_i32 = arith.constant 0 : i32
    %c0_i32_0 = arith.constant 0 : i32
    %c0_i32_1 = arith.constant 0 : i32
    %c0_i32_2 = arith.constant 0 : i32
    %c0_i32_3 = arith.constant 0 : i32
    return %c0_i32, %c0_i32_0, %c0_i32_1, %c0_i32_2 : i32, i32, i32, i32
  }
  func.func @transform_21(%arg0: i32) -> (i32, i32, i32, i32) {
    %c0_i32 = arith.constant 0 : i32
    %c0_i32_0 = arith.constant 0 : i32
    %c0_i32_1 = arith.constant 0 : i32
    %c0_i32_2 = arith.constant 0 : i32
    %c0_i32_3 = arith.constant 0 : i32
    return %c0_i32, %c0_i32_0, %c0_i32_1, %c0_i32_2 : i32, i32, i32, i32
  }
  func.func @transform_22(%arg0: i32) -> (i32, i32, i32) {
    %c0_i32 = arith.constant 0 : i32
    %c0_i32_0 = arith.constant 0 : i32
    %c0_i32_1 = arith.constant 0 : i32
    %c0_i32_2 = arith.constant 0 : i32
    return %c0_i32, %c0_i32_0, %c0_i32_1 : i32, i32, i32
  }
  func.func @transform_23(%arg0: i32) -> (i32, i32) {
    %c0_i32 = arith.constant 0 : i32
    %c0_i32_0 = arith.constant 0 : i32
    %c0_i32_1 = arith.constant 0 : i32
    return %c0_i32, %c0_i32_0 : i32, i32
  }
  func.func @transform_24(%arg0: i32) -> (i32, i32) {
    %c0_i32 = arith.constant 0 : i32
    %c0_i32_0 = arith.constant 0 : i32
    %c0_i32_1 = arith.constant 0 : i32
    return %c0_i32, %c0_i32_0 : i32, i32
  }
  func.func @transform_25(%arg0: i32) -> (i32, i32) {
    %c0_i32 = arith.constant 0 : i32
    %c0_i32_0 = arith.constant 0 : i32
    %c0_i32_1 = arith.constant 0 : i32
    return %c0_i32, %c0_i32_0 : i32, i32
  }
  func.func @transform_26(%arg0: i32) -> (i32, i32) {
    %c0_i32 = arith.constant 0 : i32
    %c0_i32_0 = arith.constant 0 : i32
    %c0_i32_1 = arith.constant 0 : i32
    return %c0_i32, %c0_i32_0 : i32, i32
  }
  func.func @transform_27(%arg0: i32) -> (i32, i32) {
    %c0_i32 = arith.constant 0 : i32
    %c0_i32_0 = arith.constant 0 : i32
    %c0_i32_1 = arith.constant 0 : i32
    return %c0_i32, %c0_i32_0 : i32, i32
  }
  func.func @transform_28(%arg0: i32) -> (i32, i32) {
    %c0_i32 = arith.constant 0 : i32
    %c0_i32_0 = arith.constant 0 : i32
    %c0_i32_1 = arith.constant 0 : i32
    return %c0_i32, %c0_i32_0 : i32, i32
  }
  func.func @transform_29(%arg0: i32) -> (i32, i32) {
    %c0_i32 = arith.constant 0 : i32
    %c0_i32_0 = arith.constant 0 : i32
    %c0_i32_1 = arith.constant 0 : i32
    return %c0_i32, %c0_i32_0 : i32, i32
  }
  func.func @transform_30(%arg0: i32) -> (i32, i32) {
    %c0_i32 = arith.constant 0 : i32
    %c0_i32_0 = arith.constant 0 : i32
    %c0_i32_1 = arith.constant 0 : i32
    return %c0_i32, %c0_i32_0 : i32, i32
  }
  func.func @transform_31(%arg0: i32) -> (i32, i32) {
    %c0_i32 = arith.constant 0 : i32
    %c0_i32_0 = arith.constant 0 : i32
    %c0_i32_1 = arith.constant 0 : i32
    return %c0_i32, %c0_i32_0 : i32, i32
  }
  func.func @transform_32(%arg0: i32) -> (i32, i32) {
    %c0_i32 = arith.constant 0 : i32
    %c0_i32_0 = arith.constant 0 : i32
    %c0_i32_1 = arith.constant 0 : i32
    return %c0_i32, %c0_i32_0 : i32, i32
  }
  func.func @transform_33(%arg0: i32) -> (i32, i32) {
    %c0_i32 = arith.constant 0 : i32
    %c0_i32_0 = arith.constant 0 : i32
    %c0_i32_1 = arith.constant 0 : i32
    return %c0_i32, %c0_i32_0 : i32, i32
  }
  func.func @transform_34(%arg0: i32) -> (i32, i32) {
    %c0_i32 = arith.constant 0 : i32
    %c0_i32_0 = arith.constant 0 : i32
    %c0_i32_1 = arith.constant 0 : i32
    return %c0_i32, %c0_i32_0 : i32, i32
  }
  func.func @transform_35(%arg0: i32) -> (i32, i32) {
    %c0_i32 = arith.constant 0 : i32
    %c0_i32_0 = arith.constant 0 : i32
    %c0_i32_1 = arith.constant 0 : i32
    return %c0_i32, %c0_i32_0 : i32, i32
  }
  func.func @transform_36(%arg0: i32) -> (i32, i32) {
    %c0_i32 = arith.constant 0 : i32
    %c0_i32_0 = arith.constant 0 : i32
    %c0_i32_1 = arith.constant 0 : i32
    return %c0_i32, %c0_i32_0 : i32, i32
  }
  func.func @transform_37(%arg0: i32) -> (i32, i32) {
    %c0_i32 = arith.constant 0 : i32
    %c0_i32_0 = arith.constant 0 : i32
    %c0_i32_1 = arith.constant 0 : i32
    return %c0_i32, %c0_i32_0 : i32, i32
  }
  func.func @transform_38(%arg0: i32) -> (i32, i32) {
    %c0_i32 = arith.constant 0 : i32
    %c0_i32_0 = arith.constant 0 : i32
    %c0_i32_1 = arith.constant 0 : i32
    return %c0_i32, %c0_i32_0 : i32, i32
  }
  func.func @transform_39(%arg0: i32) -> (i32, i32) {
    %c0_i32 = arith.constant 0 : i32
    %c0_i32_0 = arith.constant 0 : i32
    %c0_i32_1 = arith.constant 0 : i32
    return %c0_i32, %c0_i32_0 : i32, i32
  }
  func.func @transform_40(%arg0: i32) -> (i32, i32) {
    %c0_i32 = arith.constant 0 : i32
    %c0_i32_0 = arith.constant 0 : i32
    %c0_i32_1 = arith.constant 0 : i32
    return %c0_i32, %c0_i32_0 : i32, i32
  }
  func.func @transform_41(%arg0: i32) -> (i32, i32) {
    %c0_i32 = arith.constant 0 : i32
    %c0_i32_0 = arith.constant 0 : i32
    %c0_i32_1 = arith.constant 0 : i32
    return %c0_i32, %c0_i32_0 : i32, i32
  }
  func.func @transform_42(%arg0: i32) -> (i32, i32) {
    %c0_i32 = arith.constant 0 : i32
    %c0_i32_0 = arith.constant 0 : i32
    %c0_i32_1 = arith.constant 0 : i32
    return %c0_i32, %c0_i32_0 : i32, i32
  }
  func.func @transform_43(%arg0: i32) -> (i32, i32) {
    %c0_i32 = arith.constant 0 : i32
    %c0_i32_0 = arith.constant 0 : i32
    %c0_i32_1 = arith.constant 0 : i32
    return %c0_i32, %c0_i32_0 : i32, i32
  }
  func.func @transform_44(%arg0: i32) -> (i32, i32) {
    %c0_i32 = arith.constant 0 : i32
    %c0_i32_0 = arith.constant 0 : i32
    %c0_i32_1 = arith.constant 0 : i32
    return %c0_i32, %c0_i32_0 : i32, i32
  }
  func.func @transform_45(%arg0: i32) -> (i32, i32) {
    %c0_i32 = arith.constant 0 : i32
    %c0_i32_0 = arith.constant 0 : i32
    %c0_i32_1 = arith.constant 0 : i32
    return %c0_i32, %c0_i32_0 : i32, i32
  }
  func.func @transform_46(%arg0: i32) -> (i32, i32) {
    %c0_i32 = arith.constant 0 : i32
    %c0_i32_0 = arith.constant 0 : i32
    %c0_i32_1 = arith.constant 0 : i32
    return %c0_i32, %c0_i32_0 : i32, i32
  }
  func.func @transform_47(%arg0: i32) -> (i32, i32) {
    %c0_i32 = arith.constant 0 : i32
    %c0_i32_0 = arith.constant 0 : i32
    %c0_i32_1 = arith.constant 0 : i32
    return %c0_i32, %c0_i32_0 : i32, i32
  }
  func.func @transform_48(%arg0: i32) -> (i32, i32) {
    %c0_i32 = arith.constant 0 : i32
    %c0_i32_0 = arith.constant 0 : i32
    %c0_i32_1 = arith.constant 0 : i32
    return %c0_i32, %c0_i32_0 : i32, i32
  }
  func.func @transform_49(%arg0: i32) -> (i32, i32) {
    %c0_i32 = arith.constant 0 : i32
    %c0_i32_0 = arith.constant 0 : i32
    %c0_i32_1 = arith.constant 0 : i32
    return %c0_i32, %c0_i32_0 : i32, i32
  }
  func.func @transform_50(%arg0: i32) -> (i32, i32) {
    %c0_i32 = arith.constant 0 : i32
    %c0_i32_0 = arith.constant 0 : i32
    %c0_i32_1 = arith.constant 0 : i32
    return %c0_i32, %c0_i32_0 : i32, i32
  }
  func.func @transform_51(%arg0: i32) -> (i32, i32) {
    %c0_i32 = arith.constant 0 : i32
    %c0_i32_0 = arith.constant 0 : i32
    %c0_i32_1 = arith.constant 0 : i32
    return %c0_i32, %c0_i32_0 : i32, i32
  }
  func.func @transform_52(%arg0: i32) -> (i32, i32, i32) {
    %c0_i32 = arith.constant 0 : i32
    %c0_i32_0 = arith.constant 0 : i32
    %c0_i32_1 = arith.constant 0 : i32
    return %arg0, %c0_i32, %c0_i32_0 : i32, i32, i32
  }
}

</mosaic_0001>

<bundles_post_ra>
// kernel: damo_forward_pallas.1
= control target key start
LH: loop header
LB: loop body
LE: loop exit
PB: predicated region body
PF: predicated region fallthrough
CT: control target
= control target key end

     0   :  { %s12519_s6 = smov 1   ;;  %s12520_s10 = smov 2   ;;  %s14378_s0 = inlined_call_operand.smem [shape: u32[53], index: -1, kind: input, shape index: {}] }
   0x1   :  { %s12596_s5 = sld [smem:[%s14378_s0]]   ;;  %s12521_s14 = smov 3  }
   0x2   :  { %s12601_s9 = sld [smem:[%s14378_s0 + %s12519_s6]]   ;;  %s12522_s18 = smov 4  }
   0x3   :  { %s12606_s13 = sld [smem:[%s14378_s0 + %s12520_s10]]   ;;  %s12523_s22 = smov 5  }
   0x4   :  { %s12611_s17 = sld [smem:[%s14378_s0 + %s12521_s14]]   ;;  %s12524_s26 = smov 6  }
   0x5   :  { %s12616_s21 = sld [smem:[%s14378_s0 + %s12522_s18]]   ;;  %s12525_s30 = smov 7  }
   0x6   :  { %s12621_s25 = sld [smem:[%s14378_s0 + %s12523_s22]]   ;;  %s12526_s4 = smov 8  }
   0x7   :  { %14414 = sst [smem:[#allocation18_spill]] %s12596_s5  ;;  %s12527_s10 = smov 9  }
   0x8   :  { %14415 = sst [smem:[#allocation19_spill]] %s12601_s9  ;;  %s12528_s15 = smov 10  }
   0x9   :  { %14416 = sst [smem:[#allocation20_spill]] %s12606_s13  ;;  %s12529_s20 = smov 11  }
   0xa   :  { %s12626_s29 = sld [smem:[%s14378_s0 + %s12524_s26]]   ;;  %s12530_s26 = smov 12  }
   0xb   :  { %s12631_s3 = sld [smem:[%s14378_s0 + %s12525_s30]]   ;;  %s12531_s1 = smov 13  }
   0xc   :  { %s12636_s8 = sld [smem:[%s14378_s0 + %s12526_s4]]   ;;  %s12532_s7 = smov 14  }
   0xd   :  { %s12641_s14 = sld [smem:[%s14378_s0 + %s12527_s10]]   ;;  %s12534_s22 = smov 16  }
   0xe   :  { %s12646_s19 = sld [smem:[%s14378_s0 + %s12528_s15]]   ;;  %s12533_s15 = smov 15  }
   0xf   :  { %s12651_s24 = sld [smem:[%s14378_s0 + %s12529_s20]]   ;;  %s12535_s28 = smov 17  }
  0x10   :  { %s12656_s30 = sld [smem:[%s14378_s0 + %s12530_s26]]   ;;  %s12542_s23 = smov 24  }
  0x11   :  { %14417 = sst [smem:[#allocation21_spill]] %s12631_s3  ;;  %s12544_s10 = smov 26  }
  0x12   :  { %14418 = sst [smem:[#allocation22_spill]] %s12636_s8  ;;  %s12545_s16 = smov 27  }
  0x13   :  { %s12661_s6 = sld [smem:[%s14378_s0 + %s12531_s1]]   ;;  %s12543_s1 = smov 25  }
  0x14   :  { %14419 = sst [smem:[#allocation23_spill]] %s12646_s19 }
  0x15   :  { %14420 = sst [smem:[#allocation24_spill]] %s12651_s24 }
  0x16   :  { %14421 = sst [smem:[#allocation25_spill]] %s12656_s30 }
  0x17   :  { %s12666_s12 = sld [smem:[%s14378_s0 + %s12532_s7]]   ;;  %s12536_s7 = smov 18  }
  0x18   :  { %s12671_s20 = sld [smem:[%s14378_s0 + %s12533_s15]]   ;;  %s12537_s15 = smov 19  }
  0x19   :  { %14422 = sst [smem:[#allocation26_spill]] %s12661_s6 }
  0x1a   :  { %s12676_s27 = sld [smem:[%s14378_s0 + %s12534_s22]]   ;;  %s12538_s22 = smov 20  }
  0x1b   :  { %s12681_s4 = sld [smem:[%s14378_s0 + %s12535_s28]]   ;;  %s12539_s28 = smov 21  }
  0x1c   :  { %s12686_s13 = sld [smem:[%s14378_s0 + %s12536_s7]]   ;;  %s12540_s7 = smov 22  }
  0x1d   :  { %14423 = sst [smem:[#allocation27_spill]] %s12666_s12 }
  0x1e   :  { %14424 = sst [smem:[#allocation28_spill]] %s12671_s20 }
  0x1f   :  { %s12691_s20 = sld [smem:[%s14378_s0 + %s12537_s15]]   ;;  %s12541_s15 = smov 23  }
  0x20   :  { %14425 = sst [smem:[#allocation29_spill]] %s12676_s27 }
  0x21   :  { %14426 = sst [smem:[#allocation30_spill]] %s12681_s4 }
  0x22   :  { %14427 = sst [smem:[#allocation31_spill]] %s12686_s13 }
  0x23   :  { %s12696_s27 = sld [smem:[%s14378_s0 + %s12538_s22]]   ;;  %s12550_s22 = smov 32  }
  0x24   :  { %s12701_s4 = sld [smem:[%s14378_s0 + %s12539_s28]]  }
  0x25   :  { %14428 = sst [smem:[#allocation32_spill]] %s12691_s20 }
  0x26   :  { %s12706_s13 = sld [smem:[%s14378_s0 + %s12540_s7]]  }
  0x27   :  { %s10094_s20 = sld [smem:[%s14378_s0 + %s12541_s15]]  }
  0x28   :  { %s12729_s12 = sld [smem:[%s14378_s0 + %s12545_s16]]   ;;  %s12549_s16 = smov 31  }
  0x29   :  { %14429 = sst [smem:[#allocation33_spill]] %s12696_s27 }
  0x2a   :  { %14430 = sst [smem:[#allocation34_spill]] %s12701_s4 }
  0x2b   :  { %s12714_s27 = sld [smem:[%s14378_s0 + %s12542_s23]]   ;;  %s12546_s23 = smov 28  }
  0x2c   :  { %14431 = sst [smem:[#allocation35_spill]] %s12706_s13 }
  0x2d   :  { %s12719_s4 = sld [smem:[%s14378_s0 + %s12543_s1]]   ;;  %s12547_s1 = smov 29   ;;  %v110_v0 = vstv %s10094_s20 }
  0x2e   :  { %s12724_s13 = sld [smem:[%s14378_s0 + %s12544_s10]]   ;;  %s12548_s10 = smov 30   ;;  %111 = vst [vmem:[#allocation2] sm:$0x1] %v110_v0 }
  0x2f   :  { %14435 = sst [smem:[#allocation39_spill]] %s12729_s12  ;;  %s12551_s20 = smov 33  }
  0x30   :  { %s12744_s15 = sld [smem:[%s14378_s0 + %s12548_s10]]   ;;  %s12552_s10 = smov 34  }
  0x31   :  { %14432 = sst [smem:[#allocation36_spill]] %s12714_s27  ;;  %s12553_s12 = smov 35  }
  0x32   :  { %s12734_s27 = sld [smem:[%s14378_s0 + %s12546_s23]]  }
  0x33   :  { %14433 = sst [smem:[#allocation37_spill]] %s12719_s4 }
  0x34   :  { %14434 = sst [smem:[#allocation38_spill]] %s12724_s13 }
  0x35   :  { %s12739_s4 = sld [smem:[%s14378_s0 + %s12547_s1]]  }
  0x36   :  { %14438 = sst [smem:[#allocation42_spill]] %s12744_s15 }
  0x37   :  { %s12749_s23 = sld [smem:[%s14378_s0 + %s12549_s16]]  }
  0x38   :  { %14436 = sst [smem:[#allocation40_spill]] %s12734_s27  ;;  %s12554_s27 = smov 36  }
  0x39   :  { %s12754_s1 = sld [smem:[%s14378_s0 + %s12550_s22]]  }
  0x3a   :  { %s12759_s7 = sld [smem:[%s14378_s0 + %s12551_s20]]   ;;  %s12555_s20 = smov 37  }
  0x3b   :  { %14437 = sst [smem:[#allocation41_spill]] %s12739_s4  ;;  %s12556_s4 = smov 38  }
  0x3c   :  { %s12764_s15 = sld [smem:[%s14378_s0 + %s12552_s10]]  }
  0x3d   :  { %14439 = sst [smem:[#allocation43_spill]] %s12749_s23 }
  0x3e   :  { %s12769_s23 = sld [smem:[%s14378_s0 + %s12553_s12]]   ;;  %s12557_s12 = smov 39  }
  0x3f   :  { %14440 = sst [smem:[#allocation44_spill]] %s12754_s1 }
  0x40   :  { %14441 = sst [smem:[#allocation45_spill]] %s12759_s7 }
  0x41   :  { %s12774_s1 = sld [smem:[%s14378_s0 + %s12554_s27]]   ;;  %s12558_s27 = smov 40  }
  0x42   :  { %14442 = sst [smem:[#allocation46_spill]] %s12764_s15 }
  0x43   :  { %s12779_s7 = sld [smem:[%s14378_s0 + %s12555_s20]]   ;;  %s12559_s20 = smov 41  }
  0x44   :  { %s12784_s15 = sld [smem:[%s14378_s0 + %s12556_s4]]   ;;  %s12560_s4 = smov 42  }
  0x45   :  { %s12789_s13 = sld [smem:[%s14378_s0 + %s12557_s12]]   ;;  %s12561_s12 = smov 43  }
  0x46   :  { %s12804_s19 = sld [smem:[%s14378_s0 + %s12560_s4]]   ;;  %s12564_s4 = smov 46  }
  0x47   :  { %14443 = sst [smem:[#allocation47_spill]] %s12774_s1 }
  0x48   :  { %s12794_s1 = sld [smem:[%s14378_s0 + %s12558_s27]]   ;;  %s12562_s27 = smov 44  }
  0x49   :  { %14444 = sst [smem:[#allocation48_spill]] %s12779_s7 }
  0x4a   :  { %s12799_s7 = sld [smem:[%s14378_s0 + %s12559_s20]]   ;;  %s12563_s20 = smov 45  }
  0x4b   :  { %14445 = sst [smem:[#allocation49_spill]] %s12789_s13 }
  0x4c   :  { %14448 = sst [smem:[#allocation52_spill]] %s12804_s19 }
  0x4d   :  { %s12809_s13 = sld [smem:[%s14378_s0 + %s12561_s12]]   ;;  %s12565_s12 = smov 47  }
  0x4e   :  { %14446 = sst [smem:[#allocation50_spill]] %s12794_s1 }
  0x4f   :  { %s12814_s30 = sld [smem:[%s14378_s0 + %s12562_s27]]   ;;  %s12566_s27 = smov 48  }
  0x50   :  { %14447 = sst [smem:[#allocation51_spill]] %s12799_s7 }
  0x51   :  { %s12819_s7 = sld [smem:[%s14378_s0 + %s12563_s20]]   ;;  %s12567_s20 = smov 49  }
  0x52   :  { %s12824_s19 = sld [smem:[%s14378_s0 + %s12564_s4]]   ;;  %s12568_s4 = smov 50  }
  0x53   :  { %s12829_s9 = sld [smem:[%s14378_s0 + %s12565_s12]]   ;;  %s12569_s12 = smov 51  }
  0x54   :  { %s12844_s6 = sld [smem:[%s14378_s0 + %s12568_s4]]  }
  0x55   :  { %14449 = sst [smem:[#allocation53_spill]] %s12814_s30 }
  0x56   :  { %s12834_s30 = sld [smem:[%s14378_s0 + %s12566_s27]]   ;;  %s12570_s27 = smov 52  }
  0x57   :  { %14450 = sst [smem:[#allocation54_spill]] %s12819_s7 }
  0x58   :  { %s12839_s7 = sld [smem:[%s14378_s0 + %s12567_s20]]  }
  0x59   :  { %14451 = sst [smem:[#allocation55_spill]] %s12829_s9 }
  0x5a   :  { %s12849_s9 = sld [smem:[%s14378_s0 + %s12569_s12]]  }
  0x5b   :  { %s12854_s24 = sld [smem:[%s14378_s0 + %s12570_s27]]  }
  0x60   :  { %14452 = sst [smem:[#allocation56_spill]] %s12849_s9 }
  0x61   :  { %112 = vsyncpa [#allocation4], 0 }
  0x62   :  { %113 = vsyncpa [#allocation6], 0 }
  0x63   :  { %114 = vsyncpa [#allocation9], 0 }
  0x64   :  { %115 = vsyncpa [#allocation12], 0  ;;  %s12856_s20 = smov 0  }
  0x65 LB: > { %s12571_s28 = smov [#allocation5]   ;;  %s12862_s4 = sadd.s32 4294967295, %s12517_s20   ;;  %s12517_s20 = sphi %s12856_s20, %s121_s20  }
  0x66   : > { %s1385_s2 = sshll.u32 %s12571_s28, 4  ;;  %p10126_p0 = scmp.ge.s32.totalorder %s12517_s20, 1  ;;  %s1386_s2 = int_to_ptr.vmem [resolvable:$true] %s1385_s2 }
  0x67   : > { %p1259_p1 = scmp.lt.s32.totalorder %s12517_s20, 3  ;;  %p14398_p2 = scmp.eq.s32.totalorder %s12862_s4, 0 }
  0x68   : > { %s12572_s10 = smov [#allocation8]   ;;  %s12573_s12 = smov [#allocation11]  }
  0x69   : > { %p12867_p3 = pnand %p10126_p0, %p1259_p1  ;;  %s1416_s11 = sshll.u32 %s12572_s10, 4  ;;  %s12873_s11 = int_to_ptr.vmem [resolvable:$true] %s1416_s11 }
  0x6a   : > { %s1447_s16 = sshll.u32 %s12573_s12, 4  ;;  %s12574_s27 = smov [#allocation3]   ;;  %s12881_s16 = int_to_ptr.vmem [resolvable:$true] %s1447_s16 }
  0x6b   : > { %s14453_s0 = scalar_select %p12867_p3, 1, 0 }
  0x6c   : > { %p11890_p4 = pneg %p12867_p3  ;;  %s1368_s22 = sshll.u32 %s12574_s27, 4  ;;  %s12883_s22 = int_to_ptr.vmem [resolvable:$true] %s1368_s22 }
  0x6d   : > { %s12324_s28 = scalar_lea.vmem %s1386_s2, 16  ;;  %s12331_s10 = scalar_lea.vmem %s1386_s2, 32 }
  0x6e   : > { %p12877_p5 = pnand %p14398_p2, %p11890_p4  ;;  %p12325_p7 = scmp.ne.s32.totalorder %s1386_s2, %s12324_s28 }
  0x6f   : > { %p12332_p10 = scmp.lt.s32.totalorder %s1386_s2, %s1386_s2  ;;  %p12333_p11 = scmp.lt.s32.totalorder %s12331_s10, %s12324_s28 }
  0x70   : > { %p12887_p6 = pneg %p12877_p5 }
  0x71   : > { %p12334_p12 = por %p12333_p11, %p12332_p10 }
  0x72   : > { %p12327_p8 = pnand %p12325_p7, %p12887_p6 }
  0x74   : > { %p12328_p9 = pneg %p12327_p8 }
  0x76   : > { %p12335_p13 = pnand %p12334_p12, %p12328_p9 }
  0x78   : > { %12338 = shalt.err (!%p12335_p13)
}
  0x79   : > { %11896 = dma.hbm_to_vmem [thread:$0]  (!%p12877_p5), %s12784_s15, 16, %s1386_s2, [#allocation6]  }
  0x7a   : > { %s12350_s12 = scalar_lea.vmem %s12873_s11, 16  ;;  %s12357_s27 = scalar_lea.vmem %s12873_s11, 32 }
  0x7b   : > { %p12351_p0 = scmp.ne.s32.totalorder %s12873_s11, %s12350_s12  ;;  %p12358_p7 = scmp.lt.s32.totalorder %s12873_s11, %s12873_s11 }
  0x7c   : > { %p12359_p8 = scmp.lt.s32.totalorder %s12357_s27, %s12350_s12 }
  0x7d   : > { %p12353_p1 = pnand %p12351_p0, %p12887_p6 }
  0x7e   : > { %p12360_p9 = por %p12359_p8, %p12358_p7 }
  0x7f   : > { %p12354_p4 = pneg %p12353_p1 }
  0x81   : > { %p12361_p10 = pnand %p12360_p9, %p12354_p4 }
  0x83   : > { %12364 = shalt.err (!%p12361_p10)
}
  0x84   : > { %11902 = dma.hbm_to_vmem [thread:$0]  (!%p12877_p5), %s12809_s13, 16, %s12873_s11, [#allocation9]  }
  0x85   : > { %s12376_s2 = scalar_lea.vmem %s12881_s16, 16  ;;  %s12383_s28 = scalar_lea.vmem %s12881_s16, 32 }
  0x86   : > { %p12377_p11 = scmp.ne.s32.totalorder %s12881_s16, %s12376_s2  ;;  %p12384_p0 = scmp.lt.s32.totalorder %s12881_s16, %s12881_s16 }
  0x87   : > { %p12385_p1 = scmp.lt.s32.totalorder %s12383_s28, %s12376_s2 }
  0x88   : > { %p12379_p12 = pnand %p12377_p11, %p12887_p6 }
  0x89   : > { %p12386_p4 = por %p12385_p1, %p12384_p0 }
  0x8a   : > { %p12380_p13 = pneg %p12379_p12 }
  0x8c   : > { %p12387_p7 = pnand %p12386_p4, %p12380_p13 }
  0x8e   : > { %12390 = shalt.err (!%p12387_p7)
}
  0x8f   : > { %11908 = dma.hbm_to_vmem [thread:$0]  (!%p12877_p5), %s12834_s30, 16, %s12881_s16, [#allocation12]  }
  0x90   : > { %s12402_s11 = scalar_lea.vmem %s12883_s22, 16  ;;  %s12409_s10 = scalar_lea.vmem %s12883_s22, 32 }
  0x91   : > { %p12403_p8 = scmp.ne.s32.totalorder %s12883_s22, %s12402_s11  ;;  %p12410_p11 = scmp.lt.s32.totalorder %s12883_s22, %s12883_s22 }
  0x92   : > { %p12411_p12 = scmp.lt.s32.totalorder %s12409_s10, %s12402_s11 }
  0x93   : > { %p12405_p9 = pnand %p12403_p8, %p12887_p6 }
  0x94   : > { %p12412_p13 = por %p12411_p12, %p12410_p11 }
  0x95   : > { %p12406_p10 = pneg %p12405_p9 }
  0x97   : > { %p12413_p0 = pnand %p12412_p13, %p12406_p10 }
  0x99   : > { %12416 = shalt.err (!%p12413_p0)
}
  0x9a   : > { %11893 = dma.hbm_to_vmem [thread:$0]  (!%p12877_p5), %s12769_s23, 16, %s12883_s22, [#allocation4]  }
  0x9b   : > { %s12575_s12 = smov [#allocation7]   ;;  %s12576_s27 = smov [#allocation10]  }
  0x9c   : > { %s1399_s16 = sshll.u32 %s12575_s12, 4  ;;  %s1433_s2 = sshll.u32 %s12576_s27, 4  ;;  %s1400_s16 = int_to_ptr.vmem [resolvable:$true] %s1399_s16  ;;  %s1434_s2 = int_to_ptr.vmem [resolvable:$true] %s1433_s2 }
  0x9d   : > { %s12428_s28 = scalar_lea.vmem %s1400_s16, 16  ;;  %s12435_s11 = scalar_lea.vmem %s1400_s16, 32 }
  0x9e   : > { %p12429_p1 = scmp.ne.s32.totalorder %s1400_s16, %s12428_s28  ;;  %p12436_p8 = scmp.lt.s32.totalorder %s1400_s16, %s1400_s16 }
  0x9f   : > { %p12437_p9 = scmp.lt.s32.totalorder %s12435_s11, %s12428_s28 }
  0xa0   : > { %p12431_p4 = pnand %p12429_p1, %p12887_p6 }
  0xa1   : > { %p12438_p10 = por %p12437_p9, %p12436_p8 }
  0xa2   : > { %p12432_p7 = pneg %p12431_p4 }
  0xa4   : > { %p12439_p11 = pnand %p12438_p10, %p12432_p7 }
  0xa6   : > { %12442 = shalt.err (!%p12439_p11)
}
  0xa7   : > { %s14456_s1 = sld [smem:[#allocation50_spill]]  ;;  %s12454_s22 = scalar_lea.vmem %s1434_s2, 16 }
  0xa8   : > { %p12455_p12 = scmp.ne.s32.totalorder %s1434_s2, %s12454_s22  ;;  %s12461_s10 = scalar_lea.vmem %s1434_s2, 32 }
  0xa9   : > { %p12462_p1 = scmp.lt.s32.totalorder %s1434_s2, %s1434_s2  ;;  %p12463_p4 = scmp.lt.s32.totalorder %s12461_s10, %s12454_s22 }
  0xaa   : > { %p12457_p13 = pnand %p12455_p12, %p12887_p6 }
  0xab   : > { %p12464_p2 = por %p12463_p4, %p12462_p1 }
  0xac   : > { %p12458_p0 = pneg %p12457_p13 }
  0xad   : > { %11899 = dma.hbm_to_vmem [thread:$0]  (!%p12877_p5), %s14456_s1, 16, %s1400_s16, [#allocation6]  }
  0xae   : > { %p12465_p3 = pnand %p12464_p2, %p12458_p0 }
  0xb0   : > { %12468 = shalt.err (!%p12465_p3)
}
  0xb1   : > { %11905 = dma.hbm_to_vmem [thread:$0]  (!%p12877_p5), %s12824_s19, 16, %s1434_s2, [#allocation9]  }
  0xb2   : > { %s12577_s12 = smov [#allocation13]  }
  0xb3   : > { %s1464_s27 = sshll.u32 %s12577_s12, 4  ;;  %s1465_s27 = int_to_ptr.vmem [resolvable:$true] %s1464_s27 }
  0xb4   : > { %s12480_s16 = scalar_lea.vmem %s1465_s27, 16  ;;  %s12487_s28 = scalar_lea.vmem %s1465_s27, 32 }
  0xb5   : > { %p12481_p7 = scmp.ne.s32.totalorder %s1465_s27, %s12480_s16  ;;  %p12488_p10 = scmp.lt.s32.totalorder %s1465_s27, %s1465_s27 }
  0xb6   : > { %p12489_p11 = scmp.lt.s32.totalorder %s12487_s28, %s12480_s16 }
  0xb7   : > { %p12483_p8 = pnand %p12481_p7, %p12887_p6 }
  0xb8   : > { %p12490_p12 = por %p12489_p11, %p12488_p10 }
  0xb9   : > { %p12484_p9 = pneg %p12483_p8 }
  0xbb   : > { %p12491_p13 = pnand %p12490_p12, %p12484_p9 }
  0xbd   : > { %12494 = shalt.err (!%p12491_p13)
}
  0xbe   : > { %s14457_s9 = sld [smem:[#allocation56_spill]]  ;;  %p14458_p2 = scmp.ne.s32.totalorder %s14453_s0, 0 }
  0xbf   : > { %p14459_p3 = scmp.eq.s32.totalorder (!%p14458_p2), %s12862_s4, 0 }
  0xc0   : > { %1500 = sbr.rel (%p14458_p2) target bundleno = 17900 (0x45ec), region = 228 }
  0xc4   : > { %11911 = dma.hbm_to_vmem [thread:$0]  (!%p12877_p5), %s14457_s9, 16, %s1465_s27, [#allocation12]  }
  0xc5   : > { %12500 = dma.done.wait (%p14459_p3), [#allocation4], 16   ;;  %p14460_p0 = pmov %p14459_p3 }
  0xc7   : > { %12502 = vsyncadd (%p14460_p0), [#allocation4], 4294967280  ;;  %p14461_p6 = pmov %p14460_p0 }
  0xc8   : > { %p14462_p1 = pmov %p14460_p0 }
  0xc9   : > { %12504 = dma.done.wait (%p14461_p6), [#allocation6], 32  }
  0xca   : > { %12506 = vsyncadd (%p14462_p1), [#allocation6], 4294967264  ;;  %p14463_p4 = pmov %p14460_p0 }
  0xcb   : > { %p14464_p5 = pmov %p14460_p0 }
  0xcc   : > { %12508 = dma.done.wait (%p14463_p4), [#allocation9], 32  }
  0xcd   : > { %12510 = vsyncadd (%p14464_p5), [#allocation9], 4294967264  ;;  %p14465_p7 = pmov %p14460_p0 }
  0xce   : > { %p14466_p8 = pmov %p14460_p0 }
  0xcf   : > { %12512 = dma.done.wait (%p14465_p7), [#allocation12], 32  }
  0xd0   : > { %12514 = vsyncadd (%p14466_p8), [#allocation12], 4294967264  ;;  %s14467_s3 = sld [smem:[#allocation21_spill]]  ;;  %vm1702_vm0 = vcmask 1040384   ;;  %v12578_v1 = vmov 0.0   ;;  %p1655_p9 = scmp.lt.s32.totalorder %s12862_s4, 1 }
  0xd1   : > { %s14468_s5 = sld [smem:[#allocation18_spill]]  ;;  %10957 = vmatprep.subr.bf16.mxu0 %v12578_v1  ;;  %10971 = vmatprep.subr.bf16.mxu1 %v12578_v1  ;;  %vm1703_vm1 = vcmask 1041408   ;;  %v12579_v2 = vmov 65535   ;;  %vm12580_vm2 = vmmov 0   ;;  %v1681_v5 = vld [vmem:[%s12611_s17] sm:$0x3] }
  0xd2   : > { %v1704_v3 = vsel %vm1702_vm0, 4294967295, %v12579_v2  ;;  %10959 = vmatprep.mubr.msk.bf16.mxu0 %vm12580_vm2, %v12578_v1  ;;  %10975 = vmatprep.mubr.msk.bf16.mxu1 %vm12580_vm2, %v12578_v1  ;;  %s14524_s4 = smov (!%p1655_p9, %s12862_s4), 1  ;;  %vm14406_vm3 = vcmask 23552   ;;  %v12005_v18 = vld [vmem:[%s12621_s25 + $0x8] sm:$0xff]   ;;  %v12006_v19 = vld [vmem:[%s12621_s25] sm:$0xff]   ;;  %vm1798_vm4 = vcmask 261120  }
  0xd3   : > { %v1705_v4 = vsel %vm1703_vm1, %v1704_v3, 0  ;;  %s11861_s0 = smul.u32 48, %s14524_s4  ;;  %10972 = vmatpush3.bf16.msra.mxu1 %v12005_v18  ;;  %v10148_v20 = vld [vmem:[%s12616_s21] ss:$0 sm:$0xff]  ;;  %v12007_v30 = vld [vmem:[%s12641_s14 + $0x8] sm:$0xff]   ;;  %s14469_s8 = sld [smem:[#allocation22_spill]] }
  0xd4   : > { %v1707_v7 = vand.u32 %v1705_v4, %v1681_v5  ;;  %10973 = vmatprep.subr.bf16.mxu1 %v12578_v1  ;;  %v12008_v56 = vld [vmem:[%s12641_s14] sm:$0xff]   ;;  %s14470_s26 = sld [smem:[#allocation24_spill]]  ;;  %vm2185_vm7 = vcmask 64512   ;;  %s14404_s16 = smov 120   ;;  %vm2237_vm13 = vcmask 130048   ;;  %vm2442_vm15 = vcmask 1043456  }
  0xd5   : > { %v10152_v62 = vld [vmem:[%s12626_s29] ss:$0 sm:$0xff]  ;;  %s14471_s2 = sld [smem:[#allocation26_spill]]  ;;  %vm3066_vm0 = vcmask 523264   ;;  %s14494_s9 = smov 104  }
  0xd6   : > { %v1865_v6 = vld [vmem:[%s14467_s3] sm:$0x3]  ;;  %10958 = vmatpush3.bf16.msra.mxu0 %v1707_v7  ;;  %s14472_s11 = sld [smem:[#allocation19_spill]]  ;;  %s14487_s3 = smov 120  }
  0xd7   : > { %s1659_s18 = scalar_lea.vmem %s14468_s5, %s11861_s0  ;;  %v1867_v11 = vand.u32 %v1865_v6, %v1705_v4  ;;  %10987 = vmatprep.subr.bf16.mxu0 %v12578_v1  ;;  %10974 = vmatpush3.bf16.msra.mxu1 %v12006_v19  ;;  %s14473_s10 = sld [smem:[#allocation25_spill]] }
  0xd8   : > { %v1675_v8 = vld [vmem:[%s1659_s18] sm:$0xff]  ;;  %v1676_v9 = vld [vmem:[%s1659_s18 + $0x8] sm:$0xff]  ;;  %v1677_v12 = vld [vmem:[%s1659_s18 + $0x10] sm:$0xff]  ;;  %11001 = vmatprep.subr.bf16.mxu1 %v12578_v1  ;;  %s14474_s12 = sld [smem:[#allocation23_spill]] }
  0xd9   : > { %v1682_v10 = vpack.c.bf16 %v1676_v9, %v1675_v8  ;;  %v1678_v13 = vld [vmem:[%s1659_s18 + $0x18] sm:$0xff]  ;;  %v1679_v15 = vld [vmem:[%s1659_s18 + $0x20] sm:$0xff]  ;;  %v1680_v16 = vld [vmem:[%s1659_s18 + $0x28] sm:$0xff]  ;;  %s14475_s27 = sld [smem:[#allocation27_spill]] }
  0xda   : > { %v1683_v14 = vpack.c.bf16 %v1678_v13, %v1677_v12  ;;  %v1684_v17 = vpack.c.bf16 %v1680_v16, %v1679_v15  ;;  %v10161_v5 = vld [vmem:[%s14469_s8] ss:$0 sm:$0xff]  ;;  %v12009_v19 = vld [vmem:[%s14470_s26 + $0x8] sm:$0xff]   ;;  %s14476_s28 = sld [smem:[#allocation20_spill]]  ;;  %s14493_s8 = smov 112  }
  0xdb   : > { %10960 = vmatmul.mubr.msk.bf16.vlgmr.msra.gmra.mxu0 %vm14406_vm3, %v1682_v10  ;;  %s14486_s1 = sld [smem:[#allocation32_spill]] }
  0xdc   : > { %10963 = vmatprep.mubr.msk.bf16.mxu0 %vm12580_vm2, %v12578_v1  ;;  %10988 = vmatpush3.bf16.msra.mxu0 %v1867_v11  ;;  %s13049_s22 = scalar_lea.vmem %s14472_s11, %s11861_s0  ;;  %s10145_s0 = sshll.u32 %s14524_s4, 2 }
  0xdd   : > { %11025 = vmatprep.subr.bf16.mxu0 %v12578_v1  ;;  %s14402_s11 = smov 112   ;;  %s14488_s5 = sld [smem:[#allocation34_spill]] }
  0xe0   : > { %s1668_s18 = scalar_lea.vmem %s14476_s28, %s10145_s0  ;;  %s14481_s28 = sld [smem:[#allocation28_spill]] }
  0xe1   : > { %s14400_s0 = smov 104  }
  0xe3   : > { %10964 = vmatmul.mubr.msk.bf16.gmra.mxu0 %vm14406_vm3, %v1683_v14 }
  0xe4   : > { %10967 = vmatprep.mubr.msk.bf16.mxu0 %vm12580_vm2, %v12578_v1 }
  0xeb   : > { %10968 = vmatmul.mubr.msk.bf16.gmra.mxu0 %vm14406_vm3, %v1684_v17 }
  0xec   : > { %10989 = vmatprep.mubr.msk.bf16.mxu0 %vm12580_vm2, %v12578_v1 }
  0xf3   : > { %10990 = vmatmul.mubr.msk.bf16.vlgmr.msra.gmra.mxu0 %vm14406_vm3, %v1682_v10 }
  0xf4   : > { %10993 = vmatprep.mubr.msk.bf16.mxu0 %vm12580_vm2, %v12578_v1 }
  0xfb   : > { %10994 = vmatmul.mubr.msk.bf16.gmra.mxu0 %vm14406_vm3, %v1683_v14 }
  0xfc   : > { %10997 = vmatprep.mubr.msk.bf16.mxu0 %vm12580_vm2, %v12578_v1 }
 0x103   : > { %10998 = vmatmul.mubr.msk.bf16.gmra.mxu0 %vm14406_vm3, %v1684_v17 }
 0x104   : > { %11027 = vmatprep.mubr.msk.bf16.mxu0 %vm12580_vm2, %v12578_v1 }
 0x19b   : > { %v1743_v21 = vpop.f32.mrf.mxu0 }
 0x19c   : > { %v1744_v23 = vadd.f32 %v10148_v20, %v1743_v21 }
 0x19d   : > { %v10961_v22 = vpop.f32.mrf.mxu0 }
 0x19e   : > { %v1766_v27 = vmax.f32 %v1744_v23, 0.0 }
 0x19f   : > { %v1746_v24 = vpop.f32.mrf.mxu0 }
 0x1a0   : > { %v1747_v25 = vadd.f32 %v10148_v20, %v1746_v24 }
 0x1a1   : > { %v10962_v26 = vpop.f32.mrf.mxu0 }
 0x1a2   : > { %v1767_v28 = vmax.f32 %v1747_v25, 0.0  ;;  %v12010_v25 = vld [vmem:[%s14470_s26] sm:$0xff]  }
 0x1a3   : > { %v1751_v29 = vpop.f32.mrf.mxu0 }
 0x1a4   : > { %v1776_v31 = vpack.c.bf16 %v1767_v28, %v1766_v27  ;;  %v1752_v33 = vadd.f32 %v10148_v20, %v1751_v29 }
 0x1a5   : > { %v10965_v32 = vpop.f32.mrf.mxu0 }
 0x1a6   : > { %10976 = vmatmul.mubr.msk.bf16.vlgmr.msra.gmra.mxu1 %vm1798_vm4, %v1776_v31  ;;  %v1768_v37 = vmax.f32 %v1752_v33, 0.0  ;;  %v12011_v33 = vld [vmem:[%s14471_s2 + $0x8] sm:$0xff]  }
 0x1a7   : > { %v1754_v34 = vpop.f32.mrf.mxu0  ;;  %10979 = vmatprep.mubr.msk.bf16.mxu1 %vm12580_vm2, %v12578_v1  ;;  %11002 = vmatpush3.bf16.msra.mxu1 %v12007_v30 }
 0x1a8   : > { %v1755_v35 = vadd.f32 %v10148_v20, %v1754_v34  ;;  %11003 = vmatprep.subr.bf16.mxu1 %v12578_v1 }
 0x1a9   : > { %v10966_v36 = vpop.f32.mrf.mxu0 }
 0x1aa   : > { %v1769_v38 = vmax.f32 %v1755_v35, 0.0 }
 0x1ab   : > { %v1759_v39 = vpop.f32.mrf.mxu0  ;;  %11004 = vmatpush3.bf16.msra.mxu1 %v12008_v56 }
 0x1ac   : > { %v1777_v40 = vpack.c.bf16 %v1769_v38, %v1768_v37  ;;  %v1760_v41 = vadd.f32 %v10148_v20, %v1759_v39  ;;  %11009 = vmatprep.subr.bf16.mxu1 %v12578_v1 }
 0x1ad   : > { %v10969_v42 = vpop.f32.mrf.mxu0 }
 0x1ae   : > { %10980 = vmatmul.mubr.msk.bf16.gmra.mxu1 %vm1798_vm4, %v1777_v40  ;;  %v1770_v44 = vmax.f32 %v1760_v41, 0.0  ;;  %v12012_v40 = vld [vmem:[%s14471_s2] sm:$0xff]  }
 0x1af   : > { %v1762_v43 = vpop.f32.mrf.mxu0  ;;  %10983 = vmatprep.mubr.msk.bf16.mxu1 %vm12580_vm2, %v12578_v1 }
 0x1b0   : > { %v1763_v45 = vadd.f32 %v10148_v20, %v1762_v43 }
 0x1b1   : > { %v10970_v46 = vpop.f32.mrf.mxu0 }
 0x1b2   : > { %v1771_v47 = vmax.f32 %v1763_v45, 0.0  ;;  %v12581_v45 = vmov 0   ;;  %v1951_v46 = vld [vmem:[%s13049_s22] sm:$0xff] }
 0x1b3   : > { %v1903_v48 = vpop.f32.mrf.mxu0  ;;  %12003 = vset.pattern.permute.xlu1 %v12581_v45  ;;  %12004 = vset.pattern.permute.xlu0 %v12581_v45  ;;  %vm1957_vm5 = vcmp.ne.f32.partialorder %v1951_v46, 0.0 }
 0x1b4   : > { %v1778_v49 = vpack.c.bf16 %v1771_v47, %v1770_v44  ;;  %v1952_v47 = vld [vmem:[%s13049_s22 + $0x8] sm:$0xff] }
 0x1b5   : > { %v10991_v50 = vpop.f32.mrf.mxu0  ;;  %vm1958_vm6 = vcmp.ne.f32.partialorder %v1952_v47, 0.0 }
 0x1b6   : > { %10984 = vmatmul.mubr.msk.bf16.gmra.mxu1 %vm1798_vm4, %v1778_v49  ;;  %v1966_v49 = vsel %vm1958_vm6, 1, %v12581_v45 }
 0x1b7   : > { %11005 = vmatprep.mubr.msk.bf16.mxu1 %vm12580_vm2, %v12578_v1  ;;  %v1906_v51 = vpop.f32.mrf.mxu0 }
 0x1b9   : > { %v10992_v52 = vpop.f32.mrf.mxu0 }
 0x1bb   : > { %v1911_v53 = vpop.f32.mrf.mxu0 }
 0x1bd   : > { %v10995_v54 = vpop.f32.mrf.mxu0 }
 0x1bf   : > { %v1914_v55 = vpop.f32.mrf.mxu0 }
 0x1c1   : > { %v10996_v57 = vpop.f32.mrf.mxu0 }
 0x1c3   : > { %v1919_v58 = vpop.f32.mrf.mxu0 }
 0x1c5   : > { %v10999_v59 = vpop.f32.mrf.mxu0 }
 0x1c7   : > { %v1922_v60 = vpop.f32.mrf.mxu0 }
 0x1c9   : > { %v11000_v61 = vpop.f32.mrf.mxu0 }
 0x266   : > { %v1842_v63 = vpop.f32.mrf.mxu1 }
 0x267   : > { %v1843_v0 = vadd.f32 %v10152_v62, %v1842_v63 }
 0x268   : > { %v10977_v3 = vpop.f32.mrf.mxu1 }
 0x269   : > { %v1926_v4 = vadd.f32 %v1903_v48, %v1843_v0  ;;  %v1965_v48 = vsel %vm1957_vm5, 1, %v12581_v45 }
 0x26a   : > { %v1845_v6 = vpop.f32.mrf.mxu1  ;;  %1968 = vperm.xlu1 %12003, %v1965_v48  }
 0x26b   : > { %v1846_v7 = vadd.f32 %v10152_v62, %v1845_v6  ;;  %v1939_v9 = vadd.f32 %v10161_v5, %v1926_v4 }
 0x26c   : > { %v10978_v8 = vpop.f32.mrf.mxu1 }
 0x26d   : > { %v1927_v10 = vadd.f32 %v1906_v51, %v1846_v7  ;;  %v1945_v15 = vmax.f32 %v1939_v9, 0.0 }
 0x26e   : > { %v1850_v11 = vpop.f32.mrf.mxu1  ;;  %1971 = vperm.xlu1 %12003, %v1966_v49  }
 0x26f   : > { %v1940_v12 = vadd.f32 %v10161_v5, %v1927_v10  ;;  %v1851_v13 = vadd.f32 %v10152_v62, %v1850_v11 }
 0x270   : > { %v10981_v14 = vpop.f32.mrf.mxu1 }
 0x271   : > { %v1946_v16 = vmax.f32 %v1940_v12, 0.0  ;;  %v1928_v17 = vadd.f32 %v1911_v53, %v1851_v13 }
 0x272   : > { %v1853_v18 = vpop.f32.mrf.mxu1 }
 0x273   : > { %v13021_v20 = vpack.c.bf16 %v1946_v16, %v1945_v15  ;;  %v1854_v21 = vadd.f32 %v10152_v62, %v1853_v18  ;;  %v1941_v23 = vadd.f32 %v10161_v5, %v1928_v17  ;;  %v1976_v16 = vlaneseq  ;;  %v1963_v17 = vld [vmem:[%s1668_s18] sm:$0x7]  ;;  %s14482_s18 = sld [smem:[#allocation31_spill]] }
 0x274   : > { %v10982_v22 = vpop.f32.mrf.mxu1  ;;  %vm1964_vm8 = vcmp.ne.f32.partialorder %v1963_v17, 0.0 }
 0x275   : > { %v1929_v24 = vadd.f32 %v1914_v55, %v1854_v21  ;;  %11006 = vmatmul.mubr.msk.bf16.vlgmr.msra.gmra.mxu1 %vm1798_vm4, %v13021_v20  ;;  %v1947_v30 = vmax.f32 %v1941_v23, 0.0  ;;  %v10166_v55 = vld [vmem:[%s14473_s10] ss:$0 sm:$0xff]  ;;  %v1977_v18 = vshrl.u32 %v1976_v16, 7  ;;  %v1975_v21 = vsel %vm1964_vm8, 1, %v12581_v45 }
 0x276   : > { %11010 = vmatpush3.bf16.msra.mxu1 %v12009_v19  ;;  %11013 = vmatprep.mubr.msk.bf16.mxu1 %vm12580_vm2, %v12578_v1  ;;  %v1858_v26 = vpop.f32.mrf.mxu1 }
 0x277   : > { %v1942_v27 = vadd.f32 %v10161_v5, %v1929_v24  ;;  %11011 = vmatprep.subr.bf16.mxu1 %v12578_v1  ;;  %v1859_v28 = vadd.f32 %v10152_v62, %v1858_v26  ;;  %v1978_v19 = vsub.s32 1, %v1977_v18 }
 0x278   : > { %v10985_v29 = vpop.f32.mrf.mxu1 }
 0x279   : > { %v1948_v31 = vmax.f32 %v1942_v27, 0.0  ;;  %v1930_v32 = vadd.f32 %v1919_v58, %v1859_v28  ;;  %v13087_v23 = vrot.slane %v1975_v21, %v1978_v19 }
 0x27a   : > { %11012 = vmatpush3.bf16.msra.mxu1 %v12010_v25  ;;  %v1861_v34 = vpop.f32.mrf.mxu1 }
 0x27b   : > { %v13030_v35 = vpack.c.bf16 %v1948_v31, %v1947_v30  ;;  %11017 = vmatprep.subr.bf16.mxu1 %v12578_v1  ;;  %v1862_v36 = vadd.f32 %v10152_v62, %v1861_v34  ;;  %v1943_v37 = vadd.f32 %v10161_v5, %v1930_v32  ;;  %vm1980_vm9 = vcmp.eq.s32.totalorder %v13087_v23, 1 }
 0x27c   : > { %v10986_v38 = vpop.f32.mrf.mxu1 }
 0x27d   : > { %11014 = vmatmul.mubr.msk.bf16.vlgmr.msra.gmra.mxu1 %vm1798_vm4, %v13030_v35  ;;  %v1931_v39 = vadd.f32 %v1922_v60, %v1862_v36  ;;  %v1949_v41 = vmax.f32 %v1943_v37, 0.0  ;;  %v10162_v60 = vld [vmem:[%s14474_s12] ss:$0 sm:$0xff] }
 0x27e   : > { %11018 = vmatpush3.bf16.msra.mxu1 %v12011_v33  ;;  %11021 = vmatprep.mubr.msk.bf16.mxu1 %vm12580_vm2, %v12578_v1 }
 0x27f   : > { %11019 = vmatprep.subr.bf16.mxu1 %v12578_v1  ;;  %v1944_v42 = vadd.f32 %v10161_v5, %v1931_v39  ;;  %v10170_v5 = vld [vmem:[%s14475_s27] ss:$0 sm:$0xff] }
 0x281   : > { %v1950_v43 = vmax.f32 %v1944_v42, 0.0 }
 0x282   : > { %11020 = vmatpush3.bf16.msra.mxu1 %v12012_v40 }
 0x283   : > { %v13039_v44 = vpack.c.bf16 %v1950_v43, %v1949_v41  ;;  %11031 = vmatprep.subr.bf16.mxu1 %v12578_v1 }
 0x285   : > { %11022 = vmatmul.mubr.msk.bf16.vlgmr.msra.gmra.mxu1 %vm1798_vm4, %v13030_v35 }
 0x286   : > { %11033 = vmatprep.mubr.msk.bf16.mxu1 %vm12580_vm2, %v12578_v1 }
 0x2e5   : > { %v1969_v22 = vpop.permute.xlu1 %1968 }
 0x2e6   : > { %vm1973_vm10 = vcmp.eq.s32.totalorder %v1969_v22, 1 }
 0x2e7   : > { %vm13092_vm11 = vmand %vm1973_vm10, %vm1980_vm9 }
 0x2e9   : > { %v1972_v24 = vpop.permute.xlu1 %1971 }
 0x2ea   : > { %vm1974_vm12 = vcmp.eq.s32.totalorder %v1972_v24, 1 }
 0x2eb   : > { %vm13100_vm14 = vmand %vm1974_vm12, %vm1980_vm9 }
 0x335   : > { %v2044_v50 = vpop.f32.mrf.mxu1 }
 0x336   : > { %v2045_v3 = vadd.f32 %v10162_v60, %v2044_v50 }
 0x337   : > { %v11007_v51 = vpop.f32.mrf.mxu1 }
 0x339   : > { %v2047_v52 = vpop.f32.mrf.mxu1 }
 0x33a   : > { %v2048_v62 = vadd.f32 %v10162_v60, %v2047_v52 }
 0x33b   : > { %v11008_v53 = vpop.f32.mrf.mxu1 }
 0x33c   : > { %v13066_v7 = vpack.c.bf16 %v2048_v62, %v2045_v3 }
 0x33d   : > { %v2112_v54 = vpop.f32.mrf.mxu1 }
 0x33e   : > { %v2113_v58 = vadd.f32 %v10166_v55, %v2112_v54 }
 0x33f   : > { %v11015_v56 = vpop.f32.mrf.mxu1 }
 0x341   : > { %v2115_v57 = vpop.f32.mrf.mxu1 }
 0x342   : > { %v2116_v59 = vadd.f32 %v10166_v55, %v2115_v57 }
 0x343   : > { %v11016_v61 = vpop.f32.mrf.mxu1 }
 0x344   : > { %v13059_v63 = vpack.c.bf16 %v2116_v59, %v2113_v58 }
 0x345   : > { %v2176_v0 = vpop.f32.mrf.mxu1 }
 0x346   : > { %2312 = vrot.lane.b32.xlu0 %v13059_v63, %s14404_s16  ;;  %v2190_v4 = vsel %vm2185_vm7, %v13059_v63, 0  ;;  %v2177_v9 = vadd.f32 %v10170_v5, %v2176_v0 }
 0x347   : > { %v11023_v6 = vpop.f32.mrf.mxu1  ;;  %11026 = vmatpush3.bf16.xpose.msra.mxu0 %v2190_v4 }
 0x348   : > { %11037 = vmatprep.subr.bf16.mxu0 %v12578_v1 }
 0x349   : > { %v2179_v8 = vpop.f32.mrf.mxu1 }
 0x34a   : > { %v2180_v10 = vadd.f32 %v10170_v5, %v2179_v8  ;;  %2309 = vrot.lane.b32.xlu0 %v13066_v7, %s14404_s16 }
 0x34b   : > { %v11024_v11 = vpop.f32.mrf.mxu1 }
 0x34c   : > { %v13071_v12 = vpack.c.bf16 %v2180_v10, %v2177_v9 }
 0x34e   : > { %11028 = vmatmul.mubr.msk.bf16.vlgmr.msra.gmra.mxu0 %vm2185_vm7, %v13066_v7  ;;  %11032 = vmatpush3.bf16.msra.mxu1 %v13071_v12 }
 0x34f   : > { %11039 = vmatprep.mubr.msk.bf16.mxu0 %vm12580_vm2, %v12578_v1  ;;  %11043 = vmatprep.subr.bf16.mxu1 %v12578_v1 }
 0x3b8   : > { %v2313_v13 = vpop.permute.xlu0 %2312 }
 0x3b9   : > { %v2318_v14 = vsel %vm2185_vm7, %v2313_v13, 0 }
 0x3ba   : > { %11038 = vmatpush3.bf16.xpose.msra.mxu0 %v2318_v14 }
 0x3bb   : > { %11049 = vmatprep.subr.bf16.mxu0 %v12578_v1 }
 0x3bc   : > { %v2310_v15 = vpop.permute.xlu0 %2309 }
 0x3c1   : > { %11040 = vmatmul.mubr.msk.bf16.vlgmr.msra.gmra.mxu0 %vm2185_vm7, %v2310_v15 }
 0x3c2   : > { %11051 = vmatprep.mubr.msk.bf16.mxu0 %vm12580_vm2, %v12578_v1 }
 0x40e   : > { %v2226_v26 = vpop.f32.mrf.mxu0 }
 0x40f   : > { %v2233_v27 = vmul.f32 0.35355338, %v2226_v26  ;;  %v2306_v26 = vld [vmem:[%s14481_s28] sm:$0xf] }
 0x410   : > { %v11029_v28 = vpop.f32.mrf.mxu0 }
 0x411   : > { %v2235_v29 = vsel %vm13092_vm11, %v2233_v27, -1e+09 }
 0x412   : > { %v2229_v31 = vpop.f32.mrf.mxu0  ;;  %v2238_v32 = vsel %vm2237_vm13, %v2235_v29, -inf }
 0x413   : > { %v2234_v33 = vmul.f32 0.35355338, %v2229_v31  ;;  %2239 = vmax.xlane.f32.xlu0 %v2238_v32  ;;  %v2491_v31 = vsel %vm2442_vm15, %v2306_v26, 0  ;;  %v10178_v32 = vld [vmem:[%s14481_s28 + $0x4] sm:$0xf] }
 0x414   : > { %v11030_v34 = vpop.f32.mrf.mxu0 }
 0x415   : > { %v2236_v36 = vsel %vm13100_vm14, %v2234_v33, -1e+09  ;;  %v2444_v33 = vsel %vm2442_vm15, %v10178_v32, 0  ;;  %v10183_v32 = vld [vmem:[%s14481_s28 + $0x8] sm:$0xf] }
 0x416   : > { %v2241_v37 = vsel %vm2237_vm13, %v2236_v36, -inf  ;;  %11050 = vmatpush3.bf16.msra.mxu0 %v2444_v33  ;;  %v2666_v33 = vsel %vm2442_vm15, %v10183_v32, 0 }
 0x417   : > { %2242 = vmax.xlane.f32.xlu1 %v2241_v37  ;;  %11061 = vmatprep.subr.bf16.mxu0 %v12578_v1 }
 0x481   : > { %v2354_v38 = vpop.f32.mrf.mxu0 }
 0x482   : > { %v2361_v39 = vmul.f32 0.35355338, %v2354_v38 }
 0x483   : > { %v11041_v40 = vpop.f32.mrf.mxu0 }
 0x484   : > { %v2363_v41 = vsel %vm13092_vm11, %v2361_v39, -1e+09 }
 0x485   : > { %v2357_v42 = vpop.f32.mrf.mxu0  ;;  %v2365_v43 = vsel %vm2237_vm13, %v2363_v41, -inf }
 0x486   : > { %v2362_v46 = vmul.f32 0.35355338, %v2357_v42  ;;  %2366 = vmax.xlane.f32.xlu0 %v2365_v43 }
 0x487   : > { %v11042_v47 = vpop.f32.mrf.mxu0 }
 0x488   : > { %v2364_v48 = vsel %vm13100_vm14, %v2362_v46, -1e+09 }
 0x489   : > { %v2368_v49 = vsel %vm2237_vm13, %v2364_v48, -inf }
 0x48a   : > { %2369 = vmax.xlane.f32.xlu0 %v2368_v49 }
 0x49c   : > { %v2240_v50 = vpop.xlane.xlu0 %2239 }
 0x49d   : > { %v2244_v51 = vsub.f32 %v2235_v29, %v2240_v50 }
 0x49f   : > { %v2246_v52 = vmul.f32 1.442695, %v2244_v51 }
 0x4a0   : > { %v2243_v53 = vpop.xlane.xlu1 %2242 }
 0x4a1   : > { %12111 = vpow2.f32 %v2246_v52  ;;  %v2245_v54 = vsub.f32 %v2236_v36, %v2243_v53 }
 0x4a3   : > { %v2248_v55 = vmul.f32 1.442695, %v2245_v54 }
 0x4a5   : > { %12113 = vpow2.f32 %v2248_v55 }
 0x4ae   : > { %v12112_v56 = vpop.eup %12111 }
 0x4af   : > { %v2250_v57 = vsel %vm2237_vm13, %v12112_v56, 0.0 }
 0x4b0   : > { %2251 = vadd.xlane.f32.xlu1 %v2250_v57 }
 0x4b2   : > { %v12114_v58 = vpop.eup %12113 }
 0x4b3   : > { %v2253_v59 = vsel %vm2237_vm13, %v12114_v58, 0.0 }
 0x4b4   : > { %2254 = vadd.xlane.f32.xlu0 %v2253_v59 }
 0x50f   : > { %v2367_v60 = vpop.xlane.xlu0 %2366 }
 0x510   : > { %v2371_v61 = vsub.f32 %v2363_v41, %v2367_v60 }
 0x512   : > { %v2373_v62 = vmul.f32 1.442695, %v2371_v61 }
 0x513   : > { %v2370_v0 = vpop.xlane.xlu0 %2369 }
 0x514   : > { %12115 = vpow2.f32 %v2373_v62  ;;  %v2372_v3 = vsub.f32 %v2364_v48, %v2370_v0 }
 0x516   : > { %v2375_v4 = vmul.f32 1.442695, %v2372_v3 }
 0x518   : > { %12117 = vpow2.f32 %v2375_v4 }
 0x521   : > { %v12116_v5 = vpop.eup %12115 }
 0x522   : > { %v2377_v6 = vsel %vm2237_vm13, %v12116_v5, 0.0 }
 0x523   : > { %2378 = vadd.xlane.f32.xlu1 %v2377_v6 }
 0x525   : > { %v12118_v8 = vpop.eup %12117 }
 0x526   : > { %v2380_v9 = vsel %vm2237_vm13, %v12118_v8, 0.0 }
 0x527   : > { %2381 = vadd.xlane.f32.xlu0 %v2380_v9 }
 0x534   : > { %2389 = vrot.lane.b32.xlu1 %v13071_v12, %s14404_s16  ;;  %s14485_s16 = sld [smem:[#allocation29_spill]] }
 0x538   : > { %2534 = vrot.lane.b32.xlu1 %v13066_v7, %s14402_s11 }
 0x539   : > { %v2252_v10 = vpop.xlane.xlu1 %2251 }
 0x53a   : > { %12119 = vrcp.f32 %v2252_v10 }
 0x53d   : > { %2536 = vrot.lane.b32.xlu0 %v13059_v63, %s14402_s11  ;;  %v2255_v11 = vpop.xlane.xlu0 %2254 }
 0x53e   : > { %12121 = vrcp.f32 %v2255_v11 }
 0x547   : > { %v12120_v13 = vpop.eup %12119 }
 0x548   : > { %v2258_v15 = vmul.f32 %v12120_v13, %v12112_v56 }
 0x54b   : > { %v12122_v14 = vpop.eup %12121 }
 0x54c   : > { %v2259_v16 = vmul.f32 %v12122_v14, %v12114_v58 }
 0x54e   : > { %v2260_v17 = vpack.c.bf16 %v2259_v16, %v2258_v15 }
 0x550   : > { %11034 = vmatmul.mubr.msk.bf16.vlgmr.msra.gmra.mxu1 %vm2237_vm13, %v2260_v17 }
 0x551   : > { %11045 = vmatprep.mubr.msk.bf16.mxu1 %vm12580_vm2, %v12578_v1 }
 0x5ac   : > { %v2379_v18 = vpop.xlane.xlu1 %2378 }
 0x5ad   : > { %12123 = vrcp.f32 %v2379_v18 }
 0x5b0   : > { %v2390_v19 = vpop.permute.xlu1 %2389  ;;  %v2382_v21 = vpop.xlane.xlu0 %2381 }
 0x5b1   : > { %12125 = vrcp.f32 %v2382_v21  ;;  %11044 = vmatpush3.bf16.msra.mxu1 %v2390_v19 }
 0x5b2   : > { %11055 = vmatprep.subr.bf16.mxu1 %v12578_v1 }
 0x5b4   : > { %v2537_v42 = vpop.permute.xlu0 %2536  ;;  %v2535_v49 = vpop.permute.xlu1 %2534 }
 0x5b5   : > { %v2542_v48 = vsel %vm2185_vm7, %v2537_v42, 0 }
 0x5ba   : > { %v12124_v22 = vpop.eup %12123 }
 0x5bb   : > { %v2385_v27 = vmul.f32 %v12124_v22, %v12116_v5 }
 0x5be   : > { %v12126_v24 = vpop.eup %12125 }
 0x5bf   : > { %v2386_v28 = vmul.f32 %v12126_v24, %v12118_v8 }
 0x5c1   : > { %v2387_v29 = vpack.c.bf16 %v2386_v28, %v2385_v27 }
 0x5c3   : > { %11046 = vmatmul.mubr.msk.bf16.vlgmr.msra.gmra.mxu1 %vm2237_vm13, %v2387_v29 }
 0x5c4   : > { %11056 = vmatpush3.bf16.msra.mxu1 %v2491_v31  ;;  %11057 = vmatprep.mubr.msk.bf16.mxu1 %vm12580_vm2, %v12578_v1 }
 0x5c5   : > { %11067 = vmatprep.subr.bf16.mxu1 %v12578_v1 }
 0x610   : > { %v2299_v34 = vpop.f32.mrf.mxu1 }
 0x612   : > { %v11035_v36 = vpop.f32.mrf.mxu1 }
 0x614   : > { %v2302_v37 = vpop.f32.mrf.mxu1 }
 0x615   : > { %v2307_v38 = vpack.c.bf16 %v2302_v37, %v2299_v34 }
 0x616   : > { %v11036_v39 = vpop.f32.mrf.mxu1 }
 0x617   : > { %11058 = vmatmul.mubr.msk.bf16.vlgmr.msra.gmra.mxu1 %vm2185_vm7, %v2307_v38 }
 0x618   : > { %11069 = vmatprep.mubr.msk.bf16.mxu1 %vm12580_vm2, %v12578_v1 }
 0x683   : > { %v2429_v40 = vpop.f32.mrf.mxu1 }
 0x685   : > { %v11047_v41 = vpop.f32.mrf.mxu1 }
 0x687   : > { %v2432_v43 = vpop.f32.mrf.mxu1 }
 0x688   : > { %v2438_v46 = vpack.c.bf16 %v2432_v43, %v2429_v40 }
 0x689   : > { %v11048_v47 = vpop.f32.mrf.mxu1 }
 0x68a   : > { %11052 = vmatmul.mubr.msk.bf16.vlgmr.msra.gmra.mxu0 %vm2185_vm7, %v2438_v46 }
 0x68b   : > { %11062 = vmatpush3.bf16.xpose.msra.mxu0 %v2542_v48  ;;  %11063 = vmatprep.mubr.msk.bf16.mxu0 %vm12580_vm2, %v12578_v1 }
 0x68c   : > { %11073 = vmatprep.subr.bf16.mxu0 %v12578_v1 }
 0x692   : > { %11064 = vmatmul.mubr.msk.bf16.vlgmr.msra.gmra.mxu0 %vm2185_vm7, %v2535_v49 }
 0x693   : > { %11075 = vmatprep.mubr.msk.bf16.mxu0 %vm12580_vm2, %v12578_v1  ;;  %11074 = vmatpush3.bf16.msra.mxu0 %v2666_v33 }
 0x694   : > { %11085 = vmatprep.subr.bf16.mxu0 %v12578_v1 }
 0x6d7   : > { %v13148_v50 = vpop.f32.mrf.mxu1 }
 0x6d9   : > { %v11059_v51 = vpop.f32.mrf.mxu1 }
 0x6db   : > { %v13150_v52 = vpop.f32.mrf.mxu1 }
 0x6dd   : > { %v11060_v53 = vpop.f32.mrf.mxu1 }
 0x74a   : > { %v13152_v54 = vpop.f32.mrf.mxu0 }
 0x74c   : > { %v11053_v55 = vpop.f32.mrf.mxu0 }
 0x74e   : > { %v13154_v56 = vpop.f32.mrf.mxu0 }
 0x750   : > { %v11054_v57 = vpop.f32.mrf.mxu0 }
 0x752   : > { %v2578_v58 = vpop.f32.mrf.mxu0 }
 0x753   : > { %v2585_v59 = vmul.f32 0.35355338, %v2578_v58 }
 0x754   : > { %v11065_v60 = vpop.f32.mrf.mxu0 }
 0x755   : > { %v2587_v61 = vsel %vm13092_vm11, %v2585_v59, -1e+09 }
 0x756   : > { %v2581_v62 = vpop.f32.mrf.mxu0  ;;  %v2589_v0 = vsel %vm2237_vm13, %v2587_v61, -inf }
 0x757   : > { %v2586_v3 = vmul.f32 0.35355338, %v2581_v62  ;;  %2590 = vmax.xlane.f32.xlu1 %v2589_v0 }
 0x758   : > { %v11066_v4 = vpop.f32.mrf.mxu0 }
 0x759   : > { %v2588_v5 = vsel %vm13100_vm14, %v2586_v3, -1e+09 }
 0x75a   : > { %v2592_v6 = vsel %vm2237_vm13, %v2588_v5, -inf }
 0x75b   : > { %2593 = vmax.xlane.f32.xlu0 %v2592_v6 }
 0x7e0   : > { %v2591_v8 = vpop.xlane.xlu1 %2590 }
 0x7e1   : > { %v2595_v9 = vsub.f32 %v2587_v61, %v2591_v8 }
 0x7e3   : > { %v2597_v10 = vmul.f32 1.442695, %v2595_v9 }
 0x7e4   : > { %v2594_v11 = vpop.xlane.xlu0 %2593 }
 0x7e5   : > { %12127 = vpow2.f32 %v2597_v10  ;;  %v2596_v13 = vsub.f32 %v2588_v5, %v2594_v11  ;;  %v2531_v10 = vadd.f32 %v13150_v52, %v13154_v56  ;;  %v10187_v52 = vld [vmem:[%s14481_s28 + $0xc] sm:$0xf] }
 0x7e6   : > { %v2843_v56 = vsel %vm2442_vm15, %v10187_v52, 0 }
 0x7e7   : > { %v2599_v14 = vmul.f32 1.442695, %v2596_v13 }
 0x7e9   : > { %12129 = vpow2.f32 %v2599_v14 }
 0x7f2   : > { %v12128_v15 = vpop.eup %12127 }
 0x7f3   : > { %v2601_v16 = vsel %vm2237_vm13, %v12128_v15, 0.0 }
 0x7f4   : > { %2602 = vadd.xlane.f32.xlu0 %v2601_v16 }
 0x7f6   : > { %v12130_v17 = vpop.eup %12129 }
 0x7f7   : > { %v2604_v18 = vsel %vm2237_vm13, %v12130_v17, 0.0 }
 0x7f8   : > { %2605 = vadd.xlane.f32.xlu1 %v2604_v18 }
 0x809   : > { %2713 = vrot.lane.b32.xlu1 %v13059_v63, %s14400_s0 }
 0x80a   : > { %2612 = vrot.lane.b32.xlu0 %v13071_v12, %s14402_s11  ;;  %s14484_s11 = sld [smem:[#allocation33_spill]] }
 0x80d   : > { %2711 = vrot.lane.b32.xlu1 %v13066_v7, %s14400_s0 }
 0x87d   : > { %v2603_v19 = vpop.xlane.xlu0 %2602 }
 0x87e   : > { %12131 = vrcp.f32 %v2603_v19 }
 0x881   : > { %v2606_v21 = vpop.xlane.xlu1 %2605  ;;  %v2613_v22 = vpop.permute.xlu0 %2612 }
 0x882   : > { %12133 = vrcp.f32 %v2606_v21  ;;  %11068 = vmatpush3.bf16.msra.mxu1 %v2613_v22  ;;  %v12014_v22 = vld [vmem:[%s14482_s18] sm:$0xff]  }
 0x883   : > { %11079 = vmatprep.subr.bf16.mxu1 %v12578_v1 }
 0x885   : > { %v2714_v63 = vpop.permute.xlu1 %2713 }
 0x886   : > { %v2719_v31 = vsel %vm2185_vm7, %v2714_v63, 0 }
 0x889   : > { %v2712_v7 = vpop.permute.xlu1 %2711 }
 0x88b   : > { %v12132_v24 = vpop.eup %12131 }
 0x88c   : > { %v2609_v27 = vmul.f32 %v12132_v24, %v12128_v15 }
 0x88f   : > { %v12134_v26 = vpop.eup %12133 }
 0x890   : > { %v2610_v28 = vmul.f32 %v12134_v26, %v12130_v17 }
 0x892   : > { %v2611_v29 = vpack.c.bf16 %v2610_v28, %v2609_v27 }
 0x894   : > { %11070 = vmatmul.mubr.msk.bf16.vlgmr.msra.gmra.mxu1 %vm2237_vm13, %v2611_v29 }
 0x895   : > { %11080 = vmatpush3.bf16.xpose.msra.mxu1 %v2719_v31  ;;  %11081 = vmatprep.mubr.msk.bf16.mxu1 %vm12580_vm2, %v12578_v1 }
 0x896   : > { %11091 = vmatprep.subr.bf16.mxu1 %v12578_v1 }
 0x89c   : > { %11082 = vmatmul.mubr.msk.bf16.vlgmr.msra.gmra.mxu1 %vm2185_vm7, %v2712_v7 }
 0x89d   : > { %11093 = vmatprep.mubr.msk.bf16.mxu1 %vm12580_vm2, %v12578_v1  ;;  %11092 = vmatpush3.bf16.msra.mxu1 %v2843_v56 }
 0x89e   : > { %11105 = vmatprep.subr.bf16.mxu1 %v12578_v1 }
 0x954   : > { %v2652_v34 = vpop.f32.mrf.mxu1 }
 0x956   : > { %v11071_v36 = vpop.f32.mrf.mxu1 }
 0x958   : > { %v2655_v37 = vpop.f32.mrf.mxu1 }
 0x959   : > { %v2661_v38 = vpack.c.bf16 %v2655_v37, %v2652_v34  ;;  %v12021_v34 = vld [vmem:[%s14484_s11 + $0x18] sm:$0xff]  }
 0x95a   : > { %v11072_v39 = vpop.f32.mrf.mxu1 }
 0x95b   : > { %11076 = vmatmul.mubr.msk.bf16.vlgmr.msra.gmra.mxu0 %vm2185_vm7, %v2661_v38  ;;  %v10189_v39 = vld [vmem:[%s14485_s16] ss:$0 sm:$0xff] }
 0x95c   : > { %v2755_v40 = vpop.f32.mrf.mxu1  ;;  %11087 = vmatprep.mubr.msk.bf16.mxu0 %vm12580_vm2, %v12578_v1 }
 0x95d   : > { %v2762_v41 = vmul.f32 0.35355338, %v2755_v40 }
 0x95e   : > { %v11083_v42 = vpop.f32.mrf.mxu1 }
 0x95f   : > { %v2764_v43 = vsel %vm13092_vm11, %v2762_v41, -1e+09 }
 0x960   : > { %v2758_v46 = vpop.f32.mrf.mxu1  ;;  %v2766_v47 = vsel %vm2237_vm13, %v2764_v43, -inf }
 0x961   : > { %v2763_v48 = vmul.f32 0.35355338, %v2758_v46  ;;  %2767 = vmax.xlane.f32.xlu0 %v2766_v47  ;;  %v12017_v47 = vld [vmem:[%s12641_s14 + $0x18] sm:$0xff]  }
 0x962   : > { %v11084_v49 = vpop.f32.mrf.mxu1 }
 0x963   : > { %v2765_v51 = vsel %vm13100_vm14, %v2763_v48, -1e+09  ;;  %v12018_v49 = vld [vmem:[%s12641_s14 + $0x10] sm:$0xff]  }
 0x964   : > { %v2769_v53 = vsel %vm2237_vm13, %v2765_v51, -inf }
 0x965   : > { %2770 = vmax.xlane.f32.xlu1 %v2769_v53  ;;  %v12020_v53 = vld [vmem:[%s14470_s26 + $0x10] sm:$0xff]  }
 0x976   : > { %2789 = vrot.lane.b32.xlu1 %v13071_v12, %s14400_s0  ;;  %v2528_v12 = vadd.f32 %v13148_v50, %v13152_v54  ;;  %v12013_v54 = vld [vmem:[%s14482_s18 + $0x8] sm:$0xff]   ;;  %s14483_s0 = sld [smem:[#allocation30_spill]] }
 0x97c   : > { %v12015_v32 = vld [vmem:[%s14483_s0 + $0x8] sm:$0xff]   ;;  %v12016_v33 = vld [vmem:[%s14483_s0] sm:$0xff]  }
 0x9ea   : > { %v2768_v55 = vpop.xlane.xlu0 %2767 }
 0x9eb   : > { %v2772_v57 = vsub.f32 %v2764_v43, %v2768_v55  ;;  %v12022_v55 = vld [vmem:[%s14484_s11 + $0x10] sm:$0xff]  }
 0x9ed   : > { %v2774_v58 = vmul.f32 1.442695, %v2772_v57  ;;  %v12023_v57 = vld [vmem:[%s14484_s11 + $0x8] sm:$0xff]  }
 0x9ee   : > { %v2771_v59 = vpop.xlane.xlu1 %2770 }
 0x9ef   : > { %12135 = vpow2.f32 %v2774_v58  ;;  %v2773_v60 = vsub.f32 %v2765_v51, %v2771_v59  ;;  %v12019_v51 = vld [vmem:[%s14470_s26 + $0x18] sm:$0xff]   ;;  %v12024_v58 = vld [vmem:[%s14484_s11] sm:$0xff]  }
 0x9f1   : > { %v2776_v61 = vmul.f32 1.442695, %v2773_v60 }
 0x9f2   : > { %v2790_v62 = vpop.permute.xlu1 %2789 }
 0x9f3   : > { %12137 = vpow2.f32 %v2776_v61  ;;  %11086 = vmatpush3.bf16.msra.mxu0 %v2790_v62  ;;  %v10196_v61 = vld [vmem:[%s14486_s1] ss:$0 sm:$0xff] }
 0x9f4   : > { %11097 = vmatprep.subr.bf16.mxu0 %v12578_v1 }
 0x9fc   : > { %v12136_v0 = vpop.eup %12135 }
 0x9fd   : > { %v2778_v3 = vsel %vm2237_vm13, %v12136_v0, 0.0 }
 0x9fe   : > { %2779 = vadd.xlane.f32.xlu0 %v2778_v3 }
 0xa00   : > { %v12138_v4 = vpop.eup %12137 }
 0xa01   : > { %v2781_v5 = vsel %vm2237_vm13, %v12138_v4, 0.0 }
 0xa02   : > { %2782 = vadd.xlane.f32.xlu0 %v2781_v5 }
 0xa1b   : > { %v2702_v6 = vpop.f32.mrf.mxu0 }
 0xa1c   : > { %v2709_v8 = vadd.f32 %v2702_v6, %v2528_v12 }
 0xa1d   : > { %v11077_v9 = vpop.f32.mrf.mxu0 }
 0xa1f   : > { %v2705_v11 = vpop.f32.mrf.mxu0 }
 0xa20   : > { %v2710_v13 = vadd.f32 %v2705_v11, %v2531_v10  ;;  %v10208_v10 = vld [vmem:[%s14474_s12 + $0x1] ss:$0 sm:$0xff] }
 0xa21   : > { %v11078_v14 = vpop.f32.mrf.mxu0 }
 0xa87   : > { %v2780_v15 = vpop.xlane.xlu0 %2779 }
 0xa88   : > { %12139 = vrcp.f32 %v2780_v15 }
 0xa8b   : > { %v2783_v16 = vpop.xlane.xlu0 %2782 }
 0xa8c   : > { %12141 = vrcp.f32 %v2783_v16  ;;  %v1953_v16 = vld [vmem:[%s13049_s22 + $0x10] sm:$0xff] }
 0xa8d   : > { %vm1959_vm5 = vcmp.ne.f32.partialorder %v1953_v16, 0.0 }
 0xa8e   : > { %v3111_v56 = vsel %vm1959_vm5, 1, %v12581_v45 }
 0xa95   : > { %v12140_v17 = vpop.eup %12139 }
 0xa96   : > { %v2786_v19 = vmul.f32 %v12140_v17, %v12136_v0 }
 0xa99   : > { %v12142_v18 = vpop.eup %12141 }
 0xa9a   : > { %v2787_v50 = vmul.f32 %v12142_v18, %v12138_v4 }
 0xa9c   : > { %v2788_v21 = vpack.c.bf16 %v2787_v50, %v2786_v19  ;;  %v12026_v50 = vld [vmem:[%s14471_s2 + $0x10] sm:$0xff]  }
 0xa9e   : > { %11088 = vmatmul.mubr.msk.bf16.vlgmr.msra.gmra.mxu0 %vm2237_vm13, %v2788_v21 }
 0xa9f   : > { %11098 = vmatpush3.bf16.msra.mxu0 %v12013_v54  ;;  %11101 = vmatprep.mubr.msk.bf16.mxu0 %vm12580_vm2, %v12578_v1 }
 0xaa0   : > { %11099 = vmatprep.subr.bf16.mxu0 %v12578_v1 }
 0xaa3   : > { %11100 = vmatpush3.bf16.msra.mxu0 %v12014_v22  ;;  %v10217_v22 = vld [vmem:[%s14473_s10 + $0x1] ss:$0 sm:$0xff] }
 0xaa4   : > { %11113 = vmatprep.subr.bf16.mxu0 %v12578_v1 }
 0xaa6   : > { %11102 = vmatmul.mubr.msk.bf16.vlgmr.msra.gmra.mxu0 %vm1798_vm4, %v13021_v20 }
 0xaa7   : > { %11121 = vmatprep.mubr.msk.bf16.mxu0 %vm12580_vm2, %v12578_v1  ;;  %11114 = vmatpush3.bf16.msra.mxu0 %v12021_v34 }
 0xaa8   : > { %11115 = vmatprep.subr.bf16.mxu0 %v12578_v1 }
 0xaab   : > { %11116 = vmatpush3.bf16.msra.mxu0 %v12022_v55 }
 0xaac   : > { %11117 = vmatprep.subr.bf16.mxu0 %v12578_v1 }
 0xaaf   : > { %11118 = vmatpush3.bf16.msra.mxu0 %v12023_v57 }
 0xab0   : > { %11119 = vmatprep.subr.bf16.mxu0 %v12578_v1 }
 0xab3   : > { %11120 = vmatpush3.bf16.msra.mxu0 %v12024_v58 }
 0xab4   : > { %11141 = vmatprep.subr.bf16.mxu0 %v12578_v1 }
 0xb5e   : > { %v2829_v24 = vpop.f32.mrf.mxu0 }
 0xb60   : > { %v11089_v26 = vpop.f32.mrf.mxu0 }
 0xb61   : > { %v1954_v26 = vld [vmem:[%s13049_s22 + $0x18] sm:$0xff] }
 0xb62   : > { %v2832_v27 = vpop.f32.mrf.mxu0  ;;  %vm1960_vm6 = vcmp.ne.f32.partialorder %v1954_v26, 0.0 }
 0xb63   : > { %v2838_v28 = vpack.c.bf16 %v2832_v27, %v2829_v24 }
 0xb64   : > { %v11090_v63 = vpop.f32.mrf.mxu0 }
 0xb65   : > { %11094 = vmatmul.mubr.msk.bf16.vlgmr.msra.gmra.mxu1 %vm2185_vm7, %v2838_v28 }
 0xb66   : > { %v2952_v20 = vpop.f32.mrf.mxu0  ;;  %11109 = vmatprep.mubr.msk.bf16.mxu1 %vm12580_vm2, %v12578_v1  ;;  %11106 = vmatpush3.bf16.msra.mxu1 %v12015_v32 }
 0xb67   : > { %11107 = vmatprep.subr.bf16.mxu1 %v12578_v1 }
 0xb68   : > { %v11103_v29 = vpop.f32.mrf.mxu0 }
 0xb6a   : > { %v2955_v31 = vpop.f32.mrf.mxu0  ;;  %11108 = vmatpush3.bf16.msra.mxu1 %v12016_v33 }
 0xb6b   : > { %11125 = vmatprep.subr.bf16.mxu1 %v12578_v1 }
 0xb6c   : > { %v11104_v7 = vpop.f32.mrf.mxu0 }
 0xc25   : > { %v2879_v36 = vpop.f32.mrf.mxu1 }
 0xc26   : > { %v2886_v38 = vadd.f32 %v2879_v36, %v2709_v8  ;;  %v10197_v36 = vld [vmem:[%s14488_s5] ss:$0 sm:$0xff] }
 0xc27   : > { %v11095_v37 = vpop.f32.mrf.mxu1 }
 0xc28   : > { %v2895_v43 = vadd.f32 %v10189_v39, %v2886_v38 }
 0xc29   : > { %v2882_v40 = vpop.f32.mrf.mxu1 }
 0xc2a   : > { %v2887_v41 = vadd.f32 %v2882_v40, %v2710_v13  ;;  %v12025_v13 = vld [vmem:[%s14471_s2 + $0x18] sm:$0xff]  }
 0xc2b   : > { %v11096_v42 = vpop.f32.mrf.mxu1 }
 0xc2c   : > { %v2896_v46 = vadd.f32 %v10189_v39, %v2887_v41 }
 0xc2e   : > { %v2901_v48 = vpack.c.bf16 %v2896_v46, %v2895_v43  ;;  %v10226_v46 = vld [vmem:[%s14475_s27 + $0x1] ss:$0 sm:$0xff] }
 0xc30   : > { %11110 = vmatmul.mubr.msk.bf16.vlgmr.msra.gmra.mxu1 %vm1798_vm4, %v2901_v48 }
 0xc31   : > { %11126 = vmatpush3.bf16.msra.mxu1 %v12017_v47  ;;  %11129 = vmatprep.mubr.msk.bf16.mxu1 %vm12580_vm2, %v12578_v1 }
 0xc32   : > { %11127 = vmatprep.subr.bf16.mxu1 %v12578_v1 }
 0xc35   : > { %11128 = vmatpush3.bf16.msra.mxu1 %v12018_v49 }
 0xc36   : > { %11133 = vmatprep.subr.bf16.mxu1 %v12578_v1 }
 0xc38   : > { %11130 = vmatmul.mubr.msk.bf16.vlgmr.msra.gmra.mxu1 %vm1798_vm4, %v13030_v35 }
 0xc39   : > { %11134 = vmatpush3.bf16.msra.mxu1 %v12019_v51  ;;  %11137 = vmatprep.mubr.msk.bf16.mxu1 %vm12580_vm2, %v12578_v1 }
 0xc3a   : > { %11135 = vmatprep.subr.bf16.mxu1 %v12578_v1 }
 0xc3d   : > { %11136 = vmatpush3.bf16.msra.mxu1 %v12020_v53 }
 0xc3e   : > { %11149 = vmatprep.subr.bf16.mxu1 %v12578_v1 }
 0xc40   : > { %11138 = vmatmul.mubr.msk.bf16.vlgmr.msra.gmra.mxu1 %vm1798_vm4, %v13030_v35 }
 0xc41   : > { %11151 = vmatprep.mubr.msk.bf16.mxu1 %vm12580_vm2, %v12578_v1 }
 0xcf0   : > { %v3008_v59 = vpop.f32.mrf.mxu1 }
 0xcf1   : > { %v3009_v60 = vadd.f32 %v3008_v59, %v2952_v20 }
 0xcf2   : > { %v11111_v62 = vpop.f32.mrf.mxu1 }
 0xcf3   : > { %v3022_v3 = vadd.f32 %v10196_v61, %v3009_v60 }
 0xcf4   : > { %v3011_v0 = vpop.f32.mrf.mxu1 }
 0xcf5   : > { %v3012_v4 = vadd.f32 %v3011_v0, %v2955_v31  ;;  %v3024_v8 = vmax.f32 %v3022_v3, 0.0  ;;  %v3112_v31 = vsel %vm1960_vm6, 1, %v12581_v45 }
 0xcf6   : > { %v11112_v5 = vpop.f32.mrf.mxu1 }
 0xcf7   : > { %v3023_v12 = vadd.f32 %v10196_v61, %v3012_v4 }
 0xcf8   : > { %v3182_v6 = vpop.f32.mrf.mxu1 }
 0xcf9   : > { %v3025_v9 = vmax.f32 %v3023_v12, 0.0  ;;  %v3183_v17 = vadd.f32 %v10208_v10, %v3182_v6 }
 0xcfa   : > { %v11131_v11 = vpop.f32.mrf.mxu1 }
 0xcfb   : > { %v3034_v14 = vpack.c.bf16 %v3025_v9, %v3024_v8 }
 0xcfc   : > { %v3185_v15 = vpop.f32.mrf.mxu1 }
 0xcfd   : > { %v3186_v18 = vadd.f32 %v10208_v10, %v3185_v15  ;;  %11122 = vmatmul.mubr.msk.bf16.vlgmr.msra.gmra.mxu0 %vm3066_vm0, %v3034_v14 }
 0xcfe   : > { %v11132_v19 = vpop.f32.mrf.mxu1  ;;  %11142 = vmatpush3.bf16.msra.mxu0 %v12025_v13  ;;  %11145 = vmatprep.mubr.msk.bf16.mxu0 %vm12580_vm2, %v12578_v1 }
 0xcff   : > { %v13257_v54 = vpack.c.bf16 %v3186_v18, %v3183_v17  ;;  %11143 = vmatprep.subr.bf16.mxu0 %v12578_v1 }
 0xd00   : > { %v3248_v21 = vpop.f32.mrf.mxu1 }
 0xd01   : > { %3446 = vrot.lane.b32.xlu1 %v13257_v54, %s14487_s3  ;;  %v3249_v27 = vadd.f32 %v10217_v22, %v3248_v21 }
 0xd02   : > { %v11139_v52 = vpop.f32.mrf.mxu1  ;;  %11144 = vmatpush3.bf16.msra.mxu0 %v12026_v50 }
 0xd03   : > { %11155 = vmatprep.subr.bf16.mxu0 %v12578_v1 }
 0xd04   : > { %v3251_v24 = vpop.f32.mrf.mxu1 }
 0xd05   : > { %v3252_v28 = vadd.f32 %v10217_v22, %v3251_v24  ;;  %3114 = vperm.xlu1 %12003, %v3111_v56   ;;  %11146 = vmatmul.mubr.msk.bf16.vlgmr.msra.gmra.mxu0 %vm1798_vm4, %v13030_v35 }
 0xd06   : > { %v11140_v63 = vpop.f32.mrf.mxu1  ;;  %11157 = vmatprep.mubr.msk.bf16.mxu0 %vm12580_vm2, %v12578_v1 }
 0xd07   : > { %v13270_v20 = vpack.c.bf16 %v3252_v28, %v3249_v27 }
 0xd09   : > { %3449 = vrot.lane.b32.xlu0 %v13270_v20, %s14487_s3  ;;  %v3327_v29 = vsel %vm2185_vm7, %v13270_v20, 0 }
 0xd0a   : > { %11150 = vmatpush3.bf16.xpose.msra.mxu1 %v3327_v29 }
 0xd0b   : > { %11161 = vmatprep.subr.bf16.mxu1 %v12578_v1 }
 0xd0d   : > { %3117 = vperm.xlu0 %12004, %v3112_v31  }
 0xd11   : > { %11152 = vmatmul.mubr.msk.bf16.vlgmr.msra.gmra.mxu1 %vm2185_vm7, %v13257_v54 }
 0xd12   : > { %11163 = vmatprep.mubr.msk.bf16.mxu1 %vm12580_vm2, %v12578_v1 }
 0xd73   : > { %v3447_v33 = vpop.permute.xlu1 %3446 }
 0xd7b   : > { %v3450_v7 = vpop.permute.xlu0 %3449 }
 0xd7c   : > { %v3455_v32 = vsel %vm2185_vm7, %v3450_v7, 0 }
 0xd7d   : > { %11162 = vmatpush3.bf16.xpose.msra.mxu1 %v3455_v32 }
 0xd7e   : > { %11173 = vmatprep.subr.bf16.mxu1 %v12578_v1 }
 0xd80   : > { %v3115_v57 = vpop.permute.xlu1 %3114 }
 0xd81   : > { %vm3119_vm8 = vcmp.eq.s32.totalorder %v3115_v57, 1 }
 0xd82   : > { %vm13297_vm12 = vmand %vm3119_vm8, %vm1980_vm9 }
 0xd84   : > { %11164 = vmatmul.mubr.msk.bf16.vlgmr.msra.gmra.mxu1 %vm2185_vm7, %v3447_v33 }
 0xd85   : > { %11175 = vmatprep.mubr.msk.bf16.mxu1 %vm12580_vm2, %v12578_v1 }
 0xd88   : > { %v3118_v58 = vpop.permute.xlu0 %3117 }
 0xd89   : > { %vm3120_vm10 = vcmp.eq.s32.totalorder %v3118_v58, 1 }
 0xd8a   : > { %vm13305_vm5 = vmand %vm3120_vm10, %vm1980_vm9 }
 0xdbd   : > { %v3104_v34 = vpop.f32.mrf.mxu0 }
 0xdbe   : > { %v3105_v39 = vadd.f32 %v10197_v36, %v3104_v34 }
 0xdbf   : > { %v11123_v37 = vpop.f32.mrf.mxu0 }
 0xdc1   : > { %v3107_v38 = vpop.f32.mrf.mxu0 }
 0xdc2   : > { %v3108_v40 = vadd.f32 %v10197_v36, %v3107_v38 }
 0xdc3   : > { %v11124_v41 = vpop.f32.mrf.mxu0 }
 0xdc4   : > { %v13288_v42 = vpack.c.bf16 %v3108_v40, %v3105_v39 }
 0xdc5   : > { %v3314_v43 = vpop.f32.mrf.mxu0 }
 0xdc6   : > { %v3315_v49 = vadd.f32 %v10226_v46, %v3314_v43 }
 0xdc7   : > { %v11147_v47 = vpop.f32.mrf.mxu0 }
 0xdc9   : > { %v3317_v48 = vpop.f32.mrf.mxu0 }
 0xdca   : > { %v3318_v51 = vadd.f32 %v10226_v46, %v3317_v48 }
 0xdcb   : > { %v11148_v53 = vpop.f32.mrf.mxu0 }
 0xdcc   : > { %v13291_v55 = vpack.c.bf16 %v3318_v51, %v3315_v49 }
 0xdce   : > { %11156 = vmatpush3.bf16.msra.mxu0 %v13291_v55 }
 0xdcf   : > { %11167 = vmatprep.subr.bf16.mxu0 %v12578_v1 }
 0xdd1   : > { %v3363_v59 = vpop.f32.mrf.mxu1 }
 0xdd2   : > { %v3370_v60 = vmul.f32 0.35355338, %v3363_v59 }
 0xdd3   : > { %v11153_v62 = vpop.f32.mrf.mxu1 }
 0xdd4   : > { %v3372_v0 = vsel %vm13297_vm12, %v3370_v60, -1e+09  ;;  %v10232_v62 = vld [vmem:[%s14481_s28 + $0x10] sm:$0xf] }
 0xdd5   : > { %v3366_v4 = vpop.f32.mrf.mxu1  ;;  %v3374_v5 = vsel %vm2237_vm13, %v3372_v0, -inf }
 0xdd6   : > { %v3371_v12 = vmul.f32 0.35355338, %v3366_v4  ;;  %3375 = vmax.xlane.f32.xlu1 %v3374_v5 }
 0xdd7   : > { %v11154_v6 = vpop.f32.mrf.mxu1 }
 0xdd8   : > { %v3373_v8 = vsel %vm13305_vm5, %v3371_v12, -1e+09  ;;  %v3627_v12 = vsel %vm2442_vm15, %v10232_v62, 0  ;;  %v10235_v6 = vld [vmem:[%s14481_s28 + $0x14] sm:$0xf] }
 0xdd9   : > { %v3377_v9 = vsel %vm2237_vm13, %v3373_v8, -inf }
 0xdda   : > { %3378 = vmax.xlane.f32.xlu0 %v3377_v9 }
 0xe44   : > { %v3491_v10 = vpop.f32.mrf.mxu1 }
 0xe45   : > { %v3498_v11 = vmul.f32 0.35355338, %v3491_v10 }
 0xe46   : > { %v11165_v13 = vpop.f32.mrf.mxu1 }
 0xe47   : > { %v3500_v14 = vsel %vm13297_vm12, %v3498_v11, -1e+09 }
 0xe48   : > { %v3494_v15 = vpop.f32.mrf.mxu1  ;;  %v3502_v16 = vsel %vm2237_vm13, %v3500_v14, -inf }
 0xe49   : > { %v3499_v17 = vmul.f32 0.35355338, %v3494_v15  ;;  %3503 = vmax.xlane.f32.xlu1 %v3502_v16 }
 0xe4a   : > { %v11166_v18 = vpop.f32.mrf.mxu1 }
 0xe4b   : > { %v3501_v19 = vsel %vm13305_vm5, %v3499_v17, -1e+09 }
 0xe4c   : > { %v3505_v50 = vsel %vm2237_vm13, %v3501_v19, -inf }
 0xe4d   : > { %3506 = vmax.xlane.f32.xlu0 %v3505_v50 }
 0xe5f   : > { %v3376_v21 = vpop.xlane.xlu1 %3375 }
 0xe60   : > { %v3380_v22 = vsub.f32 %v3372_v0, %v3376_v21 }
 0xe62   : > { %v3382_v52 = vmul.f32 1.442695, %v3380_v22 }
 0xe63   : > { %v3379_v56 = vpop.xlane.xlu0 %3378 }
 0xe64   : > { %12143 = vpow2.f32 %v3382_v52  ;;  %v3381_v24 = vsub.f32 %v3373_v8, %v3379_v56  ;;  %v3580_v8 = vsel %vm2442_vm15, %v10235_v6, 0 }
 0xe65   : > { %11174 = vmatpush3.bf16.msra.mxu1 %v3580_v8 }
 0xe66   : > { %v3384_v26 = vmul.f32 1.442695, %v3381_v24  ;;  %11185 = vmatprep.subr.bf16.mxu1 %v12578_v1 }
 0xe68   : > { %12145 = vpow2.f32 %v3384_v26 }
 0xe71   : > { %v12144_v27 = vpop.eup %12143 }
 0xe72   : > { %v3386_v28 = vsel %vm2237_vm13, %v12144_v27, 0.0 }
 0xe73   : > { %3387 = vadd.xlane.f32.xlu1 %v3386_v28 }
 0xe75   : > { %v12146_v63 = vpop.eup %12145 }
 0xe76   : > { %v3389_v29 = vsel %vm2237_vm13, %v12146_v63, 0.0 }
 0xe77   : > { %3390 = vadd.xlane.f32.xlu0 %v3389_v29 }
 0xed2   : > { %v3504_v31 = vpop.xlane.xlu1 %3503 }
 0xed3   : > { %v3508_v7 = vsub.f32 %v3500_v14, %v3504_v31 }
 0xed5   : > { %v3510_v32 = vmul.f32 1.442695, %v3508_v7 }
 0xed6   : > { %v3507_v33 = vpop.xlane.xlu0 %3506 }
 0xed7   : > { %12147 = vpow2.f32 %v3510_v32  ;;  %v3509_v34 = vsub.f32 %v3501_v19, %v3507_v33 }
 0xed9   : > { %v3512_v36 = vmul.f32 1.442695, %v3509_v34 }
 0xedb   : > { %12149 = vpow2.f32 %v3512_v36 }
 0xee4   : > { %v12148_v37 = vpop.eup %12147 }
 0xee5   : > { %v3514_v38 = vsel %vm2237_vm13, %v12148_v37, 0.0 }
 0xee6   : > { %3515 = vadd.xlane.f32.xlu1 %v3514_v38 }
 0xee8   : > { %v12150_v39 = vpop.eup %12149 }
 0xee9   : > { %v3517_v40 = vsel %vm2237_vm13, %v12150_v39, 0.0 }
 0xeea   : > { %3518 = vadd.xlane.f32.xlu0 %v3517_v40 }
 0xef7   : > { %3526 = vrot.lane.b32.xlu1 %v13291_v55, %s14487_s3 }
 0xefb   : > { %3670 = vrot.lane.b32.xlu1 %v13257_v54, %s14493_s8 }
 0xefc   : > { %v3388_v41 = vpop.xlane.xlu1 %3387 }
 0xefd   : > { %12151 = vrcp.f32 %v3388_v41 }
 0xf00   : > { %3672 = vrot.lane.b32.xlu0 %v13270_v20, %s14493_s8  ;;  %v3391_v43 = vpop.xlane.xlu0 %3390 }
 0xf01   : > { %12153 = vrcp.f32 %v3391_v43 }
 0xf0a   : > { %v12152_v46 = vpop.eup %12151 }
 0xf0b   : > { %v3394_v48 = vmul.f32 %v12152_v46, %v12144_v27 }
 0xf0e   : > { %v12154_v47 = vpop.eup %12153 }
 0xf0f   : > { %v3395_v49 = vmul.f32 %v12154_v47, %v12146_v63 }
 0xf11   : > { %v3396_v51 = vpack.c.bf16 %v3395_v49, %v3394_v48 }
 0xf13   : > { %11158 = vmatmul.mubr.msk.bf16.vlgmr.msra.gmra.mxu0 %vm2237_vm13, %v3396_v51 }
 0xf14   : > { %11169 = vmatprep.mubr.msk.bf16.mxu0 %vm12580_vm2, %v12578_v1 }
 0xf6f   : > { %v3516_v53 = vpop.xlane.xlu1 %3515 }
 0xf70   : > { %12155 = vrcp.f32 %v3516_v53 }
 0xf73   : > { %v3519_v57 = vpop.xlane.xlu0 %3518  ;;  %v3527_v58 = vpop.permute.xlu1 %3526 }
 0xf74   : > { %12157 = vrcp.f32 %v3519_v57  ;;  %11168 = vmatpush3.bf16.msra.mxu0 %v3527_v58 }
 0xf75   : > { %11179 = vmatprep.subr.bf16.mxu0 %v12578_v1 }
 0xf77   : > { %v3673_v17 = vpop.permute.xlu0 %3672  ;;  %v3671_v22 = vpop.permute.xlu1 %3670 }
 0xf78   : > { %v3678_v21 = vsel %vm2185_vm7, %v3673_v17, 0 }
 0xf7d   : > { %v12156_v59 = vpop.eup %12155 }
 0xf7e   : > { %v3522_v0 = vmul.f32 %v12156_v59, %v12148_v37 }
 0xf81   : > { %v12158_v60 = vpop.eup %12157 }
 0xf82   : > { %v3523_v4 = vmul.f32 %v12158_v60, %v12150_v39 }
 0xf84   : > { %v3524_v5 = vpack.c.bf16 %v3523_v4, %v3522_v0 }
 0xf86   : > { %11170 = vmatmul.mubr.msk.bf16.vlgmr.msra.gmra.mxu0 %vm2237_vm13, %v3524_v5 }
 0xf87   : > { %11180 = vmatpush3.bf16.msra.mxu0 %v3627_v12  ;;  %11181 = vmatprep.mubr.msk.bf16.mxu0 %vm12580_vm2, %v12578_v1 }
 0xf88   : > { %11191 = vmatprep.subr.bf16.mxu0 %v12578_v1 }
 0xfd3   : > { %v3435_v9 = vpop.f32.mrf.mxu0 }
 0xfd5   : > { %v11159_v10 = vpop.f32.mrf.mxu0 }
 0xfd7   : > { %v3438_v11 = vpop.f32.mrf.mxu0 }
 0xfd8   : > { %v3444_v13 = vpack.c.bf16 %v3438_v11, %v3435_v9  ;;  %v10240_v9 = vld [vmem:[%s14481_s28 + $0x18] sm:$0xf] }
 0xfd9   : > { %v11160_v14 = vpop.f32.mrf.mxu0  ;;  %v3802_v10 = vsel %vm2442_vm15, %v10240_v9, 0 }
 0xfda   : > { %11182 = vmatmul.mubr.msk.bf16.vlgmr.msra.gmra.mxu0 %vm2185_vm7, %v3444_v13 }
 0xfdb   : > { %11193 = vmatprep.mubr.msk.bf16.mxu0 %vm12580_vm2, %v12578_v1 }
0x1046   : > { %v3566_v15 = vpop.f32.mrf.mxu0 }
0x1048   : > { %v11171_v16 = vpop.f32.mrf.mxu0 }
0x104a   : > { %v3569_v18 = vpop.f32.mrf.mxu0 }
0x104b   : > { %v3575_v19 = vpack.c.bf16 %v3569_v18, %v3566_v15 }
0x104c   : > { %v11172_v50 = vpop.f32.mrf.mxu0 }
0x104d   : > { %11176 = vmatmul.mubr.msk.bf16.vlgmr.msra.gmra.mxu1 %vm2185_vm7, %v3575_v19 }
0x104e   : > { %11186 = vmatpush3.bf16.xpose.msra.mxu1 %v3678_v21  ;;  %11187 = vmatprep.mubr.msk.bf16.mxu1 %vm12580_vm2, %v12578_v1 }
0x104f   : > { %11197 = vmatprep.subr.bf16.mxu1 %v12578_v1 }
0x1055   : > { %11188 = vmatmul.mubr.msk.bf16.vlgmr.msra.gmra.mxu1 %vm2185_vm7, %v3671_v22 }
0x1056   : > { %11199 = vmatprep.mubr.msk.bf16.mxu1 %vm12580_vm2, %v12578_v1  ;;  %11198 = vmatpush3.bf16.msra.mxu1 %v3802_v10 }
0x1057   : > { %11209 = vmatprep.subr.bf16.mxu1 %v12578_v1 }
0x109a   : > { %v13353_v52 = vpop.f32.mrf.mxu0 }
0x109c   : > { %v11183_v56 = vpop.f32.mrf.mxu0 }
0x109e   : > { %v13355_v24 = vpop.f32.mrf.mxu0 }
0x10a0   : > { %v11184_v26 = vpop.f32.mrf.mxu0 }
0x110d   : > { %v13357_v27 = vpop.f32.mrf.mxu1 }
0x110f   : > { %v11177_v28 = vpop.f32.mrf.mxu1 }
0x1111   : > { %v13359_v63 = vpop.f32.mrf.mxu1 }
0x1113   : > { %v11178_v29 = vpop.f32.mrf.mxu1 }
0x1115   : > { %v3714_v31 = vpop.f32.mrf.mxu1 }
0x1116   : > { %v3721_v7 = vmul.f32 0.35355338, %v3714_v31 }
0x1117   : > { %v11189_v32 = vpop.f32.mrf.mxu1 }
0x1118   : > { %v3723_v33 = vsel %vm13297_vm12, %v3721_v7, -1e+09 }
0x1119   : > { %v3717_v34 = vpop.f32.mrf.mxu1  ;;  %v3725_v36 = vsel %vm2237_vm13, %v3723_v33, -inf }
0x111a   : > { %v3722_v37 = vmul.f32 0.35355338, %v3717_v34  ;;  %3726 = vmax.xlane.f32.xlu1 %v3725_v36 }
0x111b   : > { %v11190_v38 = vpop.f32.mrf.mxu1 }
0x111c   : > { %v3724_v39 = vsel %vm13305_vm5, %v3722_v37, -1e+09 }
0x111d   : > { %v3728_v40 = vsel %vm2237_vm13, %v3724_v39, -inf }
0x111e   : > { %3729 = vmax.xlane.f32.xlu0 %v3728_v40 }
0x11a3   : > { %v3727_v41 = vpop.xlane.xlu1 %3726 }
0x11a4   : > { %v3731_v43 = vsub.f32 %v3723_v33, %v3727_v41 }
0x11a6   : > { %v3733_v46 = vmul.f32 1.442695, %v3731_v43 }
0x11a7   : > { %v3730_v47 = vpop.xlane.xlu0 %3729 }
0x11a8   : > { %12159 = vpow2.f32 %v3733_v46  ;;  %v3732_v48 = vsub.f32 %v3724_v39, %v3730_v47 }
0x11aa   : > { %v3735_v49 = vmul.f32 1.442695, %v3732_v48  ;;  %v3667_v48 = vadd.f32 %v13355_v24, %v13359_v63  ;;  %v10244_v24 = vld [vmem:[%s14481_s28 + $0x1c] sm:$0xf] }
0x11ab   : > { %v3979_v63 = vsel %vm2442_vm15, %v10244_v24, 0 }
0x11ac   : > { %12161 = vpow2.f32 %v3735_v49 }
0x11b5   : > { %v12160_v51 = vpop.eup %12159 }
0x11b6   : > { %v3737_v53 = vsel %vm2237_vm13, %v12160_v51, 0.0 }
0x11b7   : > { %3738 = vadd.xlane.f32.xlu0 %v3737_v53 }
0x11b9   : > { %v12162_v57 = vpop.eup %12161 }
0x11ba   : > { %v3740_v58 = vsel %vm2237_vm13, %v12162_v57, 0.0 }
0x11bb   : > { %3741 = vadd.xlane.f32.xlu1 %v3740_v58 }
0x11cc   : > { %3849 = vrot.lane.b32.xlu1 %v13270_v20, %s14494_s9 }
0x11cd   : > { %3748 = vrot.lane.b32.xlu0 %v13291_v55, %s14493_s8 }
0x11d0   : > { %3847 = vrot.lane.b32.xlu1 %v13257_v54, %s14494_s9 }
0x1240   : > { %v3739_v59 = vpop.xlane.xlu0 %3738 }
0x1241   : > { %12163 = vrcp.f32 %v3739_v59 }
0x1244   : > { %v3742_v60 = vpop.xlane.xlu1 %3741  ;;  %v3749_v62 = vpop.permute.xlu0 %3748 }
0x1245   : > { %12165 = vrcp.f32 %v3742_v60  ;;  %11192 = vmatpush3.bf16.msra.mxu0 %v3749_v62 }
0x1246   : > { %11203 = vmatprep.subr.bf16.mxu0 %v12578_v1 }
0x1248   : > { %v3850_v20 = vpop.permute.xlu1 %3849 }
0x1249   : > { %v3855_v8 = vsel %vm2185_vm7, %v3850_v20, 0 }
0x124c   : > { %v3848_v54 = vpop.permute.xlu1 %3847 }
0x124e   : > { %v12164_v0 = vpop.eup %12163 }
0x124f   : > { %v3745_v5 = vmul.f32 %v12164_v0, %v12160_v51 }
0x1252   : > { %v12166_v4 = vpop.eup %12165 }
0x1253   : > { %v3746_v12 = vmul.f32 %v12166_v4, %v12162_v57  ;;  %v12028_v4 = vld [vmem:[%s14482_s18 + $0x10] sm:$0xff]  }
0x1255   : > { %v3747_v6 = vpack.c.bf16 %v3746_v12, %v3745_v5 }
0x1257   : > { %11194 = vmatmul.mubr.msk.bf16.vlgmr.msra.gmra.mxu0 %vm2237_vm13, %v3747_v6 }
0x1258   : > { %11204 = vmatpush3.bf16.xpose.msra.mxu0 %v3855_v8  ;;  %11205 = vmatprep.mubr.msk.bf16.mxu0 %vm12580_vm2, %v12578_v1 }
0x1259   : > { %11215 = vmatprep.subr.bf16.mxu0 %v12578_v1 }
0x125f   : > { %11206 = vmatmul.mubr.msk.bf16.vlgmr.msra.gmra.mxu0 %vm2185_vm7, %v3848_v54 }
0x1260   : > { %11217 = vmatprep.mubr.msk.bf16.mxu0 %vm12580_vm2, %v12578_v1  ;;  %11216 = vmatpush3.bf16.msra.mxu0 %v3979_v63 }
0x1261   : > { %11229 = vmatprep.subr.bf16.mxu0 %v12578_v1 }
0x1317   : > { %v3788_v11 = vpop.f32.mrf.mxu0 }
0x1319   : > { %v11195_v13 = vpop.f32.mrf.mxu0 }
0x131a   : > { %v12029_v13 = vld [vmem:[%s14483_s0 + $0x18] sm:$0xff]  }
0x131b   : > { %v3791_v14 = vpop.f32.mrf.mxu0 }
0x131c   : > { %v3797_v15 = vpack.c.bf16 %v3791_v14, %v3788_v11  ;;  %v12030_v14 = vld [vmem:[%s14483_s0 + $0x10] sm:$0xff]  }
0x131d   : > { %v11196_v16 = vpop.f32.mrf.mxu0 }
0x131e   : > { %11200 = vmatmul.mubr.msk.bf16.vlgmr.msra.gmra.mxu1 %vm2185_vm7, %v3797_v15  ;;  %v12035_v15 = vld [vmem:[%s14484_s11 + $0x38] sm:$0xff]  }
0x131f   : > { %v3891_v17 = vpop.f32.mrf.mxu0  ;;  %11211 = vmatprep.mubr.msk.bf16.mxu1 %vm12580_vm2, %v12578_v1 }
0x1320   : > { %v3898_v18 = vmul.f32 0.35355338, %v3891_v17 }
0x1321   : > { %v11207_v19 = vpop.f32.mrf.mxu0 }
0x1322   : > { %v3900_v50 = vsel %vm13297_vm12, %v3898_v18, -1e+09  ;;  %v10247_v19 = vld [vmem:[%s14485_s16 + $0x1] ss:$0 sm:$0xff] }
0x1323   : > { %v3894_v21 = vpop.f32.mrf.mxu0  ;;  %v3902_v22 = vsel %vm2237_vm13, %v3900_v50, -inf }
0x1324   : > { %v3899_v56 = vmul.f32 0.35355338, %v3894_v21  ;;  %3903 = vmax.xlane.f32.xlu0 %v3902_v22 }
0x1325   : > { %v11208_v26 = vpop.f32.mrf.mxu0 }
0x1326   : > { %v3901_v28 = vsel %vm13305_vm5, %v3899_v56, -1e+09 }
0x1327   : > { %v3905_v29 = vsel %vm2237_vm13, %v3901_v28, -inf }
0x1328   : > { %3906 = vmax.xlane.f32.xlu1 %v3905_v29 }
0x1339   : > { %3925 = vrot.lane.b32.xlu1 %v13291_v55, %s14494_s9  ;;  %v3664_v55 = vadd.f32 %v13353_v52, %v13357_v27  ;;  %v12027_v27 = vld [vmem:[%s14482_s18 + $0x18] sm:$0xff]  }
0x13ad   : > { %v3904_v31 = vpop.xlane.xlu0 %3903 }
0x13ae   : > { %v3908_v7 = vsub.f32 %v3900_v50, %v3904_v31  ;;  %v12032_v31 = vld [vmem:[%s12641_s14 + $0x20] sm:$0xff]  }
0x13b0   : > { %v3910_v32 = vmul.f32 1.442695, %v3908_v7  ;;  %v12033_v7 = vld [vmem:[%s14470_s26 + $0x28] sm:$0xff]  }
0x13b1   : > { %v3907_v33 = vpop.xlane.xlu1 %3906 }
0x13b2   : > { %12167 = vpow2.f32 %v3910_v32  ;;  %v3909_v34 = vsub.f32 %v3901_v28, %v3907_v33  ;;  %v12031_v28 = vld [vmem:[%s12641_s14 + $0x28] sm:$0xff]   ;;  %v12034_v32 = vld [vmem:[%s14470_s26 + $0x20] sm:$0xff]   ;;  %v12036_v33 = vld [vmem:[%s14484_s11 + $0x30] sm:$0xff]  }
0x13b4   : > { %v3912_v36 = vmul.f32 1.442695, %v3909_v34  ;;  %v12037_v34 = vld [vmem:[%s14484_s11 + $0x28] sm:$0xff]  }
0x13b5   : > { %v3926_v37 = vpop.permute.xlu1 %3925 }
0x13b6   : > { %12169 = vpow2.f32 %v3912_v36  ;;  %11210 = vmatpush3.bf16.msra.mxu1 %v3926_v37  ;;  %v12038_v36 = vld [vmem:[%s14484_s11 + $0x20] sm:$0xff]  }
0x13b7   : > { %11221 = vmatprep.subr.bf16.mxu1 %v12578_v1 }
0x13bf   : > { %v12168_v38 = vpop.eup %12167 }
0x13c0   : > { %v3914_v39 = vsel %vm2237_vm13, %v12168_v38, 0.0 }
0x13c1   : > { %3915 = vadd.xlane.f32.xlu0 %v3914_v39  ;;  %v10263_v39 = vld [vmem:[%s14486_s1 + $0x1] ss:$0 sm:$0xff] }
0x13c3   : > { %v12170_v40 = vpop.eup %12169 }
0x13c4   : > { %v3917_v41 = vsel %vm2237_vm13, %v12170_v40, 0.0 }
0x13c5   : > { %3918 = vadd.xlane.f32.xlu0 %v3917_v41 }
0x13de   : > { %v3838_v43 = vpop.f32.mrf.mxu1 }
0x13df   : > { %v3845_v46 = vadd.f32 %v3838_v43, %v3664_v55 }
0x13e0   : > { %v11201_v47 = vpop.f32.mrf.mxu1 }
0x13e2   : > { %v3841_v49 = vpop.f32.mrf.mxu1 }
0x13e3   : > { %v3846_v51 = vadd.f32 %v3841_v49, %v3667_v48 }
0x13e4   : > { %v11202_v53 = vpop.f32.mrf.mxu1 }
0x13e5   : > { %v10284_v53 = vld [vmem:[%s14474_s12 + $0x2] ss:$0 sm:$0xff] }
0x144a   : > { %v3916_v57 = vpop.xlane.xlu0 %3915 }
0x144b   : > { %12171 = vrcp.f32 %v3916_v57 }
0x144e   : > { %v3919_v58 = vpop.xlane.xlu0 %3918 }
0x144f   : > { %12173 = vrcp.f32 %v3919_v58  ;;  %v12039_v58 = vld [vmem:[%s14471_s2 + $0x28] sm:$0xff]  }
0x1458   : > { %v12172_v59 = vpop.eup %12171 }
0x1459   : > { %v3922_v62 = vmul.f32 %v12172_v59, %v12168_v38 }
0x145c   : > { %v12174_v60 = vpop.eup %12173 }
0x145d   : > { %v3923_v52 = vmul.f32 %v12174_v60, %v12170_v40 }
0x145f   : > { %v3924_v0 = vpack.c.bf16 %v3923_v52, %v3922_v62  ;;  %v1955_v62 = vld [vmem:[%s13049_s22 + $0x20] sm:$0xff] }
0x1460   : > { %vm1961_vm6 = vcmp.ne.f32.partialorder %v1955_v62, 0.0 }
0x1461   : > { %11212 = vmatmul.mubr.msk.bf16.vlgmr.msra.gmra.mxu1 %vm2237_vm13, %v3924_v0 }
0x1462   : > { %11222 = vmatpush3.bf16.msra.mxu1 %v12027_v27  ;;  %11225 = vmatprep.mubr.msk.bf16.mxu1 %vm12580_vm2, %v12578_v1 }
0x1463   : > { %11223 = vmatprep.subr.bf16.mxu1 %v12578_v1 }
0x1466   : > { %11224 = vmatpush3.bf16.msra.mxu1 %v12028_v4  ;;  %v12040_v4 = vld [vmem:[%s14471_s2 + $0x20] sm:$0xff]  }
0x1467   : > { %11237 = vmatprep.subr.bf16.mxu1 %v12578_v1 }
0x1469   : > { %11226 = vmatmul.mubr.msk.bf16.vlgmr.msra.gmra.mxu1 %vm1798_vm4, %v13030_v35 }
0x146a   : > { %11245 = vmatprep.mubr.msk.bf16.mxu1 %vm12580_vm2, %v12578_v1  ;;  %11238 = vmatpush3.bf16.msra.mxu1 %v12035_v15 }
0x146b   : > { %11239 = vmatprep.subr.bf16.mxu1 %v12578_v1 }
0x146e   : > { %11240 = vmatpush3.bf16.msra.mxu1 %v12036_v33 }
0x146f   : > { %11241 = vmatprep.subr.bf16.mxu1 %v12578_v1 }
0x1472   : > { %11242 = vmatpush3.bf16.msra.mxu1 %v12037_v34 }
0x1473   : > { %11243 = vmatprep.subr.bf16.mxu1 %v12578_v1 }
0x1476   : > { %11244 = vmatpush3.bf16.msra.mxu1 %v12038_v36 }
0x1477   : > { %11265 = vmatprep.subr.bf16.mxu1 %v12578_v1 }
0x1521   : > { %v3965_v5 = vpop.f32.mrf.mxu1 }
0x1523   : > { %v11213_v12 = vpop.f32.mrf.mxu1 }
0x1525   : > { %v3968_v20 = vpop.f32.mrf.mxu1 }
0x1526   : > { %v3974_v6 = vpack.c.bf16 %v3968_v20, %v3965_v5  ;;  %v10293_v5 = vld [vmem:[%s14473_s10 + $0x2] ss:$0 sm:$0xff]  ;;  %v4252_v20 = vsel %vm1961_vm6, 1, %v12581_v45 }
0x1527   : > { %v11214_v8 = vpop.f32.mrf.mxu1 }
0x1528   : > { %11218 = vmatmul.mubr.msk.bf16.vlgmr.msra.gmra.mxu0 %vm2185_vm7, %v3974_v6  ;;  %v1956_v8 = vld [vmem:[%s13049_s22 + $0x28] sm:$0xff] }
0x1529   : > { %v4091_v54 = vpop.f32.mrf.mxu1  ;;  %11233 = vmatprep.mubr.msk.bf16.mxu0 %vm12580_vm2, %v12578_v1  ;;  %11230 = vmatpush3.bf16.msra.mxu0 %v12029_v13  ;;  %vm1962_vm8 = vcmp.ne.f32.partialorder %v1956_v8, 0.0 }
0x152a   : > { %11231 = vmatprep.subr.bf16.mxu0 %v12578_v1 }
0x152b   : > { %v11227_v9 = vpop.f32.mrf.mxu1 }
0x152d   : > { %v4094_v10 = vpop.f32.mrf.mxu1  ;;  %11232 = vmatpush3.bf16.msra.mxu0 %v12030_v14  ;;  %v4253_v14 = vsel %vm1962_vm8, 1, %v12581_v45 }
0x152e   : > { %11249 = vmatprep.subr.bf16.mxu0 %v12578_v1 }
0x152f   : > { %v11228_v11 = vpop.f32.mrf.mxu1 }
0x15e8   : > { %v4015_v16 = vpop.f32.mrf.mxu0 }
0x15e9   : > { %v4022_v18 = vadd.f32 %v4015_v16, %v3845_v46 }
0x15ea   : > { %v11219_v17 = vpop.f32.mrf.mxu0 }
0x15eb   : > { %v4032_v56 = vadd.f32 %v10247_v19, %v4022_v18  ;;  %v10273_v17 = vld [vmem:[%s14488_s5 + $0x1] ss:$0 sm:$0xff] }
0x15ec   : > { %v4018_v50 = vpop.f32.mrf.mxu0 }
0x15ed   : > { %v4023_v21 = vadd.f32 %v4018_v50, %v3846_v51 }
0x15ee   : > { %v11220_v22 = vpop.f32.mrf.mxu0 }
0x15ef   : > { %v4033_v26 = vadd.f32 %v10247_v19, %v4023_v21 }
0x15f1   : > { %v4039_v29 = vpack.c.bf16 %v4033_v26, %v4032_v56 }
0x15f3   : > { %11234 = vmatmul.mubr.msk.bf16.vlgmr.msra.gmra.mxu0 %vm1798_vm4, %v4039_v29 }
0x15f4   : > { %11250 = vmatpush3.bf16.msra.mxu0 %v12031_v28  ;;  %11253 = vmatprep.mubr.msk.bf16.mxu0 %vm12580_vm2, %v12578_v1  ;;  %v10302_v28 = vld [vmem:[%s14475_s27 + $0x2] ss:$0 sm:$0xff] }
0x15f5   : > { %11251 = vmatprep.subr.bf16.mxu0 %v12578_v1 }
0x15f8   : > { %11252 = vmatpush3.bf16.msra.mxu0 %v12032_v31 }
0x15f9   : > { %11257 = vmatprep.subr.bf16.mxu0 %v12578_v1 }
0x15fb   : > { %11254 = vmatmul.mubr.msk.bf16.vlgmr.msra.gmra.mxu0 %vm1798_vm4, %v13039_v44 }
0x15fc   : > { %11258 = vmatpush3.bf16.msra.mxu0 %v12033_v7  ;;  %11261 = vmatprep.mubr.msk.bf16.mxu0 %vm12580_vm2, %v12578_v1 }
0x15fd   : > { %11259 = vmatprep.subr.bf16.mxu0 %v12578_v1 }
0x1600   : > { %11260 = vmatpush3.bf16.msra.mxu0 %v12034_v32 }
0x1601   : > { %11273 = vmatprep.subr.bf16.mxu0 %v12578_v1 }
0x1603   : > { %11262 = vmatmul.mubr.msk.bf16.vlgmr.msra.gmra.mxu0 %vm1798_vm4, %v13030_v35 }
0x1604   : > { %11275 = vmatprep.mubr.msk.bf16.mxu0 %vm12580_vm2, %v12578_v1 }
0x16b3   : > { %v4147_v37 = vpop.f32.mrf.mxu0 }
0x16b4   : > { %v4148_v38 = vadd.f32 %v4147_v37, %v4091_v54 }
0x16b5   : > { %v11235_v40 = vpop.f32.mrf.mxu0 }
0x16b6   : > { %v4162_v55 = vadd.f32 %v10263_v39, %v4148_v38 }
0x16b7   : > { %v4150_v41 = vpop.f32.mrf.mxu0 }
0x16b8   : > { %v4151_v43 = vadd.f32 %v4150_v41, %v4094_v10  ;;  %v4164_v49 = vmax.f32 %v4162_v55, 0.0 }
0x16b9   : > { %v11236_v46 = vpop.f32.mrf.mxu0 }
0x16ba   : > { %v4163_v47 = vadd.f32 %v10263_v39, %v4151_v43 }
0x16bb   : > { %v4327_v48 = vpop.f32.mrf.mxu0 }
0x16bc   : > { %v4165_v51 = vmax.f32 %v4163_v47, 0.0  ;;  %v4328_v52 = vadd.f32 %v10284_v53, %v4327_v48 }
0x16bd   : > { %v11255_v57 = vpop.f32.mrf.mxu0 }
0x16be   : > { %v4175_v59 = vpack.c.bf16 %v4165_v51, %v4164_v49 }
0x16bf   : > { %v4330_v60 = vpop.f32.mrf.mxu0 }
0x16c0   : > { %v4331_v27 = vadd.f32 %v10284_v53, %v4330_v60  ;;  %11246 = vmatmul.mubr.msk.bf16.vlgmr.msra.gmra.mxu1 %vm3066_vm0, %v4175_v59 }
0x16c1   : > { %v11256_v0 = vpop.f32.mrf.mxu0  ;;  %11266 = vmatpush3.bf16.msra.mxu1 %v12039_v58  ;;  %11269 = vmatprep.mubr.msk.bf16.mxu1 %vm12580_vm2, %v12578_v1 }
0x16c2   : > { %v13462_v24 = vpack.c.bf16 %v4331_v27, %v4328_v52  ;;  %11267 = vmatprep.subr.bf16.mxu1 %v12578_v1 }
0x16c3   : > { %v4393_v63 = vpop.f32.mrf.mxu0 }
0x16c4   : > { %4591 = vrot.lane.b32.xlu1 %v13462_v24, %s14487_s3  ;;  %v4394_v54 = vadd.f32 %v10293_v5, %v4393_v63 }
0x16c5   : > { %v11263_v12 = vpop.f32.mrf.mxu0  ;;  %11268 = vmatpush3.bf16.msra.mxu1 %v12040_v4 }
0x16c6   : > { %11279 = vmatprep.subr.bf16.mxu1 %v12578_v1 }
0x16c7   : > { %v4396_v6 = vpop.f32.mrf.mxu0 }
0x16c8   : > { %v4397_v9 = vadd.f32 %v10293_v5, %v4396_v6  ;;  %11270 = vmatmul.mubr.msk.bf16.vlgmr.msra.gmra.mxu1 %vm1798_vm4, %v13030_v35  ;;  %4255 = vperm.xlu1 %12003, %v4252_v20  }
0x16c9   : > { %v11264_v10 = vpop.f32.mrf.mxu0  ;;  %11281 = vmatprep.mubr.msk.bf16.mxu1 %vm12580_vm2, %v12578_v1 }
0x16ca   : > { %v13475_v11 = vpack.c.bf16 %v4397_v9, %v4394_v54 }
0x16cc   : > { %4594 = vrot.lane.b32.xlu0 %v13475_v11, %s14487_s3  ;;  %v4472_v13 = vsel %vm2185_vm7, %v13475_v11, 0 }
0x16cd   : > { %11274 = vmatpush3.bf16.xpose.msra.mxu0 %v4472_v13 }
0x16ce   : > { %11285 = vmatprep.subr.bf16.mxu0 %v12578_v1 }
0x16d0   : > { %4258 = vperm.xlu0 %12004, %v4253_v14  }
0x16d4   : > { %11276 = vmatmul.mubr.msk.bf16.vlgmr.msra.gmra.mxu0 %vm2185_vm7, %v13462_v24 }
0x16d5   : > { %11287 = vmatprep.mubr.msk.bf16.mxu0 %vm12580_vm2, %v12578_v1 }
0x1736   : > { %v4592_v16 = vpop.permute.xlu1 %4591 }
0x173e   : > { %v4595_v35 = vpop.permute.xlu0 %4594 }
0x173f   : > { %v4600_v15 = vsel %vm2185_vm7, %v4595_v35, 0 }
0x1740   : > { %11286 = vmatpush3.bf16.xpose.msra.mxu0 %v4600_v15 }
0x1741   : > { %11297 = vmatprep.subr.bf16.mxu0 %v12578_v1 }
0x1743   : > { %v4256_v36 = vpop.permute.xlu1 %4255 }
0x1744   : > { %vm4260_vm10 = vcmp.eq.s32.totalorder %v4256_v36, 1 }
0x1745   : > { %vm13502_vm6 = vmand %vm4260_vm10, %vm1980_vm9 }
0x1747   : > { %11288 = vmatmul.mubr.msk.bf16.vlgmr.msra.gmra.mxu0 %vm2185_vm7, %v4592_v16 }
0x1748   : > { %11299 = vmatprep.mubr.msk.bf16.mxu0 %vm12580_vm2, %v12578_v1 }
0x174b   : > { %v4259_v37 = vpop.permute.xlu0 %4258 }
0x174c   : > { %vm4261_vm8 = vcmp.eq.s32.totalorder %v4259_v37, 1 }
0x174d   : > { %vm13511_vm3 = vmand %vm4261_vm8, %vm1980_vm9  ;;  %vm9277_vm9 = vcmask 1042432  }
0x1780   : > { %v4245_v45 = vpop.f32.mrf.mxu1 }
0x1781   : > { %v4246_v50 = vadd.f32 %v10273_v17, %v4245_v45 }
0x1782   : > { %v11247_v18 = vpop.f32.mrf.mxu1 }
0x1784   : > { %v4248_v19 = vpop.f32.mrf.mxu1 }
0x1785   : > { %v4249_v21 = vadd.f32 %v10273_v17, %v4248_v19 }
0x1786   : > { %v11248_v22 = vpop.f32.mrf.mxu1 }
0x1787   : > { %v13493_v56 = vpack.c.bf16 %v4249_v21, %v4246_v50 }
0x1788   : > { %v4459_v26 = vpop.f32.mrf.mxu1 }
0x1789   : > { %v4460_v7 = vadd.f32 %v10302_v28, %v4459_v26 }
0x178a   : > { %v11271_v29 = vpop.f32.mrf.mxu1 }
0x178c   : > { %v4462_v31 = vpop.f32.mrf.mxu1 }
0x178d   : > { %v4463_v32 = vadd.f32 %v10302_v28, %v4462_v31 }
0x178e   : > { %v11272_v33 = vpop.f32.mrf.mxu1 }
0x178f   : > { %v13496_v34 = vpack.c.bf16 %v4463_v32, %v4460_v7 }
0x1791   : > { %11280 = vmatpush3.bf16.msra.mxu1 %v13496_v34 }
0x1792   : > { %11291 = vmatprep.subr.bf16.mxu1 %v12578_v1 }
0x1794   : > { %v4508_v38 = vpop.f32.mrf.mxu0 }
0x1795   : > { %v4515_v39 = vmul.f32 0.35355338, %v4508_v38 }
0x1796   : > { %v11277_v41 = vpop.f32.mrf.mxu0 }
0x1797   : > { %v4517_v55 = vsel %vm13502_vm6, %v4515_v39, -1e+09  ;;  %v10308_v41 = vld [vmem:[%s14481_s28 + $0x20] sm:$0xf] }
0x1798   : > { %v4511_v43 = vpop.f32.mrf.mxu0  ;;  %v4519_v46 = vsel %vm2237_vm13, %v4517_v55, -inf }
0x1799   : > { %v4516_v47 = vmul.f32 0.35355338, %v4511_v43  ;;  %4520 = vmax.xlane.f32.xlu1 %v4519_v46 }
0x179a   : > { %v11278_v49 = vpop.f32.mrf.mxu0 }
0x179b   : > { %v4518_v51 = vsel %vm13511_vm3, %v4516_v47, -1e+09  ;;  %v4772_v47 = vsel %vm2442_vm15, %v10308_v41, 0  ;;  %v10311_v49 = vld [vmem:[%s14481_s28 + $0x24] sm:$0xf] }
0x179c   : > { %v4522_v53 = vsel %vm2237_vm13, %v4518_v51, -inf }
0x179d   : > { %4523 = vmax.xlane.f32.xlu0 %v4522_v53 }
0x1807   : > { %v4636_v57 = vpop.f32.mrf.mxu0 }
0x1808   : > { %v4643_v58 = vmul.f32 0.35355338, %v4636_v57 }
0x1809   : > { %v11289_v59 = vpop.f32.mrf.mxu0 }
0x180a   : > { %v4645_v60 = vsel %vm13502_vm6, %v4643_v58, -1e+09 }
0x180b   : > { %v4639_v62 = vpop.f32.mrf.mxu0  ;;  %v4647_v23 = vsel %vm2237_vm13, %v4645_v60, -inf }
0x180c   : > { %v4644_v52 = vmul.f32 0.35355338, %v4639_v62  ;;  %4648 = vmax.xlane.f32.xlu0 %v4647_v23 }
0x180d   : > { %v11290_v27 = vpop.f32.mrf.mxu0 }
0x180e   : > { %v4646_v0 = vsel %vm13511_vm3, %v4644_v52, -1e+09 }
0x180f   : > { %v4650_v4 = vsel %vm2237_vm13, %v4646_v0, -inf }
0x1810   : > { %4651 = vmax.xlane.f32.xlu1 %v4650_v4 }
0x1822   : > { %v4521_v63 = vpop.xlane.xlu1 %4520 }
0x1823   : > { %v4525_v5 = vsub.f32 %v4517_v55, %v4521_v63 }
0x1825   : > { %v4527_v12 = vmul.f32 1.442695, %v4525_v5 }
0x1826   : > { %v4524_v20 = vpop.xlane.xlu0 %4523 }
0x1827   : > { %12175 = vpow2.f32 %v4527_v12  ;;  %v4526_v6 = vsub.f32 %v4518_v51, %v4524_v20  ;;  %v4725_v51 = vsel %vm2442_vm15, %v10311_v49, 0 }
0x1828   : > { %11298 = vmatpush3.bf16.msra.mxu0 %v4725_v51 }
0x1829   : > { %v4529_v8 = vmul.f32 1.442695, %v4526_v6  ;;  %11309 = vmatprep.subr.bf16.mxu0 %v12578_v1 }
0x182b   : > { %12177 = vpow2.f32 %v4529_v8 }
0x1834   : > { %v12176_v54 = vpop.eup %12175 }
0x1835   : > { %v4531_v9 = vsel %vm2237_vm13, %v12176_v54, 0.0 }
0x1836   : > { %4532 = vadd.xlane.f32.xlu0 %v4531_v9 }
0x1838   : > { %v12178_v10 = vpop.eup %12177 }
0x1839   : > { %v4534_v13 = vsel %vm2237_vm13, %v12178_v10, 0.0 }
0x183a   : > { %4535 = vadd.xlane.f32.xlu1 %v4534_v13 }
0x1895   : > { %v4649_v14 = vpop.xlane.xlu0 %4648 }
0x1896   : > { %v4653_v35 = vsub.f32 %v4645_v60, %v4649_v14 }
0x1898   : > { %v4655_v15 = vmul.f32 1.442695, %v4653_v35 }
0x1899   : > { %v4652_v16 = vpop.xlane.xlu1 %4651 }
0x189a   : > { %12179 = vpow2.f32 %v4655_v15  ;;  %v4654_v45 = vsub.f32 %v4646_v0, %v4652_v16 }
0x189c   : > { %v4657_v17 = vmul.f32 1.442695, %v4654_v45 }
0x189e   : > { %12181 = vpow2.f32 %v4657_v17 }
0x18a7   : > { %v12180_v18 = vpop.eup %12179 }
0x18a8   : > { %v4659_v19 = vsel %vm2237_vm13, %v12180_v18, 0.0 }
0x18a9   : > { %4660 = vadd.xlane.f32.xlu0 %v4659_v19 }
0x18ab   : > { %v12182_v50 = vpop.eup %12181 }
0x18ac   : > { %v4662_v21 = vsel %vm2237_vm13, %v12182_v50, 0.0 }
0x18ad   : > { %4663 = vadd.xlane.f32.xlu1 %v4662_v21 }
0x18be   : > { %4817 = vrot.lane.b32.xlu1 %v13475_v11, %s14493_s8 }
0x18bf   : > { %4671 = vrot.lane.b32.xlu0 %v13496_v34, %s14487_s3  ;;  %v4533_v22 = vpop.xlane.xlu0 %4532 }
0x18c0   : > { %12183 = vrcp.f32 %v4533_v22 }
0x18c2   : > { %4815 = vrot.lane.b32.xlu1 %v13462_v24, %s14493_s8 }
0x18c3   : > { %v4536_v26 = vpop.xlane.xlu1 %4535 }
0x18c4   : > { %12185 = vrcp.f32 %v4536_v26 }
0x18cd   : > { %v12184_v28 = vpop.eup %12183 }
0x18ce   : > { %v4539_v31 = vmul.f32 %v12184_v28, %v12176_v54 }
0x18d1   : > { %v12186_v29 = vpop.eup %12185 }
0x18d2   : > { %v4540_v7 = vmul.f32 %v12186_v29, %v12178_v10 }
0x18d4   : > { %v4541_v32 = vpack.c.bf16 %v4540_v7, %v4539_v31 }
0x18d6   : > { %11282 = vmatmul.mubr.msk.bf16.vlgmr.msra.gmra.mxu1 %vm2237_vm13, %v4541_v32 }
0x18d7   : > { %11293 = vmatprep.mubr.msk.bf16.mxu1 %vm12580_vm2, %v12578_v1 }
0x1932   : > { %v4661_v33 = vpop.xlane.xlu0 %4660 }
0x1933   : > { %12187 = vrcp.f32 %v4661_v33 }
0x1936   : > { %v4672_v36 = vpop.permute.xlu0 %4671  ;;  %v4664_v37 = vpop.xlane.xlu1 %4663 }
0x1937   : > { %12189 = vrcp.f32 %v4664_v37  ;;  %11292 = vmatpush3.bf16.msra.mxu1 %v4672_v36 }
0x1938   : > { %11303 = vmatprep.subr.bf16.mxu1 %v12578_v1 }
0x193a   : > { %v4818_v52 = vpop.permute.xlu1 %4817 }
0x193b   : > { %v4823_v63 = vsel %vm2185_vm7, %v4818_v52, 0 }
0x193e   : > { %v4816_v5 = vpop.permute.xlu1 %4815 }
0x1940   : > { %v12188_v38 = vpop.eup %12187 }
0x1941   : > { %v4667_v55 = vmul.f32 %v12188_v38, %v12180_v18 }
0x1944   : > { %v12190_v39 = vpop.eup %12189 }
0x1945   : > { %v4668_v43 = vmul.f32 %v12190_v39, %v12182_v50 }
0x1947   : > { %v4669_v46 = vpack.c.bf16 %v4668_v43, %v4667_v55 }
0x1949   : > { %11294 = vmatmul.mubr.msk.bf16.vlgmr.msra.gmra.mxu1 %vm2237_vm13, %v4669_v46 }
0x194a   : > { %11304 = vmatpush3.bf16.msra.mxu1 %v4772_v47  ;;  %11305 = vmatprep.mubr.msk.bf16.mxu1 %vm12580_vm2, %v12578_v1 }
0x194b   : > { %11315 = vmatprep.subr.bf16.mxu1 %v12578_v1 }
0x1996   : > { %v4580_v53 = vpop.f32.mrf.mxu1 }
0x1998   : > { %v11283_v57 = vpop.f32.mrf.mxu1 }
0x199a   : > { %v4583_v58 = vpop.f32.mrf.mxu1 }
0x199b   : > { %v4589_v59 = vpack.c.bf16 %v4583_v58, %v4580_v53  ;;  %v10316_v53 = vld [vmem:[%s14481_s28 + $0x28] sm:$0xf] }
0x199c   : > { %v11284_v60 = vpop.f32.mrf.mxu1  ;;  %v4947_v57 = vsel %vm2442_vm15, %v10316_v53, 0 }
0x199d   : > { %11306 = vmatmul.mubr.msk.bf16.vlgmr.msra.gmra.mxu1 %vm2185_vm7, %v4589_v59 }
0x199e   : > { %11317 = vmatprep.mubr.msk.bf16.mxu1 %vm12580_vm2, %v12578_v1 }
0x1a09   : > { %v4711_v62 = vpop.f32.mrf.mxu1 }
0x1a0b   : > { %v11295_v23 = vpop.f32.mrf.mxu1 }
0x1a0d   : > { %v4714_v27 = vpop.f32.mrf.mxu1 }
0x1a0e   : > { %v4720_v0 = vpack.c.bf16 %v4714_v27, %v4711_v62 }
0x1a0f   : > { %v11296_v4 = vpop.f32.mrf.mxu1 }
0x1a10   : > { %11300 = vmatmul.mubr.msk.bf16.vlgmr.msra.gmra.mxu0 %vm2185_vm7, %v4720_v0 }
0x1a11   : > { %11310 = vmatpush3.bf16.xpose.msra.mxu0 %v4823_v63  ;;  %11311 = vmatprep.mubr.msk.bf16.mxu0 %vm12580_vm2, %v12578_v1 }
0x1a12   : > { %11321 = vmatprep.subr.bf16.mxu0 %v12578_v1 }
0x1a18   : > { %11312 = vmatmul.mubr.msk.bf16.vlgmr.msra.gmra.mxu0 %vm2185_vm7, %v4816_v5 }
0x1a19   : > { %11323 = vmatprep.mubr.msk.bf16.mxu0 %vm12580_vm2, %v12578_v1  ;;  %11322 = vmatpush3.bf16.msra.mxu0 %v4947_v57 }
0x1a1a   : > { %11333 = vmatprep.subr.bf16.mxu0 %v12578_v1 }
0x1a5d   : > { %v13558_v12 = vpop.f32.mrf.mxu1 }
0x1a5f   : > { %v11307_v20 = vpop.f32.mrf.mxu1 }
0x1a61   : > { %v13560_v6 = vpop.f32.mrf.mxu1 }
0x1a63   : > { %v11308_v8 = vpop.f32.mrf.mxu1 }
0x1ad0   : > { %v13562_v54 = vpop.f32.mrf.mxu0 }
0x1ad2   : > { %v11301_v9 = vpop.f32.mrf.mxu0 }
0x1ad4   : > { %v13564_v10 = vpop.f32.mrf.mxu0 }
0x1ad6   : > { %v11302_v13 = vpop.f32.mrf.mxu0 }
0x1ad8   : > { %v4859_v14 = vpop.f32.mrf.mxu0 }
0x1ad9   : > { %v4866_v35 = vmul.f32 0.35355338, %v4859_v14 }
0x1ada   : > { %v11313_v15 = vpop.f32.mrf.mxu0 }
0x1adb   : > { %v4868_v16 = vsel %vm13502_vm6, %v4866_v35, -1e+09 }
0x1adc   : > { %v4862_v45 = vpop.f32.mrf.mxu0  ;;  %v4870_v17 = vsel %vm2237_vm13, %v4868_v16, -inf }
0x1add   : > { %v4867_v18 = vmul.f32 0.35355338, %v4862_v45  ;;  %4871 = vmax.xlane.f32.xlu0 %v4870_v17 }
0x1ade   : > { %v11314_v19 = vpop.f32.mrf.mxu0 }
0x1adf   : > { %v4869_v50 = vsel %vm13511_vm3, %v4867_v18, -1e+09 }
0x1ae0   : > { %v4873_v21 = vsel %vm2237_vm13, %v4869_v50, -inf }
0x1ae1   : > { %4874 = vmax.xlane.f32.xlu1 %v4873_v21 }
0x1af2   : > { %4893 = vrot.lane.b32.xlu1 %v13496_v34, %s14493_s8 }
0x1af6   : > { %4992 = vrot.lane.b32.xlu1 %v13462_v24, %s14494_s9 }
0x1b66   : > { %v4872_v22 = vpop.xlane.xlu0 %4871 }
0x1b67   : > { %v4876_v26 = vsub.f32 %v4868_v16, %v4872_v22  ;;  %v4809_v22 = vadd.f32 %v13558_v12, %v13562_v54 }
0x1b69   : > { %v4878_v28 = vmul.f32 1.442695, %v4876_v26 }
0x1b6a   : > { %v4875_v29 = vpop.xlane.xlu1 %4874 }
0x1b6b   : > { %12191 = vpow2.f32 %v4878_v28  ;;  %v4877_v31 = vsub.f32 %v4869_v50, %v4875_v29 }
0x1b6d   : > { %v4880_v7 = vmul.f32 1.442695, %v4877_v31  ;;  %v4812_v31 = vadd.f32 %v13560_v6, %v13564_v10  ;;  %v12042_v6 = vld [vmem:[%s14482_s18 + $0x20] sm:$0xff]   ;;  %v10320_v10 = vld [vmem:[%s14481_s28 + $0x2c] sm:$0xf] }
0x1b6e   : > { %v4894_v32 = vpop.permute.xlu1 %4893 }
0x1b6f   : > { %12193 = vpow2.f32 %v4880_v7  ;;  %11316 = vmatpush3.bf16.msra.mxu1 %v4894_v32 }
0x1b70   : > { %11327 = vmatprep.subr.bf16.mxu1 %v12578_v1 }
0x1b78   : > { %v12192_v33 = vpop.eup %12191 }
0x1b79   : > { %v4882_v36 = vsel %vm2237_vm13, %v12192_v33, 0.0 }
0x1b7a   : > { %4883 = vadd.xlane.f32.xlu0 %v4882_v36 }
0x1b7c   : > { %v12194_v37 = vpop.eup %12193 }
0x1b7d   : > { %v4885_v38 = vsel %vm2237_vm13, %v12194_v37, 0.0 }
0x1b7e   : > { %4886 = vadd.xlane.f32.xlu0 %v4885_v38 }
0x1b94   : > { %4994 = vrot.lane.b32.xlu0 %v13475_v11, %s14494_s9  ;;  %v4993_v11 = vpop.permute.xlu1 %4992 }
0x1c03   : > { %v4884_v24 = vpop.xlane.xlu0 %4883 }
0x1c04   : > { %12195 = vrcp.f32 %v4884_v24 }
0x1c07   : > { %v4887_v39 = vpop.xlane.xlu0 %4886 }
0x1c08   : > { %12197 = vrcp.f32 %v4887_v39  ;;  %v12041_v39 = vld [vmem:[%s14482_s18 + $0x28] sm:$0xff]  }
0x1c0b   : > { %v4995_v47 = vpop.permute.xlu0 %4994 }
0x1c0c   : > { %v5000_v51 = vsel %vm2185_vm7, %v4995_v47, 0 }
0x1c11   : > { %v12196_v41 = vpop.eup %12195 }
0x1c12   : > { %v4890_v43 = vmul.f32 %v12196_v41, %v12192_v33 }
0x1c15   : > { %v12198_v55 = vpop.eup %12197 }
0x1c16   : > { %v4891_v46 = vmul.f32 %v12198_v55, %v12194_v37  ;;  %v5124_v55 = vsel %vm2442_vm15, %v10320_v10, 0 }
0x1c18   : > { %v4892_v49 = vpack.c.bf16 %v4891_v46, %v4890_v43 }
0x1c1a   : > { %11318 = vmatmul.mubr.msk.bf16.vlgmr.msra.gmra.mxu1 %vm2237_vm13, %v4892_v49 }
0x1c1b   : > { %11328 = vmatpush3.bf16.xpose.msra.mxu1 %v5000_v51  ;;  %11329 = vmatprep.mubr.msk.bf16.mxu1 %vm12580_vm2, %v12578_v1 }
0x1c1c   : > { %11339 = vmatprep.subr.bf16.mxu1 %v12578_v1 }
0x1c22   : > { %11330 = vmatmul.mubr.msk.bf16.vlgmr.msra.gmra.mxu1 %vm2185_vm7, %v4993_v11 }
0x1c23   : > { %11341 = vmatprep.mubr.msk.bf16.mxu1 %vm12580_vm2, %v12578_v1  ;;  %11340 = vmatpush3.bf16.msra.mxu1 %v5124_v55  ;;  %v10360_v55 = vld [vmem:[%s14474_s12 + $0x3] ss:$0 sm:$0xff] }
0x1c24   : > { %11353 = vmatprep.subr.bf16.mxu1 %v12578_v1 }
0x1cda   : > { %v4933_v58 = vpop.f32.mrf.mxu1 }
0x1cdc   : > { %v11319_v59 = vpop.f32.mrf.mxu1 }
0x1cdd   : > { %v12044_v59 = vld [vmem:[%s14483_s0 + $0x20] sm:$0xff]  }
0x1cde   : > { %v4936_v60 = vpop.f32.mrf.mxu1 }
0x1cdf   : > { %v4942_v62 = vpack.c.bf16 %v4936_v60, %v4933_v58  ;;  %v12043_v58 = vld [vmem:[%s14483_s0 + $0x28] sm:$0xff]   ;;  %v12049_v60 = vld [vmem:[%s14484_s11 + $0x58] sm:$0xff]  }
0x1ce0   : > { %v11320_v23 = vpop.f32.mrf.mxu1 }
0x1ce1   : > { %11324 = vmatmul.mubr.msk.bf16.vlgmr.msra.gmra.mxu0 %vm2185_vm7, %v4942_v62 }
0x1ce2   : > { %v5036_v52 = vpop.f32.mrf.mxu1  ;;  %11335 = vmatprep.mubr.msk.bf16.mxu0 %vm12580_vm2, %v12578_v1 }
0x1ce3   : > { %v5043_v27 = vmul.f32 0.35355338, %v5036_v52 }
0x1ce4   : > { %v11331_v0 = vpop.f32.mrf.mxu1 }
0x1ce5   : > { %v5045_v4 = vsel %vm13502_vm6, %v5043_v27, -1e+09  ;;  %v10323_v27 = vld [vmem:[%s14485_s16 + $0x2] ss:$0 sm:$0xff] }
0x1ce6   : > { %v5039_v63 = vpop.f32.mrf.mxu1  ;;  %v5047_v5 = vsel %vm2237_vm13, %v5045_v4, -inf }
0x1ce7   : > { %v5044_v20 = vmul.f32 0.35355338, %v5039_v63  ;;  %5048 = vmax.xlane.f32.xlu1 %v5047_v5 }
0x1ce8   : > { %v11332_v8 = vpop.f32.mrf.mxu1 }
0x1ce9   : > { %v5046_v9 = vsel %vm13511_vm3, %v5044_v20, -1e+09  ;;  %v12045_v8 = vld [vmem:[%s12641_s14 + $0x38] sm:$0xff]  }
0x1cea   : > { %v5050_v13 = vsel %vm2237_vm13, %v5046_v9, -inf }
0x1ceb   : > { %5051 = vmax.xlane.f32.xlu0 %v5050_v13  ;;  %v12046_v13 = vld [vmem:[%s12641_s14 + $0x30] sm:$0xff]  }
0x1d70   : > { %v5049_v14 = vpop.xlane.xlu1 %5048 }
0x1d71   : > { %v5053_v35 = vsub.f32 %v5045_v4, %v5049_v14  ;;  %v12047_v14 = vld [vmem:[%s14470_s26 + $0x38] sm:$0xff]  }
0x1d73   : > { %v5055_v15 = vmul.f32 1.442695, %v5053_v35  ;;  %v12048_v35 = vld [vmem:[%s14470_s26 + $0x30] sm:$0xff]  }
0x1d74   : > { %v5052_v16 = vpop.xlane.xlu0 %5051 }
0x1d75   : > { %12199 = vpow2.f32 %v5055_v15  ;;  %v5054_v45 = vsub.f32 %v5046_v9, %v5052_v16  ;;  %v12050_v15 = vld [vmem:[%s14484_s11 + $0x50] sm:$0xff]   ;;  %v12051_v16 = vld [vmem:[%s14484_s11 + $0x48] sm:$0xff]  }
0x1d77   : > { %v5057_v17 = vmul.f32 1.442695, %v5054_v45  ;;  %v12052_v45 = vld [vmem:[%s14484_s11 + $0x40] sm:$0xff]  }
0x1d79   : > { %12201 = vpow2.f32 %v5057_v17 }
0x1d82   : > { %v12200_v18 = vpop.eup %12199 }
0x1d83   : > { %v5059_v19 = vsel %vm2237_vm13, %v12200_v18, 0.0 }
0x1d84   : > { %5060 = vadd.xlane.f32.xlu0 %v5059_v19  ;;  %v10339_v19 = vld [vmem:[%s14486_s1 + $0x2] ss:$0 sm:$0xff] }
0x1d86   : > { %v12202_v50 = vpop.eup %12201 }
0x1d87   : > { %v5062_v21 = vsel %vm2237_vm13, %v12202_v50, 0.0 }
0x1d88   : > { %5063 = vadd.xlane.f32.xlu1 %v5062_v21 }
0x1d9a   : > { %5070 = vrot.lane.b32.xlu0 %v13496_v34, %s14494_s9 }
0x1da1   : > { %v4983_v26 = vpop.f32.mrf.mxu0 }
0x1da2   : > { %v4990_v28 = vadd.f32 %v4983_v26, %v4809_v22 }
0x1da3   : > { %v11325_v29 = vpop.f32.mrf.mxu0 }
0x1da5   : > { %v4986_v7 = vpop.f32.mrf.mxu0 }
0x1da6   : > { %v4991_v32 = vadd.f32 %v4986_v7, %v4812_v31 }
0x1da7   : > { %v11326_v33 = vpop.f32.mrf.mxu0 }
0x1e0d   : > { %v5061_v36 = vpop.xlane.xlu0 %5060 }
0x1e0e   : > { %12203 = vrcp.f32 %v5061_v36  ;;  %v12053_v36 = vld [vmem:[%s14471_s2 + $0x38] sm:$0xff]  }
0x1e11   : > { %v5064_v37 = vpop.xlane.xlu1 %5063  ;;  %v5071_v38 = vpop.permute.xlu0 %5070 }
0x1e12   : > { %12205 = vrcp.f32 %v5064_v37  ;;  %11334 = vmatpush3.bf16.msra.mxu0 %v5071_v38 }
0x1e13   : > { %11345 = vmatprep.subr.bf16.mxu0 %v12578_v1 }
0x1e1b   : > { %v12204_v34 = vpop.eup %12203 }
0x1e1c   : > { %v5067_v54 = vmul.f32 %v12204_v34, %v12200_v18 }
0x1e1f   : > { %v12206_v12 = vpop.eup %12205 }
0x1e20   : > { %v5068_v24 = vmul.f32 %v12206_v12, %v12202_v50  ;;  %v12054_v12 = vld [vmem:[%s14471_s2 + $0x30] sm:$0xff]  }
0x1e22   : > { %v5069_v41 = vpack.c.bf16 %v5068_v24, %v5067_v54  ;;  %v10369_v24 = vld [vmem:[%s14473_s10 + $0x3] ss:$0 sm:$0xff] }
0x1e24   : > { %11336 = vmatmul.mubr.msk.bf16.vlgmr.msra.gmra.mxu0 %vm2237_vm13, %v5069_v41 }
0x1e25   : > { %11346 = vmatpush3.bf16.msra.mxu0 %v12041_v39  ;;  %11349 = vmatprep.mubr.msk.bf16.mxu0 %vm12580_vm2, %v12578_v1 }
0x1e26   : > { %11347 = vmatprep.subr.bf16.mxu0 %v12578_v1 }
0x1e29   : > { %11348 = vmatpush3.bf16.msra.mxu0 %v12042_v6 }
0x1e2a   : > { %11361 = vmatprep.subr.bf16.mxu0 %v12578_v1 }
0x1e2c   : > { %11350 = vmatmul.mubr.msk.bf16.vlgmr.msra.gmra.mxu0 %vm1798_vm4, %v13039_v44 }
0x1e2d   : > { %11369 = vmatprep.mubr.msk.bf16.mxu0 %vm12580_vm2, %v12578_v1  ;;  %11362 = vmatpush3.bf16.msra.mxu0 %v12049_v60 }
0x1e2e   : > { %11363 = vmatprep.subr.bf16.mxu0 %v12578_v1 }
0x1e31   : > { %11364 = vmatpush3.bf16.msra.mxu0 %v12050_v15 }
0x1e32   : > { %11365 = vmatprep.subr.bf16.mxu0 %v12578_v1 }
0x1e35   : > { %11366 = vmatpush3.bf16.msra.mxu0 %v12051_v16 }
0x1e36   : > { %11367 = vmatprep.subr.bf16.mxu0 %v12578_v1 }
0x1e39   : > { %11368 = vmatpush3.bf16.msra.mxu0 %v12052_v45 }
0x1e3a   : > { %11389 = vmatprep.subr.bf16.mxu0 %v12578_v1 }
0x1ee4   : > { %v5110_v43 = vpop.f32.mrf.mxu0 }
0x1ee6   : > { %v11337_v46 = vpop.f32.mrf.mxu0 }
0x1ee8   : > { %v5113_v47 = vpop.f32.mrf.mxu0 }
0x1ee9   : > { %v5119_v49 = vpack.c.bf16 %v5113_v47, %v5110_v43 }
0x1eea   : > { %v11338_v51 = vpop.f32.mrf.mxu0 }
0x1eeb   : > { %11342 = vmatmul.mubr.msk.bf16.vlgmr.msra.gmra.mxu1 %vm2185_vm7, %v5119_v49 }
0x1eec   : > { %v5236_v44 = vpop.f32.mrf.mxu0  ;;  %11357 = vmatprep.mubr.msk.bf16.mxu1 %vm12580_vm2, %v12578_v1  ;;  %11354 = vmatpush3.bf16.msra.mxu1 %v12043_v58 }
0x1eed   : > { %11355 = vmatprep.subr.bf16.mxu1 %v12578_v1 }
0x1eee   : > { %v11351_v11 = vpop.f32.mrf.mxu0 }
0x1ef0   : > { %v5239_v53 = vpop.f32.mrf.mxu0  ;;  %11356 = vmatpush3.bf16.msra.mxu1 %v12044_v59  ;;  %v10349_v59 = vld [vmem:[%s14488_s5 + $0x2] ss:$0 sm:$0xff] }
0x1ef1   : > { %11373 = vmatprep.subr.bf16.mxu1 %v12578_v1 }
0x1ef2   : > { %v11352_v57 = vpop.f32.mrf.mxu0 }
0x1fab   : > { %v5160_v62 = vpop.f32.mrf.mxu1 }
0x1fac   : > { %v5167_v52 = vadd.f32 %v5160_v62, %v4990_v28 }
0x1fad   : > { %v11343_v23 = vpop.f32.mrf.mxu1 }
0x1fae   : > { %v5177_v5 = vadd.f32 %v10323_v27, %v5167_v52 }
0x1faf   : > { %v5163_v0 = vpop.f32.mrf.mxu1 }
0x1fb0   : > { %v5168_v4 = vadd.f32 %v5163_v0, %v4991_v32 }
0x1fb1   : > { %v11344_v63 = vpop.f32.mrf.mxu1 }
0x1fb2   : > { %v5178_v20 = vadd.f32 %v10323_v27, %v5168_v4  ;;  %v10378_v63 = vld [vmem:[%s14475_s27 + $0x3] ss:$0 sm:$0xff] }
0x1fb4   : > { %v5184_v9 = vpack.c.bf16 %v5178_v20, %v5177_v5 }
0x1fb6   : > { %11358 = vmatmul.mubr.msk.bf16.vlgmr.msra.gmra.mxu1 %vm1798_vm4, %v5184_v9 }
0x1fb7   : > { %11374 = vmatpush3.bf16.msra.mxu1 %v12045_v8  ;;  %11377 = vmatprep.mubr.msk.bf16.mxu1 %vm12580_vm2, %v12578_v1 }
0x1fb8   : > { %11375 = vmatprep.subr.bf16.mxu1 %v12578_v1 }
0x1fbb   : > { %11376 = vmatpush3.bf16.msra.mxu1 %v12046_v13 }
0x1fbc   : > { %11381 = vmatprep.subr.bf16.mxu1 %v12578_v1 }
0x1fbe   : > { %11378 = vmatmul.mubr.msk.bf16.vlgmr.msra.gmra.mxu1 %vm1798_vm4, %v13288_v42 }
0x1fbf   : > { %11382 = vmatpush3.bf16.msra.mxu1 %v12047_v14  ;;  %11385 = vmatprep.mubr.msk.bf16.mxu1 %vm12580_vm2, %v12578_v1 }
0x1fc0   : > { %11383 = vmatprep.subr.bf16.mxu1 %v12578_v1 }
0x1fc3   : > { %11384 = vmatpush3.bf16.msra.mxu1 %v12048_v35 }
0x1fc4   : > { %11397 = vmatprep.subr.bf16.mxu1 %v12578_v1 }
0x1fc6   : > { %11386 = vmatmul.mubr.msk.bf16.vlgmr.msra.gmra.mxu1 %vm1798_vm4, %v13493_v56 }
0x1fc7   : > { %11399 = vmatprep.mubr.msk.bf16.mxu1 %vm12580_vm2, %v12578_v1 }
0x2076   : > { %v5292_v17 = vpop.f32.mrf.mxu1 }
0x2077   : > { %v5293_v18 = vadd.f32 %v5292_v17, %v5236_v44 }
0x2078   : > { %v11359_v50 = vpop.f32.mrf.mxu1 }
0x2079   : > { %v5307_v22 = vadd.f32 %v10339_v19, %v5293_v18 }
0x207a   : > { %v5295_v21 = vpop.f32.mrf.mxu1 }
0x207b   : > { %v5296_v26 = vadd.f32 %v5295_v21, %v5239_v53  ;;  %v5309_v7 = vmax.f32 %v5307_v22, 0.0 }
0x207c   : > { %v11360_v28 = vpop.f32.mrf.mxu1 }
0x207d   : > { %v5308_v29 = vadd.f32 %v10339_v19, %v5296_v26 }
0x207e   : > { %v5460_v31 = vpop.f32.mrf.mxu1 }
0x207f   : > { %v5310_v32 = vmax.f32 %v5308_v29, 0.0  ;;  %v5461_v49 = vadd.f32 %v10360_v55, %v5460_v31 }
0x2080   : > { %v11379_v33 = vpop.f32.mrf.mxu1 }
0x2081   : > { %v5320_v37 = vpack.c.bf16 %v5310_v32, %v5309_v7 }
0x2082   : > { %v5463_v38 = vpop.f32.mrf.mxu1 }
0x2083   : > { %11370 = vmatmul.mubr.msk.bf16.vlgmr.msra.gmra.mxu0 %vm3066_vm0, %v5320_v37  ;;  %v5464_v46 = vadd.f32 %v10360_v55, %v5463_v38 }
0x2084   : > { %v11380_v34 = vpop.f32.mrf.mxu1  ;;  %11390 = vmatpush3.bf16.msra.mxu0 %v12053_v36  ;;  %11393 = vmatprep.mubr.msk.bf16.mxu0 %vm12580_vm2, %v12578_v1 }
0x2085   : > { %11391 = vmatprep.subr.bf16.mxu0 %v12578_v1  ;;  %v13679_v44 = vpack.c.bf16 %v5464_v46, %v5461_v49 }
0x2086   : > { %v5530_v54 = vpop.f32.mrf.mxu1 }
0x2087   : > { %v5531_v6 = vadd.f32 %v10369_v24, %v5530_v54 }
0x2088   : > { %v11387_v39 = vpop.f32.mrf.mxu1  ;;  %11392 = vmatpush3.bf16.msra.mxu0 %v12054_v12 }
0x2089   : > { %11403 = vmatprep.subr.bf16.mxu0 %v12578_v1 }
0x208a   : > { %v5533_v41 = vpop.f32.mrf.mxu1 }
0x208b   : > { %v5534_v10 = vadd.f32 %v10369_v24, %v5533_v41  ;;  %11394 = vmatmul.mubr.msk.bf16.vlgmr.msra.gmra.mxu0 %vm1798_vm4, %v13493_v56 }
0x208c   : > { %v11388_v43 = vpop.f32.mrf.mxu1  ;;  %11405 = vmatprep.mubr.msk.bf16.mxu0 %vm12580_vm2, %v12578_v1 }
0x208d   : > { %v13673_v47 = vpack.c.bf16 %v5534_v10, %v5531_v6 }
0x208f   : > { %5731 = vrot.lane.b32.xlu1 %v13673_v47, %s14487_s3  ;;  %v5609_v51 = vsel %vm2185_vm7, %v13673_v47, 0 }
0x2090   : > { %11398 = vmatpush3.bf16.xpose.msra.mxu1 %v5609_v51 }
0x2091   : > { %11409 = vmatprep.subr.bf16.mxu1 %v12578_v1 }
0x2093   : > { %5728 = vrot.lane.b32.xlu1 %v13679_v44, %s14487_s3 }
0x2097   : > { %11400 = vmatmul.mubr.msk.bf16.vlgmr.msra.gmra.mxu1 %vm2185_vm7, %v13679_v44 }
0x2098   : > { %11411 = vmatprep.mubr.msk.bf16.mxu1 %vm12580_vm2, %v12578_v1 }
0x2101   : > { %v5732_v11 = vpop.permute.xlu1 %5731 }
0x2102   : > { %v5737_v53 = vsel %vm2185_vm7, %v5732_v11, 0 }
0x2103   : > { %11410 = vmatpush3.bf16.xpose.msra.mxu1 %v5737_v53 }
0x2104   : > { %11421 = vmatprep.subr.bf16.mxu1 %v12578_v1 }
0x2105   : > { %v5729_v57 = vpop.permute.xlu1 %5728 }
0x210a   : > { %11412 = vmatmul.mubr.msk.bf16.vlgmr.msra.gmra.mxu1 %vm2185_vm7, %v5729_v57 }
0x210b   : > { %11423 = vmatprep.mubr.msk.bf16.mxu1 %vm12580_vm2, %v12578_v1 }
0x2143   : > { %v5390_v58 = vpop.f32.mrf.mxu0 }
0x2144   : > { %v5391_v23 = vadd.f32 %v10349_v59, %v5390_v58 }
0x2145   : > { %v11371_v60 = vpop.f32.mrf.mxu0 }
0x2147   : > { %v5393_v62 = vpop.f32.mrf.mxu0 }
0x2148   : > { %v5394_v52 = vadd.f32 %v10349_v59, %v5393_v62 }
0x2149   : > { %v11372_v27 = vpop.f32.mrf.mxu0 }
0x214a   : > { %v13694_v0 = vpack.c.bf16 %v5394_v52, %v5391_v23 }
0x214b   : > { %v5596_v4 = vpop.f32.mrf.mxu0 }
0x214c   : > { %v5597_v8 = vadd.f32 %v10378_v63, %v5596_v4 }
0x214d   : > { %v11395_v5 = vpop.f32.mrf.mxu0 }
0x214f   : > { %v5599_v20 = vpop.f32.mrf.mxu0 }
0x2150   : > { %v5600_v9 = vadd.f32 %v10378_v63, %v5599_v20 }
0x2151   : > { %v11396_v13 = vpop.f32.mrf.mxu0 }
0x2152   : > { %v13697_v14 = vpack.c.bf16 %v5600_v9, %v5597_v8 }
0x2154   : > { %11404 = vmatpush3.bf16.msra.mxu0 %v13697_v14 }
0x2155   : > { %11415 = vmatprep.subr.bf16.mxu0 %v12578_v1 }
0x2157   : > { %v5645_v35 = vpop.f32.mrf.mxu1 }
0x2158   : > { %v5652_v15 = vmul.f32 0.35355338, %v5645_v35 }
0x2159   : > { %v11401_v16 = vpop.f32.mrf.mxu1 }
0x215a   : > { %v5654_v45 = vsel %vm13092_vm11, %v5652_v15, -1e+09  ;;  %v10384_v16 = vld [vmem:[%s14481_s28 + $0x30] sm:$0xf] }
0x215b   : > { %v5648_v17 = vpop.f32.mrf.mxu1  ;;  %v5656_v18 = vsel %vm2237_vm13, %v5654_v45, -inf }
0x215c   : > { %v5653_v19 = vmul.f32 0.35355338, %v5648_v17  ;;  %5657 = vmax.xlane.f32.xlu0 %v5656_v18 }
0x215d   : > { %v11402_v50 = vpop.f32.mrf.mxu1 }
0x215e   : > { %v5655_v21 = vsel %vm13100_vm14, %v5653_v19, -1e+09  ;;  %v5909_v19 = vsel %vm2442_vm15, %v10384_v16, 0  ;;  %v10387_v50 = vld [vmem:[%s14481_s28 + $0x34] sm:$0xf] }
0x215f   : > { %v5659_v22 = vsel %vm2237_vm13, %v5655_v21, -inf }
0x2160   : > { %5660 = vmax.xlane.f32.xlu1 %v5659_v22 }
0x21ca   : > { %v5773_v26 = vpop.f32.mrf.mxu1 }
0x21cb   : > { %v5780_v28 = vmul.f32 0.35355338, %v5773_v26 }
0x21cc   : > { %v11413_v29 = vpop.f32.mrf.mxu1 }
0x21cd   : > { %v5782_v31 = vsel %vm13092_vm11, %v5780_v28, -1e+09 }
0x21ce   : > { %v5776_v7 = vpop.f32.mrf.mxu1  ;;  %v5784_v32 = vsel %vm2237_vm13, %v5782_v31, -inf }
0x21cf   : > { %v5781_v33 = vmul.f32 0.35355338, %v5776_v7  ;;  %5785 = vmax.xlane.f32.xlu0 %v5784_v32 }
0x21d0   : > { %v11414_v36 = vpop.f32.mrf.mxu1 }
0x21d1   : > { %v5783_v37 = vsel %vm13100_vm14, %v5781_v33, -1e+09 }
0x21d2   : > { %v5787_v38 = vsel %vm2237_vm13, %v5783_v37, -inf }
0x21d3   : > { %5788 = vmax.xlane.f32.xlu0 %v5787_v38 }
0x21e5   : > { %v5658_v34 = vpop.xlane.xlu0 %5657 }
0x21e6   : > { %v5662_v12 = vsub.f32 %v5654_v45, %v5658_v34 }
0x21e8   : > { %v5664_v54 = vmul.f32 1.442695, %v5662_v12 }
0x21e9   : > { %v5661_v24 = vpop.xlane.xlu1 %5660 }
0x21ea   : > { %12207 = vpow2.f32 %v5664_v54  ;;  %v5663_v39 = vsub.f32 %v5655_v21, %v5661_v24  ;;  %v5862_v21 = vsel %vm2442_vm15, %v10387_v50, 0 }
0x21eb   : > { %11422 = vmatpush3.bf16.msra.mxu1 %v5862_v21 }
0x21ec   : > { %v5666_v41 = vmul.f32 1.442695, %v5663_v39  ;;  %11433 = vmatprep.subr.bf16.mxu1 %v12578_v1 }
0x21ee   : > { %12209 = vpow2.f32 %v5666_v41 }
0x21f7   : > { %v12208_v6 = vpop.eup %12207 }
0x21f8   : > { %v5668_v10 = vsel %vm2237_vm13, %v12208_v6, 0.0 }
0x21f9   : > { %5669 = vadd.xlane.f32.xlu1 %v5668_v10 }
0x21fb   : > { %v12210_v55 = vpop.eup %12209 }
0x21fc   : > { %v5671_v43 = vsel %vm2237_vm13, %v12210_v55, 0.0 }
0x21fd   : > { %5672 = vadd.xlane.f32.xlu0 %v5671_v43 }
0x2258   : > { %v5786_v46 = vpop.xlane.xlu0 %5785 }
0x2259   : > { %v5790_v49 = vsub.f32 %v5782_v31, %v5786_v46 }
0x225b   : > { %v5792_v51 = vmul.f32 1.442695, %v5790_v49 }
0x225c   : > { %v5789_v11 = vpop.xlane.xlu0 %5788 }
0x225d   : > { %12211 = vpow2.f32 %v5792_v51  ;;  %v5791_v53 = vsub.f32 %v5783_v37, %v5789_v11 }
0x225f   : > { %v5794_v57 = vmul.f32 1.442695, %v5791_v53 }
0x2261   : > { %12213 = vpow2.f32 %v5794_v57 }
0x226a   : > { %v12212_v58 = vpop.eup %12211 }
0x226b   : > { %v5796_v59 = vsel %vm2237_vm13, %v12212_v58, 0.0 }
0x226c   : > { %5797 = vadd.xlane.f32.xlu1 %v5796_v59 }
0x226e   : > { %v12214_v60 = vpop.eup %12213 }
0x226f   : > { %v5799_v62 = vsel %vm2237_vm13, %v12214_v60, 0.0 }
0x2270   : > { %5800 = vadd.xlane.f32.xlu0 %v5799_v62 }
0x227d   : > { %5808 = vrot.lane.b32.xlu1 %v13697_v14, %s14487_s3 }
0x2281   : > { %5952 = vrot.lane.b32.xlu1 %v13679_v44, %s14493_s8 }
0x2282   : > { %v5670_v23 = vpop.xlane.xlu1 %5669 }
0x2283   : > { %12215 = vrcp.f32 %v5670_v23 }
0x2286   : > { %5954 = vrot.lane.b32.xlu0 %v13673_v47, %s14493_s8  ;;  %v5673_v52 = vpop.xlane.xlu0 %5672 }
0x2287   : > { %12217 = vrcp.f32 %v5673_v52 }
0x2290   : > { %v12216_v27 = vpop.eup %12215 }
0x2291   : > { %v5676_v63 = vmul.f32 %v12216_v27, %v12208_v6 }
0x2294   : > { %v12218_v4 = vpop.eup %12217 }
0x2295   : > { %v5677_v5 = vmul.f32 %v12218_v4, %v12210_v55 }
0x2297   : > { %v5678_v20 = vpack.c.bf16 %v5677_v5, %v5676_v63 }
0x2299   : > { %11406 = vmatmul.mubr.msk.bf16.vlgmr.msra.gmra.mxu0 %vm2237_vm13, %v5678_v20 }
0x229a   : > { %11417 = vmatprep.mubr.msk.bf16.mxu0 %vm12580_vm2, %v12578_v1 }
0x22f5   : > { %v5798_v8 = vpop.xlane.xlu1 %5797 }
0x22f6   : > { %12219 = vrcp.f32 %v5798_v8 }
0x22f9   : > { %v5801_v9 = vpop.xlane.xlu0 %5800  ;;  %v5809_v13 = vpop.permute.xlu1 %5808 }
0x22fa   : > { %12221 = vrcp.f32 %v5801_v9  ;;  %11416 = vmatpush3.bf16.msra.mxu0 %v5809_v13 }
0x22fb   : > { %11427 = vmatprep.subr.bf16.mxu0 %v12578_v1 }
0x22fd   : > { %v5955_v33 = vpop.permute.xlu0 %5954  ;;  %v5953_v12 = vpop.permute.xlu1 %5952 }
0x22fe   : > { %v5960_v34 = vsel %vm2185_vm7, %v5955_v33, 0 }
0x2303   : > { %v12220_v35 = vpop.eup %12219 }
0x2304   : > { %v5804_v45 = vmul.f32 %v12220_v35, %v12212_v58 }
0x2307   : > { %v12222_v15 = vpop.eup %12221 }
0x2308   : > { %v5805_v17 = vmul.f32 %v12222_v15, %v12214_v60 }
0x230a   : > { %v5806_v18 = vpack.c.bf16 %v5805_v17, %v5804_v45 }
0x230c   : > { %11418 = vmatmul.mubr.msk.bf16.vlgmr.msra.gmra.mxu0 %vm2237_vm13, %v5806_v18 }
0x230d   : > { %11428 = vmatpush3.bf16.msra.mxu0 %v5909_v19  ;;  %11429 = vmatprep.mubr.msk.bf16.mxu0 %vm12580_vm2, %v12578_v1 }
0x230e   : > { %11439 = vmatprep.subr.bf16.mxu0 %v12578_v1 }
0x2359   : > { %v5717_v22 = vpop.f32.mrf.mxu0 }
0x235b   : > { %v11407_v26 = vpop.f32.mrf.mxu0 }
0x235d   : > { %v5720_v28 = vpop.f32.mrf.mxu0 }
0x235e   : > { %v5726_v29 = vpack.c.bf16 %v5720_v28, %v5717_v22  ;;  %v10392_v22 = vld [vmem:[%s14481_s28 + $0x38] sm:$0xf] }
0x235f   : > { %v11408_v31 = vpop.f32.mrf.mxu0  ;;  %v6084_v26 = vsel %vm2442_vm15, %v10392_v22, 0  ;;  %v12057_v22 = vld [vmem:[%s14483_s0 + $0x38] sm:$0xff]  }
0x2360   : > { %11430 = vmatmul.mubr.msk.bf16.vlgmr.msra.gmra.mxu0 %vm2185_vm7, %v5726_v29 }
0x2361   : > { %11441 = vmatprep.mubr.msk.bf16.mxu0 %vm12580_vm2, %v12578_v1 }
0x23cc   : > { %v5848_v7 = vpop.f32.mrf.mxu0 }
0x23ce   : > { %v11419_v32 = vpop.f32.mrf.mxu0 }
0x23d0   : > { %v5851_v36 = vpop.f32.mrf.mxu0 }
0x23d1   : > { %v5857_v37 = vpack.c.bf16 %v5851_v36, %v5848_v7 }
0x23d2   : > { %v11420_v38 = vpop.f32.mrf.mxu0 }
0x23d3   : > { %11424 = vmatmul.mubr.msk.bf16.vlgmr.msra.gmra.mxu1 %vm2185_vm7, %v5857_v37 }
0x23d4   : > { %11434 = vmatpush3.bf16.xpose.msra.mxu1 %v5960_v34  ;;  %11435 = vmatprep.mubr.msk.bf16.mxu1 %vm12580_vm2, %v12578_v1 }
0x23d5   : > { %11445 = vmatprep.subr.bf16.mxu1 %v12578_v1 }
0x23db   : > { %11436 = vmatmul.mubr.msk.bf16.vlgmr.msra.gmra.mxu1 %vm2185_vm7, %v5953_v12 }
0x23dc   : > { %11447 = vmatprep.mubr.msk.bf16.mxu1 %vm12580_vm2, %v12578_v1  ;;  %11446 = vmatpush3.bf16.msra.mxu1 %v6084_v26  ;;  %v12058_v26 = vld [vmem:[%s14483_s0 + $0x30] sm:$0xff]  }
0x23dd   : > { %11457 = vmatprep.subr.bf16.mxu1 %v12578_v1 }
0x2420   : > { %v13747_v54 = vpop.f32.mrf.mxu0 }
0x2422   : > { %v11431_v24 = vpop.f32.mrf.mxu0 }
0x2424   : > { %v13749_v39 = vpop.f32.mrf.mxu0 }
0x2426   : > { %v11432_v41 = vpop.f32.mrf.mxu0 }
0x2493   : > { %v13751_v6 = vpop.f32.mrf.mxu1 }
0x2495   : > { %v11425_v10 = vpop.f32.mrf.mxu1 }
0x2497   : > { %v13753_v55 = vpop.f32.mrf.mxu1 }
0x2499   : > { %v11426_v43 = vpop.f32.mrf.mxu1 }
0x249b   : > { %v5996_v46 = vpop.f32.mrf.mxu1 }
0x249c   : > { %v6003_v49 = vmul.f32 0.35355338, %v5996_v46 }
0x249d   : > { %v11437_v51 = vpop.f32.mrf.mxu1 }
0x249e   : > { %v6005_v11 = vsel %vm13092_vm11, %v6003_v49, -1e+09 }
0x249f   : > { %v5999_v53 = vpop.f32.mrf.mxu1  ;;  %v6007_v57 = vsel %vm2237_vm13, %v6005_v11, -inf }
0x24a0   : > { %v6004_v58 = vmul.f32 0.35355338, %v5999_v53  ;;  %6008 = vmax.xlane.f32.xlu1 %v6007_v57 }
0x24a1   : > { %v11438_v59 = vpop.f32.mrf.mxu1 }
0x24a2   : > { %v6006_v60 = vsel %vm13100_vm14, %v6004_v58, -1e+09 }
0x24a3   : > { %v6010_v62 = vsel %vm2237_vm13, %v6006_v60, -inf }
0x24a4   : > { %6011 = vmax.xlane.f32.xlu0 %v6010_v62 }
0x2529   : > { %v6009_v23 = vpop.xlane.xlu1 %6008 }
0x252a   : > { %v6013_v52 = vsub.f32 %v6005_v11, %v6009_v23 }
0x252c   : > { %v6015_v27 = vmul.f32 1.442695, %v6013_v52 }
0x252d   : > { %v6012_v4 = vpop.xlane.xlu0 %6011 }
0x252e   : > { %12223 = vpow2.f32 %v6015_v27  ;;  %v6014_v63 = vsub.f32 %v6006_v60, %v6012_v4  ;;  %v5949_v27 = vadd.f32 %v13749_v39, %v13753_v55  ;;  %v10396_v39 = vld [vmem:[%s14481_s28 + $0x3c] sm:$0xf] }
0x252f   : > { %v6261_v55 = vsel %vm2442_vm15, %v10396_v39, 0 }
0x2530   : > { %v6017_v5 = vmul.f32 1.442695, %v6014_v63 }
0x2532   : > { %12225 = vpow2.f32 %v6017_v5 }
0x253b   : > { %v12224_v20 = vpop.eup %12223 }
0x253c   : > { %v6019_v8 = vsel %vm2237_vm13, %v12224_v20, 0.0 }
0x253d   : > { %6020 = vadd.xlane.f32.xlu0 %v6019_v8 }
0x253f   : > { %v12226_v9 = vpop.eup %12225 }
0x2540   : > { %v6022_v13 = vsel %vm2237_vm13, %v12226_v9, 0.0 }
0x2541   : > { %6023 = vadd.xlane.f32.xlu1 %v6022_v13 }
0x2552   : > { %6131 = vrot.lane.b32.xlu1 %v13673_v47, %s14494_s9 }
0x2553   : > { %6030 = vrot.lane.b32.xlu0 %v13697_v14, %s14493_s8 }
0x2556   : > { %6129 = vrot.lane.b32.xlu1 %v13679_v44, %s14494_s9 }
0x25c6   : > { %v6021_v35 = vpop.xlane.xlu0 %6020 }
0x25c7   : > { %12227 = vrcp.f32 %v6021_v35 }
0x25ca   : > { %v6024_v15 = vpop.xlane.xlu1 %6023  ;;  %v6031_v16 = vpop.permute.xlu0 %6030 }
0x25cb   : > { %12229 = vrcp.f32 %v6024_v15  ;;  %11440 = vmatpush3.bf16.msra.mxu0 %v6031_v16  ;;  %v12056_v16 = vld [vmem:[%s14482_s18 + $0x30] sm:$0xff]  }
0x25cc   : > { %11451 = vmatprep.subr.bf16.mxu0 %v12578_v1 }
0x25ce   : > { %v6132_v47 = vpop.permute.xlu1 %6131 }
0x25cf   : > { %v6137_v21 = vsel %vm2185_vm7, %v6132_v47, 0 }
0x25d2   : > { %v6130_v44 = vpop.permute.xlu1 %6129 }
0x25d4   : > { %v12228_v45 = vpop.eup %12227 }
0x25d5   : > { %v6027_v18 = vmul.f32 %v12228_v45, %v12224_v20 }
0x25d8   : > { %v12230_v17 = vpop.eup %12229 }
0x25d9   : > { %v6028_v19 = vmul.f32 %v12230_v17, %v12226_v9 }
0x25db   : > { %v6029_v50 = vpack.c.bf16 %v6028_v19, %v6027_v18 }
0x25dd   : > { %11442 = vmatmul.mubr.msk.bf16.vlgmr.msra.gmra.mxu0 %vm2237_vm13, %v6029_v50 }
0x25de   : > { %11452 = vmatpush3.bf16.xpose.msra.mxu0 %v6137_v21  ;;  %11453 = vmatprep.mubr.msk.bf16.mxu0 %vm12580_vm2, %v12578_v1 }
0x25df   : > { %11463 = vmatprep.subr.bf16.mxu0 %v12578_v1 }
0x25e5   : > { %11454 = vmatmul.mubr.msk.bf16.vlgmr.msra.gmra.mxu0 %vm2185_vm7, %v6130_v44 }
0x25e6   : > { %11465 = vmatprep.mubr.msk.bf16.mxu0 %vm12580_vm2, %v12578_v1  ;;  %11464 = vmatpush3.bf16.msra.mxu0 %v6261_v55 }
0x25e7   : > { %11477 = vmatprep.subr.bf16.mxu0 %v12578_v1 }
0x269d   : > { %v6070_v28 = vpop.f32.mrf.mxu0 }
0x269f   : > { %v11443_v29 = vpop.f32.mrf.mxu0 }
0x26a1   : > { %v6073_v31 = vpop.f32.mrf.mxu0 }
0x26a2   : > { %v6079_v7 = vpack.c.bf16 %v6073_v31, %v6070_v28  ;;  %v12063_v28 = vld [vmem:[%s14484_s11 + $0x78] sm:$0xff]  }
0x26a3   : > { %v11444_v32 = vpop.f32.mrf.mxu0 }
0x26a4   : > { %11448 = vmatmul.mubr.msk.bf16.vlgmr.msra.gmra.mxu1 %vm2185_vm7, %v6079_v7  ;;  %v10399_v32 = vld [vmem:[%s14485_s16 + $0x3] ss:$0 sm:$0xff] }
0x26a5   : > { %v6173_v33 = vpop.f32.mrf.mxu0  ;;  %11459 = vmatprep.mubr.msk.bf16.mxu1 %vm12580_vm2, %v12578_v1 }
0x26a6   : > { %v6180_v36 = vmul.f32 0.35355338, %v6173_v33 }
0x26a7   : > { %v11455_v37 = vpop.f32.mrf.mxu0 }
0x26a8   : > { %v6182_v38 = vsel %vm13092_vm11, %v6180_v36, -1e+09  ;;  %vm9634_vm11 = vcmask 1045504  }
0x26a9   : > { %v6176_v34 = vpop.f32.mrf.mxu0  ;;  %v6184_v12 = vsel %vm2237_vm13, %v6182_v38, -inf }
0x26aa   : > { %v6181_v24 = vmul.f32 0.35355338, %v6176_v34  ;;  %6185 = vmax.xlane.f32.xlu0 %v6184_v12  ;;  %v12059_v12 = vld [vmem:[%s12641_s14 + $0x48] sm:$0xff]  }
0x26ab   : > { %v11456_v41 = vpop.f32.mrf.mxu0 }
0x26ac   : > { %v6183_v10 = vsel %vm13100_vm14, %v6181_v24, -1e+09  ;;  %v12060_v41 = vld [vmem:[%s12641_s14 + $0x40] sm:$0xff]  }
0x26ad   : > { %v6187_v43 = vsel %vm2237_vm13, %v6183_v10, -inf }
0x26ae   : > { %6188 = vmax.xlane.f32.xlu1 %v6187_v43  ;;  %v12062_v43 = vld [vmem:[%s14470_s26 + $0x40] sm:$0xff]  }
0x26bf   : > { %6207 = vrot.lane.b32.xlu1 %v13697_v14, %s14494_s9  ;;  %v5946_v14 = vadd.f32 %v13747_v54, %v13751_v6  ;;  %v12055_v6 = vld [vmem:[%s14482_s18 + $0x38] sm:$0xff]  }
0x2733   : > { %v6186_v46 = vpop.xlane.xlu0 %6185 }
0x2734   : > { %v6190_v49 = vsub.f32 %v6182_v38, %v6186_v46  ;;  %v12064_v46 = vld [vmem:[%s14484_s11 + $0x70] sm:$0xff]  }
0x2736   : > { %v6192_v51 = vmul.f32 1.442695, %v6190_v49  ;;  %v12065_v49 = vld [vmem:[%s14484_s11 + $0x68] sm:$0xff]  }
0x2737   : > { %v6189_v25 = vpop.xlane.xlu1 %6188 }
0x2738   : > { %12231 = vpow2.f32 %v6192_v51  ;;  %v6191_v11 = vsub.f32 %v6183_v10, %v6189_v25  ;;  %v12061_v10 = vld [vmem:[%s14470_s26 + $0x48] sm:$0xff]   ;;  %v12066_v51 = vld [vmem:[%s14484_s11 + $0x60] sm:$0xff]  }
0x273a   : > { %v6194_v53 = vmul.f32 1.442695, %v6191_v11 }
0x273b   : > { %v6208_v57 = vpop.permute.xlu1 %6207 }
0x273c   : > { %12233 = vpow2.f32 %v6194_v53  ;;  %11458 = vmatpush3.bf16.msra.mxu1 %v6208_v57  ;;  %v10415_v53 = vld [vmem:[%s14486_s1 + $0x3] ss:$0 sm:$0xff] }
0x273d   : > { %11469 = vmatprep.subr.bf16.mxu1 %v12578_v1 }
0x2745   : > { %v12232_v30 = vpop.eup %12231 }
0x2746   : > { %v6196_v58 = vsel %vm2237_vm13, %v12232_v30, 0.0 }
0x2747   : > { %6197 = vadd.xlane.f32.xlu0 %v6196_v58 }
0x2749   : > { %v12234_v59 = vpop.eup %12233 }
0x274a   : > { %v6199_v60 = vsel %vm2237_vm13, %v12234_v59, 0.0 }
0x274b   : > { %6200 = vadd.xlane.f32.xlu0 %v6199_v60 }
0x2764   : > { %v6120_v62 = vpop.f32.mrf.mxu1 }
0x2765   : > { %v6127_v23 = vadd.f32 %v6120_v62, %v5946_v14 }
0x2766   : > { %v11449_v52 = vpop.f32.mrf.mxu1 }
0x2768   : > { %v6123_v4 = vpop.f32.mrf.mxu1 }
0x2769   : > { %v6128_v63 = vadd.f32 %v6123_v4, %v5949_v27  ;;  %v10436_v27 = vld [vmem:[%s14474_s12 + $0x4] ss:$0 sm:$0xff] }
0x276a   : > { %v11450_v5 = vpop.f32.mrf.mxu1 }
0x27d0   : > { %v6198_v20 = vpop.xlane.xlu0 %6197 }
0x27d1   : > { %12235 = vrcp.f32 %v6198_v20 }
0x27d4   : > { %v6201_v8 = vpop.xlane.xlu0 %6200 }
0x27d5   : > { %12237 = vrcp.f32 %v6201_v8 }
0x27de   : > { %v12236_v9 = vpop.eup %12235 }
0x27df   : > { %v6204_v35 = vmul.f32 %v12236_v9, %v12232_v30 }
0x27e2   : > { %v12238_v13 = vpop.eup %12237 }
0x27e3   : > { %v6205_v54 = vmul.f32 %v12238_v13, %v12234_v59 }
0x27e5   : > { %v6206_v15 = vpack.c.bf16 %v6205_v54, %v6204_v35  ;;  %v12068_v35 = vld [vmem:[%s14471_s2 + $0x40] sm:$0xff]  }
0x27e7   : > { %11460 = vmatmul.mubr.msk.bf16.vlgmr.msra.gmra.mxu1 %vm2237_vm13, %v6206_v15  ;;  %v10445_v15 = vld [vmem:[%s14473_s10 + $0x4] ss:$0 sm:$0xff] }
0x27e8   : > { %11470 = vmatpush3.bf16.msra.mxu1 %v12055_v6  ;;  %11473 = vmatprep.mubr.msk.bf16.mxu1 %vm12580_vm2, %v12578_v1 }
0x27e9   : > { %11471 = vmatprep.subr.bf16.mxu1 %v12578_v1 }
0x27ec   : > { %11472 = vmatpush3.bf16.msra.mxu1 %v12056_v16 }
0x27ed   : > { %11485 = vmatprep.subr.bf16.mxu1 %v12578_v1 }
0x27ef   : > { %11474 = vmatmul.mubr.msk.bf16.vlgmr.msra.gmra.mxu1 %vm1798_vm4, %v13288_v42 }
0x27f0   : > { %11493 = vmatprep.mubr.msk.bf16.mxu1 %vm12580_vm2, %v12578_v1  ;;  %11486 = vmatpush3.bf16.msra.mxu1 %v12063_v28 }
0x27f1   : > { %11487 = vmatprep.subr.bf16.mxu1 %v12578_v1 }
0x27f4   : > { %11488 = vmatpush3.bf16.msra.mxu1 %v12064_v46 }
0x27f5   : > { %11489 = vmatprep.subr.bf16.mxu1 %v12578_v1 }
0x27f8   : > { %11490 = vmatpush3.bf16.msra.mxu1 %v12065_v49 }
0x27f9   : > { %11491 = vmatprep.subr.bf16.mxu1 %v12578_v1 }
0x27fc   : > { %11492 = vmatpush3.bf16.msra.mxu1 %v12066_v51 }
0x27fd   : > { %11513 = vmatprep.subr.bf16.mxu1 %v12578_v1 }
0x28a7   : > { %v6247_v45 = vpop.f32.mrf.mxu1 }
0x28a9   : > { %v11461_v17 = vpop.f32.mrf.mxu1 }
0x28ab   : > { %v6250_v18 = vpop.f32.mrf.mxu1 }
0x28ac   : > { %v6256_v19 = vpack.c.bf16 %v6250_v18, %v6247_v45 }
0x28ad   : > { %v11462_v47 = vpop.f32.mrf.mxu1 }
0x28ae   : > { %11466 = vmatmul.mubr.msk.bf16.vlgmr.msra.gmra.mxu0 %vm2185_vm7, %v6256_v19 }
0x28af   : > { %v6373_v42 = vpop.f32.mrf.mxu1  ;;  %11481 = vmatprep.mubr.msk.bf16.mxu0 %vm12580_vm2, %v12578_v1  ;;  %11478 = vmatpush3.bf16.msra.mxu0 %v12057_v22 }
0x28b0   : > { %11479 = vmatprep.subr.bf16.mxu0 %v12578_v1 }
0x28b1   : > { %v11475_v50 = vpop.f32.mrf.mxu1 }
0x28b3   : > { %v6376_v21 = vpop.f32.mrf.mxu1  ;;  %11480 = vmatpush3.bf16.msra.mxu0 %v12058_v26 }
0x28b4   : > { %11497 = vmatprep.subr.bf16.mxu0 %v12578_v1 }
0x28b5   : > { %v11476_v44 = vpop.f32.mrf.mxu1 }
0x296e   : > { %v6297_v29 = vpop.f32.mrf.mxu0 }
0x296f   : > { %v6304_v7 = vadd.f32 %v6297_v29, %v6127_v23  ;;  %v10454_v29 = vld [vmem:[%s14475_s27 + $0x4] ss:$0 sm:$0xff] }
0x2970   : > { %v11467_v31 = vpop.f32.mrf.mxu0 }
0x2971   : > { %v6314_v38 = vadd.f32 %v10399_v32, %v6304_v7 }
0x2972   : > { %v6300_v33 = vpop.f32.mrf.mxu0 }
0x2973   : > { %v6305_v36 = vadd.f32 %v6300_v33, %v6128_v63  ;;  %v12067_v63 = vld [vmem:[%s14471_s2 + $0x48] sm:$0xff]  }
0x2974   : > { %v11468_v37 = vpop.f32.mrf.mxu0 }
0x2975   : > { %v6315_v34 = vadd.f32 %v10399_v32, %v6305_v36 }
0x2977   : > { %v6321_v24 = vpack.c.bf16 %v6315_v34, %v6314_v38 }
0x2979   : > { %11482 = vmatmul.mubr.msk.bf16.vlgmr.msra.gmra.mxu0 %vm1798_vm4, %v6321_v24 }
0x297a   : > { %11498 = vmatpush3.bf16.msra.mxu0 %v12059_v12  ;;  %11501 = vmatprep.mubr.msk.bf16.mxu0 %vm12580_vm2, %v12578_v1 }
0x297b   : > { %11499 = vmatprep.subr.bf16.mxu0 %v12578_v1 }
0x297e   : > { %11500 = vmatpush3.bf16.msra.mxu0 %v12060_v41 }
0x297f   : > { %11505 = vmatprep.subr.bf16.mxu0 %v12578_v1 }
0x2981   : > { %11502 = vmatmul.mubr.msk.bf16.vlgmr.msra.gmra.mxu0 %vm1798_vm4, %v13493_v56 }
0x2982   : > { %11506 = vmatpush3.bf16.msra.mxu0 %v12061_v10  ;;  %11509 = vmatprep.mubr.msk.bf16.mxu0 %vm12580_vm2, %v12578_v1 }
0x2983   : > { %11507 = vmatprep.subr.bf16.mxu0 %v12578_v1 }
0x2986   : > { %11508 = vmatpush3.bf16.msra.mxu0 %v12062_v43 }
0x2987   : > { %11521 = vmatprep.subr.bf16.mxu0 %v12578_v1 }
0x2989   : > { %11510 = vmatmul.mubr.msk.bf16.vlgmr.msra.gmra.mxu0 %vm1798_vm4, %v13493_v56 }
0x298a   : > { %11523 = vmatprep.mubr.msk.bf16.mxu0 %vm12580_vm2, %v12578_v1 }
0x2a39   : > { %v6429_v25 = vpop.f32.mrf.mxu0 }
0x2a3a   : > { %v6430_v11 = vadd.f32 %v6429_v25, %v6373_v42 }
0x2a3b   : > { %v11483_v57 = vpop.f32.mrf.mxu0 }
0x2a3c   : > { %v6444_v58 = vadd.f32 %v10415_v53, %v6430_v11 }
0x2a3d   : > { %v6432_v30 = vpop.f32.mrf.mxu0 }
0x2a3e   : > { %v6433_v59 = vadd.f32 %v6432_v30, %v6376_v21  ;;  %v6446_v23 = vmax.f32 %v6444_v58, 0.0 }
0x2a3f   : > { %v11484_v60 = vpop.f32.mrf.mxu0 }
0x2a40   : > { %v6445_v14 = vadd.f32 %v10415_v53, %v6433_v59 }
0x2a41   : > { %v6593_v62 = vpop.f32.mrf.mxu0 }
0x2a42   : > { %v6447_v52 = vmax.f32 %v6445_v14, 0.0  ;;  %v6594_v8 = vadd.f32 %v10436_v27, %v6593_v62 }
0x2a43   : > { %v11503_v4 = vpop.f32.mrf.mxu0 }
0x2a44   : > { %v6457_v5 = vpack.c.bf16 %v6447_v52, %v6446_v23 }
0x2a45   : > { %v6596_v20 = vpop.f32.mrf.mxu0 }
0x2a46   : > { %v6597_v9 = vadd.f32 %v10436_v27, %v6596_v20  ;;  %11494 = vmatmul.mubr.msk.bf16.vlgmr.msra.gmra.mxu1 %vm3066_vm0, %v6457_v5 }
0x2a47   : > { %v11504_v13 = vpop.f32.mrf.mxu0  ;;  %11514 = vmatpush3.bf16.msra.mxu1 %v12067_v63  ;;  %11517 = vmatprep.mubr.msk.bf16.mxu1 %vm12580_vm2, %v12578_v1 }
0x2a48   : > { %v13855_v54 = vpack.c.bf16 %v6597_v9, %v6594_v8  ;;  %11515 = vmatprep.subr.bf16.mxu1 %v12578_v1 }
0x2a49   : > { %v6659_v6 = vpop.f32.mrf.mxu0 }
0x2a4a   : > { %6857 = vrot.lane.b32.xlu1 %v13855_v54, %s14487_s3  ;;  %v6660_v55 = vadd.f32 %v10445_v15, %v6659_v6 }
0x2a4b   : > { %v11511_v16 = vpop.f32.mrf.mxu0  ;;  %11516 = vmatpush3.bf16.msra.mxu1 %v12068_v35 }
0x2a4c   : > { %11527 = vmatprep.subr.bf16.mxu1 %v12578_v1 }
0x2a4d   : > { %v6662_v39 = vpop.f32.mrf.mxu0 }
0x2a4e   : > { %v6663_v45 = vadd.f32 %v10445_v15, %v6662_v39  ;;  %11518 = vmatmul.mubr.msk.bf16.vlgmr.msra.gmra.mxu1 %vm1798_vm4, %v13493_v56 }
0x2a4f   : > { %v11512_v17 = vpop.f32.mrf.mxu0  ;;  %11529 = vmatprep.mubr.msk.bf16.mxu1 %vm12580_vm2, %v12578_v1 }
0x2a50   : > { %v13866_v18 = vpack.c.bf16 %v6663_v45, %v6660_v55 }
0x2a52   : > { %6860 = vrot.lane.b32.xlu0 %v13866_v18, %s14487_s3  ;;  %v6738_v19 = vsel %vm2185_vm7, %v13866_v18, 0 }
0x2a53   : > { %11522 = vmatpush3.bf16.xpose.msra.mxu0 %v6738_v19 }
0x2a54   : > { %11533 = vmatprep.subr.bf16.mxu0 %v12578_v1 }
0x2a5a   : > { %11524 = vmatmul.mubr.msk.bf16.vlgmr.msra.gmra.mxu0 %vm2185_vm7, %v13855_v54 }
0x2a5b   : > { %11535 = vmatprep.mubr.msk.bf16.mxu0 %vm12580_vm2, %v12578_v1 }
0x2abc   : > { %v6858_v50 = vpop.permute.xlu1 %6857 }
0x2ac4   : > { %v6861_v47 = vpop.permute.xlu0 %6860 }
0x2ac5   : > { %v6866_v42 = vsel %vm2185_vm7, %v6861_v47, 0 }
0x2ac6   : > { %11534 = vmatpush3.bf16.xpose.msra.mxu0 %v6866_v42 }
0x2ac7   : > { %11545 = vmatprep.subr.bf16.mxu0 %v12578_v1 }
0x2acd   : > { %11536 = vmatmul.mubr.msk.bf16.vlgmr.msra.gmra.mxu0 %vm2185_vm7, %v6858_v50 }
0x2ace   : > { %11547 = vmatprep.mubr.msk.bf16.mxu0 %vm12580_vm2, %v12578_v1 }
0x2b06   : > { %v13882_v21 = vpop.f32.mrf.mxu1 }
0x2b08   : > { %v11495_v44 = vpop.f32.mrf.mxu1 }
0x2b0a   : > { %v13884_v22 = vpop.f32.mrf.mxu1 }
0x2b0c   : > { %v11496_v26 = vpop.f32.mrf.mxu1 }
0x2b0e   : > { %v6725_v28 = vpop.f32.mrf.mxu1 }
0x2b0f   : > { %v6726_v32 = vadd.f32 %v10454_v29, %v6725_v28 }
0x2b10   : > { %v11519_v31 = vpop.f32.mrf.mxu1 }
0x2b12   : > { %v6728_v7 = vpop.f32.mrf.mxu1 }
0x2b13   : > { %v6729_v33 = vadd.f32 %v10454_v29, %v6728_v7 }
0x2b14   : > { %v11520_v36 = vpop.f32.mrf.mxu1 }
0x2b15   : > { %v13887_v37 = vpack.c.bf16 %v6729_v33, %v6726_v32 }
0x2b17   : > { %11528 = vmatpush3.bf16.msra.mxu1 %v13887_v37 }
0x2b18   : > { %11539 = vmatprep.subr.bf16.mxu1 %v12578_v1 }
0x2b1a   : > { %v6774_v38 = vpop.f32.mrf.mxu0 }
0x2b1b   : > { %v6781_v34 = vmul.f32 0.35355338, %v6774_v38 }
0x2b1c   : > { %v11525_v12 = vpop.f32.mrf.mxu0 }
0x2b1d   : > { %v6783_v24 = vsel %vm13297_vm12, %v6781_v34, -1e+09  ;;  %v10460_v34 = vld [vmem:[%s14481_s28 + $0x40] sm:$0xf] }
0x2b1e   : > { %v6777_v41 = vpop.f32.mrf.mxu0  ;;  %v6785_v10 = vsel %vm2237_vm13, %v6783_v24, -inf }
0x2b1f   : > { %v6782_v43 = vmul.f32 0.35355338, %v6777_v41  ;;  %6786 = vmax.xlane.f32.xlu1 %v6785_v10  ;;  %v7038_v10 = vsel %vm2442_vm15, %v10460_v34, 0 }
0x2b20   : > { %v11526_v46 = vpop.f32.mrf.mxu0 }
0x2b21   : > { %v6784_v49 = vsel %vm13305_vm5, %v6782_v43, -1e+09  ;;  %v10463_v43 = vld [vmem:[%s14481_s28 + $0x44] sm:$0xf] }
0x2b22   : > { %v6788_v51 = vsel %vm2237_vm13, %v6784_v49, -inf  ;;  %v6991_v46 = vsel %vm2442_vm15, %v10463_v43, 0 }
0x2b23   : > { %6789 = vmax.xlane.f32.xlu0 %v6788_v51  ;;  %11546 = vmatpush3.bf16.msra.mxu0 %v6991_v46  ;;  %v10468_v46 = vld [vmem:[%s14481_s28 + $0x48] sm:$0xf] }
0x2b24   : > { %11557 = vmatprep.subr.bf16.mxu0 %v12578_v1 }
0x2b8d   : > { %v6902_v25 = vpop.f32.mrf.mxu0 }
0x2b8e   : > { %v6909_v11 = vmul.f32 0.35355338, %v6902_v25 }
0x2b8f   : > { %v11537_v53 = vpop.f32.mrf.mxu0 }
0x2b90   : > { %v6911_v57 = vsel %vm13297_vm12, %v6909_v11, -1e+09 }
0x2b91   : > { %v6905_v30 = vpop.f32.mrf.mxu0  ;;  %v6913_v58 = vsel %vm2237_vm13, %v6911_v57, -inf }
0x2b92   : > { %v6910_v59 = vmul.f32 0.35355338, %v6905_v30  ;;  %6914 = vmax.xlane.f32.xlu0 %v6913_v58 }
0x2b93   : > { %v11538_v60 = vpop.f32.mrf.mxu0 }
0x2b94   : > { %v6912_v14 = vsel %vm13305_vm5, %v6910_v59, -1e+09 }
0x2b95   : > { %v6916_v62 = vsel %vm2237_vm13, %v6912_v14, -inf }
0x2b96   : > { %6917 = vmax.xlane.f32.xlu1 %v6916_v62 }
0x2ba8   : > { %v6787_v23 = vpop.xlane.xlu1 %6786 }
0x2ba9   : > { %v6791_v52 = vsub.f32 %v6783_v24, %v6787_v23 }
0x2bab   : > { %v6793_v27 = vmul.f32 1.442695, %v6791_v52 }
0x2bac   : > { %v6790_v4 = vpop.xlane.xlu0 %6789 }
0x2bad   : > { %12239 = vpow2.f32 %v6793_v27  ;;  %v6792_v63 = vsub.f32 %v6784_v49, %v6790_v4 }
0x2baf   : > { %v6795_v5 = vmul.f32 1.442695, %v6792_v63 }
0x2bb1   : > { %12241 = vpow2.f32 %v6795_v5 }
0x2bba   : > { %v12240_v20 = vpop.eup %12239 }
0x2bbb   : > { %v6797_v8 = vsel %vm2237_vm13, %v12240_v20, 0.0 }
0x2bbc   : > { %6798 = vadd.xlane.f32.xlu0 %v6797_v8 }
0x2bbe   : > { %v12242_v9 = vpop.eup %12241 }
0x2bbf   : > { %v6800_v13 = vsel %vm2237_vm13, %v12242_v9, 0.0 }
0x2bc0   : > { %6801 = vadd.xlane.f32.xlu1 %v6800_v13 }
0x2c1b   : > { %v6915_v35 = vpop.xlane.xlu0 %6914 }
0x2c1c   : > { %v6919_v6 = vsub.f32 %v6911_v57, %v6915_v35 }
0x2c1e   : > { %v6921_v15 = vmul.f32 1.442695, %v6919_v6 }
0x2c1f   : > { %v6918_v16 = vpop.xlane.xlu1 %6917 }
0x2c20   : > { %12243 = vpow2.f32 %v6921_v15  ;;  %v6920_v39 = vsub.f32 %v6912_v14, %v6918_v16 }
0x2c22   : > { %v6923_v55 = vmul.f32 1.442695, %v6920_v39 }
0x2c24   : > { %12245 = vpow2.f32 %v6923_v55 }
0x2c2d   : > { %v12244_v45 = vpop.eup %12243 }
0x2c2e   : > { %v6925_v17 = vsel %vm2237_vm13, %v12244_v45, 0.0 }
0x2c2f   : > { %6926 = vadd.xlane.f32.xlu0 %v6925_v17 }
0x2c31   : > { %v12246_v19 = vpop.eup %12245 }
0x2c32   : > { %v6928_v47 = vsel %vm2237_vm13, %v12246_v19, 0.0 }
0x2c33   : > { %6929 = vadd.xlane.f32.xlu1 %v6928_v47 }
0x2c44   : > { %7083 = vrot.lane.b32.xlu1 %v13866_v18, %s14493_s8 }
0x2c45   : > { %6937 = vrot.lane.b32.xlu0 %v13887_v37, %s14487_s3  ;;  %v6799_v42 = vpop.xlane.xlu0 %6798 }
0x2c46   : > { %12247 = vrcp.f32 %v6799_v42 }
0x2c48   : > { %7081 = vrot.lane.b32.xlu1 %v13855_v54, %s14493_s8 }
0x2c49   : > { %v6802_v50 = vpop.xlane.xlu1 %6801 }
0x2c4a   : > { %12249 = vrcp.f32 %v6802_v50 }
0x2c53   : > { %v12248_v44 = vpop.eup %12247 }
0x2c54   : > { %v6805_v28 = vmul.f32 %v12248_v44, %v12240_v20 }
0x2c57   : > { %v12250_v26 = vpop.eup %12249 }
0x2c58   : > { %v6806_v29 = vmul.f32 %v12250_v26, %v12242_v9 }
0x2c5a   : > { %v6807_v31 = vpack.c.bf16 %v6806_v29, %v6805_v28 }
0x2c5c   : > { %11530 = vmatmul.mubr.msk.bf16.vlgmr.msra.gmra.mxu1 %vm2237_vm13, %v6807_v31 }
0x2c5d   : > { %11541 = vmatprep.mubr.msk.bf16.mxu1 %vm12580_vm2, %v12578_v1 }
0x2cb8   : > { %v6927_v7 = vpop.xlane.xlu0 %6926 }
0x2cb9   : > { %12251 = vrcp.f32 %v6927_v7 }
0x2cbc   : > { %v6938_v32 = vpop.permute.xlu0 %6937  ;;  %v6930_v33 = vpop.xlane.xlu1 %6929 }
0x2cbd   : > { %12253 = vrcp.f32 %v6930_v33  ;;  %11540 = vmatpush3.bf16.msra.mxu1 %v6938_v32 }
0x2cbe   : > { %11551 = vmatprep.subr.bf16.mxu1 %v12578_v1 }
0x2cc0   : > { %v7084_v58 = vpop.permute.xlu1 %7083 }
0x2cc1   : > { %v7089_v62 = vsel %vm2185_vm7, %v7084_v58, 0 }
0x2cc4   : > { %v7082_v23 = vpop.permute.xlu1 %7081 }
0x2cc6   : > { %v12252_v36 = vpop.eup %12251 }
0x2cc7   : > { %v6933_v12 = vmul.f32 %v12252_v36, %v12244_v45 }
0x2cca   : > { %v12254_v38 = vpop.eup %12253 }
0x2ccb   : > { %v6934_v24 = vmul.f32 %v12254_v38, %v12246_v19 }
0x2ccd   : > { %v6935_v41 = vpack.c.bf16 %v6934_v24, %v6933_v12 }
0x2ccf   : > { %11542 = vmatmul.mubr.msk.bf16.vlgmr.msra.gmra.mxu1 %vm2237_vm13, %v6935_v41 }
0x2cd0   : > { %11552 = vmatpush3.bf16.msra.mxu1 %v7038_v10  ;;  %11553 = vmatprep.mubr.msk.bf16.mxu1 %vm12580_vm2, %v12578_v1 }
0x2cd1   : > { %11563 = vmatprep.subr.bf16.mxu1 %v12578_v1 }
0x2d1c   : > { %v6846_v49 = vpop.f32.mrf.mxu1 }
0x2d1e   : > { %v11531_v51 = vpop.f32.mrf.mxu1 }
0x2d20   : > { %v6849_v25 = vpop.f32.mrf.mxu1 }
0x2d21   : > { %v6855_v11 = vpack.c.bf16 %v6849_v25, %v6846_v49  ;;  %v7213_v49 = vsel %vm2442_vm15, %v10468_v46, 0  ;;  %v12071_v46 = vld [vmem:[%s14483_s0 + $0x48] sm:$0xff]  }
0x2d22   : > { %v11532_v53 = vpop.f32.mrf.mxu1 }
0x2d23   : > { %11554 = vmatmul.mubr.msk.bf16.vlgmr.msra.gmra.mxu1 %vm2185_vm7, %v6855_v11 }
0x2d24   : > { %11565 = vmatprep.mubr.msk.bf16.mxu1 %vm12580_vm2, %v12578_v1 }
0x2d8f   : > { %v6977_v57 = vpop.f32.mrf.mxu1 }
0x2d91   : > { %v11543_v30 = vpop.f32.mrf.mxu1 }
0x2d93   : > { %v6980_v59 = vpop.f32.mrf.mxu1 }
0x2d94   : > { %v6986_v60 = vpack.c.bf16 %v6980_v59, %v6977_v57 }
0x2d95   : > { %v11544_v14 = vpop.f32.mrf.mxu1 }
0x2d96   : > { %11548 = vmatmul.mubr.msk.bf16.vlgmr.msra.gmra.mxu0 %vm2185_vm7, %v6986_v60 }
0x2d97   : > { %11558 = vmatpush3.bf16.xpose.msra.mxu0 %v7089_v62  ;;  %11559 = vmatprep.mubr.msk.bf16.mxu0 %vm12580_vm2, %v12578_v1 }
0x2d98   : > { %11569 = vmatprep.subr.bf16.mxu0 %v12578_v1 }
0x2d9e   : > { %11560 = vmatmul.mubr.msk.bf16.vlgmr.msra.gmra.mxu0 %vm2185_vm7, %v7082_v23 }
0x2d9f   : > { %11571 = vmatprep.mubr.msk.bf16.mxu0 %vm12580_vm2, %v12578_v1  ;;  %11570 = vmatpush3.bf16.msra.mxu0 %v7213_v49  ;;  %v12072_v49 = vld [vmem:[%s14483_s0 + $0x40] sm:$0xff]  }
0x2da0   : > { %11581 = vmatprep.subr.bf16.mxu0 %v12578_v1 }
0x2de3   : > { %v13937_v52 = vpop.f32.mrf.mxu1 }
0x2de5   : > { %v11555_v27 = vpop.f32.mrf.mxu1 }
0x2de7   : > { %v13939_v4 = vpop.f32.mrf.mxu1 }
0x2de9   : > { %v11556_v63 = vpop.f32.mrf.mxu1 }
0x2e56   : > { %v13941_v5 = vpop.f32.mrf.mxu0 }
0x2e57   : > { %v7075_v3 = vadd.f32 %v13937_v52, %v13941_v5 }
0x2e58   : > { %v11549_v20 = vpop.f32.mrf.mxu0 }
0x2e5a   : > { %v13943_v8 = vpop.f32.mrf.mxu0 }
0x2e5c   : > { %v11550_v9 = vpop.f32.mrf.mxu0 }
0x2e5e   : > { %v7125_v13 = vpop.f32.mrf.mxu0 }
0x2e5f   : > { %v7132_v35 = vmul.f32 0.35355338, %v7125_v13 }
0x2e60   : > { %v11561_v6 = vpop.f32.mrf.mxu0 }
0x2e61   : > { %v7134_v15 = vsel %vm13297_vm12, %v7132_v35, -1e+09 }
0x2e62   : > { %v7128_v16 = vpop.f32.mrf.mxu0  ;;  %v7136_v39 = vsel %vm2237_vm13, %v7134_v15, -inf }
0x2e63   : > { %v7133_v55 = vmul.f32 0.35355338, %v7128_v16  ;;  %7137 = vmax.xlane.f32.xlu0 %v7136_v39 }
0x2e64   : > { %v11562_v45 = vpop.f32.mrf.mxu0 }
0x2e65   : > { %v7135_v17 = vsel %vm13305_vm5, %v7133_v55, -1e+09 }
0x2e66   : > { %v7139_v19 = vsel %vm2237_vm13, %v7135_v17, -inf }
0x2e67   : > { %7140 = vmax.xlane.f32.xlu1 %v7139_v19 }
0x2e78   : > { %7159 = vrot.lane.b32.xlu1 %v13887_v37, %s14493_s8 }
0x2e7c   : > { %7258 = vrot.lane.b32.xlu1 %v13855_v54, %s14494_s9 }
0x2eec   : > { %v7138_v47 = vpop.xlane.xlu0 %7137 }
0x2eed   : > { %v7142_v42 = vsub.f32 %v7134_v15, %v7138_v47 }
0x2eef   : > { %v7144_v50 = vmul.f32 1.442695, %v7142_v42  ;;  %v7078_v42 = vadd.f32 %v13939_v4, %v13943_v8  ;;  %v12070_v4 = vld [vmem:[%s14482_s18 + $0x40] sm:$0xff]   ;;  %v10472_v8 = vld [vmem:[%s14481_s28 + $0x4c] sm:$0xf] }
0x2ef0   : > { %v7141_v44 = vpop.xlane.xlu1 %7140 }
0x2ef1   : > { %12255 = vpow2.f32 %v7144_v50  ;;  %v7143_v26 = vsub.f32 %v7135_v17, %v7141_v44 }
0x2ef3   : > { %v7146_v28 = vmul.f32 1.442695, %v7143_v26 }
0x2ef4   : > { %v7160_v29 = vpop.permute.xlu1 %7159 }
0x2ef5   : > { %12257 = vpow2.f32 %v7146_v28  ;;  %11564 = vmatpush3.bf16.msra.mxu1 %v7160_v29 }
0x2ef6   : > { %11575 = vmatprep.subr.bf16.mxu1 %v12578_v1 }
0x2efe   : > { %v12256_v31 = vpop.eup %12255 }
0x2eff   : > { %v7148_v7 = vsel %vm2237_vm13, %v12256_v31, 0.0 }
0x2f00   : > { %7149 = vadd.xlane.f32.xlu0 %v7148_v7 }
0x2f02   : > { %v12258_v32 = vpop.eup %12257 }
0x2f03   : > { %v7151_v33 = vsel %vm2237_vm13, %v12258_v32, 0.0 }
0x2f04   : > { %7152 = vadd.xlane.f32.xlu0 %v7151_v33 }
0x2f1a   : > { %7260 = vrot.lane.b32.xlu0 %v13866_v18, %s14494_s9  ;;  %v7259_v18 = vpop.permute.xlu1 %7258 }
0x2f89   : > { %v7150_v54 = vpop.xlane.xlu0 %7149 }
0x2f8a   : > { %12259 = vrcp.f32 %v7150_v54  ;;  %v7390_v54 = vsel %vm2442_vm15, %v10472_v8, 0 }
0x2f8d   : > { %v7153_v36 = vpop.xlane.xlu0 %7152 }
0x2f8e   : > { %12261 = vrcp.f32 %v7153_v36 }
0x2f91   : > { %v7261_v41 = vpop.permute.xlu0 %7260 }
0x2f92   : > { %v7266_v43 = vsel %vm2185_vm7, %v7261_v41, 0 }
0x2f97   : > { %v12260_v38 = vpop.eup %12259 }
0x2f98   : > { %v7156_v12 = vmul.f32 %v12260_v38, %v12256_v31 }
0x2f9b   : > { %v12262_v34 = vpop.eup %12261 }
0x2f9c   : > { %v7157_v24 = vmul.f32 %v12262_v34, %v12258_v32  ;;  %v12069_v32 = vld [vmem:[%s14482_s18 + $0x48] sm:$0xff]  }
0x2f9e   : > { %v7158_v10 = vpack.c.bf16 %v7157_v24, %v7156_v12 }
0x2fa0   : > { %11566 = vmatmul.mubr.msk.bf16.vlgmr.msra.gmra.mxu1 %vm2237_vm13, %v7158_v10 }
0x2fa1   : > { %11576 = vmatpush3.bf16.xpose.msra.mxu1 %v7266_v43  ;;  %11577 = vmatprep.mubr.msk.bf16.mxu1 %vm12580_vm2, %v12578_v1 }
0x2fa2   : > { %11587 = vmatprep.subr.bf16.mxu1 %v12578_v1 }
0x2fa8   : > { %11578 = vmatmul.mubr.msk.bf16.vlgmr.msra.gmra.mxu1 %vm2185_vm7, %v7259_v18 }
0x2fa9   : > { %11589 = vmatprep.mubr.msk.bf16.mxu1 %vm12580_vm2, %v12578_v1  ;;  %11588 = vmatpush3.bf16.msra.mxu1 %v7390_v54 }
0x2faa   : > { %11601 = vmatprep.subr.bf16.mxu1 %v12578_v1 }
0x3060   : > { %v7199_v51 = vpop.f32.mrf.mxu1 }
0x3062   : > { %v11567_v25 = vpop.f32.mrf.mxu1 }
0x3064   : > { %v7202_v11 = vpop.f32.mrf.mxu1 }
0x3065   : > { %v7208_v53 = vpack.c.bf16 %v7202_v11, %v7199_v51  ;;  %v12077_v51 = vld [vmem:[%s14484_s11 + $0x98] sm:$0xff]  }
0x3066   : > { %v11568_v57 = vpop.f32.mrf.mxu1 }
0x3067   : > { %11572 = vmatmul.mubr.msk.bf16.vlgmr.msra.gmra.mxu0 %vm2185_vm7, %v7208_v53  ;;  %v10475_v57 = vld [vmem:[%s14485_s16 + $0x4] ss:$0 sm:$0xff] }
0x3068   : > { %v7302_v30 = vpop.f32.mrf.mxu1  ;;  %11583 = vmatprep.mubr.msk.bf16.mxu0 %vm12580_vm2, %v12578_v1 }
0x3069   : > { %v7309_v58 = vmul.f32 0.35355338, %v7302_v30 }
0x306a   : > { %v11579_v59 = vpop.f32.mrf.mxu1 }
0x306b   : > { %v7311_v60 = vsel %vm13297_vm12, %v7309_v58, -1e+09 }
0x306c   : > { %v7305_v14 = vpop.f32.mrf.mxu1  ;;  %v7313_v62 = vsel %vm2237_vm13, %v7311_v60, -inf }
0x306d   : > { %v7310_v23 = vmul.f32 0.35355338, %v7305_v14  ;;  %7314 = vmax.xlane.f32.xlu1 %v7313_v62  ;;  %v12073_v62 = vld [vmem:[%s12641_s14 + $0x58] sm:$0xff]  }
0x306e   : > { %v11580_v27 = vpop.f32.mrf.mxu1 }
0x306f   : > { %v7312_v63 = vsel %vm13305_vm5, %v7310_v23, -1e+09  ;;  %v12074_v27 = vld [vmem:[%s12641_s14 + $0x50] sm:$0xff]  }
0x3070   : > { %v7316_v20 = vsel %vm2237_vm13, %v7312_v63, -inf }
0x3071   : > { %7317 = vmax.xlane.f32.xlu0 %v7316_v20  ;;  %v12076_v20 = vld [vmem:[%s14470_s26 + $0x50] sm:$0xff]  }
0x30f6   : > { %v7315_v9 = vpop.xlane.xlu1 %7314 }
0x30f7   : > { %v7319_v13 = vsub.f32 %v7311_v60, %v7315_v9  ;;  %v12078_v9 = vld [vmem:[%s14484_s11 + $0x90] sm:$0xff]  }
0x30f9   : > { %v7321_v35 = vmul.f32 1.442695, %v7319_v13  ;;  %v12079_v13 = vld [vmem:[%s14484_s11 + $0x88] sm:$0xff]  }
0x30fa   : > { %v7318_v6 = vpop.xlane.xlu0 %7317 }
0x30fb   : > { %12263 = vpow2.f32 %v7321_v35  ;;  %v7320_v15 = vsub.f32 %v7312_v63, %v7318_v6  ;;  %v12075_v63 = vld [vmem:[%s14470_s26 + $0x58] sm:$0xff]   ;;  %v12080_v35 = vld [vmem:[%s14484_s11 + $0x80] sm:$0xff]  }
0x30fd   : > { %v7323_v61 = vmul.f32 1.442695, %v7320_v15 }
0x30ff   : > { %12265 = vpow2.f32 %v7323_v61  ;;  %v10491_v61 = vld [vmem:[%s14486_s1 + $0x4] ss:$0 sm:$0xff] }
0x3108   : > { %v12264_v16 = vpop.eup %12263 }
0x3109   : > { %v7325_v39 = vsel %vm2237_vm13, %v12264_v16, 0.0 }
0x310a   : > { %7326 = vadd.xlane.f32.xlu0 %v7325_v39 }
0x310c   : > { %v12266_v55 = vpop.eup %12265 }
0x310d   : > { %v7328_v45 = vsel %vm2237_vm13, %v12266_v55, 0.0 }
0x310e   : > { %7329 = vadd.xlane.f32.xlu1 %v7328_v45 }
0x3120   : > { %7336 = vrot.lane.b32.xlu0 %v13887_v37, %s14494_s9 }
0x3127   : > { %v7249_v17 = vpop.f32.mrf.mxu0 }
0x3128   : > { %v7256_v19 = vadd.f32 %v7249_v17, %v7075_v3 }
0x3129   : > { %v11573_v47 = vpop.f32.mrf.mxu0 }
0x312b   : > { %v7252_v50 = vpop.f32.mrf.mxu0 }
0x312c   : > { %v7257_v44 = vadd.f32 %v7252_v50, %v7078_v42 }
0x312d   : > { %v11574_v26 = vpop.f32.mrf.mxu0 }
0x3193   : > { %v7327_v28 = vpop.xlane.xlu0 %7326 }
0x3194   : > { %12267 = vrcp.f32 %v7327_v28 }
0x3197   : > { %v7330_v29 = vpop.xlane.xlu1 %7329  ;;  %v7337_v31 = vpop.permute.xlu0 %7336 }
0x3198   : > { %12269 = vrcp.f32 %v7330_v29  ;;  %11582 = vmatpush3.bf16.msra.mxu0 %v7337_v31  ;;  %v12082_v31 = vld [vmem:[%s14471_s2 + $0x50] sm:$0xff]  }
0x3199   : > { %11593 = vmatprep.subr.bf16.mxu0 %v12578_v1 }
0x31a1   : > { %v12268_v37 = vpop.eup %12267 }
0x31a2   : > { %v7333_v5 = vmul.f32 %v12268_v37, %v12264_v16 }
0x31a5   : > { %v12270_v52 = vpop.eup %12269 }
0x31a6   : > { %v7334_v7 = vmul.f32 %v12270_v52, %v12266_v55  ;;  %v10521_v52 = vld [vmem:[%s14473_s10 + $0x5] ss:$0 sm:$0xff] }
0x31a8   : > { %v7335_v33 = vpack.c.bf16 %v7334_v7, %v7333_v5 }
0x31aa   : > { %11584 = vmatmul.mubr.msk.bf16.vlgmr.msra.gmra.mxu0 %vm2237_vm13, %v7335_v33 }
0x31ab   : > { %11594 = vmatpush3.bf16.msra.mxu0 %v12069_v32  ;;  %11597 = vmatprep.mubr.msk.bf16.mxu0 %vm12580_vm2, %v12578_v1 }
0x31ac   : > { %11595 = vmatprep.subr.bf16.mxu0 %v12578_v1 }
0x31af   : > { %11596 = vmatpush3.bf16.msra.mxu0 %v12070_v4  ;;  %v10512_v4 = vld [vmem:[%s14474_s12 + $0x5] ss:$0 sm:$0xff] }
0x31b0   : > { %11609 = vmatprep.subr.bf16.mxu0 %v12578_v1 }
0x31b2   : > { %11598 = vmatmul.mubr.msk.bf16.vlgmr.msra.gmra.mxu0 %vm1798_vm4, %v13493_v56 }
0x31b3   : > { %11617 = vmatprep.mubr.msk.bf16.mxu0 %vm12580_vm2, %v12578_v1  ;;  %11610 = vmatpush3.bf16.msra.mxu0 %v12077_v51  ;;  %v10530_v51 = vld [vmem:[%s14475_s27 + $0x5] ss:$0 sm:$0xff] }
0x31b4   : > { %11611 = vmatprep.subr.bf16.mxu0 %v12578_v1 }
0x31b7   : > { %11612 = vmatpush3.bf16.msra.mxu0 %v12078_v9 }
0x31b8   : > { %11613 = vmatprep.subr.bf16.mxu0 %v12578_v1 }
0x31bb   : > { %11614 = vmatpush3.bf16.msra.mxu0 %v12079_v13 }
0x31bc   : > { %11615 = vmatprep.subr.bf16.mxu0 %v12578_v1 }
0x31bf   : > { %11616 = vmatpush3.bf16.msra.mxu0 %v12080_v35 }
0x31c0   : > { %11637 = vmatprep.subr.bf16.mxu0 %v12578_v1 }
0x326a   : > { %v7376_v36 = vpop.f32.mrf.mxu0 }
0x326c   : > { %v11585_v38 = vpop.f32.mrf.mxu0 }
0x326e   : > { %v7379_v34 = vpop.f32.mrf.mxu0 }
0x326f   : > { %v7385_v12 = vpack.c.bf16 %v7379_v34, %v7376_v36 }
0x3270   : > { %v11586_v24 = vpop.f32.mrf.mxu0 }
0x3271   : > { %11590 = vmatmul.mubr.msk.bf16.vlgmr.msra.gmra.mxu1 %vm2185_vm7, %v7385_v12 }
0x3272   : > { %v7502_v41 = vpop.f32.mrf.mxu0  ;;  %11605 = vmatprep.mubr.msk.bf16.mxu1 %vm12580_vm2, %v12578_v1  ;;  %11602 = vmatpush3.bf16.msra.mxu1 %v12071_v46 }
0x3273   : > { %11603 = vmatprep.subr.bf16.mxu1 %v12578_v1 }
0x3274   : > { %v11599_v10 = vpop.f32.mrf.mxu0 }
0x3276   : > { %v7505_v43 = vpop.f32.mrf.mxu0  ;;  %11604 = vmatpush3.bf16.msra.mxu1 %v12072_v49 }
0x3277   : > { %11621 = vmatprep.subr.bf16.mxu1 %v12578_v1 }
0x3278   : > { %v11600_v18 = vpop.f32.mrf.mxu0 }
0x3331   : > { %v7426_v25 = vpop.f32.mrf.mxu1 }
0x3332   : > { %v7433_v53 = vadd.f32 %v7426_v25, %v7256_v19 }
0x3333   : > { %v11591_v11 = vpop.f32.mrf.mxu1 }
0x3334   : > { %v7443_v60 = vadd.f32 %v10475_v57, %v7433_v53 }
0x3335   : > { %v7429_v30 = vpop.f32.mrf.mxu1 }
0x3336   : > { %v7434_v58 = vadd.f32 %v7429_v30, %v7257_v44  ;;  %v12081_v44 = vld [vmem:[%s14471_s2 + $0x58] sm:$0xff]   ;;  %s14504_s2 = sld [smem:[#allocation39_spill]] }
0x3337   : > { %v11592_v59 = vpop.f32.mrf.mxu1 }
0x3338   : > { %v7444_v14 = vadd.f32 %v10475_v57, %v7434_v58 }
0x333a   : > { %v7450_v23 = vpack.c.bf16 %v7444_v14, %v7443_v60 }
0x333c   : > { %11606 = vmatmul.mubr.msk.bf16.vlgmr.msra.gmra.mxu1 %vm1798_vm4, %v7450_v23 }
0x333d   : > { %11622 = vmatpush3.bf16.msra.mxu1 %v12073_v62  ;;  %11625 = vmatprep.mubr.msk.bf16.mxu1 %vm12580_vm2, %v12578_v1 }
0x333e   : > { %11623 = vmatprep.subr.bf16.mxu1 %v12578_v1 }
0x3341   : > { %11624 = vmatpush3.bf16.msra.mxu1 %v12074_v27 }
0x3342   : > { %11629 = vmatprep.subr.bf16.mxu1 %v12578_v1 }
0x3344   : > { %11626 = vmatmul.mubr.msk.bf16.vlgmr.msra.gmra.mxu1 %vm1798_vm4, %v13694_v0 }
0x3345   : > { %11630 = vmatpush3.bf16.msra.mxu1 %v12075_v63  ;;  %11633 = vmatprep.mubr.msk.bf16.mxu1 %vm12580_vm2, %v12578_v1 }
0x3346   : > { %11631 = vmatprep.subr.bf16.mxu1 %v12578_v1 }
0x3349   : > { %11632 = vmatpush3.bf16.msra.mxu1 %v12076_v20 }
0x334a   : > { %11645 = vmatprep.subr.bf16.mxu1 %v12578_v1 }
0x334c   : > { %11634 = vmatmul.mubr.msk.bf16.vlgmr.msra.gmra.mxu1 %vm1798_vm4, %v13493_v56 }
0x334d   : > { %11647 = vmatprep.mubr.msk.bf16.mxu1 %vm12580_vm2, %v12578_v1 }
0x33fc   : > { %v7558_v6 = vpop.f32.mrf.mxu1 }
0x33fd   : > { %v7559_v15 = vadd.f32 %v7558_v6, %v7502_v41 }
0x33fe   : > { %v11607_v16 = vpop.f32.mrf.mxu1 }
0x33ff   : > { %v7573_v55 = vadd.f32 %v10491_v61, %v7559_v15 }
0x3400   : > { %v7561_v39 = vpop.f32.mrf.mxu1 }
0x3401   : > { %v7562_v45 = vadd.f32 %v7561_v39, %v7505_v43  ;;  %v7575_v47 = vmax.f32 %v7573_v55, 0.0 }
0x3402   : > { %v11608_v3 = vpop.f32.mrf.mxu1 }
0x3403   : > { %v7574_v17 = vadd.f32 %v10491_v61, %v7562_v45 }
0x3404   : > { %v7726_v19 = vpop.f32.mrf.mxu1 }
0x3405   : > { %v7576_v42 = vmax.f32 %v7574_v17, 0.0  ;;  %v7727_v38 = vadd.f32 %v10512_v4, %v7726_v19 }
0x3406   : > { %v11627_v50 = vpop.f32.mrf.mxu1 }
0x3407   : > { %v7586_v26 = vpack.c.bf16 %v7576_v42, %v7575_v47 }
0x3408   : > { %v7729_v28 = vpop.f32.mrf.mxu1 }
0x3409   : > { %11618 = vmatmul.mubr.msk.bf16.vlgmr.msra.gmra.mxu0 %vm3066_vm0, %v7586_v26  ;;  %v7730_v54 = vadd.f32 %v10512_v4, %v7729_v28 }
0x340a   : > { %v11628_v29 = vpop.f32.mrf.mxu1  ;;  %11638 = vmatpush3.bf16.msra.mxu0 %v12081_v44  ;;  %11641 = vmatprep.mubr.msk.bf16.mxu0 %vm12580_vm2, %v12578_v1 }
0x340b   : > { %11639 = vmatprep.subr.bf16.mxu0 %v12578_v1  ;;  %v14058_v12 = vpack.c.bf16 %v7730_v54, %v7727_v38 }
0x340c   : > { %v7792_v37 = vpop.f32.mrf.mxu1 }
0x340d   : > { %v7793_v32 = vadd.f32 %v10521_v52, %v7792_v37 }
0x340e   : > { %v11635_v5 = vpop.f32.mrf.mxu1  ;;  %11640 = vmatpush3.bf16.msra.mxu0 %v12082_v31 }
0x340f   : > { %11651 = vmatprep.subr.bf16.mxu0 %v12578_v1 }
0x3410   : > { %v7795_v7 = vpop.f32.mrf.mxu1 }
0x3411   : > { %v7796_v33 = vadd.f32 %v10521_v52, %v7795_v7  ;;  %11642 = vmatmul.mubr.msk.bf16.vlgmr.msra.gmra.mxu0 %vm1798_vm4, %v13493_v56 }
0x3412   : > { %v11636_v8 = vpop.f32.mrf.mxu1  ;;  %11653 = vmatprep.mubr.msk.bf16.mxu0 %vm12580_vm2, %v12578_v1 }
0x3413   : > { %v14052_v36 = vpack.c.bf16 %v7796_v33, %v7793_v32 }
0x3415   : > { %7993 = vrot.lane.b32.xlu1 %v14052_v36, %s14487_s3  ;;  %v7871_v34 = vsel %vm2185_vm7, %v14052_v36, 0 }
0x3416   : > { %11646 = vmatpush3.bf16.xpose.msra.mxu1 %v7871_v34 }
0x3417   : > { %11657 = vmatprep.subr.bf16.mxu1 %v12578_v1 }
0x3419   : > { %7990 = vrot.lane.b32.xlu1 %v14058_v12, %s14487_s3 }
0x341d   : > { %11648 = vmatmul.mubr.msk.bf16.vlgmr.msra.gmra.mxu1 %vm2185_vm7, %v14058_v12 }
0x341e   : > { %11659 = vmatprep.mubr.msk.bf16.mxu1 %vm12580_vm2, %v12578_v1 }
0x3487   : > { %v7994_v56 = vpop.permute.xlu1 %7993 }
0x3488   : > { %v7999_v24 = vsel %vm2185_vm7, %v7994_v56, 0 }
0x3489   : > { %11658 = vmatpush3.bf16.xpose.msra.mxu1 %v7999_v24 }
0x348a   : > { %11669 = vmatprep.subr.bf16.mxu1 %v12578_v1 }
0x348b   : > { %v7991_v41 = vpop.permute.xlu1 %7990 }
0x3490   : > { %11660 = vmatmul.mubr.msk.bf16.vlgmr.msra.gmra.mxu1 %vm2185_vm7, %v7991_v41 }
0x3491   : > { %11671 = vmatprep.mubr.msk.bf16.mxu1 %vm12580_vm2, %v12578_v1 }
0x34c9   : > { %v14072_v10 = vpop.f32.mrf.mxu0 }
0x34cb   : > { %v11619_v43 = vpop.f32.mrf.mxu0 }
0x34cd   : > { %v14074_v18 = vpop.f32.mrf.mxu0 }
0x34cf   : > { %v11620_v46 = vpop.f32.mrf.mxu0 }
0x34d1   : > { %v7858_v49 = vpop.f32.mrf.mxu0 }
0x34d2   : > { %v7859_v53 = vadd.f32 %v10530_v51, %v7858_v49 }
0x34d3   : > { %v11643_v25 = vpop.f32.mrf.mxu0 }
0x34d5   : > { %v7861_v11 = vpop.f32.mrf.mxu0 }
0x34d6   : > { %v7862_v57 = vadd.f32 %v10530_v51, %v7861_v11 }
0x34d7   : > { %v11644_v30 = vpop.f32.mrf.mxu0 }
0x34d8   : > { %v14077_v58 = vpack.c.bf16 %v7862_v57, %v7859_v53 }
0x34da   : > { %11652 = vmatpush3.bf16.msra.mxu0 %v14077_v58 }
0x34db   : > { %11663 = vmatprep.subr.bf16.mxu0 %v12578_v1 }
0x34dd   : > { %v7907_v59 = vpop.f32.mrf.mxu1 }
0x34de   : > { %v7914_v60 = vmul.f32 0.35355338, %v7907_v59  ;;  %v10536_v59 = vld [vmem:[%s14481_s28 + $0x50] sm:$0xf] }
0x34df   : > { %v11649_v14 = vpop.f32.mrf.mxu1 }
0x34e0   : > { %v7916_v62 = vsel %vm13502_vm6, %v7914_v60, -1e+09 }
0x34e1   : > { %v7910_v23 = vpop.f32.mrf.mxu1  ;;  %v7918_v27 = vsel %vm2237_vm13, %v7916_v62, -inf }
0x34e2   : > { %v7915_v63 = vmul.f32 0.35355338, %v7910_v23  ;;  %7919 = vmax.xlane.f32.xlu0 %v7918_v27  ;;  %v8171_v23 = vsel %vm2442_vm15, %v10536_v59, 0  ;;  %v10539_v27 = vld [vmem:[%s14481_s28 + $0x54] sm:$0xf] }
0x34e3   : > { %v11650_v20 = vpop.f32.mrf.mxu1 }
0x34e4   : > { %v7917_v9 = vsel %vm13511_vm3, %v7915_v63, -1e+09  ;;  %v8124_v63 = vsel %vm2442_vm15, %v10539_v27, 0  ;;  %v10544_v27 = vld [vmem:[%s14481_s28 + $0x58] sm:$0xf] }
0x34e5   : > { %v7921_v13 = vsel %vm2237_vm13, %v7917_v9, -inf  ;;  %11670 = vmatpush3.bf16.msra.mxu1 %v8124_v63  ;;  %v8346_v63 = vsel %vm2442_vm15, %v10544_v27, 0 }
0x34e6   : > { %7922 = vmax.xlane.f32.xlu1 %v7921_v13  ;;  %11681 = vmatprep.subr.bf16.mxu1 %v12578_v1 }
0x3550   : > { %v8035_v35 = vpop.f32.mrf.mxu1 }
0x3551   : > { %v8042_v6 = vmul.f32 0.35355338, %v8035_v35 }
0x3552   : > { %v11661_v15 = vpop.f32.mrf.mxu1 }
0x3553   : > { %v8044_v61 = vsel %vm13502_vm6, %v8042_v6, -1e+09 }
0x3554   : > { %v8038_v16 = vpop.f32.mrf.mxu1  ;;  %v8046_v39 = vsel %vm2237_vm13, %v8044_v61, -inf }
0x3555   : > { %v8043_v55 = vmul.f32 0.35355338, %v8038_v16  ;;  %8047 = vmax.xlane.f32.xlu0 %v8046_v39 }
0x3556   : > { %v11662_v45 = vpop.f32.mrf.mxu1 }
0x3557   : > { %v8045_v3 = vsel %vm13511_vm3, %v8043_v55, -1e+09 }
0x3558   : > { %v8049_v17 = vsel %vm2237_vm13, %v8045_v3, -inf }
0x3559   : > { %8050 = vmax.xlane.f32.xlu0 %v8049_v17 }
0x356b   : > { %v7920_v19 = vpop.xlane.xlu0 %7919 }
0x356c   : > { %v7924_v47 = vsub.f32 %v7916_v62, %v7920_v19 }
0x356e   : > { %v7926_v42 = vmul.f32 1.442695, %v7924_v47 }
0x356f   : > { %v7923_v50 = vpop.xlane.xlu1 %7922 }
0x3570   : > { %12271 = vpow2.f32 %v7926_v42  ;;  %v7925_v44 = vsub.f32 %v7917_v9, %v7923_v50 }
0x3572   : > { %v7928_v26 = vmul.f32 1.442695, %v7925_v44 }
0x3574   : > { %12273 = vpow2.f32 %v7928_v26 }
0x357d   : > { %v12272_v28 = vpop.eup %12271 }
0x357e   : > { %v7930_v29 = vsel %vm2237_vm13, %v12272_v28, 0.0 }
0x357f   : > { %7931 = vadd.xlane.f32.xlu1 %v7930_v29 }
0x3581   : > { %v12274_v31 = vpop.eup %12273 }
0x3582   : > { %v7933_v37 = vsel %vm2237_vm13, %v12274_v31, 0.0 }
0x3583   : > { %7934 = vadd.xlane.f32.xlu0 %v7933_v37 }
0x35de   : > { %v8048_v52 = vpop.xlane.xlu0 %8047 }
0x35df   : > { %v8052_v5 = vsub.f32 %v8044_v61, %v8048_v52 }
0x35e1   : > { %v8054_v7 = vmul.f32 1.442695, %v8052_v5 }
0x35e2   : > { %v8051_v32 = vpop.xlane.xlu0 %8050 }
0x35e3   : > { %12275 = vpow2.f32 %v8054_v7  ;;  %v8053_v33 = vsub.f32 %v8045_v3, %v8051_v32 }
0x35e5   : > { %v8056_v4 = vmul.f32 1.442695, %v8053_v33 }
0x35e7   : > { %12277 = vpow2.f32 %v8056_v4 }
0x35f0   : > { %v12276_v8 = vpop.eup %12275 }
0x35f1   : > { %v8058_v54 = vsel %vm2237_vm13, %v12276_v8, 0.0 }
0x35f2   : > { %8059 = vadd.xlane.f32.xlu1 %v8058_v54 }
0x35f4   : > { %v12278_v38 = vpop.eup %12277 }
0x35f5   : > { %v8061_v34 = vsel %vm2237_vm13, %v12278_v38, 0.0 }
0x35f6   : > { %8062 = vadd.xlane.f32.xlu0 %v8061_v34 }
0x3603   : > { %8070 = vrot.lane.b32.xlu1 %v14077_v58, %s14487_s3  ;;  %s14499_s3 = sld [smem:[#allocation35_spill]] }
0x3607   : > { %8214 = vrot.lane.b32.xlu1 %v14058_v12, %s14493_s8 }
0x3608   : > { %v7932_v56 = vpop.xlane.xlu1 %7931 }
0x3609   : > { %12279 = vrcp.f32 %v7932_v56 }
0x360c   : > { %8216 = vrot.lane.b32.xlu0 %v14052_v36, %s14493_s8  ;;  %v7935_v24 = vpop.xlane.xlu0 %7934 }
0x360d   : > { %12281 = vrcp.f32 %v7935_v24 }
0x3616   : > { %v12280_v41 = vpop.eup %12279 }
0x3617   : > { %v7938_v46 = vmul.f32 %v12280_v41, %v12272_v28 }
0x361a   : > { %v12282_v43 = vpop.eup %12281 }
0x361b   : > { %v7939_v49 = vmul.f32 %v12282_v43, %v12274_v31 }
0x361d   : > { %v7940_v51 = vpack.c.bf16 %v7939_v49, %v7938_v46 }
0x361f   : > { %11654 = vmatmul.mubr.msk.bf16.vlgmr.msra.gmra.mxu0 %vm2237_vm13, %v7940_v51 }
0x3620   : > { %11665 = vmatprep.mubr.msk.bf16.mxu0 %vm12580_vm2, %v12578_v1 }
0x367b   : > { %v8060_v25 = vpop.xlane.xlu1 %8059 }
0x367c   : > { %12283 = vrcp.f32 %v8060_v25 }
0x367f   : > { %v8063_v11 = vpop.xlane.xlu0 %8062  ;;  %v8071_v53 = vpop.permute.xlu1 %8070 }
0x3680   : > { %12285 = vrcp.f32 %v8063_v11  ;;  %11664 = vmatpush3.bf16.msra.mxu0 %v8071_v53 }
0x3681   : > { %11675 = vmatprep.subr.bf16.mxu0 %v12578_v1 }
0x3683   : > { %v8217_v16 = vpop.permute.xlu0 %8216  ;;  %v8215_v17 = vpop.permute.xlu1 %8214 }
0x3684   : > { %v8222_v3 = vsel %vm2185_vm7, %v8217_v16, 0 }
0x3689   : > { %v12284_v57 = vpop.eup %12283 }
0x368a   : > { %v8066_v60 = vmul.f32 %v12284_v57, %v12276_v8 }
0x368d   : > { %v12286_v30 = vpop.eup %12285 }
0x368e   : > { %v8067_v14 = vmul.f32 %v12286_v30, %v12278_v38 }
0x3690   : > { %v8068_v62 = vpack.c.bf16 %v8067_v14, %v8066_v60 }
0x3692   : > { %11666 = vmatmul.mubr.msk.bf16.vlgmr.msra.gmra.mxu0 %vm2237_vm13, %v8068_v62 }
0x3693   : > { %11676 = vmatpush3.bf16.msra.mxu0 %v8171_v23  ;;  %11677 = vmatprep.mubr.msk.bf16.mxu0 %vm12580_vm2, %v12578_v1 }
0x3694   : > { %11687 = vmatprep.subr.bf16.mxu0 %v12578_v1 }
0x36df   : > { %v7979_v20 = vpop.f32.mrf.mxu0 }
0x36e1   : > { %v11655_v9 = vpop.f32.mrf.mxu0 }
0x36e3   : > { %v7982_v13 = vpop.f32.mrf.mxu0 }
0x36e4   : > { %v7988_v35 = vpack.c.bf16 %v7982_v13, %v7979_v20 }
0x36e5   : > { %v11656_v6 = vpop.f32.mrf.mxu0 }
0x36e6   : > { %11678 = vmatmul.mubr.msk.bf16.vlgmr.msra.gmra.mxu0 %vm2185_vm7, %v7988_v35 }
0x36e7   : > { %11689 = vmatprep.mubr.msk.bf16.mxu0 %vm12580_vm2, %v12578_v1 }
0x3752   : > { %v8110_v15 = vpop.f32.mrf.mxu0 }
0x3754   : > { %v11667_v61 = vpop.f32.mrf.mxu0 }
0x3756   : > { %v8113_v39 = vpop.f32.mrf.mxu0 }
0x3757   : > { %v8119_v55 = vpack.c.bf16 %v8113_v39, %v8110_v15 }
0x3758   : > { %v11668_v45 = vpop.f32.mrf.mxu0 }
0x3759   : > { %11672 = vmatmul.mubr.msk.bf16.vlgmr.msra.gmra.mxu1 %vm2185_vm7, %v8119_v55 }
0x375a   : > { %11682 = vmatpush3.bf16.xpose.msra.mxu1 %v8222_v3  ;;  %11683 = vmatprep.mubr.msk.bf16.mxu1 %vm12580_vm2, %v12578_v1 }
0x375b   : > { %11693 = vmatprep.subr.bf16.mxu1 %v12578_v1 }
0x3761   : > { %11684 = vmatmul.mubr.msk.bf16.vlgmr.msra.gmra.mxu1 %vm2185_vm7, %v8215_v17 }
0x3762   : > { %11695 = vmatprep.mubr.msk.bf16.mxu1 %vm12580_vm2, %v12578_v1  ;;  %11694 = vmatpush3.bf16.msra.mxu1 %v8346_v63 }
0x3763   : > { %11705 = vmatprep.subr.bf16.mxu1 %v12578_v1 }
0x37a6   : > { %v14127_v19 = vpop.f32.mrf.mxu0 }
0x37a8   : > { %v11679_v47 = vpop.f32.mrf.mxu0 }
0x37aa   : > { %v14129_v42 = vpop.f32.mrf.mxu0 }
0x37ac   : > { %v11680_v50 = vpop.f32.mrf.mxu0 }
0x3819   : > { %v14131_v44 = vpop.f32.mrf.mxu1 }
0x381b   : > { %v11673_v26 = vpop.f32.mrf.mxu1 }
0x381c   : > { %v10584_v26 = vld [vmem:[%s14499_s3 + $0x1] ss:$0 sm:$0xff] }
0x381d   : > { %v14133_v28 = vpop.f32.mrf.mxu1 }
0x381f   : > { %v11674_v29 = vpop.f32.mrf.mxu1 }
0x3820   : > { %v10585_v29 = vld [vmem:[%s14499_s3 + $0x2] ss:$0 sm:$0xff] }
0x3821   : > { %v8258_v31 = vpop.f32.mrf.mxu1 }
0x3822   : > { %v8265_v37 = vmul.f32 0.35355338, %v8258_v31 }
0x3823   : > { %v11685_v52 = vpop.f32.mrf.mxu1 }
0x3824   : > { %v8267_v5 = vsel %vm13502_vm6, %v8265_v37, -1e+09 }
0x3825   : > { %v8261_v7 = vpop.f32.mrf.mxu1  ;;  %v8269_v32 = vsel %vm2237_vm13, %v8267_v5, -inf }
0x3826   : > { %v8266_v33 = vmul.f32 0.35355338, %v8261_v7  ;;  %8270 = vmax.xlane.f32.xlu1 %v8269_v32 }
0x3827   : > { %v11686_v4 = vpop.f32.mrf.mxu1 }
0x3828   : > { %v8268_v8 = vsel %vm13511_vm3, %v8266_v33, -1e+09 }
0x3829   : > { %v8272_v54 = vsel %vm2237_vm13, %v8268_v8, -inf }
0x382a   : > { %8273 = vmax.xlane.f32.xlu0 %v8272_v54  ;;  %v10586_v54 = vld [vmem:[#allocation2] ss:$0 sm:$0xff] }
0x38af   : > { %v8271_v38 = vpop.xlane.xlu1 %8270 }
0x38b0   : > { %v8275_v34 = vsub.f32 %v8267_v5, %v8271_v38  ;;  %v8208_v38 = vadd.f32 %v14127_v19, %v14131_v44 }
0x38b2   : > { %v8277_v56 = vmul.f32 1.442695, %v8275_v34 }
0x38b3   : > { %v8274_v24 = vpop.xlane.xlu0 %8273 }
0x38b4   : > { %12287 = vpow2.f32 %v8277_v56  ;;  %v8276_v41 = vsub.f32 %v8268_v8, %v8274_v24  ;;  %v10583_v8 = vld [vmem:[%s14499_s3] ss:$0 sm:$0xff]  ;;  %s14506_s3 = sld [smem:[#allocation44_spill]] }
0x38b6   : > { %v8279_v43 = vmul.f32 1.442695, %v8276_v41  ;;  %v8211_v41 = vadd.f32 %v14129_v42, %v14133_v28 }
0x38b8   : > { %12289 = vpow2.f32 %v8279_v43 }
0x38c1   : > { %v12288_v46 = vpop.eup %12287 }
0x38c2   : > { %v8281_v49 = vsel %vm2237_vm13, %v12288_v46, 0.0 }
0x38c3   : > { %8282 = vadd.xlane.f32.xlu0 %v8281_v49 }
0x38c5   : > { %v12290_v51 = vpop.eup %12289 }
0x38c6   : > { %v8284_v25 = vsel %vm2237_vm13, %v12290_v51, 0.0 }
0x38c7   : > { %8285 = vadd.xlane.f32.xlu1 %v8284_v25 }
0x38d8   : > { %8393 = vrot.lane.b32.xlu1 %v14052_v36, %s14494_s9 }
0x38d9   : > { %8292 = vrot.lane.b32.xlu0 %v14077_v58, %s14493_s8  ;;  %s14501_s8 = sld [smem:[#allocation38_spill]] }
0x38dc   : > { %8391 = vrot.lane.b32.xlu1 %v14058_v12, %s14494_s9 }
0x394c   : > { %v8283_v11 = vpop.xlane.xlu0 %8282 }
0x394d   : > { %12291 = vrcp.f32 %v8283_v11  ;;  %v10425_v11 = vld [vmem:[%s14488_s5 + $0x3] ss:$0 sm:$0xff] }
0x394e   : > { %v6528_v19 = vadd.f32 %v10425_v11, %v13882_v21  ;;  %v6531_v44 = vadd.f32 %v10425_v11, %v13884_v22  ;;  %v12083_v22 = vld [vmem:[%s14482_s18 + $0x58] sm:$0xff]   ;;  %v10577_v11 = vld [vmem:[%s14488_s5 + $0x5] ss:$0 sm:$0xff] }
0x3950   : > { %v8286_v53 = vpop.xlane.xlu1 %8285  ;;  %v8293_v57 = vpop.permute.xlu0 %8292 }
0x3951   : > { %12293 = vrcp.f32 %v8286_v53  ;;  %11688 = vmatpush3.bf16.msra.mxu0 %v8293_v57  ;;  %v10501_v53 = vld [vmem:[%s14488_s5 + $0x4] ss:$0 sm:$0xff]  ;;  %s14507_s5 = sld [smem:[#allocation41_spill]] }
0x3952   : > { %11699 = vmatprep.subr.bf16.mxu0 %v12578_v1  ;;  %v7660_v42 = vadd.f32 %v10501_v53, %v14074_v18  ;;  %v10548_v18 = vld [vmem:[%s14481_s28 + $0x5c] sm:$0xf] }
0x3954   : > { %v8394_v36 = vpop.permute.xlu1 %8393 }
0x3955   : > { %v8399_v23 = vsel %vm2185_vm7, %v8394_v36, 0 }
0x3958   : > { %v8392_v12 = vpop.permute.xlu1 %8391 }
0x395a   : > { %v12292_v30 = vpop.eup %12291 }
0x395b   : > { %v8289_v60 = vmul.f32 %v12292_v30, %v12288_v46  ;;  %v7657_v30 = vadd.f32 %v10501_v53, %v14072_v10  ;;  %v12084_v10 = vld [vmem:[%s14482_s18 + $0x50] sm:$0xff]  }
0x395e   : > { %v12294_v59 = vpop.eup %12293 }
0x395f   : > { %v8290_v14 = vmul.f32 %v12294_v59, %v12290_v51 }
0x3961   : > { %v8291_v62 = vpack.c.bf16 %v8290_v14, %v8289_v60 }
0x3963   : > { %11690 = vmatmul.mubr.msk.bf16.vlgmr.msra.gmra.mxu0 %vm2237_vm13, %v8291_v62 }
0x3964   : > { %11700 = vmatpush3.bf16.xpose.msra.mxu0 %v8399_v23  ;;  %11701 = vmatprep.mubr.msk.bf16.mxu0 %vm12580_vm2, %v12578_v1 }
0x3965   : > { %11711 = vmatprep.subr.bf16.mxu0 %v12578_v1 }
0x396b   : > { %11702 = vmatmul.mubr.msk.bf16.vlgmr.msra.gmra.mxu0 %vm2185_vm7, %v8392_v12 }
0x396c   : > { %11713 = vmatprep.mubr.msk.bf16.mxu0 %vm12580_vm2, %v12578_v1 }
0x3a23   : > { %v8332_v20 = vpop.f32.mrf.mxu0 }
0x3a25   : > { %v11691_v9 = vpop.f32.mrf.mxu0 }
0x3a26   : > { %v8523_v9 = vsel %vm2442_vm15, %v10548_v18, 0 }
0x3a27   : > { %v8335_v13 = vpop.f32.mrf.mxu0  ;;  %11712 = vmatpush3.bf16.msra.mxu0 %v8523_v9 }
0x3a28   : > { %v8341_v35 = vpack.c.bf16 %v8335_v13, %v8332_v20  ;;  %11725 = vmatprep.subr.bf16.mxu0 %v12578_v1 }
0x3a29   : > { %v11692_v6 = vpop.f32.mrf.mxu0 }
0x3a2a   : > { %11696 = vmatmul.mubr.msk.bf16.vlgmr.msra.gmra.mxu1 %vm2185_vm7, %v8341_v35 }
0x3a2b   : > { %v8435_v15 = vpop.f32.mrf.mxu0  ;;  %11707 = vmatprep.mubr.msk.bf16.mxu1 %vm12580_vm2, %v12578_v1 }
0x3a2c   : > { %v8442_v61 = vmul.f32 0.35355338, %v8435_v15 }
0x3a2d   : > { %v11703_v16 = vpop.f32.mrf.mxu0 }
0x3a2e   : > { %v8444_v39 = vsel %vm13502_vm6, %v8442_v61, -1e+09 }
0x3a2f   : > { %v8438_v55 = vpop.f32.mrf.mxu0  ;;  %v8446_v45 = vsel %vm2237_vm13, %v8444_v39, -inf }
0x3a30   : > { %v8443_v3 = vmul.f32 0.35355338, %v8438_v55  ;;  %8447 = vmax.xlane.f32.xlu0 %v8446_v45  ;;  %v12085_v45 = vld [vmem:[%s14483_s0 + $0x58] sm:$0xff]  }
0x3a31   : > { %v11704_v17 = vpop.f32.mrf.mxu0 }
0x3a32   : > { %v8445_v47 = vsel %vm13511_vm3, %v8443_v3, -1e+09  ;;  %v12086_v3 = vld [vmem:[%s14483_s0 + $0x50] sm:$0xff]   ;;  %v12087_v17 = vld [vmem:[%s14484_s11 + $0xb8] sm:$0xff]   ;;  %s14502_s0 = sld [smem:[#allocation37_spill]]  ;;  %vm9324_vm3 = vcmask 31744  }
0x3a33   : > { %v8449_v50 = vsel %vm2237_vm13, %v8445_v47, -inf }
0x3a34   : > { %8450 = vmax.xlane.f32.xlu1 %v8449_v50 }
0x3a45   : > { %8469 = vrot.lane.b32.xlu1 %v14077_v58, %s14494_s9  ;;  %s14500_s9 = sld [smem:[#allocation36_spill]] }
0x3a49   : > { %8816 = vperm.xlu1 %12003, %v10584_v26  }
0x3a4d   : > { %8829 = vperm.xlu1 %12003, %v10585_v29   ;;  %v10551_v29 = vld [vmem:[%s14485_s16 + $0x5] ss:$0 sm:$0xff] }
0x3ab9   : > { %v8448_v40 = vpop.xlane.xlu0 %8447 }
0x3aba   : > { %v8452_v31 = vsub.f32 %v8444_v39, %v8448_v40 }
0x3abc   : > { %v8454_v37 = vmul.f32 1.442695, %v8452_v31 }
0x3abd   : > { %v8451_v52 = vpop.xlane.xlu1 %8450 }
0x3abe   : > { %12295 = vpow2.f32 %v8454_v37  ;;  %v8453_v5 = vsub.f32 %v8445_v47, %v8451_v52 }
0x3ac0   : > { %v8456_v7 = vmul.f32 1.442695, %v8453_v5 }
0x3ac1   : > { %v8470_v48 = vpop.permute.xlu1 %8469 }
0x3ac2   : > { %12297 = vpow2.f32 %v8456_v7  ;;  %11706 = vmatpush3.bf16.msra.mxu1 %v8470_v48  ;;  %v12088_v48 = vld [vmem:[%s14484_s11 + $0xb0] sm:$0xff]  }
0x3ac3   : > { %11717 = vmatprep.subr.bf16.mxu1 %v12578_v1 }
0x3ac5   : > { %v8817_v57 = vpop.permute.xlu1 %8816 }
0x3ac6   : > { %v8819_v59 = vmul.f32 %v8817_v57, %v7657_v30  ;;  %v8820_v60 = vmul.f32 %v8817_v57, %v7660_v42 }
0x3acb   : > { %v12296_v32 = vpop.eup %12295 }
0x3acc   : > { %v8458_v58 = vsel %vm2237_vm13, %v12296_v32, 0.0 }
0x3acd   : > { %8459 = vadd.xlane.f32.xlu0 %v8458_v58  ;;  %v12090_v58 = vld [vmem:[%s14484_s11 + $0xa0] sm:$0xff]  }
0x3acf   : > { %v12298_v33 = vpop.eup %12297 }
0x3ad0   : > { %v8461_v4 = vsel %vm2237_vm13, %v12298_v33, 0.0 }
0x3ad1   : > { %8462 = vadd.xlane.f32.xlu0 %v8461_v4 }
0x3ae7   : > { %8805 = vperm.xlu0 %12004, %v10583_v8   ;;  %v10567_v8 = vld [vmem:[%s14486_s1 + $0x5] ss:$0 sm:$0xff]  ;;  %s14503_s1 = sld [smem:[#allocation40_spill]] }
0x3aea   : > { %v8382_v34 = vpop.f32.mrf.mxu1 }
0x3aeb   : > { %v14180_v56 = vadd.f32 %v8382_v34, %v8208_v38  ;;  %8843 = vperm.xlu0 %12004, %v10586_v54  }
0x3aec   : > { %v11697_v24 = vpop.f32.mrf.mxu1 }
0x3aee   : > { %v8385_v43 = vpop.f32.mrf.mxu1 }
0x3aef   : > { %v14184_v46 = vadd.f32 %v8385_v43, %v8211_v41 }
0x3af0   : > { %v11698_v49 = vpop.f32.mrf.mxu1 }
0x3b56   : > { %v8460_v51 = vpop.xlane.xlu0 %8459 }
0x3b57   : > { %12299 = vrcp.f32 %v8460_v51  ;;  %v12091_v51 = vld [vmem:[%s14500_s9 + $0x8] sm:$0xff]  }
0x3b5a   : > { %v8463_v25 = vpop.xlane.xlu0 %8462 }
0x3b5b   : > { %12301 = vrcp.f32 %v8463_v25  ;;  %v12092_v25 = vld [vmem:[%s14500_s9] sm:$0xff]  }
0x3b62   : > { %v8806_v28 = vpop.permute.xlu0 %8805 }
0x3b63   : > { %v8808_v14 = vmul.f32 %v8806_v28, %v6528_v19  ;;  %v8809_v36 = vmul.f32 %v8806_v28, %v6531_v44  ;;  %v8830_v19 = vpop.permute.xlu1 %8829 }
0x3b64   : > { %v12300_v12 = vpop.eup %12299 }
0x3b65   : > { %v14192_v62 = vadd.f32 %v8819_v59, %v8808_v14  ;;  %v14194_v23 = vadd.f32 %v8820_v60, %v8809_v36  ;;  %v8466_v21 = vmul.f32 %v12300_v12, %v12296_v32  ;;  %v12089_v32 = vld [vmem:[%s14484_s11 + $0xa8] sm:$0xff]  }
0x3b66   : > { %v8844_v36 = vpop.permute.xlu0 %8843 }
0x3b68   : > { %v12302_v27 = vpop.eup %12301 }
0x3b69   : > { %v8467_v63 = vmul.f32 %v12302_v27, %v12298_v33 }
0x3b6b   : > { %v8468_v20 = vpack.c.bf16 %v8467_v63, %v8466_v21 }
0x3b6d   : > { %11708 = vmatmul.mubr.msk.bf16.vlgmr.msra.gmra.mxu1 %vm2237_vm13, %v8468_v20 }
0x3b6e   : > { %11718 = vmatpush3.bf16.msra.mxu1 %v12083_v22  ;;  %11721 = vmatprep.mubr.msk.bf16.mxu1 %vm12580_vm2, %v12578_v1 }
0x3b6f   : > { %11719 = vmatprep.subr.bf16.mxu1 %v12578_v1 }
0x3b72   : > { %11720 = vmatpush3.bf16.msra.mxu1 %v12084_v10  ;;  %v12093_v10 = vld [vmem:[%s14501_s8 + $0x8] sm:$0xff]  }
0x3b73   : > { %11733 = vmatprep.subr.bf16.mxu1 %v12578_v1 }
0x3b75   : > { %11722 = vmatmul.mubr.msk.bf16.vlgmr.msra.gmra.mxu1 %vm1798_vm4, %v13694_v0 }
0x3b76   : > { %11741 = vmatprep.mubr.msk.bf16.mxu1 %vm12580_vm2, %v12578_v1  ;;  %11734 = vmatpush3.bf16.msra.mxu1 %v12087_v17 }
0x3b77   : > { %11735 = vmatprep.subr.bf16.mxu1 %v12578_v1 }
0x3b7a   : > { %11736 = vmatpush3.bf16.msra.mxu1 %v12088_v48  ;;  %v12099_v48 = vld [vmem:[%s14506_s3 + $0x18] sm:$0xff]  }
0x3b7b   : > { %11737 = vmatprep.subr.bf16.mxu1 %v12578_v1 }
0x3b7e   : > { %11738 = vmatpush3.bf16.msra.mxu1 %v12089_v32  ;;  %v10595_v32 = vld [vmem:[%s14507_s5] ss:$0 sm:$0xff]  ;;  %s14510_s5 = sld [smem:[#allocation47_spill]] }
0x3b7f   : > { %11739 = vmatprep.subr.bf16.mxu1 %v12578_v1 }
0x3b82   : > { %11740 = vmatpush3.bf16.msra.mxu1 %v12090_v58 }
0x3b83   : > { %11761 = vmatprep.subr.bf16.mxu1 %v12578_v1 }
0x3c2d   : > { %v8509_v13 = vpop.f32.mrf.mxu1 }
0x3c2f   : > { %v11709_v35 = vpop.f32.mrf.mxu1 }
0x3c31   : > { %v8512_v6 = vpop.f32.mrf.mxu1 }
0x3c32   : > { %v8518_v15 = vpack.c.bf16 %v8512_v6, %v8509_v13 }
0x3c33   : > { %v11710_v61 = vpop.f32.mrf.mxu1 }
0x3c34   : > { %11714 = vmatmul.mubr.msk.bf16.vlgmr.msra.gmra.mxu0 %vm2185_vm7, %v8518_v15 }
0x3c35   : > { %v8635_v0 = vpop.f32.mrf.mxu1  ;;  %11729 = vmatprep.mubr.msk.bf16.mxu0 %vm12580_vm2, %v12578_v1  ;;  %11726 = vmatpush3.bf16.msra.mxu0 %v12085_v45  ;;  %v10591_v45 = vld [vmem:[%s14504_s2] ss:$0 sm:$0xff]  ;;  %s12585_s2 = smov 124  }
0x3c36   : > { %11727 = vmatprep.subr.bf16.mxu0 %v12578_v1 }
0x3c37   : > { %v11723_v16 = vpop.f32.mrf.mxu1 }
0x3c39   : > { %v8638_v39 = vpop.f32.mrf.mxu1  ;;  %11728 = vmatpush3.bf16.msra.mxu0 %v12086_v3 }
0x3c3a   : > { %11745 = vmatprep.subr.bf16.mxu0 %v12578_v1 }
0x3c3b   : > { %v11724_v55 = vpop.f32.mrf.mxu1 }
0x3c3c   : > { %v12096_v55 = vld [vmem:[%s14503_s1] sm:$0xff]  }
0x3cf4   : > { %v8559_v47 = vpop.f32.mrf.mxu0 }
0x3cf5   : > { %v8566_v26 = vadd.f32 %v8559_v47, %v14180_v56 }
0x3cf6   : > { %v11715_v50 = vpop.f32.mrf.mxu0 }
0x3cf7   : > { %v8576_v52 = vadd.f32 %v10551_v29, %v8566_v26 }
0x3cf8   : > { %v8562_v40 = vpop.f32.mrf.mxu0 }
0x3cf9   : > { %v8567_v31 = vadd.f32 %v8562_v40, %v14184_v46 }
0x3cfa   : > { %v11716_v37 = vpop.f32.mrf.mxu0 }
0x3cfb   : > { %v8577_v5 = vadd.f32 %v10551_v29, %v8567_v31 }
0x3cfd   : > { %v8583_v7 = vpack.c.bf16 %v8577_v5, %v8576_v52 }
0x3cff   : > { %11730 = vmatmul.mubr.msk.bf16.vlgmr.msra.gmra.mxu0 %vm1798_vm4, %v8583_v7 }
0x3d00   : > { %11749 = vmatprep.mubr.msk.bf16.mxu0 %vm12580_vm2, %v12578_v1  ;;  %11746 = vmatpush3.bf16.msra.mxu0 %v12091_v51 }
0x3d01   : > { %11747 = vmatprep.subr.bf16.mxu0 %v12578_v1 }
0x3d04   : > { %11748 = vmatpush3.bf16.msra.mxu0 %v12092_v25 }
0x3d05   : > { %11753 = vmatprep.subr.bf16.mxu0 %v12578_v1 }
0x3dbf   : > { %v8691_v33 = vpop.f32.mrf.mxu0 }
0x3dc0   : > { %v8692_v4 = vadd.f32 %v8691_v33, %v8635_v0 }
0x3dc1   : > { %v11731_v54 = vpop.f32.mrf.mxu0 }
0x3dc2   : > { %v8706_v34 = vadd.f32 %v10567_v8, %v8692_v4 }
0x3dc3   : > { %v8694_v38 = vpop.f32.mrf.mxu0 }
0x3dc4   : > { %v8695_v56 = vadd.f32 %v8694_v38, %v8638_v39  ;;  %v8708_v43 = vmax.f32 %v8706_v34, 0.0  ;;  %v12095_v39 = vld [vmem:[%s14503_s1 + $0x8] sm:$0xff]   ;;  %s14508_s1 = sld [smem:[#allocation46_spill]] }
0x3dc5   : > { %v11732_v24 = vpop.f32.mrf.mxu0 }
0x3dc6   : > { %v8707_v41 = vadd.f32 %v10567_v8, %v8695_v56 }
0x3dc8   : > { %v8709_v46 = vmax.f32 %v8707_v41, 0.0 }
0x3dca   : > { %v8719_v49 = vpack.c.bf16 %v8709_v46, %v8708_v43  ;;  %v12098_v24 = vld [vmem:[%s14508_s1] sm:$0xff]   ;;  %v12100_v43 = vld [vmem:[%s14506_s3 + $0x10] sm:$0xff]   ;;  %v12101_v46 = vld [vmem:[%s14506_s3 + $0x8] sm:$0xff]   ;;  %s14511_s1 = sld [smem:[#allocation51_spill]] }
0x3dcc   : > { %11742 = vmatmul.mubr.msk.bf16.vlgmr.msra.gmra.mxu1 %vm3066_vm0, %v8719_v49  ;;  %v12102_v49 = vld [vmem:[%s14506_s3] sm:$0xff]  }
0x3dcd   : > { %11765 = vmatprep.mubr.msk.bf16.mxu1 %vm12580_vm2, %v12578_v1  ;;  %11762 = vmatpush3.bf16.msra.mxu1 %v12095_v39 }
0x3dce   : > { %11763 = vmatprep.subr.bf16.mxu1 %v12578_v1 }
0x3dd1   : > { %11764 = vmatpush3.bf16.msra.mxu1 %v12096_v55 }
0x3dd2   : > { %11775 = vmatprep.subr.bf16.mxu1 %v12578_v1 }
0x3e8c   : > { %v8789_v53 = vpop.f32.mrf.mxu1 }
0x3e8d   : > { %v8790_v57 = vadd.f32 %v10577_v11, %v8789_v53 }
0x3e8e   : > { %v11743_v44 = vpop.f32.mrf.mxu1 }
0x3e8f   : > { %v8832_v30 = vmul.f32 %v8830_v19, %v8790_v57 }
0x3e90   : > { %v8792_v42 = vpop.f32.mrf.mxu1 }
0x3e91   : > { %v8834_v28 = vadd.f32 %v8832_v30, %v14192_v62  ;;  %v8793_v59 = vadd.f32 %v10577_v11, %v8792_v42  ;;  %v12094_v62 = vld [vmem:[%s14501_s8] sm:$0xff]  }
0x3e92   : > { %v11744_v60 = vpop.f32.mrf.mxu1  ;;  %v9270_v30 = vld [vmem:[%s14510_s5] sm:$0x3]  ;;  %s14514_s5 = sld [smem:[#allocation45_spill]] }
0x3e93   : > { %v8833_v14 = vmul.f32 %v8830_v19, %v8793_v59  ;;  %v8846_v12 = vadd.f32 %v8844_v36, %v8834_v28 }
0x3e95   : > { %v8835_v27 = vadd.f32 %v8833_v14, %v14194_v23  ;;  %v8848_v63 = vmax.f32 %v8846_v12, 0.0  ;;  %v10587_v23 = vld [vmem:[%s14502_s0] ss:$0 sm:$0xff]  ;;  %s14505_s0 = sld [smem:[#allocation42_spill]]  ;;  %v9328_v14 = vsel %vm1703_vm1, %v9270_v30, 0 }
0x3e97   : > { %v8847_v21 = vadd.f32 %v8844_v36, %v8835_v27 }
0x3e99   : > { %v8849_v22 = vmax.f32 %v8847_v21, 0.0  ;;  %v9450_v21 = vld [vmem:[%s14511_s1] sm:$0x3]  ;;  %s14515_s1 = sld [smem:[#allocation49_spill]] }
0x3e9b   : > { %v8854_v20 = vpack.c.bf16 %v8849_v22, %v8848_v63  ;;  %v12097_v7 = vld [vmem:[%s14505_s0] sm:$0xff]   ;;  %s14509_s0 = sld [smem:[#allocation43_spill]] }
0x3e9d   : > { %11750 = vmatmul.mubr.msk.bf16.vlgmr.msra.gmra.mxu0 %vm1798_vm4, %v8854_v20 }
0x3e9e   : > { %11757 = vmatprep.mubr.msk.bf16.mxu0 %vm12580_vm2, %v12578_v1  ;;  %11754 = vmatpush3.bf16.msra.mxu0 %v12093_v10 }
0x3e9f   : > { %11755 = vmatprep.subr.bf16.mxu0 %v12578_v1 }
0x3ea1   : > { %v10599_v51 = vld [vmem:[%s14509_s0] ss:$0 sm:$0xff]  ;;  %s14513_s0 = sld [smem:[#allocation54_spill]] }
0x3ea2   : > { %11756 = vmatpush3.bf16.msra.mxu0 %v12094_v62 }
0x3ea3   : > { %11769 = vmatprep.subr.bf16.mxu0 %v12578_v1 }
0x3ea7   : > { %v9577_v62 = vld [vmem:[%s14513_s0] sm:$0x7]  ;;  %s14517_s0 = sld [smem:[#allocation53_spill]] }
0x3f5d   : > { %v8911_v18 = vpop.f32.mrf.mxu0 }
0x3f5e   : > { %v8912_v13 = vadd.f32 %v10587_v23, %v8911_v18 }
0x3f5f   : > { %v11751_v9 = vpop.f32.mrf.mxu0 }
0x3f60   : > { %v8918_v61 = vmax.f32 %v8912_v13, 0.0  ;;  %v10602_v9 = vld [vmem:[%s14514_s5] ss:$0 sm:$0xff]  ;;  %s14518_s5 = sld [smem:[#allocation55_spill]] }
0x3f61   : > { %v8914_v35 = vpop.f32.mrf.mxu0 }
0x3f62   : > { %v8915_v6 = vadd.f32 %v10587_v23, %v8914_v35 }
0x3f63   : > { %v11752_v15 = vpop.f32.mrf.mxu0 }
0x3f64   : > { %v8919_v0 = vmax.f32 %v8915_v6, 0.0 }
0x3f66   : > { %v8924_v16 = vpack.c.bf16 %v8919_v0, %v8918_v61 }
0x3f68   : > { %11758 = vmatmul.mubr.msk.bf16.vlgmr.msra.gmra.mxu0 %vm1798_vm4, %v8924_v16 }
0x3f69   : > { %11771 = vmatprep.mubr.msk.bf16.mxu0 %vm12580_vm2, %v12578_v1  ;;  %11770 = vmatpush3.bf16.msra.mxu0 %v12097_v7  ;;  %v12103_v7 = vld [vmem:[%s14515_s1 + $0x8] sm:$0xff]  }
0x3f6a   : > { %11787 = vmatprep.subr.bf16.mxu0 %v12578_v1 }
0x4028   : > { %v8981_v3 = vpop.f32.mrf.mxu0 }
0x4029   : > { %v8982_v17 = vadd.f32 %v10591_v45, %v8981_v3 }
0x402a   : > { %v11759_v47 = vpop.f32.mrf.mxu0 }
0x402b   : > { %v8988_v26 = vadd.f32 %v8982_v17, %v8848_v63  ;;  %v9452_v63 = vsel %vm1703_vm1, %v9450_v21, 0 }
0x402c   : > { %v8984_v50 = vpop.f32.mrf.mxu0 }
0x402d   : > { %v8985_v29 = vadd.f32 %v10591_v45, %v8984_v50  ;;  %v8990_v37 = vmax.f32 %v8988_v26, 0.0 }
0x402e   : > { %v11760_v40 = vpop.f32.mrf.mxu0 }
0x402f   : > { %v8989_v31 = vadd.f32 %v8985_v29, %v8849_v22  ;;  %v9278_v22 = vsel %vm1703_vm1, 4294967295, %v12579_v2  ;;  %v10610_v2 = vld [vmem:[#allocation3] ss:$0 sm:$0xff]  ;;  %vm9273_vm1 = vcmask 39936  }
0x4030   : > { %v14296_v20 = vsel %vm9277_vm9, %v9278_v22, 0 }
0x4031   : > { %v8991_v52 = vmax.f32 %v8989_v31, 0.0  ;;  %v9579_v18 = vand.u32 %v9577_v62, %v14296_v20 }
0x4033   : > { %v8996_v5 = vpack.c.bf16 %v8991_v52, %v8990_v37 }
0x4035   : > { %11766 = vmatmul.mubr.msk.bf16.vlgmr.msra.gmra.mxu1 %vm1798_vm4, %v8996_v5 }
0x4036   : > { %11783 = vmatprep.mubr.msk.bf16.mxu1 %vm12580_vm2, %v12578_v1  ;;  %11776 = vmatpush3.bf16.msra.mxu1 %v12099_v48  ;;  %v12104_v48 = vld [vmem:[%s14515_s1] sm:$0xff]  }
0x4037   : > { %11777 = vmatprep.subr.bf16.mxu1 %v12578_v1 }
0x403a   : > { %11778 = vmatpush3.bf16.msra.mxu1 %v12100_v43 }
0x403b   : > { %11779 = vmatprep.subr.bf16.mxu1 %v12578_v1 }
0x403e   : > { %11780 = vmatpush3.bf16.msra.mxu1 %v12101_v46 }
0x403f   : > { %11781 = vmatprep.subr.bf16.mxu1 %v12578_v1 }
0x4042   : > { %11782 = vmatpush3.bf16.msra.mxu1 %v12102_v49 }
0x4043   : > { %11799 = vmatprep.subr.bf16.mxu1 %v12578_v1 }
0x40f5   : > { %v9053_v58 = vpop.f32.mrf.mxu1 }
0x40f6   : > { %v9054_v4 = vadd.f32 %v10595_v32, %v9053_v58 }
0x40f7   : > { %v11767_v33 = vpop.f32.mrf.mxu1 }
0x40f8   : > { %v9060_v34 = vmax.f32 %v9054_v4, 0.0  ;;  %v10613_v4 = vld [vmem:[#allocation5] ss:$0 sm:$0xff] }
0x40f9   : > { %v9056_v8 = vpop.f32.mrf.mxu1 }
0x40fa   : > { %v9057_v54 = vadd.f32 %v10595_v32, %v9056_v8 }
0x40fb   : > { %v11768_v38 = vpop.f32.mrf.mxu1 }
0x40fc   : > { %v9061_v56 = vmax.f32 %v9057_v54, 0.0 }
0x40fe   : > { %v9064_v41 = vpack.c.bf16 %v9061_v56, %v9060_v34 }
0x4100   : > { %9623 = vrot.lane.b32.xlu1 %v9064_v41, %s12585_s2  ;;  %11772 = vmatmul.mubr.msk.bf16.vlgmr.msra.gmra.mxu0 %vm2237_vm13, %v9064_v41  ;;  %s14512_s2 = sld [smem:[#allocation48_spill]] }
0x4101   : > { %11788 = vmatpush3.bf16.msra.mxu0 %v12098_v24  ;;  %11789 = vmatprep.mubr.msk.bf16.mxu0 %vm12580_vm2, %v12578_v1 }
0x4102   : > { %11793 = vmatprep.subr.bf16.mxu0 %v12578_v1 }
0x4106   : > { %v9271_v10 = vld [vmem:[%s14512_s2] sm:$0x7]  ;;  %s14516_s2 = sld [smem:[#allocation52_spill]] }
0x4107   : > { %v9281_v23 = vand.u32 %v14296_v20, %v9271_v10 }
0x4108   : > { %11790 = vmatmul.mubr.msk.bf16.vlgmr.msra.gmra.mxu0 %vm2237_vm13, %v9064_v41 }
0x4109   : > { %11795 = vmatprep.mubr.msk.bf16.mxu0 %vm12580_vm2, %v12578_v1  ;;  %11794 = vmatpush3.bf16.msra.mxu0 %v9281_v23 }
0x410a   : > { %11805 = vmatprep.subr.bf16.mxu0 %v12578_v1 }
0x410c   : > { %v9497_v49 = vld [vmem:[%s14516_s2] sm:$0x7]  ;;  %s12586_s2 = smov 8  }
0x41c0   : > { %v9115_v25 = vpop.f32.mrf.mxu0 }
0x41c1   : > { %v9116_v53 = vadd.f32 %v10599_v51, %v9115_v25 }
0x41c2   : > { %v11773_v11 = vpop.f32.mrf.mxu0 }
0x41c3   : > { %v9122_v42 = vmax.f32 %v9116_v53, 0.0  ;;  %v9499_v11 = vand.u32 %v9497_v49, %v14296_v20 }
0x41c4   : > { %v9118_v57 = vpop.f32.mrf.mxu0 }
0x41c5   : > { %v9119_v19 = vadd.f32 %v10599_v51, %v9118_v57  ;;  %v12105_v57 = vld [vmem:[%s14517_s0] sm:$0x3f]   ;;  %s10637_s0 = sshll.u32 %s14524_s4, 4 }
0x41c6   : > { %v11774_v44 = vpop.f32.mrf.mxu0  ;;  %s1673_s1 = scalar_lea.vmem %s12854_s24, %s10637_s0 }
0x41c7   : > { %v9123_v28 = vmax.f32 %v9119_v19, 0.0  ;;  %v9636_v19 = vsel %vm9634_vm11, %v12105_v57, 0  ;;  %v12106_v44 = vld [vmem:[%s12839_s7] sm:$0x3f]   ;;  %v12312_v57 = vld [vmem:[%s13049_s22 + $0x18] sm:$0xff] }
0x41c8   : > { %v9250_v59 = vpop.f32.mrf.mxu0  ;;  %v9782_v30 = vsel %vm9634_vm11, %v12106_v44, 0 }
0x41c9   : > { %v9132_v60 = vpack.c.bf16 %v9123_v28, %v9122_v42  ;;  %v9624_v42 = vpop.permute.xlu1 %9623  ;;  %v9827_v28 = vld [vmem:[%s12844_s6] sm:$0x7] }
0x41ca   : > { %v11791_v36 = vpop.f32.mrf.mxu0 }
0x41cb   : > { %11784 = vmatmul.mubr.msk.bf16.vlgmr.msra.gmra.mxu1 %vm3066_vm0, %v9132_v60  ;;  %v12107_v60 = vld [vmem:[%s14518_s5 + $0x18] sm:$0xff]   ;;  %v12109_v36 = vld [vmem:[%s14518_s5 + $0x8] sm:$0xff]  }
0x41cc   : > { %v9253_v12 = vpop.f32.mrf.mxu0  ;;  %11800 = vmatpush3.bf16.msra.mxu1 %v9328_v14  ;;  %11801 = vmatprep.mubr.msk.bf16.mxu1 %vm12580_vm2, %v12578_v1  ;;  %v12108_v14 = vld [vmem:[%s14518_s5 + $0x10] sm:$0xff]  }
0x41cd   : > { %11813 = vmatprep.subr.bf16.mxu1 %v12578_v1 }
0x41ce   : > { %v11792_v27 = vpop.f32.mrf.mxu0 }
0x41cf   : > { %v10614_v27 = vld [vmem:[#allocation7] ss:$0 sm:$0xff] }
0x41d3   : > { %11802 = vmatmul.mubr.msk.bf16.vlgmr.msra.gmra.mxu1 %vm9324_vm3, %v9064_v41 }
0x41d4   : > { %11814 = vmatpush3.bf16.msra.mxu1 %v9452_v63  ;;  %11815 = vmatprep.mubr.msk.bf16.mxu1 %vm12580_vm2, %v12578_v1 }
0x41d5   : > { %11825 = vmatprep.subr.bf16.mxu1 %v12578_v1 }
0x41db   : > { %11816 = vmatmul.mubr.msk.bf16.vlgmr.msra.gmra.mxu1 %vm9324_vm3, %v9064_v41 }
0x41dc   : > { %11827 = vmatprep.mubr.msk.bf16.mxu1 %vm12580_vm2, %v12578_v1  ;;  %11826 = vmatpush3.bf16.msra.mxu1 %v9579_v18 }
0x41dd   : > { %11837 = vmatprep.subr.bf16.mxu1 %v12578_v1 }
0x428b   : > { %v9201_v13 = vpop.f32.mrf.mxu1 }
0x428c   : > { %v9202_v35 = vadd.f32 %v10602_v9, %v9201_v13 }
0x428d   : > { %v11785_v6 = vpop.f32.mrf.mxu1 }
0x428e   : > { %v9257_v15 = vadd.f32 %v9250_v59, %v9202_v35  ;;  %v9829_v59 = vand.u32 %v9827_v28, %v14296_v20 }
0x428f   : > { %v9204_v61 = vpop.f32.mrf.mxu1 }
0x4290   : > { %v9205_v0 = vadd.f32 %v10602_v9, %v9204_v61  ;;  %v14305_v39 = vadd.f32 %v10610_v2, %v9257_v15  ;;  %v10620_v9 = vld [vmem:[#allocation8] ss:$0 sm:$0xff] }
0x4291   : > { %v11786_v16 = vpop.f32.mrf.mxu1 }
0x4292   : > { %v9258_v55 = vadd.f32 %v9253_v12, %v9205_v0  ;;  %v9268_v47 = vmax.f32 %v14305_v39, 0.0  ;;  %v12110_v12 = vld [vmem:[%s14518_s5] sm:$0xff]  }
0x4293   : > { %v9364_v45 = vpop.f32.mrf.mxu1 }
0x4294   : > { %v14307_v3 = vadd.f32 %v10610_v2, %v9258_v55 }
0x4295   : > { %v11803_v17 = vpop.f32.mrf.mxu1 }
0x4296   : > { %v9269_v50 = vmax.f32 %v14307_v3, 0.0 }
0x4297   : > { %v9367_v26 = vpop.f32.mrf.mxu1 }
0x4298   : > { %v9272_v29 = vpack.c.bf16 %v9269_v50, %v9268_v47  ;;  %v10624_v47 = vld [vmem:[#allocation10] ss:$0 sm:$0xff] }
0x4299   : > { %v11804_v40 = vpop.f32.mrf.mxu1 }
0x429a   : > { %11796 = vmatmul.mubr.msk.bf16.vlgmr.msra.gmra.mxu0 %vm9273_vm1, %v9272_v29  ;;  %11828 = vmatmul.mubr.msk.bf16.vlgmr.msra.gmra.mxu1 %vm9273_vm1, %v9272_v29 }
0x429b   : > { %v14313_v31 = vpop.f32.mrf.mxu1  ;;  %11809 = vmatprep.mubr.msk.bf16.mxu0 %vm12580_vm2, %v12578_v1  ;;  %11845 = vmatprep.mubr.msk.bf16.mxu1 %vm12580_vm2, %v12578_v1 }
0x429c   : > { %11806 = vmatpush3.bf16.msra.mxu0 %v12103_v7  ;;  %11838 = vmatpush3.bf16.msra.mxu1 %v12107_v60 }
0x429d   : > { %v11817_v37 = vpop.f32.mrf.mxu1  ;;  %11807 = vmatprep.subr.bf16.mxu0 %v12578_v1  ;;  %11839 = vmatprep.subr.bf16.mxu1 %v12578_v1 }
0x429f   : > { %v14319_v52 = vpop.f32.mrf.mxu1 }
0x42a0   : > { %11808 = vmatpush3.bf16.msra.mxu0 %v12104_v48  ;;  %11840 = vmatpush3.bf16.msra.mxu1 %v12108_v14 }
0x42a1   : > { %v11818_v5 = vpop.f32.mrf.mxu1  ;;  %11819 = vmatprep.subr.bf16.mxu0 %v12578_v1  ;;  %11841 = vmatprep.subr.bf16.mxu1 %v12578_v1 }
0x42a4   : > { %11842 = vmatpush3.bf16.msra.mxu1 %v12109_v36 }
0x42a5   : > { %11843 = vmatprep.subr.bf16.mxu1 %v12578_v1 }
0x42a8   : > { %11844 = vmatpush3.bf16.msra.mxu1 %v12110_v12 }
0x435a   : > { %v9317_v32 = vpop.f32.mrf.mxu0  ;;  %v14325_v58 = vpop.f32.mrf.mxu1 }
0x435b   : > { %v9365_v33 = vadd.f32 %v9364_v45, %v9317_v32 }
0x435c   : > { %v11797_v8 = vpop.f32.mrf.mxu0  ;;  %v11829_v54 = vpop.f32.mrf.mxu1 }
0x435d   : > { %v9378_v56 = vadd.f32 %v10613_v4, %v9365_v33  ;;  %v12311_v54 = vld [vmem:[%s13049_s22 + $0x10] sm:$0xff]  ;;  %s12587_s22 = smov 5  }
0x435e   : > { %v9320_v38 = vpop.f32.mrf.mxu0  ;;  %v14327_v34 = vpop.f32.mrf.mxu1 }
0x435f   : > { %v9368_v24 = vadd.f32 %v9367_v26, %v9320_v38  ;;  %v9380_v51 = vmax.f32 %v9378_v56, 0.0 }
0x4360   : > { %v11798_v41 = vpop.f32.mrf.mxu0  ;;  %v11830_v43 = vpop.f32.mrf.mxu1 }
0x4361   : > { %v9379_v46 = vadd.f32 %v10613_v4, %v9368_v24 }
0x4363   : > { %v9381_v25 = vmax.f32 %v9379_v46, 0.0 }
0x4365   : > { %v9386_v53 = vpack.c.bf16 %v9381_v25, %v9380_v51 }
0x4367   : > { %11810 = vmatmul.mubr.msk.bf16.vlgmr.msra.gmra.mxu0 %vm1798_vm4, %v9386_v53  ;;  %vm9630_vm4 = vcmask 97280  }
0x4368   : > { %11820 = vmatpush3.bf16.msra.mxu0 %v9499_v11  ;;  %11821 = vmatprep.mubr.msk.bf16.mxu0 %vm12580_vm2, %v12578_v1 }
0x4369   : > { %11831 = vmatprep.subr.bf16.mxu0 %v12578_v1 }
0x436f   : > { %11822 = vmatmul.mubr.msk.bf16.vlgmr.msra.gmra.mxu0 %vm9273_vm1, %v9272_v29 }
0x4370   : > { %11832 = vmatpush3.bf16.msra.mxu0 %v9636_v19  ;;  %11833 = vmatprep.mubr.msk.bf16.mxu0 %vm12580_vm2, %v12578_v1  ;;  %v10625_v19 = vld [vmem:[#allocation11] ss:$0 sm:$0xff] }
0x4371   : > { %11849 = vmatprep.subr.bf16.mxu0 %v12578_v1 }
0x4377   : > { %11834 = vmatmul.mubr.msk.bf16.vlgmr.msra.gmra.mxu0 %vm9630_vm4, %v9624_v42 }
0x4378   : > { %11850 = vmatpush3.bf16.msra.mxu0 %v9782_v30  ;;  %11851 = vmatprep.mubr.msk.bf16.mxu0 %vm12580_vm2, %v12578_v1 }
0x4379   : > { %11855 = vmatprep.subr.bf16.mxu0 %v12578_v1 }
0x437f   : > { %11852 = vmatmul.mubr.msk.bf16.vlgmr.msra.gmra.mxu0 %vm9630_vm4, %v9624_v42 }
0x4380   : > { %11856 = vmatpush3.bf16.msra.mxu0 %v9829_v59  ;;  %11857 = vmatprep.mubr.msk.bf16.mxu0 %vm12580_vm2, %v12578_v1  ;;  %vm14519_vm2 = vcmask 23552   ;;  %v10634_v59 = vld [vmem:[#allocation13] ss:$0 sm:$0xff] }
0x4381   : > { %vm14520_vm13 = vmmov %vm14519_vm2 }
0x4382   : > { %vm14521_vm14 = vmmov %vm14519_vm2 }
0x4383   : > { %vm14522_vm15 = vmmov %vm14519_vm2 }
0x4387   : > { %11858 = vmatmul.mubr.msk.bf16.vlgmr.msra.gmra.mxu0 %vm9273_vm1, %v9272_v29 }
0x4427   : > { %v9443_v21 = vpop.f32.mrf.mxu0 }
0x4428   : > { %v9444_v22 = vadd.f32 %v10614_v27, %v9443_v21 }
0x4429   : > { %v11811_v63 = vpop.f32.mrf.mxu0 }
0x442a   : > { %v9495_v23 = vadd.f32 %v14313_v31, %v9444_v22 }
0x442b   : > { %v9446_v20 = vpop.f32.mrf.mxu0 }
0x442c   : > { %v9447_v62 = vadd.f32 %v10614_v27, %v9446_v20 }
0x442d   : > { %v11812_v10 = vpop.f32.mrf.mxu0 }
0x442e   : > { %v9496_v15 = vadd.f32 %v14319_v52, %v9447_v62 }
0x442f   : > { %v9535_v18 = vpop.f32.mrf.mxu0 }
0x4430   : > { %v9542_v13 = vadd.f32 %v9535_v18, %v9495_v23 }
0x4431   : > { %v11823_v35 = vpop.f32.mrf.mxu0 }
0x4432   : > { %v9551_v6 = vadd.f32 %v10620_v9, %v9542_v13 }
0x4433   : > { %v9538_v2 = vpop.f32.mrf.mxu0 }
0x4434   : > { %v9543_v1 = vadd.f32 %v9538_v2, %v9496_v15  ;;  %v9553_v61 = vsel %vm14519_vm2, %v9551_v6, -inf }
0x4435   : > { %9554 = vmax.xlane.f32.xlu0 %v9553_v61  ;;  %v11824_v0 = vpop.f32.mrf.mxu0 }
0x4436   : > { %v9552_v16 = vadd.f32 %v10620_v9, %v9543_v1 }
0x4437   : > { %v9672_v55 = vpop.f32.mrf.mxu0 }
0x4438   : > { %v9673_v45 = vadd.f32 %v9672_v55, %v14325_v58  ;;  %v9556_v17 = vsel %vm14520_vm13, %v9552_v16, -inf }
0x4439   : > { %9557 = vmax.xlane.f32.xlu1 %v9556_v17  ;;  %v11835_v50 = vpop.f32.mrf.mxu0 }
0x443a   : > { %v9686_v29 = vadd.f32 %v10624_v47, %v9673_v45 }
0x443b   : > { %v9675_v26 = vpop.f32.mrf.mxu0 }
0x443c   : > { %v9676_v40 = vadd.f32 %v9675_v26, %v14327_v34  ;;  %v9688_v5 = vmax.f32 %v9686_v29, 0.0 }
0x443d   : > { %v11836_v31 = vpop.f32.mrf.mxu0 }
0x443e   : > { %v9687_v37 = vadd.f32 %v10624_v47, %v9676_v40 }
0x443f   : > { %v9818_v52 = vpop.f32.mrf.mxu0 }
0x4440   : > { %v9689_v7 = vmax.f32 %v9687_v37, 0.0 }
0x4441   : > { %v11853_v48 = vpop.f32.mrf.mxu0 }
0x4442   : > { %v9698_v32 = vpack.c.bf16 %v9689_v7, %v9688_v5 }
0x4443   : > { %v9821_v33 = vpop.f32.mrf.mxu0 }
0x4444   : > { %11846 = vmatmul.mubr.msk.bf16.vlgmr.msra.gmra.mxu1 %vm3066_vm0, %v9698_v32  ;;  %vm9919_vm0 = vcmask 138240  }
0x4445   : > { %v11854_v58 = vpop.f32.mrf.mxu0 }
0x4447   : > { %v9865_v4 = vpop.f32.mrf.mxu0 }
0x4449   : > { %v11859_v8 = vpop.f32.mrf.mxu0 }
0x444a   : > { %9885 = vperm.xlu1 %12003, %v12311_v54  }
0x444b   : > { %v9868_v38 = vpop.f32.mrf.mxu0 }
0x444d   : > { %v11860_v56 = vpop.f32.mrf.mxu0 }
0x44be   : > { %v9555_v24 = vpop.xlane.xlu0 %9554 }
0x44bf   : > { %v9559_v34 = vsub.f32 %v9551_v6, %v9555_v24 }
0x44c1   : > { %v9561_v41 = vmul.f32 1.442695, %v9559_v34 }
0x44c2   : > { %v9558_v43 = vpop.xlane.xlu1 %9557 }
0x44c3   : > { %12303 = vpow2.f32 %v9561_v41  ;;  %v9560_v46 = vsub.f32 %v9552_v16, %v9558_v43 }
0x44c5   : > { %v9563_v49 = vmul.f32 1.442695, %v9560_v46 }
0x44c6   : > { %v9886_v63 = vpop.permute.xlu1 %9885 }
0x44c7   : > { %12305 = vpow2.f32 %v9563_v49  ;;  %v9893_v61 = vmul.f32 %v9886_v63, %v14305_v39 }
0x44d0   : > { %v12304_v51 = vpop.eup %12303 }
0x44d1   : > { %v9565_v25 = vsel %vm14521_vm14, %v12304_v51, 0.0 }
0x44d2   : > { %9566 = vadd.xlane.f32.xlu0 %v9565_v25 }
0x44d4   : > { %v12306_v11 = vpop.eup %12305 }
0x44d5   : > { %v9568_v53 = vsel %vm14522_vm15, %v12306_v11, 0.0 }
0x44d6   : > { %9569 = vadd.xlane.f32.xlu0 %v9568_v53 }
0x44ec   : > { %9890 = vperm.xlu0 %12004, %v12312_v57  }
0x4504   : > { %v9767_v44 = vpop.f32.mrf.mxu1 }
0x4505   : > { %v9768_v30 = vadd.f32 %v10625_v19, %v9767_v44 }
0x4506   : > { %v11847_v42 = vpop.f32.mrf.mxu1 }
0x4507   : > { %v9825_v28 = vadd.f32 %v9818_v52, %v9768_v30 }
0x4508   : > { %v9770_v60 = vpop.f32.mrf.mxu1 }
0x4509   : > { %v9872_v14 = vadd.f32 %v9865_v4, %v9825_v28  ;;  %v9771_v36 = vadd.f32 %v10625_v19, %v9770_v60 }
0x450a   : > { %v11848_v12 = vpop.f32.mrf.mxu1 }
0x450b   : > { %v9881_v27 = vadd.f32 %v10634_v59, %v9872_v14  ;;  %v9826_v21 = vadd.f32 %v9821_v33, %v9771_v36 }
0x450d   : > { %v9873_v22 = vadd.f32 %v9868_v38, %v9826_v21  ;;  %v9897_v20 = vmul.f32 %v9886_v63, %v9881_v27 }
0x450f   : > { %9909 = vrot.lane.b32.xlu0 %v9897_v20, %s12586_s2  ;;  %v9882_v10 = vadd.f32 %v10634_v59, %v9873_v22 }
0x455b   : > { %v9567_v62 = vpop.xlane.xlu0 %9566 }
0x455c   : > { %12307 = vrcp.f32 %v9567_v62 }
0x455f   : > { %v9570_v23 = vpop.xlane.xlu0 %9569 }
0x4560   : > { %12309 = vrcp.f32 %v9570_v23 }
0x4567   : > { %v9891_v15 = vpop.permute.xlu0 %9890 }
0x4568   : > { %v9898_v1 = vmul.f32 %v9891_v15, %v9882_v10  ;;  %v9894_v50 = vmul.f32 %v9891_v15, %v14307_v3 }
0x4569   : > { %v12308_v18 = vpop.eup %12307 }
0x456a   : > { %v9573_v9 = vmul.f32 %v12308_v18, %v12304_v51 }
0x456c   : > { %v9895_v13 = vmul.f32 %v9886_v63, %v9573_v9 }
0x456d   : > { %v12310_v35 = vpop.eup %12309 }
0x456e   : > { %v9574_v6 = vmul.f32 %v12310_v35, %v12306_v11  ;;  %9901 = vrot.lane.b32.xlu1 %v9895_v13, %s12587_s22 }
0x4570   : > { %v9896_v2 = vmul.f32 %v9891_v15, %v9574_v6 }
0x4572   : > { %9903 = vrot.lane.b32.xlu1 %v9896_v2, %s12587_s22 }
0x4576   : > { %9911 = vrot.lane.b32.xlu1 %v9898_v1, %s12586_s2 }
0x4581   : > { %v9910_v16 = vpop.permute.xlu0 %9909 }
0x45e0   : > { %v9902_v0 = vpop.permute.xlu1 %9901 }
0x45e1   : > { %v9915_v55 = vsel %vm9273_vm1, %v9893_v61, %v9902_v0 }
0x45e2   : > { %v9917_v45 = vsel %vm2185_vm7, %v9915_v55, %v9910_v16 }
0x45e3   : > { %v9920_v17 = vsel %vm9919_vm0, %v9917_v45, 0.0 }
0x45e4   : > { %v9904_v47 = vpop.permute.xlu1 %9903  ;;  %9922 = vst [vmem:[%s1673_s1] sm:$0xff] %v9920_v17 }
0x45e5   : > { %v9916_v26 = vsel %vm9273_vm1, %v9894_v50, %v9904_v47 }
0x45e8   : > { %v9912_v29 = vpop.permute.xlu1 %9911 }
0x45e9   : > { %v9918_v40 = vsel %vm2185_vm7, %v9916_v26, %v9912_v29 }
0x45ea   : > { %v9921_v31 = vsel %vm9919_vm0, %v9918_v40, 0.0 }
0x45eb   : > { %9923 = vst [vmem:[%s1673_s1 + $0x8] sm:$0xff] %v9921_v31 }
0x45ec PF: > { %s121_s20 = sadd.s32 1, %s12517_s20  }
0x45ed   : > { %p118_p10 = scmp.ge.s32.totalorder %s121_s20, 4  }
0x45ef   :  { %120 = sbr.rel (!%p118_p10) target bundleno = 101 (0x65), region = 428 }
0x45f4   :  { %9945 = vsyncpa [#allocation4], 1 }
0x45f5   :  { %9947 = vsyncpa [#allocation4 + $0x1], 1 }
0x45f6   :  { %9948 = vsyncpa [#allocation6], 1 }
0x45f7   :  { %9949 = vsyncpa [#allocation9], 1 }
0x45f8   :  { %9950 = vsyncpa [#allocation12], 1 }

</bundles_post_ra>
